<compile_context>
chip_gen: v5e
topology: v5e:2x2
jax: 0.10.0
libtpu: 0.0.40
codegen_flags: <defaults>
</compile_context>

<pallas_src>
import functools

import jax
import jax.numpy as jnp
import numpy as np
from jax import lax
from jax.experimental import pallas as pl
from jax.experimental.pallas import tpu as pltpu

HIDDEN1 = 2096          # layer-1 width (as in the PyTorch module)
HIDDEN2 = 1024          # layer-2 width
K_PAD = 2176            # HIDDEN1 padded to 17*128 (minimal lane-aligned pad)
LANE = 128
SUBLANE = 8


def _round_up(x, m):
    return (x + m - 1) // m * m


def _actor_kernel(x_ref, w1_ref, b1_ref, w2_ref, b2_ref, w3_ref, b3_ref,
                  out_ref, *, num_action: int, batch: int, softmax_dim: int):
    """Single-invocation forward: all weights resident in VMEM.

      h1     = relu(x  @ W1 + b1)        (Bp, K_PAD)   bf16 in, f32 acc
      h2     = relu(h1 @ W2 + b2)        (Bp, 1024)
      logits =       h2 @ W3 + b3        (Bp, n_pad)
      prob   = softmax(masked logits, axis=softmax_dim)

    Padded W1 columns / W2 rows / b1 entries are zero, so padded h1 lanes are
    exactly 0 and contribute nothing.  Padded batch rows and padded logit
    columns are masked with a finite large-negative so both softmax axes stay
    exact for the real rows/columns (which the wrapper slices out).
    """
    x_bf = x_ref[...].astype(jnp.bfloat16)

    h1 = jnp.dot(x_bf, w1_ref[...], preferred_element_type=jnp.float32)
    h1 = jnp.maximum(h1 + b1_ref[...], 0.0)

    h2 = jnp.dot(h1.astype(jnp.bfloat16), w2_ref[...],
                 preferred_element_type=jnp.float32)
    h2 = jnp.maximum(h2 + b2_ref[...], 0.0)

    logits = jnp.dot(h2.astype(jnp.bfloat16), w3_ref[...],
                     preferred_element_type=jnp.float32) + b3_ref[...]

    # Mask padded rows (batch pad) and padded columns (action pad).  Finite
    # large-negative (not -inf) so all-masked slices give uniform junk instead
    # of inf-inf NaNs; the wrapper slices junk away.
    row = lax.broadcasted_iota(jnp.int32, logits.shape, 0)
    col = lax.broadcasted_iota(jnp.int32, logits.shape, 1)
    valid = (row < batch) & (col < num_action)
    logits = jnp.where(valid, logits, -1e30)

    m = jnp.max(logits, axis=softmax_dim, keepdims=True)
    e = jnp.exp(logits - m)
    s = jnp.sum(e, axis=softmax_dim, keepdims=True)
    out_ref[...] = e / s


def init_actor_params(key, state_dim: int, num_action: int):
    """f32 params, same math as PyTorch (W stored transposed: (in, out))."""
    keys = jax.random.split(key, 6)

    def lin(kw, kb, fan_in, fan_out):
        bound = 1.0 / np.sqrt(fan_in)
        w = jax.random.uniform(kw, (fan_in, fan_out), jnp.float32, -bound, bound)
        b = jax.random.uniform(kb, (1, fan_out), jnp.float32, -bound, bound)
        return w, b

    w1, b1 = lin(keys[0], keys[1], state_dim, HIDDEN1)
    w2, b2 = lin(keys[2], keys[3], HIDDEN1, HIDDEN2)
    w3, b3 = lin(keys[4], keys[5], HIDDEN2, num_action)
    return (w1, b1, w2, b2, w3, b3)


def pack_actor_params(params):
    """One-time packing: zero-pad to TPU-friendly shapes, cast weights to bf16."""
    w1, b1, w2, b2, w3, b3 = params
    state_dim = w1.shape[0]
    num_action = w3.shape[1]
    n_pad = max(LANE, _round_up(num_action, LANE))

    w1p = jnp.zeros((state_dim, K_PAD), jnp.bfloat16).at[:, :HIDDEN1].set(
        w1.astype(jnp.bfloat16))
    b1p = jnp.zeros((1, K_PAD), jnp.float32).at[:, :HIDDEN1].set(b1)
    w2p = jnp.zeros((K_PAD, HIDDEN2), jnp.bfloat16).at[:HIDDEN1, :].set(
        w2.astype(jnp.bfloat16))
    b2p = b2.astype(jnp.float32)
    w3p = jnp.zeros((HIDDEN2, n_pad), jnp.bfloat16).at[:, :num_action].set(
        w3.astype(jnp.bfloat16))
    b3p = jnp.zeros((1, n_pad), jnp.float32).at[:, :num_action].set(b3)
    return (w1p, b1p, w2p, b2p, w3p, b3p), num_action


@functools.partial(jax.jit, static_argnames=("num_action", "softmax_dim"))
def actor_forward(x, packed_params, *, num_action: int, softmax_dim: int = 0):
    """Pallas wrapper matching Actor.forward(x, softmax_dim)."""
    w1, b1, w2, b2, w3, b3 = packed_params
    batch, state_dim = x.shape
    n_pad = w3.shape[1]

    # Pad batch (sublane) dim to a multiple of 8: avoids masked partial stores
    # and quarter-filled vregs / MXU passes.
    b_pad = max(SUBLANE, _round_up(batch, SUBLANE))
    x_pad = jnp.zeros((b_pad, state_dim), x.dtype).at[:batch, :].set(x)

    kernel = functools.partial(_actor_kernel, num_action=num_action,
                               batch=batch, softmax_dim=softmax_dim)

    weight_bytes = (w1.size + w2.size + w3.size) * 2          # bf16
    bias_bytes = (b1.size + b2.size + b3.size) * 4            # f32
    io_bytes = (x_pad.size + b_pad * n_pad) * 4               # f32 x + out
    cost = pl.CostEstimate(
        flops=2 * b_pad * (state_dim * K_PAD + K_PAD * HIDDEN2 + HIDDEN2 * n_pad),
        transcendentals=b_pad * n_pad,                         # exp in softmax
        bytes_accessed=weight_bytes + bias_bytes + io_bytes,
    )

    out_padded = pl.pallas_call(
        kernel,
        out_shape=jax.ShapeDtypeStruct((b_pad, n_pad), jnp.float32),
        grid_spec=pltpu.PrefetchScalarGridSpec(
            num_scalar_prefetch=0,
            grid=(1,),                                        # single step: ~5 MB resident
            in_specs=[
                pl.BlockSpec((b_pad, state_dim), lambda i: (0, 0)),   # x
                pl.BlockSpec((state_dim, K_PAD), lambda i: (0, 0)),   # W1
                pl.BlockSpec((1, K_PAD), lambda i: (0, 0)),           # b1
                pl.BlockSpec((K_PAD, HIDDEN2), lambda i: (0, 0)),     # W2 (dominant stream)
                pl.BlockSpec((1, HIDDEN2), lambda i: (0, 0)),         # b2
                pl.BlockSpec((HIDDEN2, n_pad), lambda i: (0, 0)),     # W3
                pl.BlockSpec((1, n_pad), lambda i: (0, 0)),           # b3
            ],
            out_specs=pl.BlockSpec((b_pad, n_pad), lambda i: (0, 0)),
        ),
        compiler_params=pltpu.CompilerParams(
            dimension_semantics=("arbitrary",),
            vmem_limit_bytes=32 << 20,   # fits v5e/v6e/v7x (v7x phys = 64 MiB)
        ),
        cost_estimate=cost,
    )(x_pad, w1, b1, w2, b2, w3, b3)

    return out_padded[:batch, :num_action]


def actor_forward_ref(x, params, softmax_dim: int = 0):
    """Pure-JAX reference mirroring the kernel's bf16-weight / f32-accum math."""
    w1, b1, w2, b2, w3, b3 = params

    def lin(a, w, b):
        return jnp.dot(a.astype(jnp.bfloat16), w.astype(jnp.bfloat16),
                       preferred_element_type=jnp.float32) + b

    h1 = jax.nn.relu(lin(x, w1, b1))
    h2 = jax.nn.relu(lin(h1, w2, b2))
    logits = lin(h2, w3, b3)
    return jax.nn.softmax(logits, axis=softmax_dim)


if __name__ == "__main__":
    state_dim = 32
    num_action = 6
    batch = 4

    key = jax.random.PRNGKey(0)
    k_param, k_x = jax.random.split(key)

    params = init_actor_params(k_param, state_dim, num_action)
    packed, _ = pack_actor_params(params)
    x = jax.random.normal(k_x, (batch, state_dim), dtype=jnp.float32)

    # softmax over the action axis (same as Actor.forward(x, softmax_dim=1)).
    prob = actor_forward(x, packed, num_action=num_action, softmax_dim=1)
    prob = jax.block_until_ready(prob)
    ref = actor_forward_ref(x, params, softmax_dim=1)
    np.testing.assert_allclose(np.asarray(prob), np.asarray(ref),
                               rtol=2e-2, atol=2e-2)
    assert np.allclose(np.asarray(prob).sum(axis=1), 1.0, atol=1e-3)

    # PyTorch default softmax_dim=0 (softmax over the batch axis).
    prob0 = jax.block_until_ready(
        actor_forward(x, packed, num_action=num_action, softmax_dim=0))
    ref0 = actor_forward_ref(x, params, softmax_dim=0)
    np.testing.assert_allclose(np.asarray(prob0), np.asarray(ref0),
                               rtol=2e-2, atol=2e-2)
    assert np.allclose(np.asarray(prob0).sum(axis=0), 1.0, atol=1e-3)

    print("KERNEL_OK")
</pallas_src>

<mosaic_0001>
module attributes {stable_mosaic.version = 11 : i64} {
  func.func @_actor_kernel(%arg0: i32, %arg1: memref<8x32xf32, #tpu.memory_space<vmem>>, %arg2: memref<32x2176xbf16, #tpu.memory_space<vmem>>, %arg3: memref<1x2176xf32, #tpu.memory_space<vmem>>, %arg4: memref<2176x1024xbf16, #tpu.memory_space<vmem>>, %arg5: memref<1x1024xf32, #tpu.memory_space<vmem>>, %arg6: memref<1024x128xbf16, #tpu.memory_space<vmem>>, %arg7: memref<1x128xf32, #tpu.memory_space<vmem>>, %arg8: memref<8x128xf32, #tpu.memory_space<vmem>>) attributes {dimension_semantics = [#tpu.dimension_semantics<arbitrary>], iteration_bounds = array<i64: 1>, scalar_prefetch = 0 : i64, scratch_operands = 0 : i64, tpu.core_type = #tpu.core_type<tc>, window_params = [{pipeline_mode = #tpu.pipeline_mode<synchronous>, transform_indices = @transform_0, window_bounds = array<i64: 8, 32>}, {pipeline_mode = #tpu.pipeline_mode<synchronous>, transform_indices = @transform_1, window_bounds = array<i64: 32, 2176>}, {pipeline_mode = #tpu.pipeline_mode<synchronous>, transform_indices = @transform_2, window_bounds = array<i64: 1, 2176>}, {pipeline_mode = #tpu.pipeline_mode<synchronous>, transform_indices = @transform_3, window_bounds = array<i64: 2176, 1024>}, {pipeline_mode = #tpu.pipeline_mode<synchronous>, transform_indices = @transform_4, window_bounds = array<i64: 1, 1024>}, {pipeline_mode = #tpu.pipeline_mode<synchronous>, transform_indices = @transform_5, window_bounds = array<i64: 1024, 128>}, {pipeline_mode = #tpu.pipeline_mode<synchronous>, transform_indices = @transform_6, window_bounds = array<i64: 1, 128>}, {pipeline_mode = #tpu.pipeline_mode<synchronous>, transform_indices = @transform_7, window_bounds = array<i64: 8, 128>}]} {
    %c0 = arith.constant 0 : index
    %c0_0 = arith.constant 0 : index
    %0 = vector.load %arg1[%c0, %c0_0] : memref<8x32xf32, #tpu.memory_space<vmem>>, vector<8x32xf32>
    %1 = arith.truncf %0 : vector<8x32xf32> to vector<8x32xbf16>
    %c0_1 = arith.constant 0 : index
    %c0_2 = arith.constant 0 : index
    %2 = vector.load %arg2[%c0_1, %c0_2] : memref<32x2176xbf16, #tpu.memory_space<vmem>>, vector<32x2176xbf16>
    %cst = arith.constant dense<0.000000e+00> : vector<8x2176xf32>
    %3 = tpu.matmul %1, %2, %cst {dimension_numbers = #tpu.dot_dimension_numbers<[1], [0], [0], [1], [0, 0, 1, 1], [], []>} : vector<8x32xbf16>, vector<32x2176xbf16>, vector<8x2176xf32> -> vector<8x2176xf32>
    %c0_3 = arith.constant 0 : index
    %c0_4 = arith.constant 0 : index
    %4 = vector.load %arg3[%c0_3, %c0_4] : memref<1x2176xf32, #tpu.memory_space<vmem>>, vector<1x2176xf32>
    %5 = vector.broadcast %4 : vector<1x2176xf32> to vector<8x2176xf32>
    %6 = arith.addf %3, %5 : vector<8x2176xf32>
    %cst_5 = arith.constant 0.000000e+00 : f32
    %7 = vector.broadcast %cst_5 : f32 to vector<8x2176xf32>
    %8 = arith.maximumf %6, %7 : vector<8x2176xf32>
    %9 = arith.truncf %8 : vector<8x2176xf32> to vector<8x2176xbf16>
    %c0_6 = arith.constant 0 : index
    %c0_7 = arith.constant 0 : index
    %10 = vector.load %arg4[%c0_6, %c0_7] : memref<2176x1024xbf16, #tpu.memory_space<vmem>>, vector<2176x1024xbf16>
    %cst_8 = arith.constant dense<0.000000e+00> : vector<8x1024xf32>
    %11 = tpu.matmul %9, %10, %cst_8 {dimension_numbers = #tpu.dot_dimension_numbers<[1], [0], [0], [1], [0, 0, 1, 1], [], []>} : vector<8x2176xbf16>, vector<2176x1024xbf16>, vector<8x1024xf32> -> vector<8x1024xf32>
    %c0_9 = arith.constant 0 : index
    %c0_10 = arith.constant 0 : index
    %12 = vector.load %arg5[%c0_9, %c0_10] : memref<1x1024xf32, #tpu.memory_space<vmem>>, vector<1x1024xf32>
    %13 = vector.broadcast %12 : vector<1x1024xf32> to vector<8x1024xf32>
    %14 = arith.addf %11, %13 : vector<8x1024xf32>
    %cst_11 = arith.constant 0.000000e+00 : f32
    %15 = vector.broadcast %cst_11 : f32 to vector<8x1024xf32>
    %16 = arith.maximumf %14, %15 : vector<8x1024xf32>
    %17 = arith.truncf %16 : vector<8x1024xf32> to vector<8x1024xbf16>
    %c0_12 = arith.constant 0 : index
    %c0_13 = arith.constant 0 : index
    %18 = vector.load %arg6[%c0_12, %c0_13] : memref<1024x128xbf16, #tpu.memory_space<vmem>>, vector<1024x128xbf16>
    %cst_14 = arith.constant dense<0.000000e+00> : vector<8x128xf32>
    %19 = tpu.matmul %17, %18, %cst_14 {dimension_numbers = #tpu.dot_dimension_numbers<[1], [0], [0], [1], [0, 0, 1, 1], [], []>} : vector<8x1024xbf16>, vector<1024x128xbf16>, vector<8x128xf32> -> vector<8x128xf32>
    %c0_15 = arith.constant 0 : index
    %c0_16 = arith.constant 0 : index
    %20 = vector.load %arg7[%c0_15, %c0_16] : memref<1x128xf32, #tpu.memory_space<vmem>>, vector<1x128xf32>
    %21 = vector.broadcast %20 : vector<1x128xf32> to vector<8x128xf32>
    %22 = arith.addf %19, %21 : vector<8x128xf32>
    %23 = tpu.iota {dimensions = array<i32: 0>} : vector<8x128xi32>
    %24 = tpu.iota {dimensions = array<i32: 1>} : vector<8x128xi32>
    %c4_i32 = arith.constant 4 : i32
    %25 = vector.broadcast %c4_i32 : i32 to vector<8x128xi32>
    %26 = arith.cmpi slt, %23, %25 : vector<8x128xi32>
    %c6_i32 = arith.constant 6 : i32
    %27 = vector.broadcast %c6_i32 : i32 to vector<8x128xi32>
    %28 = arith.cmpi slt, %24, %27 : vector<8x128xi32>
    %29 = arith.andi %26, %28 : vector<8x128xi1>
    %cst_17 = arith.constant -1.000000e+30 : f32
    %30 = vector.broadcast %cst_17 : f32 to vector<8x128xf32>
    %31 = arith.select %29, %22, %30 : vector<8x128xi1>, vector<8x128xf32>
    %cst_18 = arith.constant dense<0xFF800000> : vector<8xf32>
    %32 = vector.multi_reduction <maximumf>, %31, %cst_18 [1] : vector<8x128xf32> to vector<8xf32>
    %33 = vector.shape_cast %32 : vector<8xf32> to vector<8x1xf32>
    %34 = vector.broadcast %33 : vector<8x1xf32> to vector<8x128xf32>
    %35 = arith.subf %31, %34 : vector<8x128xf32>
    %36 = math.exp %35 : vector<8x128xf32>
    %cst_19 = arith.constant dense<0.000000e+00> : vector<8xf32>
    %37 = vector.multi_reduction <add>, %36, %cst_19 [1] : vector<8x128xf32> to vector<8xf32>
    %38 = vector.shape_cast %37 : vector<8xf32> to vector<8x1xf32>
    %39 = vector.broadcast %38 : vector<8x1xf32> to vector<8x128xf32>
    %40 = arith.divf %36, %39 : vector<8x128xf32>
    %c0_20 = arith.constant 0 : index
    %c0_21 = arith.constant 0 : index
    %41 = vector.load %arg8[%c0_20, %c0_21] : memref<8x128xf32, #tpu.memory_space<vmem>>, vector<8x128xf32>
    tpu.vector_store %arg8[%c0_20, %c0_21], %40 {strides = array<i32>} : memref<8x128xf32, #tpu.memory_space<vmem>>, vector<8x128xf32>,
    return
  }
  func.func @transform_0(%arg0: i32) -> (i32, i32) {
    %c0_i32 = arith.constant 0 : i32
    %c0_i32_0 = arith.constant 0 : i32
    %c0_i32_1 = arith.constant 0 : i32
    return %c0_i32, %c0_i32_0 : i32, i32
  }
  func.func @transform_1(%arg0: i32) -> (i32, i32) {
    %c0_i32 = arith.constant 0 : i32
    %c0_i32_0 = arith.constant 0 : i32
    %c0_i32_1 = arith.constant 0 : i32
    return %c0_i32, %c0_i32_0 : i32, i32
  }
  func.func @transform_2(%arg0: i32) -> (i32, i32) {
    %c0_i32 = arith.constant 0 : i32
    %c0_i32_0 = arith.constant 0 : i32
    %c0_i32_1 = arith.constant 0 : i32
    return %c0_i32, %c0_i32_0 : i32, i32
  }
  func.func @transform_3(%arg0: i32) -> (i32, i32) {
    %c0_i32 = arith.constant 0 : i32
    %c0_i32_0 = arith.constant 0 : i32
    %c0_i32_1 = arith.constant 0 : i32
    return %c0_i32, %c0_i32_0 : i32, i32
  }
  func.func @transform_4(%arg0: i32) -> (i32, i32) {
    %c0_i32 = arith.constant 0 : i32
    %c0_i32_0 = arith.constant 0 : i32
    %c0_i32_1 = arith.constant 0 : i32
    return %c0_i32, %c0_i32_0 : i32, i32
  }
  func.func @transform_5(%arg0: i32) -> (i32, i32) {
    %c0_i32 = arith.constant 0 : i32
    %c0_i32_0 = arith.constant 0 : i32
    %c0_i32_1 = arith.constant 0 : i32
    return %c0_i32, %c0_i32_0 : i32, i32
  }
  func.func @transform_6(%arg0: i32) -> (i32, i32) {
    %c0_i32 = arith.constant 0 : i32
    %c0_i32_0 = arith.constant 0 : i32
    %c0_i32_1 = arith.constant 0 : i32
    return %c0_i32, %c0_i32_0 : i32, i32
  }
  func.func @transform_7(%arg0: i32) -> (i32, i32) {
    %c0_i32 = arith.constant 0 : i32
    %c0_i32_0 = arith.constant 0 : i32
    %c0_i32_1 = arith.constant 0 : i32
    return %c0_i32, %c0_i32_0 : i32, i32
  }
}

</mosaic_0001>

<bundles_post_ra>
// kernel: actor_forward.1
= control target key start
LH: loop header
LB: loop body
LE: loop exit
PB: predicated region body
PF: predicated region fallthrough
CT: control target
= control target key end

     0   :  { %12 = vsyncpa [#allocation3], 0  ;;  %s16153_s0 = inlined_call_operand.vmem [shape: f32[8,32], index: 0, kind: input, shape index: {}]   ;;  %s16154_s1 = inlined_call_operand.hbm [shape: bf16[32,2176], index: 1, kind: input, shape index: {}]   ;;  %s16155_s2 = inlined_call_operand.hbm [shape: f32[1,2176], index: 2, kind: input, shape index: {}]   ;;  %s16156_s3 = inlined_call_operand.hbm [shape: bf16[2176,1024], index: 3, kind: input, shape index: {}]   ;;  %s16157_s4 = inlined_call_operand.hbm [shape: f32[1,1024], index: 4, kind: input, shape index: {}]   ;;  %s16158_s5 = inlined_call_operand.hbm [shape: bf16[1024,128], index: 5, kind: input, shape index: {}]   ;;  %s16159_s6 = inlined_call_operand.hbm [shape: f32[1,128], index: 6, kind: input, shape index: {}]   ;;  %s16160_s7 = inlined_call_operand.vmem [shape: f32[8,128], index: 7, kind: output, shape index: {}]  }
   0x1   :  { %13 = vsyncpa [#allocation5], 0 }
   0x2   :  { %14 = vsyncpa [#allocation8], 0  ;;  %s36_s26 = sshll.u32 %s16155_s2, 4  ;;  %s37_s26 = int_to_ptr.hbm [resolvable:$true] %s36_s26 }
   0x3   :  { %15 = vsyncpa [#allocation11], 0  ;;  %s15736_s27 = smov [#allocation4]   ;;  %s60_s8 = sshll.u32 %s16157_s4, 4  ;;  %s61_s8 = int_to_ptr.hbm [resolvable:$true] %s60_s8 }
   0x4   :  { %s38_s28 = sshll.u32 %s15736_s27, 4  ;;  %s15737_s9 = smov [#allocation7]   ;;  %s39_s28 = int_to_ptr.vmem [resolvable:$true] %s38_s28 }
   0x5   :  { %41 = dma.hbm_to_vmem [thread:$0]  %s37_s26, 272, %s39_s28, [#allocation5]  }
   0x6   :  { %s62_s10 = sshll.u32 %s15737_s9, 4  ;;  %s22_s13 = sshll.u32 %s16154_s1, 4  ;;  %s63_s10 = int_to_ptr.vmem [resolvable:$true] %s62_s10  ;;  %s23_s13 = int_to_ptr.hbm [resolvable:$true] %s22_s13 }
   0x7   :  { %65 = dma.hbm_to_vmem [thread:$0]  %s61_s8, 128, %s63_s10, [#allocation8]  }
   0x8   :  { %s15738_s2 = smov [#allocation2]   ;;  %s46_s17 = sshll.u32 %s16156_s3, 4  ;;  %s47_s17 = int_to_ptr.hbm [resolvable:$true] %s46_s17 }
   0x9   :  { %s24_s14 = sshll.u32 %s15738_s2, 4  ;;  %s15739_s18 = smov 1088   ;;  %s25_s14 = int_to_ptr.vmem [resolvable:$true] %s24_s14 }
   0xa   :  { %s15740_s4 = smov 68   ;;  %s15741_s19 = smov [#allocation6]  }
   0xb   :  { %30 = dma.hbm_to_vmem [thread:$0]  %s23_s13, 4352, %s25_s14, [#allocation3], %s15739_s18, %s15739_s18, %s15740_s4  }
   0xc   :  { %s48_s20 = sshll.u32 %s15741_s19, 4  ;;  %s15742_s21 = smov 512   ;;  %s49_s20 = int_to_ptr.vmem [resolvable:$true] %s48_s20 }
   0xd   :  { %s15743_s22 = smov 32   ;;  %s70_s24 = sshll.u32 %s16158_s5, 4  ;;  %s71_s24 = int_to_ptr.hbm [resolvable:$true] %s70_s24 }
   0xe   :  { %54 = dma.hbm_to_vmem [thread:$0]  %s47_s17, 139264, %s49_s20, [#allocation5], %s15742_s21, %s15742_s21, %s15743_s22  }
   0xf   :  { %s15744_s25 = smov [#allocation9]   ;;  %s84_s28 = sshll.u32 %s16159_s6, 4  ;;  %s85_s28 = int_to_ptr.hbm [resolvable:$true] %s84_s28 }
  0x10   :  { %s72_s26 = sshll.u32 %s15744_s25, 4  ;;  %s15745_s29 = smov 64   ;;  %s73_s26 = int_to_ptr.vmem [resolvable:$true] %s72_s26 }
  0x11   :  { %s15746_s30 = smov 4   ;;  %s15747_s8 = smov [#allocation10]  }
  0x12   :  { %78 = dma.hbm_to_vmem [thread:$0]  %s71_s24, 8192, %s73_s26, [#allocation8], %s15745_s29, %s15745_s29, %s15746_s30  }
  0x13   :  { %s86_s9 = sshll.u32 %s15747_s8, 4  ;;  %s87_s9 = int_to_ptr.vmem [resolvable:$true] %s86_s9 }
  0x14   :  { %89 = dma.hbm_to_vmem [thread:$0]  %s85_s28, 16, %s87_s9, [#allocation11]  }
  0x15   :  { %15728 = dma.done.wait [#allocation3], 4352  }
  0x16   :  { %15729 = vsyncadd [#allocation3], 4294962944 }
  0x17   :  { %15730 = dma.done.wait [#allocation5], 139536  }
  0x18   :  { %15731 = vsyncadd [#allocation5], 4294827760 }
  0x19   :  { %15732 = dma.done.wait [#allocation8], 8320  }
  0x1a   :  { %15733 = vsyncadd [#allocation8], 4294958976 }
  0x1b   :  { %15734 = dma.done.wait [#allocation11], 16  }
  0x1c   :  { %15735 = vsyncadd [#allocation11], 4294967280  ;;  %v9683_v0 = vld [vmem:[#allocation2 + $0x88] sm:$0xf]  ;;  %v14399_v1 = vld [vmem:[#allocation2 + $0xc8] sm:$0xf0] }
  0x1d   :  { %v14391_v2 = vld [vmem:[#allocation2 + $0x8c] sm:$0xf]  ;;  %v9684_v3 = vor.u32 %v14399_v1, %v9683_v0  ;;  %v9685_v4 = vld [vmem:[#allocation2 + $0xcc] sm:$0xf0]  ;;  %v14400_v6 = vld [vmem:[#allocation2 + $0xd0] sm:$0xf0] }
  0x1e   :  { %v9691_v5 = vld [vmem:[#allocation2 + $0x90] sm:$0xf]  ;;  %v9688_v7 = vor.u32 %v14391_v2, %v9685_v4  ;;  %v14392_v9 = vld [vmem:[#allocation2 + $0x94] sm:$0xf]  ;;  %v9693_v10 = vld [vmem:[#allocation2 + $0xd4] sm:$0xf0] }
  0x1f   :  { %v9692_v8 = vor.u32 %v14400_v6, %v9691_v5  ;;  %v9615_v11 = vld [vmem:[#allocation2] sm:$0xf]  ;;  %375 = vmatpush.bf16.msra.mxu0 %v9684_v3  ;;  %v9696_v12 = vor.u32 %v14392_v9, %v9693_v10  ;;  %v14382_v13 = vld [vmem:[#allocation2 + $0x40] sm:$0xf0]  ;;  %v9617_v15 = vld [vmem:[#allocation2 + $0x44] sm:$0xf0] }
  0x20   :  { %v14374_v14 = vld [vmem:[#allocation2 + $0x4] sm:$0xf]  ;;  %388 = vmatpush.bf16.msra.mxu1 %v9688_v7  ;;  %v9616_v16 = vor.u32 %v14382_v13, %v9615_v11  ;;  %v9623_v18 = vld [vmem:[#allocation2 + $0x8] sm:$0xf]  ;;  %v14383_v19 = vld [vmem:[#allocation2 + $0x48] sm:$0xf0] }
  0x21   :  { %401 = vmatpush.bf16.msra.mxu2 %v9692_v8  ;;  %v9620_v17 = vor.u32 %v14374_v14, %v9617_v15  ;;  %v14375_v20 = vld [vmem:[#allocation2 + $0xc] sm:$0xf]  ;;  %414 = vmatpush.bf16.msra.mxu3 %v9696_v12  ;;  %v9624_v21 = vor.u32 %v14383_v19, %v9623_v18  ;;  %v9625_v22 = vld [vmem:[#allocation2 + $0x4c] sm:$0xf0]  ;;  %v115_v23 = vld [vmem:[%s16153_s0] sm:$0xff]  ;;  %vm365_vm0 = vcmask 261120  }
  0x22   :  { %v9699_v24 = vld [vmem:[#allocation2 + $0x98] sm:$0xf]  ;;  %v9628_v25 = vor.u32 %v14375_v20, %v9625_v22  ;;  %v15809_v26 = vpack.c.bf16 %v115_v23, %v115_v23  ;;  %v14401_v27 = vld [vmem:[#allocation2 + $0xd8] sm:$0xf0]  ;;  %v9701_v29 = vld [vmem:[#allocation2 + $0xdc] sm:$0xf0] }
  0x23   :  { %v14393_v28 = vld [vmem:[#allocation2 + $0x9c] sm:$0xf]  ;;  %376 = vmatpush.bf16.msra.mxu0 %v9616_v16  ;;  %v9700_v30 = vor.u32 %v14401_v27, %v9699_v24  ;;  %v9707_v32 = vld [vmem:[#allocation2 + $0xa0] sm:$0xf]  ;;  %v14402_v33 = vld [vmem:[#allocation2 + $0xe0] sm:$0xf0] }
  0x24   :  { %v9704_v31 = vor.u32 %v14393_v28, %v9701_v29  ;;  %v9631_v34 = vld [vmem:[#allocation2 + $0x10] sm:$0xf]  ;;  %389 = vmatpush.bf16.msra.mxu1 %v9620_v17  ;;  %v9708_v35 = vor.u32 %v14402_v33, %v9707_v32  ;;  %v14384_v36 = vld [vmem:[#allocation2 + $0x50] sm:$0xf0]  ;;  %v9633_v38 = vld [vmem:[#allocation2 + $0x54] sm:$0xf0] }
  0x25   :  { %402 = vmatpush.bf16.msra.mxu2 %v9624_v21  ;;  %v14376_v37 = vld [vmem:[#allocation2 + $0x14] sm:$0xf]  ;;  %415 = vmatpush.bf16.msra.mxu3 %v9628_v25  ;;  %v9632_v39 = vor.u32 %v14384_v36, %v9631_v34  ;;  %v9639_v40 = vld [vmem:[#allocation2 + $0x18] sm:$0xf]  ;;  %v14385_v41 = vld [vmem:[#allocation2 + $0x58] sm:$0xf0] }
  0x26   :  { %v14394_v42 = vld [vmem:[#allocation2 + $0xa4] sm:$0xf]  ;;  %9749 = vmatmul.msk.bf16.vlgmr.msra.gmra.mxu0 %vm365_vm0, %v15809_v26  ;;  %v9636_v43 = vor.u32 %v14376_v37, %v9633_v38  ;;  %v9709_v44 = vld [vmem:[#allocation2 + $0xe4] sm:$0xf0]  ;;  %v14377_v45 = vld [vmem:[#allocation2 + $0x1c] sm:$0xf]  ;;  %v9640_v51 = vor.u32 %v14385_v41, %v9639_v40 }
  0x27   :  { %427 = vmatpush.bf16.msrb.mxu0 %v9700_v30  ;;  %v9641_v46 = vld [vmem:[#allocation2 + $0x5c] sm:$0xf0]  ;;  %9750 = vmatmul.msk.bf16.vlgmr.msra.gmra.mxu1 %vm365_vm0, %v15809_v26  ;;  %v9712_v47 = vor.u32 %v14394_v42, %v9709_v44  ;;  %v9715_v48 = vld [vmem:[#allocation2 + $0xa8] sm:$0xf]  ;;  %v14403_v49 = vld [vmem:[#allocation2 + $0xe8] sm:$0xf0] }
  0x28   :  { %440 = vmatpush.bf16.msrb.mxu1 %v9704_v31  ;;  %9751 = vmatmul.msk.bf16.vlgmr.msra.gmra.mxu2 %vm365_vm0, %v15809_v26  ;;  %v14395_v50 = vld [vmem:[#allocation2 + $0xac] sm:$0xf]  ;;  %v9716_v52 = vor.u32 %v14403_v49, %v9715_v48  ;;  %v9717_v53 = vld [vmem:[#allocation2 + $0xec] sm:$0xf0]  ;;  %v14404_v55 = vld [vmem:[#allocation2 + $0xf0] sm:$0xf0]  ;;  %v9644_v56 = vor.u32 %v14377_v45, %v9641_v46 }
  0x29   :  { %9752 = vmatmul.msk.bf16.vlgmr.msra.gmra.mxu3 %vm365_vm0, %v15809_v26  ;;  %453 = vmatpush.bf16.msrb.mxu2 %v9708_v35  ;;  %v9723_v54 = vld [vmem:[#allocation2 + $0xb0] sm:$0xf]  ;;  %v9720_v57 = vor.u32 %v14395_v50, %v9717_v53  ;;  %v9647_v59 = vld [vmem:[#allocation2 + $0x20] sm:$0xf]  ;;  %v14386_v60 = vld [vmem:[#allocation2 + $0x60] sm:$0xf0] }
  0x2a   :  { %466 = vmatpush.bf16.msrb.mxu3 %v9712_v47  ;;  %v9724_v58 = vor.u32 %v14404_v55, %v9723_v54  ;;  %v14378_v61 = vld [vmem:[#allocation2 + $0x24] sm:$0xf]  ;;  %v9648_v62 = vor.u32 %v14386_v60, %v9647_v59  ;;  %v9649_v63 = vld [vmem:[#allocation2 + $0x64] sm:$0xf0]  ;;  %v14387_v1 = vld [vmem:[#allocation2 + $0x68] sm:$0xf0] }
  0x2b   :  { %428 = vmatpush.bf16.msrb.mxu0 %v9632_v39  ;;  %v9655_v0 = vld [vmem:[#allocation2 + $0x28] sm:$0xf]  ;;  %v9652_v2 = vor.u32 %v14378_v61, %v9649_v63  ;;  %v14396_v3 = vld [vmem:[#allocation2 + $0xb4] sm:$0xf]  ;;  %v9725_v4 = vld [vmem:[#allocation2 + $0xf4] sm:$0xf0] }
  0x2c   :  { %441 = vmatpush.bf16.msrb.mxu1 %v9636_v43  ;;  %v14379_v5 = vld [vmem:[#allocation2 + $0x2c] sm:$0xf]  ;;  %v9728_v6 = vor.u32 %v14396_v3, %v9725_v4  ;;  %v9657_v7 = vld [vmem:[#allocation2 + $0x6c] sm:$0xf0]  ;;  %v9656_v8 = vor.u32 %v14387_v1, %v9655_v0  ;;  %v9731_v10 = vld [vmem:[#allocation2 + $0xb8] sm:$0xf] }
  0x2d   :  { %454 = vmatpush.bf16.msrb.mxu2 %v9640_v51  ;;  %v9660_v9 = vor.u32 %v14379_v5, %v9657_v7  ;;  %v14405_v11 = vld [vmem:[#allocation2 + $0xf8] sm:$0xf0]  ;;  %v9733_v13 = vld [vmem:[#allocation2 + $0xfc] sm:$0xf0]  ;;  %v14406_v15 = vld [vmem:[#allocation2 + $0x100] sm:$0xf0] }
  0x2e   :  { %467 = vmatpush.bf16.msrb.mxu3 %v9644_v56  ;;  %v14397_v12 = vld [vmem:[#allocation2 + $0xbc] sm:$0xf]  ;;  %v9739_v14 = vld [vmem:[#allocation2 + $0xc0] sm:$0xf]  ;;  %v9732_v16 = vor.u32 %v14405_v11, %v9731_v10  ;;  %v9663_v19 = vld [vmem:[#allocation2 + $0x30] sm:$0xf] }
  0x2f   :  { %479 = vmatpush.bf16.msra.mxu0 %v9716_v52  ;;  %v9736_v17 = vor.u32 %v14397_v12, %v9733_v13  ;;  %v9740_v18 = vor.u32 %v14406_v15, %v9739_v14  ;;  %v14388_v20 = vld [vmem:[#allocation2 + $0x70] sm:$0xf0]  ;;  %v9665_v22 = vld [vmem:[#allocation2 + $0x74] sm:$0xf0]  ;;  %v14389_v24 = vld [vmem:[#allocation2 + $0x78] sm:$0xf0] }
  0x30   :  { %492 = vmatpush.bf16.msra.mxu1 %v9720_v57  ;;  %v14380_v21 = vld [vmem:[#allocation2 + $0x34] sm:$0xf]  ;;  %v9671_v23 = vld [vmem:[#allocation2 + $0x38] sm:$0xf]  ;;  %v14398_v25 = vld [vmem:[#allocation2 + $0xc4] sm:$0xf]  ;;  %v9664_v29 = vor.u32 %v14388_v20, %v9663_v19 }
  0x31   :  { %505 = vmatpush.bf16.msra.mxu2 %v9724_v58  ;;  %v9741_v27 = vld [vmem:[#allocation2 + $0x104] sm:$0xf0]  ;;  %v14381_v28 = vld [vmem:[#allocation2 + $0x3c] sm:$0xf]  ;;  %v9673_v31 = vld [vmem:[#allocation2 + $0x7c] sm:$0xf0]  ;;  %v9668_v32 = vor.u32 %v14380_v21, %v9665_v22  ;;  %v9672_v33 = vor.u32 %v14389_v24, %v9671_v23 }
  0x32   :  { %518 = vmatpush.bf16.msra.mxu3 %v9728_v6  ;;  %v9744_v30 = vor.u32 %v14398_v25, %v9741_v27  ;;  %v9676_v34 = vor.u32 %v14381_v28, %v9673_v31  ;;  %v9992_v35 = vld [vmem:[#allocation6 + $0x1c0] sm:$0xf]  ;;  %v9747_v39 = vld [vmem:[#allocation2 + $0xc8] sm:$0xf]  ;;  %v14407_v40 = vld [vmem:[#allocation2 + $0x108] sm:$0xf0] }
  0x33   :  { %480 = vmatpush.bf16.msra.mxu0 %v9648_v62  ;;  %v14468_v36 = vld [vmem:[#allocation6 + $0x1dc] sm:$0xf0]  ;;  %v9748_v45 = vor.u32 %v14407_v40, %v9747_v39 }
  0x34   :  { %493 = vmatpush.bf16.msra.mxu1 %v9652_v2  ;;  %v10248_v37 = vld [vmem:[#allocation6 + $0x3c0] sm:$0xf]  ;;  %v9993_v43 = vor.u32 %v14468_v36, %v9992_v35 }
  0x35   :  { %506 = vmatpush.bf16.msra.mxu2 %v9656_v8  ;;  %v14532_v38 = vld [vmem:[#allocation6 + $0x3dc] sm:$0xf0] }
  0x36   :  { %519 = vmatpush.bf16.msra.mxu3 %v9660_v9  ;;  %9753 = vmatmul.msk.bf16.vlgmr.msrb.gmra.mxu0 %vm365_vm0, %v15809_v26  ;;  %v10504_v41 = vld [vmem:[#allocation6 + $0x5c0] sm:$0xf]  ;;  %v10249_v44 = vor.u32 %v14532_v38, %v10248_v37 }
  0x37   :  { %9754 = vmatmul.msk.bf16.vlgmr.msrb.gmra.mxu1 %vm365_vm0, %v15809_v26  ;;  %531 = vmatpush.bf16.msrb.mxu0 %v9732_v16  ;;  %v14596_v42 = vld [vmem:[#allocation6 + $0x5dc] sm:$0xf0] }
  0x38   :  { %9755 = vmatmul.msk.bf16.vlgmr.msrb.gmra.mxu2 %vm365_vm0, %v15809_v26  ;;  %544 = vmatpush.bf16.msrb.mxu1 %v9736_v17  ;;  %v9960_v46 = vld [vmem:[#allocation6 + $0x180] sm:$0xf]  ;;  %v10505_v52 = vor.u32 %v14596_v42, %v10504_v41 }
  0x39   :  { %9756 = vmatmul.msk.bf16.vlgmr.msrb.gmra.mxu3 %vm365_vm0, %v15809_v26  ;;  %557 = vmatpush.bf16.msrb.mxu2 %v9740_v18  ;;  %v14460_v47 = vld [vmem:[#allocation6 + $0x19c] sm:$0xf0] }
  0x3a   :  { %570 = vmatpush.bf16.msrb.mxu3 %v9744_v30  ;;  %v10216_v48 = vld [vmem:[#allocation6 + $0x380] sm:$0xf]  ;;  %v9961_v55 = vor.u32 %v14460_v47, %v9960_v46 }
  0x3b   :  { %532 = vmatpush.bf16.msrb.mxu0 %v9664_v29  ;;  %v14524_v49 = vld [vmem:[#allocation6 + $0x39c] sm:$0xf0] }
  0x3c   :  { %545 = vmatpush.bf16.msrb.mxu1 %v9668_v32  ;;  %v9679_v50 = vld [vmem:[#allocation2 + $0x40] sm:$0xf]  ;;  %v14390_v51 = vld [vmem:[#allocation2 + $0x80] sm:$0xf0]  ;;  %v10217_v56 = vor.u32 %v14524_v49, %v10216_v48 }
  0x3d   :  { %558 = vmatpush.bf16.msrb.mxu2 %v9672_v33  ;;  %v10472_v53 = vld [vmem:[#allocation6 + $0x580] sm:$0xf]  ;;  %v9680_v57 = vor.u32 %v14390_v51, %v9679_v50 }
  0x3e   :  { %571 = vmatpush.bf16.msrb.mxu3 %v9676_v34  ;;  %v14588_v54 = vld [vmem:[#allocation6 + $0x59c] sm:$0xf0] }
  0x3f   :  { %v9928_v58 = vld [vmem:[#allocation6 + $0x140] sm:$0xf]  ;;  %v10473_v62 = vor.u32 %v14588_v54, %v10472_v53 }
  0x40   :  { %v14452_v59 = vld [vmem:[#allocation6 + $0x15c] sm:$0xf0] }
  0x41   :  { %v10184_v60 = vld [vmem:[#allocation6 + $0x340] sm:$0xf]  ;;  %v9929_v1 = vor.u32 %v14452_v59, %v9928_v58 }
  0x42   :  { %v14516_v61 = vld [vmem:[#allocation6 + $0x35c] sm:$0xf0] }
  0x43   :  { %v10440_v63 = vld [vmem:[#allocation6 + $0x540] sm:$0xf]  ;;  %v10185_v2 = vor.u32 %v14516_v61, %v10184_v60 }
  0x44   :  { %v14580_v0 = vld [vmem:[#allocation6 + $0x55c] sm:$0xf0] }
  0x45   :  { %v9896_v3 = vld [vmem:[#allocation6 + $0x100] sm:$0xf]  ;;  %v10441_v7 = vor.u32 %v14580_v0, %v10440_v63 }
  0x46   :  { %9757 = vmatmul.msk.bf16.vlgmr.msra.gmra.mxu0 %vm365_vm0, %v15809_v26  ;;  %v14444_v4 = vld [vmem:[#allocation6 + $0x11c] sm:$0xf0] }
  0x47   :  { %9758 = vmatmul.msk.bf16.vlgmr.msra.gmra.mxu1 %vm365_vm0, %v15809_v26  ;;  %583 = vmatpush.bf16.msra.mxu0 %v9748_v45  ;;  %v10152_v5 = vld [vmem:[#allocation6 + $0x300] sm:$0xf]  ;;  %v9897_v10 = vor.u32 %v14444_v4, %v9896_v3 }
  0x48   :  { %9759 = vmatmul.msk.bf16.vlgmr.msra.gmra.mxu2 %vm365_vm0, %v15809_v26  ;;  %7170 = vmatpush.bf16.msra.mxu1 %v9993_v43  ;;  %v14508_v6 = vld [vmem:[#allocation6 + $0x31c] sm:$0xf0] }
  0x49   :  { %9760 = vmatmul.msk.bf16.vlgmr.msra.gmra.mxu3 %vm365_vm0, %v15809_v26  ;;  %7183 = vmatpush.bf16.msra.mxu2 %v10249_v44  ;;  %v10408_v8 = vld [vmem:[#allocation6 + $0x500] sm:$0xf]  ;;  %v10153_v13 = vor.u32 %v14508_v6, %v10152_v5 }
  0x4a   :  { %7196 = vmatpush.bf16.msra.mxu3 %v10505_v52  ;;  %v14572_v9 = vld [vmem:[#allocation6 + $0x51c] sm:$0xf0] }
  0x4b   :  { %584 = vmatpush.bf16.msra.mxu0 %v9680_v57  ;;  %v10760_v11 = vld [vmem:[#allocation6 + $0x7c0] sm:$0xf]  ;;  %v10409_v18 = vor.u32 %v14572_v9, %v10408_v8 }
  0x4c   :  { %7171 = vmatpush.bf16.msra.mxu1 %v9961_v55  ;;  %v14660_v12 = vld [vmem:[#allocation6 + $0x7dc] sm:$0xf0] }
  0x4d   :  { %7184 = vmatpush.bf16.msra.mxu2 %v10217_v56  ;;  %v9864_v14 = vld [vmem:[#allocation6 + $0xc0] sm:$0xf]  ;;  %v10761_v21 = vor.u32 %v14660_v12, %v10760_v11 }
  0x4e   :  { %7197 = vmatpush.bf16.msra.mxu3 %v10473_v62  ;;  %v14436_v15 = vld [vmem:[#allocation6 + $0xdc] sm:$0xf0] }
  0x4f   :  { %v10120_v16 = vld [vmem:[#allocation6 + $0x2c0] sm:$0xf]  ;;  %v9865_v24 = vor.u32 %v14436_v15, %v9864_v14 }
  0x50   :  { %7172 = vmatpush.bf16.msra.mxu1 %v9929_v1  ;;  %v14500_v17 = vld [vmem:[#allocation6 + $0x2dc] sm:$0xf0] }
  0x51   :  { %7185 = vmatpush.bf16.msra.mxu2 %v10185_v2  ;;  %v10376_v19 = vld [vmem:[#allocation6 + $0x4c0] sm:$0xf]  ;;  %v10121_v25 = vor.u32 %v14500_v17, %v10120_v16 }
  0x52   :  { %7198 = vmatpush.bf16.msra.mxu3 %v10441_v7  ;;  %v14564_v20 = vld [vmem:[#allocation6 + $0x4dc] sm:$0xf0] }
  0x53   :  { %v10728_v22 = vld [vmem:[#allocation6 + $0x780] sm:$0xf]  ;;  %v10377_v31 = vor.u32 %v14564_v20, %v10376_v19 }
  0x54   :  { %7173 = vmatpush.bf16.msra.mxu1 %v9897_v10  ;;  %v14652_v23 = vld [vmem:[#allocation6 + $0x79c] sm:$0xf0] }
  0x55   :  { %7186 = vmatpush.bf16.msra.mxu2 %v10153_v13  ;;  %v9832_v27 = vld [vmem:[#allocation6 + $0x80] sm:$0xf]  ;;  %v10729_v34 = vor.u32 %v14652_v23, %v10728_v22 }
  0x56   :  { %9761 = vmatmul.msk.bf16.vlgmr.msrb.gmra.mxu0 %vm365_vm0, %v15809_v26  ;;  %7199 = vmatpush.bf16.msra.mxu3 %v10409_v18  ;;  %v14428_v28 = vld [vmem:[#allocation6 + $0x9c] sm:$0xf0] }
  0x57   :  { %v10088_v29 = vld [vmem:[#allocation6 + $0x280] sm:$0xf]  ;;  %9762 = vmatmul.msk.bf16.vlgmr.msrb.gmra.mxu1 %vm365_vm0, %v15809_v26  ;;  %7209 = vmatpush.bf16.msrb.mxu0 %v10761_v21  ;;  %v9833_v37 = vor.u32 %v14428_v28, %v9832_v27 }
  0x58   :  { %v14492_v30 = vld [vmem:[#allocation6 + $0x29c] sm:$0xf0]  ;;  %9763 = vmatmul.msk.bf16.vlgmr.msrb.gmra.mxu2 %vm365_vm0, %v15809_v26  ;;  %7174 = vmatpush.bf16.msra.mxu1 %v9865_v24 }
  0x59   :  { %v10344_v32 = vld [vmem:[#allocation6 + $0x480] sm:$0xf]  ;;  %9764 = vmatmul.msk.bf16.vlgmr.msrb.gmra.mxu3 %vm365_vm0, %v15809_v26  ;;  %7187 = vmatpush.bf16.msra.mxu2 %v10121_v25  ;;  %v10089_v38 = vor.u32 %v14492_v30, %v10088_v29 }
  0x5a   :  { %v14556_v33 = vld [vmem:[#allocation6 + $0x49c] sm:$0xf0]  ;;  %7200 = vmatpush.bf16.msra.mxu3 %v10377_v31 }
  0x5b   :  { %v10696_v35 = vld [vmem:[#allocation6 + $0x740] sm:$0xf]  ;;  %v10345_v43 = vor.u32 %v14556_v33, %v10344_v32  ;;  %7210 = vmatpush.bf16.msrb.mxu0 %v10729_v34 }
  0x5c   :  { %v14644_v36 = vld [vmem:[#allocation6 + $0x75c] sm:$0xf0]  ;;  %7175 = vmatpush.bf16.msra.mxu1 %v9833_v37 }
  0x5d   :  { %v9800_v39 = vld [vmem:[#allocation6 + $0x40] sm:$0xf]  ;;  %v10697_v46 = vor.u32 %v14644_v36, %v10696_v35  ;;  %7188 = vmatpush.bf16.msra.mxu2 %v10089_v38 }
  0x5e   :  { %v14420_v40 = vld [vmem:[#allocation6 + $0x5c] sm:$0xf0]  ;;  %7201 = vmatpush.bf16.msra.mxu3 %v10345_v43 }
  0x5f   :  { %v10056_v41 = vld [vmem:[#allocation6 + $0x240] sm:$0xf]  ;;  %v9801_v49 = vor.u32 %v14420_v40, %v9800_v39  ;;  %7211 = vmatpush.bf16.msrb.mxu0 %v10697_v46 }
  0x60   :  { %v14484_v42 = vld [vmem:[#allocation6 + $0x25c] sm:$0xf0] }
  0x61   :  { %v10312_v44 = vld [vmem:[#allocation6 + $0x440] sm:$0xf]  ;;  %v10057_v50 = vor.u32 %v14484_v42, %v10056_v41  ;;  %7176 = vmatpush.bf16.msra.mxu1 %v9801_v49 }
  0x62   :  { %v14548_v45 = vld [vmem:[#allocation6 + $0x45c] sm:$0xf0] }
  0x63   :  { %v10664_v47 = vld [vmem:[#allocation6 + $0x700] sm:$0xf]  ;;  %v10313_v55 = vor.u32 %v14548_v45, %v10312_v44  ;;  %7189 = vmatpush.bf16.msra.mxu2 %v10057_v50 }
  0x64   :  { %v14636_v48 = vld [vmem:[#allocation6 + $0x71c] sm:$0xf0] }
  0x65   :  { %v9768_v51 = vld [vmem:[#allocation6] sm:$0xf]  ;;  %v10665_v60 = vor.u32 %v14636_v48, %v10664_v47  ;;  %7202 = vmatpush.bf16.msra.mxu3 %v10313_v55 }
  0x66   :  { %v14412_v52 = vld [vmem:[#allocation6 + $0x1c] sm:$0xf0]  ;;  %9765 = vmatmul.msk.bf16.vlgmr.msra.gmra.mxu0 %vm365_vm0, %v15809_v26 }
  0x67   :  { %v10024_v53 = vld [vmem:[#allocation6 + $0x200] sm:$0xf]  ;;  %v9769_v1 = vor.u32 %v14412_v52, %v9768_v51  ;;  %7212 = vmatpush.bf16.msrb.mxu0 %v10665_v60 }
  0x68   :  { %v14476_v54 = vld [vmem:[#allocation6 + $0x21c] sm:$0xf0] }
  0x69   :  { %v10632_v56 = vld [vmem:[#allocation6 + $0x6c0] sm:$0xf]  ;;  %v10025_v2 = vor.u32 %v14476_v54, %v10024_v53  ;;  %7177 = vmatpush.bf16.msra.mxu1 %v9769_v1 }
  0x6a   :  { %v11016_v57 = vld [vmem:[#allocation6 + $0x9c0] sm:$0xf] }
  0x6b   :  { %v14724_v58 = vld [vmem:[#allocation6 + $0x9dc] sm:$0xf0]  ;;  %7190 = vmatpush.bf16.msra.mxu2 %v10025_v2 }
  0x6c   :  { %v11272_v59 = vld [vmem:[#allocation6 + $0xbc0] sm:$0xf]  ;;  %v11017_v5 = vor.u32 %v14724_v58, %v11016_v57 }
  0x6d   :  { %v14788_v61 = vld [vmem:[#allocation6 + $0xbdc] sm:$0xf0] }
  0x6e   :  { %v10280_v62 = vld [vmem:[#allocation6 + $0x400] sm:$0xf]  ;;  %v11273_v6 = vor.u32 %v14788_v61, %v11272_v59  ;;  %7222 = vmatpush.bf16.msrb.mxu1 %v11017_v5 }
  0x6f   :  { %v14540_v63 = vld [vmem:[#allocation6 + $0x41c] sm:$0xf0] }
  0x70   :  { %v14628_v0 = vld [vmem:[#allocation6 + $0x6dc] sm:$0xf0]  ;;  %v10281_v9 = vor.u32 %v14540_v63, %v10280_v62  ;;  %7235 = vmatpush.bf16.msrb.mxu2 %v11273_v6 }
  0x71   :  { %v11528_v3 = vld [vmem:[#allocation6 + $0xdc0] sm:$0xf]  ;;  %v10633_v10 = vor.u32 %v14628_v0, %v10632_v56 }
  0x72   :  { %v14852_v4 = vld [vmem:[#allocation6 + $0xddc] sm:$0xf0]  ;;  %7203 = vmatpush.bf16.msra.mxu3 %v10281_v9 }
  0x73   :  { %v10984_v7 = vld [vmem:[#allocation6 + $0x980] sm:$0xf]  ;;  %v11529_v14 = vor.u32 %v14852_v4, %v11528_v3  ;;  %7213 = vmatpush.bf16.msrb.mxu0 %v10633_v10 }
  0x74   :  { %v14716_v8 = vld [vmem:[#allocation6 + $0x99c] sm:$0xf0] }
  0x75   :  { %v10600_v11 = vld [vmem:[#allocation6 + $0x680] sm:$0xf]  ;;  %v10985_v18 = vor.u32 %v14716_v8, %v10984_v7 }
  0x76   :  { %v11240_v12 = vld [vmem:[#allocation6 + $0xb80] sm:$0xf]  ;;  %7248 = vmatpush.bf16.msrb.mxu3 %v11529_v14 }
  0x77   :  { %v14780_v13 = vld [vmem:[#allocation6 + $0xb9c] sm:$0xf0]  ;;  %7223 = vmatpush.bf16.msrb.mxu1 %v10985_v18 }
  0x78   :  { %v14620_v15 = vld [vmem:[#allocation6 + $0x69c] sm:$0xf0]  ;;  %v11241_v19 = vor.u32 %v14780_v13, %v11240_v12 }
  0x79   :  { %v11496_v16 = vld [vmem:[#allocation6 + $0xd80] sm:$0xf]  ;;  %v10601_v22 = vor.u32 %v14620_v15, %v10600_v11 }
  0x7a   :  { %v14844_v17 = vld [vmem:[#allocation6 + $0xd9c] sm:$0xf0]  ;;  %7236 = vmatpush.bf16.msrb.mxu2 %v11241_v19 }
  0x7b   :  { %v10952_v20 = vld [vmem:[#allocation6 + $0x940] sm:$0xf]  ;;  %v11497_v27 = vor.u32 %v14844_v17, %v11496_v16  ;;  %7214 = vmatpush.bf16.msrb.mxu0 %v10601_v22 }
  0x7c   :  { %v14708_v21 = vld [vmem:[#allocation6 + $0x95c] sm:$0xf0] }
  0x7d   :  { %v10568_v23 = vld [vmem:[#allocation6 + $0x640] sm:$0xf]  ;;  %v10953_v31 = vor.u32 %v14708_v21, %v10952_v20  ;;  %7249 = vmatpush.bf16.msrb.mxu3 %v11497_v27 }
  0x7e   :  { %v11208_v24 = vld [vmem:[#allocation6 + $0xb40] sm:$0xf] }
  0x7f   :  { %v14772_v25 = vld [vmem:[#allocation6 + $0xb5c] sm:$0xf0]  ;;  %7224 = vmatpush.bf16.msrb.mxu1 %v10953_v31 }
  0x80   :  { %v14612_v28 = vld [vmem:[#allocation6 + $0x65c] sm:$0xf0]  ;;  %v11209_v26 = vor.u32 %v14772_v25, %v11208_v24 }
  0x81   :  { %v11464_v29 = vld [vmem:[#allocation6 + $0xd40] sm:$0xf]  ;;  %v10569_v34 = vor.u32 %v14612_v28, %v10568_v23 }
  0x82   :  { %v14836_v30 = vld [vmem:[#allocation6 + $0xd5c] sm:$0xf0]  ;;  %7237 = vmatpush.bf16.msrb.mxu2 %v11209_v26 }
  0x83   :  { %v10920_v32 = vld [vmem:[#allocation6 + $0x900] sm:$0xf]  ;;  %v11465_v38 = vor.u32 %v14836_v30, %v11464_v29  ;;  %7215 = vmatpush.bf16.msrb.mxu0 %v10569_v34 }
  0x84   :  { %v14700_v33 = vld [vmem:[#allocation6 + $0x91c] sm:$0xf0] }
  0x85   :  { %v10536_v35 = vld [vmem:[#allocation6 + $0x600] sm:$0xf]  ;;  %v10921_v44 = vor.u32 %v14700_v33, %v10920_v32  ;;  %7250 = vmatpush.bf16.msrb.mxu3 %v11465_v38 }
  0x86   :  { %v11176_v36 = vld [vmem:[#allocation6 + $0xb00] sm:$0xf] }
  0x87   :  { %v14764_v37 = vld [vmem:[#allocation6 + $0xb1c] sm:$0xf0]  ;;  %7225 = vmatpush.bf16.msrb.mxu1 %v10921_v44 }
  0x88   :  { %v14604_v39 = vld [vmem:[#allocation6 + $0x61c] sm:$0xf0]  ;;  %v11177_v45 = vor.u32 %v14764_v37, %v11176_v36 }
  0x89   :  { %v11432_v40 = vld [vmem:[#allocation6 + $0xd00] sm:$0xf]  ;;  %v10537_v48 = vor.u32 %v14604_v39, %v10536_v35 }
  0x8a   :  { %v14828_v41 = vld [vmem:[#allocation6 + $0xd1c] sm:$0xf0]  ;;  %7238 = vmatpush.bf16.msrb.mxu2 %v11177_v45 }
  0x8b   :  { %v11784_v42 = vld [vmem:[#allocation6 + $0xfc0] sm:$0xf]  ;;  %v11433_v51 = vor.u32 %v14828_v41, %v11432_v40  ;;  %7216 = vmatpush.bf16.msrb.mxu0 %v10537_v48 }
  0x8c   :  { %v14916_v43 = vld [vmem:[#allocation6 + $0xfdc] sm:$0xf0] }
  0x8d   :  { %v10888_v46 = vld [vmem:[#allocation6 + $0x8c0] sm:$0xf]  ;;  %v11785_v52 = vor.u32 %v14916_v43, %v11784_v42  ;;  %7251 = vmatpush.bf16.msrb.mxu3 %v11433_v51  ;;  %v15845_v42 = vld [vmem:[#allocation4] sm:$0xff] }
  0x8e   :  { %v14692_v47 = vld [vmem:[#allocation6 + $0x8dc] sm:$0xf0]  ;;  %v159_v43 = vperm.slane %v15845_v42, 0  ;;  %v160_v44 = vperm.slane %v15845_v42, 1 }
  0x8f   :  { %v11144_v49 = vld [vmem:[#allocation6 + $0xac0] sm:$0xf]  ;;  %v10889_v55 = vor.u32 %v14692_v47, %v10888_v46  ;;  %7261 = vmatpush.bf16.msra.mxu0 %v11785_v52 }
  0x90   :  { %v14756_v50 = vld [vmem:[#allocation6 + $0xadc] sm:$0xf0] }
  0x91   :  { %v11752_v53 = vld [vmem:[#allocation6 + $0xf80] sm:$0xf]  ;;  %v11145_v56 = vor.u32 %v14756_v50, %v11144_v49  ;;  %7226 = vmatpush.bf16.msrb.mxu1 %v10889_v55  ;;  %v161_v55 = vperm.slane %v15845_v42, 2 }
  0x92   :  { %v14908_v54 = vld [vmem:[#allocation6 + $0xf9c] sm:$0xf0] }
  0x93   :  { %v10856_v57 = vld [vmem:[#allocation6 + $0x880] sm:$0xf]  ;;  %v11753_v61 = vor.u32 %v14908_v54, %v11752_v53  ;;  %7239 = vmatpush.bf16.msrb.mxu2 %v11145_v56 }
  0x94   :  { %v14684_v58 = vld [vmem:[#allocation6 + $0x89c] sm:$0xf0] }
  0x95   :  { %v11112_v59 = vld [vmem:[#allocation6 + $0xa80] sm:$0xf]  ;;  %v10857_v0 = vor.u32 %v14684_v58, %v10856_v57  ;;  %7262 = vmatpush.bf16.msra.mxu0 %v11753_v61  ;;  %v162_v58 = vperm.slane %v15845_v42, 3 }
  0x96   :  { %v14748_v60 = vld [vmem:[#allocation6 + $0xa9c] sm:$0xf0] }
  0x97   :  { %v11720_v62 = vld [vmem:[#allocation6 + $0xf40] sm:$0xf]  ;;  %v11113_v1 = vor.u32 %v14748_v60, %v11112_v59  ;;  %7227 = vmatpush.bf16.msrb.mxu1 %v10857_v0 }
  0x98   :  { %v14900_v63 = vld [vmem:[#allocation6 + $0xf5c] sm:$0xf0] }
  0x99   :  { %v11721_v2 = vor.u32 %v14900_v63, %v11720_v62  ;;  %v11688_v3 = vld [vmem:[#allocation6 + $0xf00] sm:$0xf]  ;;  %7240 = vmatpush.bf16.msrb.mxu2 %v11113_v1 }
  0x9a   :  { %v14892_v4 = vld [vmem:[#allocation6 + $0xf1c] sm:$0xf0] }
  0x9b   :  { %7263 = vmatpush.bf16.msra.mxu0 %v11721_v2  ;;  %v11689_v5 = vor.u32 %v14892_v4, %v11688_v3  ;;  %v11400_v6 = vld [vmem:[#allocation6 + $0xcc0] sm:$0xf] }
  0x9c   :  { %v14820_v7 = vld [vmem:[#allocation6 + $0xcdc] sm:$0xf0] }
  0x9d   :  { %v11656_v8 = vld [vmem:[#allocation6 + $0xec0] sm:$0xf]  ;;  %v11401_v9 = vor.u32 %v14820_v7, %v11400_v6 }
  0x9e   :  { %v14884_v10 = vld [vmem:[#allocation6 + $0xedc] sm:$0xf0] }
  0x9f   :  { %7264 = vmatpush.bf16.msra.mxu0 %v11689_v5  ;;  %v11657_v11 = vor.u32 %v14884_v10, %v11656_v8  ;;  %v10824_v12 = vld [vmem:[#allocation6 + $0x840] sm:$0xf]  ;;  %7252 = vmatpush.bf16.msrb.mxu3 %v11401_v9 }
  0xa0   :  { %v14676_v13 = vld [vmem:[#allocation6 + $0x85c] sm:$0xf0] }
  0xa1   :  { %v10825_v14 = vor.u32 %v14676_v13, %v10824_v12  ;;  %v11080_v15 = vld [vmem:[#allocation6 + $0xa40] sm:$0xf] }
  0xa2   :  { %v14740_v16 = vld [vmem:[#allocation6 + $0xa5c] sm:$0xf0] }
  0xa3   :  { %7265 = vmatpush.bf16.msra.mxu0 %v11657_v11  ;;  %v11081_v17 = vor.u32 %v14740_v16, %v11080_v15  ;;  %v11368_v18 = vld [vmem:[#allocation6 + $0xc80] sm:$0xf]  ;;  %7228 = vmatpush.bf16.msrb.mxu1 %v10825_v14  ;;  %v378_v45 = vpop.f32.mrf.mxu0 }
  0xa4   :  { %v14812_v19 = vld [vmem:[#allocation6 + $0xc9c] sm:$0xf0]  ;;  %v379_v46 = vadd.f32 %v378_v45, %v159_v43  ;;  %v391_v47 = vpop.f32.mrf.mxu1 }
  0xa5   :  { %v11624_v20 = vld [vmem:[#allocation6 + $0xe80] sm:$0xf]  ;;  %v11369_v21 = vor.u32 %v14812_v19, %v11368_v18  ;;  %7241 = vmatpush.bf16.msrb.mxu2 %v11081_v17  ;;  %v392_v50 = vadd.f32 %v391_v47, %v160_v44 }
  0xa6   :  { %v14876_v22 = vld [vmem:[#allocation6 + $0xe9c] sm:$0xf0]  ;;  %v590_v53 = vmax.f32 %v379_v46, 0.0 }
  0xa7   :  { %v11625_v23 = vor.u32 %v14876_v22, %v11624_v20  ;;  %v10792_v24 = vld [vmem:[#allocation6 + $0x800] sm:$0xf]  ;;  %7253 = vmatpush.bf16.msrb.mxu3 %v11369_v21  ;;  %v591_v54 = vmax.f32 %v392_v50, 0.0  ;;  %v163_v20 = vperm.slane %v15845_v42, 4 }
  0xa8   :  { %v14668_v25 = vld [vmem:[#allocation6 + $0x81c] sm:$0xf0]  ;;  %v15850_v57 = vpack.c.bf16 %v590_v53, %v590_v53 }
  0xa9   :  { %v11048_v27 = vld [vmem:[#allocation6 + $0xa00] sm:$0xf]  ;;  %v10793_v28 = vor.u32 %v14668_v25, %v10792_v24  ;;  %7266 = vmatpush.bf16.msra.mxu0 %v11625_v23  ;;  %v15853_v62 = vpack.c.bf16 %v591_v54, %v591_v54 }
  0xaa   :  { %v14732_v29 = vld [vmem:[#allocation6 + $0xa1c] sm:$0xf0]  ;;  %7178 = vmatmul.bf16.vlgmr.msra.gmra.mxu1 %v15850_v57 }
  0xab   :  { %v11049_v30 = vor.u32 %v14732_v29, %v11048_v27  ;;  %7229 = vmatpush.bf16.msrb.mxu1 %v10793_v28  ;;  %v11336_v31 = vld [vmem:[#allocation6 + $0xc40] sm:$0xf]  ;;  %v404_v1 = vpop.f32.mrf.mxu2  ;;  %7191 = vmatmul.bf16.vlgmr.msra.gmra.mxu2 %v15853_v62  ;;  %v380_v4 = vpop.f32.mrf.mxu0 }
  0xac   :  { %v14804_v26 = vld [vmem:[#allocation6 + $0xc5c] sm:$0xf0]  ;;  %v405_v2 = vadd.f32 %v404_v1, %v161_v55  ;;  %v417_v3 = vpop.f32.mrf.mxu3  ;;  %v393_v10 = vpop.f32.mrf.mxu1 }
  0xad   :  { %7242 = vmatpush.bf16.msrb.mxu2 %v11049_v30  ;;  %v11337_v32 = vor.u32 %v14804_v26, %v11336_v31  ;;  %v11592_v33 = vld [vmem:[#allocation6 + $0xe40] sm:$0xf]  ;;  %v418_v9 = vadd.f32 %v417_v3, %v162_v58 }
  0xae   :  { %v14868_v34 = vld [vmem:[#allocation6 + $0xe5c] sm:$0xf0]  ;;  %v592_v15 = vmax.f32 %v405_v2, 0.0 }
  0xaf   :  { %v11593_v35 = vor.u32 %v14868_v34, %v11592_v33  ;;  %7254 = vmatpush.bf16.msrb.mxu3 %v11337_v32  ;;  %v11304_v36 = vld [vmem:[#allocation6 + $0xc00] sm:$0xf]  ;;  %v593_v18 = vmax.f32 %v418_v9, 0.0  ;;  %v164_v32 = vperm.slane %v15845_v42, 5 }
  0xb0   :  { %v14796_v37 = vld [vmem:[#allocation6 + $0xc1c] sm:$0xf0]  ;;  %v15858_v21 = vpack.c.bf16 %v592_v15, %v592_v15 }
  0xb1   :  { %7267 = vmatpush.bf16.msra.mxu0 %v11593_v35  ;;  %v11305_v38 = vor.u32 %v14796_v37, %v11304_v36  ;;  %v11560_v39 = vld [vmem:[#allocation6 + $0xe00] sm:$0xf]  ;;  %v15860_v28 = vpack.c.bf16 %v593_v18, %v593_v18 }
  0xb2   :  { %v14860_v40 = vld [vmem:[#allocation6 + $0xe1c] sm:$0xf0]  ;;  %7204 = vmatmul.bf16.vlgmr.msra.gmra.mxu3 %v15858_v21 }
  0xb3   :  { %v11561_v41 = vor.u32 %v14860_v40, %v11560_v39  ;;  %7255 = vmatpush.bf16.msrb.mxu3 %v11305_v38  ;;  %v12040_v48 = vld [vmem:[#allocation6 + $0x11c0] sm:$0xf]  ;;  %7217 = vmatmul.bf16.vlgmr.msrb.gmra.mxu0 %v15860_v28  ;;  %v406_v35 = vpop.f32.mrf.mxu2  ;;  %v430_v38 = vpop.f32.mrf.mxu0 }
  0xb4   :  { %v14980_v49 = vld [vmem:[#allocation6 + $0x11dc] sm:$0xf0]  ;;  %v419_v37 = vpop.f32.mrf.mxu3  ;;  %v431_v44 = vadd.f32 %v430_v38, %v163_v20  ;;  %v443_v45 = vpop.f32.mrf.mxu1 }
  0xb5   :  { %7268 = vmatpush.bf16.msra.mxu0 %v11561_v41  ;;  %v12296_v51 = vld [vmem:[#allocation6 + $0x13c0] sm:$0xf]  ;;  %v12041_v56 = vor.u32 %v14980_v49, %v12040_v48  ;;  %v444_v50 = vadd.f32 %v443_v45, %v164_v32 }
  0xb6   :  { %v15044_v52 = vld [vmem:[#allocation6 + $0x13dc] sm:$0xf0]  ;;  %v594_v54 = vmax.f32 %v431_v44, 0.0 }
  0xb7   :  { %v12297_v59 = vor.u32 %v15044_v52, %v12296_v51  ;;  %v12008_v60 = vld [vmem:[#allocation6 + $0x1180] sm:$0xf]  ;;  %7274 = vmatpush.bf16.msra.mxu1 %v12041_v56  ;;  %v595_v58 = vmax.f32 %v444_v50, 0.0 }
  0xb8   :  { %v14972_v61 = vld [vmem:[#allocation6 + $0x119c] sm:$0xf0] }
  0xb9   :  { %v12264_v63 = vld [vmem:[#allocation6 + $0x1380] sm:$0xf]  ;;  %v12009_v5 = vor.u32 %v14972_v61, %v12008_v60  ;;  %7287 = vmatpush.bf16.msra.mxu2 %v12297_v59  ;;  %v165_v60 = vperm.slane %v15845_v42, 6 }
  0xba   :  { %v15036_v0 = vld [vmem:[#allocation6 + $0x139c] sm:$0xf0] }
  0xbb   :  { %v12552_v6 = vld [vmem:[#allocation6 + $0x15c0] sm:$0xf]  ;;  %v12265_v11 = vor.u32 %v15036_v0, %v12264_v63  ;;  %7275 = vmatpush.bf16.msra.mxu1 %v12009_v5  ;;  %v15866_v0 = vpack.c.bf16 %v594_v54, %v594_v54  ;;  %v166_v5 = vperm.slane %v15845_v42, 7  ;;  %v456_v10 = vpop.f32.mrf.mxu2 }
  0xbc   :  { %v15108_v7 = vld [vmem:[#allocation6 + $0x15dc] sm:$0xf0]  ;;  %v469_v18 = vpop.f32.mrf.mxu3 }
  0xbd   :  { %v12808_v8 = vld [vmem:[#allocation6 + $0x17c0] sm:$0xf]  ;;  %v12553_v19 = vor.u32 %v15108_v7, %v12552_v6  ;;  %7288 = vmatpush.bf16.msra.mxu2 %v12265_v11  ;;  %v15869_v6 = vpack.c.bf16 %v595_v58, %v595_v58  ;;  %7230 = vmatmul.bf16.vlgmr.msrb.gmra.mxu1 %v15866_v0 }
  0xbe   :  { %v15172_v12 = vld [vmem:[#allocation6 + $0x17dc] sm:$0xf0] }
  0xbf   :  { %v11976_v13 = vld [vmem:[#allocation6 + $0x1140] sm:$0xf]  ;;  %v12809_v22 = vor.u32 %v15172_v12, %v12808_v8  ;;  %7300 = vmatpush.bf16.msra.mxu3 %v12553_v19  ;;  %7243 = vmatmul.bf16.vlgmr.msrb.gmra.mxu2 %v15869_v6  ;;  %v445_v19 = vpop.f32.mrf.mxu1 }
  0xc0   :  { %v14964_v14 = vld [vmem:[#allocation6 + $0x115c] sm:$0xf0] }
  0xc1   :  { %v12232_v16 = vld [vmem:[#allocation6 + $0x1340] sm:$0xf]  ;;  %v11977_v23 = vor.u32 %v14964_v14, %v11976_v13  ;;  %7313 = vmatpush.bf16.msrb.mxu0 %v12809_v22  ;;  %v457_v13 = vadd.f32 %v456_v10, %v165_v60  ;;  %v432_v14 = vpop.f32.mrf.mxu0 }
  0xc2   :  { %v15028_v17 = vld [vmem:[#allocation6 + $0x135c] sm:$0xf0] }
  0xc3   :  { %v12520_v24 = vld [vmem:[#allocation6 + $0x1580] sm:$0xf]  ;;  %v12233_v29 = vor.u32 %v15028_v17, %v12232_v16  ;;  %7276 = vmatpush.bf16.msra.mxu1 %v11977_v23  ;;  %v470_v23 = vadd.f32 %v469_v18, %v166_v5  ;;  %v458_v50 = vpop.f32.mrf.mxu2 }
  0xc4   :  { %v15100_v25 = vld [vmem:[#allocation6 + $0x159c] sm:$0xf0]  ;;  %v471_v60 = vpop.f32.mrf.mxu3 }
  0xc5   :  { %v12776_v27 = vld [vmem:[#allocation6 + $0x1780] sm:$0xf]  ;;  %v12521_v36 = vor.u32 %v15100_v25, %v12520_v24  ;;  %7289 = vmatpush.bf16.msra.mxu2 %v12233_v29  ;;  %v596_v29 = vmax.f32 %v457_v13, 0.0  ;;  %v597_v32 = vmax.f32 %v470_v23, 0.0 }
  0xc6   :  { %v15164_v30 = vld [vmem:[#allocation6 + $0x179c] sm:$0xf0] }
  0xc7   :  { %v11944_v31 = vld [vmem:[#allocation6 + $0x1100] sm:$0xf]  ;;  %v12777_v39 = vor.u32 %v15164_v30, %v12776_v27  ;;  %7301 = vmatpush.bf16.msra.mxu3 %v12521_v36  ;;  %v15873_v27 = vld [vmem:[#allocation4 + $0x8] sm:$0xff] }
  0xc8   :  { %v14956_v26 = vld [vmem:[#allocation6 + $0x111c] sm:$0xf0]  ;;  %v167_v36 = vperm.slane %v15873_v27, 0  ;;  %v168_v37 = vperm.slane %v15873_v27, 1  ;;  %v169_v18 = vperm.slane %v15873_v27, 2 }
  0xc9   :  { %v12200_v33 = vld [vmem:[#allocation6 + $0x1300] sm:$0xf]  ;;  %v11945_v40 = vor.u32 %v14956_v26, %v11944_v31  ;;  %7314 = vmatpush.bf16.msrb.mxu0 %v12777_v39 }
  0xca   :  { %v15020_v34 = vld [vmem:[#allocation6 + $0x131c] sm:$0xf0] }
  0xcb   :  { %v12488_v41 = vld [vmem:[#allocation6 + $0x1540] sm:$0xf]  ;;  %v12201_v46 = vor.u32 %v15020_v34, %v12200_v33  ;;  %7277 = vmatpush.bf16.msra.mxu1 %v11945_v40  ;;  %v15875_v34 = vpack.c.bf16 %v596_v29, %v596_v29  ;;  %v15879_v40 = vpack.c.bf16 %v597_v32, %v597_v32 }
  0xcc   :  { %v15092_v43 = vld [vmem:[#allocation6 + $0x155c] sm:$0xf0] }
  0xcd   :  { %v12744_v47 = vld [vmem:[#allocation6 + $0x1740] sm:$0xf]  ;;  %v12489_v55 = vor.u32 %v15092_v43, %v12488_v41  ;;  %7290 = vmatpush.bf16.msra.mxu2 %v12201_v46  ;;  %7256 = vmatmul.bf16.vlgmr.msrb.gmra.mxu3 %v15875_v34 }
  0xce   :  { %v15156_v48 = vld [vmem:[#allocation6 + $0x175c] sm:$0xf0]  ;;  %7269 = vmatmul.bf16.vlgmr.msra.gmra.mxu0 %v15879_v40 }
  0xcf   :  { %v11912_v49 = vld [vmem:[#allocation6 + $0x10c0] sm:$0xf]  ;;  %v12745_v59 = vor.u32 %v15156_v48, %v12744_v47  ;;  %7302 = vmatpush.bf16.msra.mxu3 %v12489_v55  ;;  %v482_v55 = vpop.f32.mrf.mxu0 }
  0xd0   :  { %v14948_v51 = vld [vmem:[#allocation6 + $0x10dc] sm:$0xf0] }
  0xd1   :  { %v12168_v52 = vld [vmem:[#allocation6 + $0x12c0] sm:$0xf]  ;;  %v11913_v1 = vor.u32 %v14948_v51, %v11912_v49  ;;  %7315 = vmatpush.bf16.msrb.mxu0 %v12745_v59 }
  0xd2   :  { %v15012_v53 = vld [vmem:[#allocation6 + $0x12dc] sm:$0xf0] }
  0xd3   :  { %v12456_v56 = vld [vmem:[#allocation6 + $0x1500] sm:$0xf]  ;;  %v12169_v2 = vor.u32 %v15012_v53, %v12168_v52  ;;  %7278 = vmatpush.bf16.msra.mxu1 %v11913_v1 }
  0xd4   :  { %v15084_v61 = vld [vmem:[#allocation6 + $0x151c] sm:$0xf0] }
  0xd5   :  { %v12712_v63 = vld [vmem:[#allocation6 + $0x1700] sm:$0xf]  ;;  %v12457_v11 = vor.u32 %v15084_v61, %v12456_v56  ;;  %7291 = vmatpush.bf16.msra.mxu2 %v12169_v2  ;;  %v483_v61 = vadd.f32 %v482_v55, %v167_v36 }
  0xd6   :  { %v15148_v3 = vld [vmem:[#allocation6 + $0x171c] sm:$0xf0] }
  0xd7   :  { %v11880_v4 = vld [vmem:[#allocation6 + $0x1080] sm:$0xf]  ;;  %v12713_v15 = vor.u32 %v15148_v3, %v12712_v63  ;;  %7303 = vmatpush.bf16.msra.mxu3 %v12457_v11  ;;  %v495_v63 = vpop.f32.mrf.mxu1  ;;  %v598_v13 = vmax.f32 %v483_v61, 0.0 }
  0xd8   :  { %v14940_v7 = vld [vmem:[#allocation6 + $0x109c] sm:$0xf0] }
  0xd9   :  { %v12136_v8 = vld [vmem:[#allocation6 + $0x1280] sm:$0xf]  ;;  %v11881_v20 = vor.u32 %v14940_v7, %v11880_v4  ;;  %7316 = vmatpush.bf16.msrb.mxu0 %v12713_v15  ;;  %v496_v7 = vadd.f32 %v495_v63, %v168_v37 }
  0xda   :  { %v15004_v9 = vld [vmem:[#allocation6 + $0x129c] sm:$0xf0] }
  0xdb   :  { %v12424_v12 = vld [vmem:[#allocation6 + $0x14c0] sm:$0xf]  ;;  %v12137_v22 = vor.u32 %v15004_v9, %v12136_v8  ;;  %7279 = vmatpush.bf16.msra.mxu1 %v11881_v20 }
  0xdc   :  { %v15076_v16 = vld [vmem:[#allocation6 + $0x14dc] sm:$0xf0] }
  0xdd   :  { %v12680_v17 = vld [vmem:[#allocation6 + $0x16c0] sm:$0xf]  ;;  %v12425_v26 = vor.u32 %v15076_v16, %v12424_v12  ;;  %7292 = vmatpush.bf16.msra.mxu2 %v12137_v22  ;;  %v15884_v22 = vpack.c.bf16 %v598_v13, %v598_v13 }
  0xde   :  { %v15140_v42 = vld [vmem:[#allocation6 + $0x16dc] sm:$0xf0] }
  0xdf   :  { %v11848_v24 = vld [vmem:[#allocation6 + $0x1040] sm:$0xf]  ;;  %v12681_v35 = vor.u32 %v15140_v42, %v12680_v17  ;;  %7304 = vmatpush.bf16.msra.mxu3 %v12425_v26  ;;  %v599_v17 = vmax.f32 %v496_v7, 0.0 }
  0xe0   :  { %v14932_v25 = vld [vmem:[#allocation6 + $0x105c] sm:$0xf0] }
  0xe1   :  { %v12104_v30 = vld [vmem:[#allocation6 + $0x1240] sm:$0xf]  ;;  %v11849_v41 = vor.u32 %v14932_v25, %v11848_v24  ;;  %7317 = vmatpush.bf16.msrb.mxu0 %v12681_v35  ;;  %v170_v25 = vperm.slane %v15873_v27, 3  ;;  %v15887_v29 = vpack.c.bf16 %v599_v17, %v599_v17  ;;  %v508_v35 = vpop.f32.mrf.mxu2 }
  0xe2   :  { %v14996_v31 = vld [vmem:[#allocation6 + $0x125c] sm:$0xf0] }
  0xe3   :  { %v12392_v33 = vld [vmem:[#allocation6 + $0x1480] sm:$0xf]  ;;  %v12105_v43 = vor.u32 %v14996_v31, %v12104_v30  ;;  %7280 = vmatpush.bf16.msra.mxu1 %v11849_v41  ;;  %v509_v41 = vadd.f32 %v508_v35, %v169_v18 }
  0xe4   :  { %v15068_v38 = vld [vmem:[#allocation6 + $0x149c] sm:$0xf0] }
  0xe5   :  { %v12648_v39 = vld [vmem:[#allocation6 + $0x1680] sm:$0xf]  ;;  %v12393_v51 = vor.u32 %v15068_v38, %v12392_v33  ;;  %7293 = vmatpush.bf16.msra.mxu2 %v12105_v43 }
  0xe6   :  { %v15132_v44 = vld [vmem:[#allocation6 + $0x169c] sm:$0xf0] }
  0xe7   :  { %v11816_v45 = vld [vmem:[#allocation6 + $0x1000] sm:$0xf]  ;;  %v12649_v56 = vor.u32 %v15132_v44, %v12648_v39  ;;  %7305 = vmatpush.bf16.msra.mxu3 %v12393_v51 }
  0xe8   :  { %v14924_v46 = vld [vmem:[#allocation6 + $0x101c] sm:$0xf0] }
  0xe9   :  { %v12072_v47 = vld [vmem:[#allocation6 + $0x1200] sm:$0xf]  ;;  %v11817_v1 = vor.u32 %v14924_v46, %v11816_v45  ;;  %7318 = vmatpush.bf16.msrb.mxu0 %v12649_v56  ;;  %v521_v45 = vpop.f32.mrf.mxu3 }
  0xea   :  { %v14988_v48 = vld [vmem:[#allocation6 + $0x121c] sm:$0xf0] }
  0xeb   :  { %v13064_v49 = vld [vmem:[#allocation6 + $0x19c0] sm:$0xf]  ;;  %v12073_v2 = vor.u32 %v14988_v48, %v12072_v47  ;;  %7281 = vmatpush.bf16.msra.mxu1 %v11817_v1  ;;  %v484_v47 = vpop.f32.mrf.mxu0 }
  0xec   :  { %v15236_v52 = vld [vmem:[#allocation6 + $0x19dc] sm:$0xf0] }
  0xed   :  { %v13320_v53 = vld [vmem:[#allocation6 + $0x1bc0] sm:$0xf]  ;;  %v13065_v8 = vor.u32 %v15236_v52, %v13064_v49  ;;  %7294 = vmatpush.bf16.msra.mxu2 %v12073_v2  ;;  %v522_v49 = vadd.f32 %v521_v45, %v170_v25 }
  0xee   :  { %v15300_v54 = vld [vmem:[#allocation6 + $0x1bdc] sm:$0xf0]  ;;  %7282 = vmatmul.bf16.vlgmr.msra.gmra.mxu1 %v15884_v22 }
  0xef   :  { %v12360_v58 = vld [vmem:[#allocation6 + $0x1440] sm:$0xf]  ;;  %v13321_v9 = vor.u32 %v15300_v54, %v13320_v53  ;;  %7326 = vmatpush.bf16.msrb.mxu1 %v13065_v8  ;;  %v497_v53 = vpop.f32.mrf.mxu1  ;;  %v600_v54 = vmax.f32 %v509_v41, 0.0  ;;  %v601_v60 = vmax.f32 %v522_v49, 0.0 }
  0xf0   :  { %v15060_v59 = vld [vmem:[#allocation6 + $0x145c] sm:$0xf0]  ;;  %7295 = vmatmul.bf16.vlgmr.msra.gmra.mxu2 %v15887_v29 }
  0xf1   :  { %v12616_v3 = vld [vmem:[#allocation6 + $0x1640] sm:$0xf]  ;;  %v12361_v14 = vor.u32 %v15060_v59, %v12360_v58  ;;  %7339 = vmatpush.bf16.msrb.mxu2 %v13321_v9  ;;  %v15891_v1 = vpack.c.bf16 %v600_v54, %v600_v54  ;;  %v523_v18 = vpop.f32.mrf.mxu3 }
  0xf2   :  { %v15124_v4 = vld [vmem:[#allocation6 + $0x165c] sm:$0xf0]  ;;  %v174_v18 = vperm.slane %v15873_v27, 7 }
  0xf3   :  { %v13032_v5 = vld [vmem:[#allocation6 + $0x1980] sm:$0xf]  ;;  %v12617_v42 = vor.u32 %v15124_v4, %v12616_v3  ;;  %7306 = vmatpush.bf16.msra.mxu3 %v12361_v14  ;;  %v15893_v3 = vpack.c.bf16 %v601_v60, %v601_v60 }
  0xf4   :  { %v15228_v10 = vld [vmem:[#allocation6 + $0x199c] sm:$0xf0] }
  0xf5   :  { %v13288_v11 = vld [vmem:[#allocation6 + $0x1b80] sm:$0xf]  ;;  %v13033_v30 = vor.u32 %v15228_v10, %v13032_v5  ;;  %7319 = vmatpush.bf16.msrb.mxu0 %v12617_v42  ;;  %v534_v42 = vpop.f32.mrf.mxu0 }
  0xf6   :  { %v15292_v12 = vld [vmem:[#allocation6 + $0x1b9c] sm:$0xf0] }
  0xf7   :  { %v12328_v15 = vld [vmem:[#allocation6 + $0x1400] sm:$0xf]  ;;  %v13289_v31 = vor.u32 %v15292_v12, %v13288_v11  ;;  %7327 = vmatpush.bf16.msrb.mxu1 %v13033_v30 }
  0xf8   :  { %v15052_v16 = vld [vmem:[#allocation6 + $0x141c] sm:$0xf0] }
  0xf9   :  { %v12584_v19 = vld [vmem:[#allocation6 + $0x1600] sm:$0xf]  ;;  %v12329_v36 = vor.u32 %v15052_v16, %v12328_v15  ;;  %7340 = vmatpush.bf16.msrb.mxu2 %v13289_v31  ;;  %v510_v16 = vpop.f32.mrf.mxu2 }
  0xfa   :  { %v15116_v20 = vld [vmem:[#allocation6 + $0x161c] sm:$0xf0] }
  0xfb   :  { %v13576_v23 = vld [vmem:[#allocation6 + $0x1dc0] sm:$0xf]  ;;  %v12585_v43 = vor.u32 %v15116_v20, %v12584_v19  ;;  %7307 = vmatpush.bf16.msra.mxu3 %v12329_v36 }
  0xfc   :  { %v15364_v24 = vld [vmem:[#allocation6 + $0x1ddc] sm:$0xf0] }
  0xfd   :  { %v13832_v26 = vld [vmem:[#allocation6 + $0x1fc0] sm:$0xf]  ;;  %v13577_v44 = vor.u32 %v15364_v24, %v13576_v23  ;;  %7320 = vmatpush.bf16.msrb.mxu0 %v12585_v43  ;;  %v547_v24 = vpop.f32.mrf.mxu1 }
  0xfe   :  { %v15428_v32 = vld [vmem:[#allocation6 + $0x1fdc] sm:$0xf0]  ;;  %7308 = vmatmul.bf16.vlgmr.msra.gmra.mxu3 %v15891_v1 }
  0xff   :  { %v13000_v33 = vld [vmem:[#allocation6 + $0x1940] sm:$0xf]  ;;  %v13833_v48 = vor.u32 %v15428_v32, %v13832_v26  ;;  %7352 = vmatpush.bf16.msrb.mxu3 %v13577_v44  ;;  %v171_v44 = vperm.slane %v15873_v27, 4 }
 0x100   :  { %v15220_v37 = vld [vmem:[#allocation6 + $0x195c] sm:$0xf0]  ;;  %7321 = vmatmul.bf16.vlgmr.msrb.gmra.mxu0 %v15893_v3 }
 0x101   :  { %v13256_v38 = vld [vmem:[#allocation6 + $0x1b40] sm:$0xf]  ;;  %v13001_v55 = vor.u32 %v15220_v37, %v13000_v33  ;;  %7365 = vmatpush.bf16.msra.mxu0 %v13833_v48  ;;  %v172_v48 = vperm.slane %v15873_v27, 5  ;;  %v560_v53 = vpop.f32.mrf.mxu2 }
 0x102   :  { %v15284_v39 = vld [vmem:[#allocation6 + $0x1b5c] sm:$0xf0] }
 0x103   :  { %v13544_v46 = vld [vmem:[#allocation6 + $0x1d80] sm:$0xf]  ;;  %v13257_v56 = vor.u32 %v15284_v39, %v13256_v38  ;;  %7328 = vmatpush.bf16.msrb.mxu1 %v13001_v55 }
 0x104   :  { %v15356_v50 = vld [vmem:[#allocation6 + $0x1d9c] sm:$0xf0] }
 0x105   :  { %v13800_v51 = vld [vmem:[#allocation6 + $0x1f80] sm:$0xf]  ;;  %v13545_v2 = vor.u32 %v15356_v50, %v13544_v46  ;;  %7341 = vmatpush.bf16.msrb.mxu2 %v13257_v56 }
 0x106   :  { %v15420_v52 = vld [vmem:[#allocation6 + $0x1f9c] sm:$0xf0] }
 0x107   :  { %v12968_v58 = vld [vmem:[#allocation6 + $0x1900] sm:$0xf]  ;;  %v13801_v4 = vor.u32 %v15420_v52, %v13800_v51  ;;  %7353 = vmatpush.bf16.msrb.mxu3 %v13545_v2 }
 0x108   :  { %v15212_v59 = vld [vmem:[#allocation6 + $0x191c] sm:$0xf0] }
 0x109   :  { %v13224_v61 = vld [vmem:[#allocation6 + $0x1b00] sm:$0xf]  ;;  %v12969_v8 = vor.u32 %v15212_v59, %v12968_v58  ;;  %7366 = vmatpush.bf16.msra.mxu0 %v13801_v4  ;;  %v573_v58 = vpop.f32.mrf.mxu3  ;;  %v536_v59 = vpop.f32.mrf.mxu0 }
 0x10a   :  { %v15276_v63 = vld [vmem:[#allocation6 + $0x1b1c] sm:$0xf0] }
 0x10b   :  { %v13512_v5 = vld [vmem:[#allocation6 + $0x1d40] sm:$0xf]  ;;  %v13225_v9 = vor.u32 %v15276_v63, %v13224_v61  ;;  %7329 = vmatpush.bf16.msrb.mxu1 %v12969_v8  ;;  %v535_v61 = vadd.f32 %v534_v42, %v171_v44  ;;  %v9994_v42 = vld [vmem:[#allocation6 + $0x1e0] sm:$0xf0]  ;;  %v574_v44 = vadd.f32 %v573_v58, %v174_v18 }
 0x10c   :  { %v15348_v7 = vld [vmem:[#allocation6 + $0x1d5c] sm:$0xf0] }
 0x10d   :  { %v13768_v10 = vld [vmem:[#allocation6 + $0x1f40] sm:$0xf]  ;;  %v13513_v17 = vor.u32 %v15348_v7, %v13512_v5  ;;  %7342 = vmatpush.bf16.msrb.mxu2 %v13225_v9  ;;  %v549_v5 = vpop.f32.mrf.mxu1  ;;  %v548_v7 = vadd.f32 %v547_v24, %v172_v48 }
 0x10e   :  { %v15412_v11 = vld [vmem:[#allocation6 + $0x1f5c] sm:$0xf0]  ;;  %v605_v5 = vmax.f32 %v574_v44, 0.0 }
 0x10f   :  { %v12936_v12 = vld [vmem:[#allocation6 + $0x18c0] sm:$0xf]  ;;  %v13769_v19 = vor.u32 %v15412_v11, %v13768_v10  ;;  %7354 = vmatpush.bf16.msrb.mxu3 %v13513_v17  ;;  %v14464_v17 = vld [vmem:[#allocation6 + $0x1c4] sm:$0xf] }
 0x110   :  { %v15204_v13 = vld [vmem:[#allocation6 + $0x18dc] sm:$0xf0]  ;;  %v15911_v18 = vpack.c.bf16 %v605_v5, %v605_v5  ;;  %v14560_v5 = vld [vmem:[#allocation6 + $0x4c4] sm:$0xf] }
 0x111   :  { %v13192_v14 = vld [vmem:[#allocation6 + $0x1ac0] sm:$0xf]  ;;  %v12937_v25 = vor.u32 %v15204_v13, %v12936_v12  ;;  %7367 = vmatpush.bf16.msra.mxu0 %v13769_v19  ;;  %v602_v19 = vmax.f32 %v535_v61, 0.0  ;;  %v10506_v61 = vld [vmem:[#allocation6 + $0x5e0] sm:$0xf0] }
 0x112   :  { %v15268_v15 = vld [vmem:[#allocation6 + $0x1adc] sm:$0xf0] }
 0x113   :  { %v13480_v20 = vld [vmem:[#allocation6 + $0x1d00] sm:$0xf]  ;;  %v13193_v30 = vor.u32 %v15268_v15, %v13192_v14  ;;  %7330 = vmatpush.bf16.msrb.mxu1 %v12937_v25  ;;  %v173_v15 = vperm.slane %v15873_v27, 6  ;;  %v603_v25 = vmax.f32 %v548_v7, 0.0 }
 0x114   :  { %v15340_v23 = vld [vmem:[#allocation6 + $0x1d1c] sm:$0xf0] }
 0x115   :  { %v13736_v31 = vld [vmem:[#allocation6 + $0x1f00] sm:$0xf]  ;;  %v13481_v37 = vor.u32 %v15340_v23, %v13480_v20  ;;  %7343 = vmatpush.bf16.msrb.mxu2 %v13193_v30 }
 0x116   :  { %v15404_v26 = vld [vmem:[#allocation6 + $0x1f1c] sm:$0xf0] }
 0x117   :  { %v12904_v32 = vld [vmem:[#allocation6 + $0x1880] sm:$0xf]  ;;  %v13737_v39 = vor.u32 %v15404_v26, %v13736_v31  ;;  %7355 = vmatpush.bf16.msrb.mxu3 %v13481_v37 }
 0x118   :  { %v15196_v33 = vld [vmem:[#allocation6 + $0x189c] sm:$0xf0] }
 0x119   :  { %v13160_v35 = vld [vmem:[#allocation6 + $0x1a80] sm:$0xf]  ;;  %v12905_v45 = vor.u32 %v15196_v33, %v12904_v32  ;;  %7368 = vmatpush.bf16.msra.mxu0 %v13737_v39 }
 0x11a   :  { %v15260_v36 = vld [vmem:[#allocation6 + $0x1a9c] sm:$0xf0] }
 0x11b   :  { %v13448_v38 = vld [vmem:[#allocation6 + $0x1cc0] sm:$0xf]  ;;  %v13161_v46 = vor.u32 %v15260_v36, %v13160_v35  ;;  %7331 = vmatpush.bf16.msrb.mxu1 %v12905_v45  ;;  %v9997_v35 = vor.u32 %v14464_v17, %v9994_v42  ;;  %v561_v36 = vadd.f32 %v560_v53, %v173_v15  ;;  %v15901_v45 = vpop.f32.mrf.mxu0  ;;  %v10474_v17 = vld [vmem:[#allocation6 + $0x5a0] sm:$0xf0] }
 0x11c   :  { %v15332_v41 = vld [vmem:[#allocation6 + $0x1cdc] sm:$0xf0] }
 0x11d   :  { %v13704_v43 = vld [vmem:[#allocation6 + $0x1ec0] sm:$0xf]  ;;  %v13449_v54 = vor.u32 %v15332_v41, %v13448_v38  ;;  %7344 = vmatpush.bf16.msrb.mxu2 %v13161_v46  ;;  %v562_v38 = vpop.f32.mrf.mxu2  ;;  %v14456_v41 = vld [vmem:[#allocation6 + $0x184] sm:$0xf]  ;;  %v575_v46 = vpop.f32.mrf.mxu3 }
 0x11e   :  { %v15396_v47 = vld [vmem:[#allocation6 + $0x1edc] sm:$0xf0]  ;;  %v14504_v46 = vld [vmem:[#allocation6 + $0x304] sm:$0xf] }
 0x11f   :  { %v12872_v49 = vld [vmem:[#allocation6 + $0x1840] sm:$0xf]  ;;  %v13705_v60 = vor.u32 %v15396_v47, %v13704_v43  ;;  %7356 = vmatpush.bf16.msrb.mxu3 %v13449_v54  ;;  %v9962_v43 = vld [vmem:[#allocation6 + $0x1a0] sm:$0xf0]  ;;  %v15903_v47 = vpack.c.bf16 %v602_v19, %v602_v19 }
 0x120   :  { %v15188_v50 = vld [vmem:[#allocation6 + $0x185c] sm:$0xf0]  ;;  %v14528_v54 = vld [vmem:[#allocation6 + $0x3c4] sm:$0xf]  ;;  %v9965_v59 = vor.u32 %v14456_v41, %v9962_v43 }
 0x121   :  { %v13128_v51 = vld [vmem:[#allocation6 + $0x1a40] sm:$0xf]  ;;  %v12873_v8 = vor.u32 %v15188_v50, %v12872_v49  ;;  %7369 = vmatpush.bf16.msra.mxu0 %v13705_v60  ;;  %v14592_v60 = vld [vmem:[#allocation6 + $0x5c4] sm:$0xf] }
 0x122   :  { %v15252_v52 = vld [vmem:[#allocation6 + $0x1a5c] sm:$0xf0]  ;;  %v14432_v41 = vld [vmem:[#allocation6 + $0xc4] sm:$0xf] }
 0x123   :  { %v13416_v55 = vld [vmem:[#allocation6 + $0x1c80] sm:$0xf]  ;;  %v13129_v9 = vor.u32 %v15252_v52, %v13128_v51  ;;  %7332 = vmatpush.bf16.msrb.mxu1 %v12873_v8  ;;  %v15905_v52 = vpack.c.bf16 %v603_v25, %v603_v25  ;;  %v14440_v25 = vld [vmem:[#allocation6 + $0x104] sm:$0xf] }
 0x124   :  { %v15324_v56 = vld [vmem:[#allocation6 + $0x1c9c] sm:$0xf0]  ;;  %v9866_v43 = vld [vmem:[#allocation6 + $0xe0] sm:$0xf0] }
 0x125   :  { %v13672_v63 = vld [vmem:[#allocation6 + $0x1e80] sm:$0xf]  ;;  %v13417_v16 = vor.u32 %v15324_v56, %v13416_v55  ;;  %7345 = vmatpush.bf16.msrb.mxu2 %v13129_v9  ;;  %v10250_v55 = vld [vmem:[#allocation6 + $0x3e0] sm:$0xf0]  ;;  %v604_v56 = vmax.f32 %v561_v36, 0.0 }
 0x126   :  { %v15388_v2 = vld [vmem:[#allocation6 + $0x1e9c] sm:$0xf0]  ;;  %v10253_v8 = vor.u32 %v14528_v54, %v10250_v55  ;;  %v14448_v9 = vld [vmem:[#allocation6 + $0x144] sm:$0xf] }
 0x127   :  { %v12840_v4 = vld [vmem:[#allocation6 + $0x1800] sm:$0xf]  ;;  %v13673_v20 = vor.u32 %v15388_v2, %v13672_v63  ;;  %7357 = vmatpush.bf16.msrb.mxu3 %v13417_v16  ;;  %v14584_v16 = vld [vmem:[#allocation6 + $0x584] sm:$0xf] }
 0x128   :  { %v15180_v10 = vld [vmem:[#allocation6 + $0x181c] sm:$0xf0]  ;;  %v10442_v36 = vld [vmem:[#allocation6 + $0x560] sm:$0xf0] }
 0x129   :  { %v13096_v11 = vld [vmem:[#allocation6 + $0x1a00] sm:$0xf]  ;;  %v12841_v30 = vor.u32 %v15180_v10, %v12840_v4  ;;  %7370 = vmatpush.bf16.msra.mxu0 %v13673_v20  ;;  %v9930_v10 = vld [vmem:[#allocation6 + $0x160] sm:$0xf0] }
 0x12a   :  { %v15244_v12 = vld [vmem:[#allocation6 + $0x1a1c] sm:$0xf0]  ;;  %v9933_v42 = vor.u32 %v14448_v9, %v9930_v10 }
 0x12b   :  { %v14088_v13 = vld [vmem:[#allocation6 + $0x21c0] sm:$0xf]  ;;  %v13097_v31 = vor.u32 %v15244_v12, %v13096_v11  ;;  %7333 = vmatpush.bf16.msrb.mxu1 %v12841_v30  ;;  %v10509_v11 = vor.u32 %v14592_v60, %v10506_v61  ;;  %v14520_v12 = vld [vmem:[#allocation6 + $0x384] sm:$0xf] }
 0x12c   :  { %v15492_v14 = vld [vmem:[#allocation6 + $0x21dc] sm:$0xf0]  ;;  %v9898_v30 = vld [vmem:[#allocation6 + $0x120] sm:$0xf0] }
 0x12d   :  { %v13384_v23 = vld [vmem:[#allocation6 + $0x1c40] sm:$0xf]  ;;  %v14089_v33 = vor.u32 %v15492_v14, %v14088_v13  ;;  %7346 = vmatpush.bf16.msrb.mxu2 %v13097_v31  ;;  %v10218_v13 = vld [vmem:[#allocation6 + $0x3a0] sm:$0xf0]  ;;  %v15909_v14 = vpack.c.bf16 %v604_v56, %v604_v56  ;;  %v10477_v31 = vor.u32 %v14584_v16, %v10474_v17 }
 0x12e   :  { %v15316_v24 = vld [vmem:[#allocation6 + $0x1c5c] sm:$0xf0]  ;;  %7334 = vmatmul.bf16.vlgmr.msrb.gmra.mxu1 %v15903_v47  ;;  %v14496_v61 = vld [vmem:[#allocation6 + $0x2c4] sm:$0xf] }
 0x12f   :  { %v13640_v26 = vld [vmem:[#allocation6 + $0x1e40] sm:$0xf]  ;;  %v13385_v39 = vor.u32 %v15316_v24, %v13384_v23  ;;  %7378 = vmatpush.bf16.msra.mxu1 %v14089_v33  ;;  %v588_v23 = vpop.f32.mrf.mxu0  ;;  %v10221_v24 = vor.u32 %v14520_v12, %v10218_v13  ;;  %v14416_v12 = vld [vmem:[#allocation6 + $0x44] sm:$0xf] }
 0x130   :  { %v15380_v32 = vld [vmem:[#allocation6 + $0x1e5c] sm:$0xf0]  ;;  %7347 = vmatmul.bf16.vlgmr.msrb.gmra.mxu2 %v15905_v52  ;;  %v9802_v13 = vld [vmem:[#allocation6 + $0x60] sm:$0xf0] }
 0x131   :  { %v14056_v37 = vld [vmem:[#allocation6 + $0x2180] sm:$0xf]  ;;  %v13641_v48 = vor.u32 %v15380_v32, %v13640_v26  ;;  %7391 = vmatpush.bf16.msra.mxu2 %v9997_v35  ;;  %7358 = vmatpush.bf16.msrb.mxu3 %v13385_v39  ;;  %v14512_v26 = vld [vmem:[#allocation6 + $0x344] sm:$0xf] }
 0x132   :  { %v15484_v27 = vld [vmem:[#allocation6 + $0x219c] sm:$0xf0]  ;;  %v10186_v32 = vld [vmem:[#allocation6 + $0x360] sm:$0xf0] }
 0x133   :  { %v13352_v49 = vld [vmem:[#allocation6 + $0x1c00] sm:$0xf]  ;;  %v14057_v58 = vor.u32 %v15484_v27, %v14056_v37  ;;  %7371 = vmatpush.bf16.msra.mxu0 %v13641_v48  ;;  %v14576_v35 = vld [vmem:[#allocation6 + $0x544] sm:$0xf]  ;;  %v9901_v37 = vor.u32 %v14440_v25, %v9898_v30  ;;  %v10189_v27 = vor.u32 %v14512_v26, %v10186_v32  ;;  %v9805_v30 = vor.u32 %v14416_v12, %v9802_v13 }
 0x134   :  { %v15308_v50 = vld [vmem:[#allocation6 + $0x1c1c] sm:$0xf0]  ;;  %v10445_v44 = vor.u32 %v14576_v35, %v10442_v36  ;;  %v10154_v48 = vld [vmem:[#allocation6 + $0x320] sm:$0xf0] }
 0x135   :  { %v13608_v51 = vld [vmem:[#allocation6 + $0x1e00] sm:$0xf]  ;;  %v13353_v63 = vor.u32 %v15308_v50, %v13352_v49  ;;  %7379 = vmatpush.bf16.msra.mxu1 %v14057_v58  ;;  %7392 = vmatpush.bf16.msra.mxu2 %v9965_v59  ;;  %v14568_v50 = vld [vmem:[#allocation6 + $0x504] sm:$0xf]  ;;  %v10157_v56 = vor.u32 %v14504_v46, %v10154_v48 }
 0x136   :  { %v15372_v53 = vld [vmem:[#allocation6 + $0x1e1c] sm:$0xf0]  ;;  %v14424_v58 = vld [vmem:[#allocation6 + $0x84] sm:$0xf] }
 0x137   :  { %v14024_v2 = vld [vmem:[#allocation6 + $0x2140] sm:$0xf]  ;;  %v13609_v7 = vor.u32 %v15372_v53, %v13608_v51  ;;  %7359 = vmatpush.bf16.msrb.mxu3 %v13353_v63  ;;  %v10410_v51 = vld [vmem:[#allocation6 + $0x520] sm:$0xf0]  ;;  %v9869_v53 = vor.u32 %v14432_v41, %v9866_v43 }
 0x138   :  { %v15476_v4 = vld [vmem:[#allocation6 + $0x215c] sm:$0xf0]  ;;  %v9834_v59 = vld [vmem:[#allocation6 + $0xa0] sm:$0xf0]  ;;  %v10413_v60 = vor.u32 %v14568_v50, %v10410_v51 }
 0x139   :  { %v14025_v15 = vor.u32 %v15476_v4, %v14024_v2  ;;  %v13992_v19 = vld [vmem:[#allocation6 + $0x2100] sm:$0xf]  ;;  %7372 = vmatpush.bf16.msra.mxu0 %v13609_v7  ;;  %7393 = vmatpush.bf16.msra.mxu2 %v9933_v42  ;;  %v10122_v63 = vld [vmem:[#allocation6 + $0x2e0] sm:$0xf0]  ;;  %v15572_v2 = vld [vmem:[#allocation4 + $0x10] ss:$0 sm:$0xff] }
 0x13a   :  { %v15468_v20 = vld [vmem:[#allocation6 + $0x211c] sm:$0xf0]  ;;  %7360 = vmatmul.bf16.vlgmr.msrb.gmra.mxu3 %v15909_v14  ;;  %v10378_v7 = vld [vmem:[#allocation6 + $0x4e0] sm:$0xf0]  ;;  %v587_v16 = vadd.f32 %v15572_v2, %v15901_v45 }
 0x13b   :  { %7404 = vmatpush.bf16.msra.mxu3 %v10253_v8  ;;  %7380 = vmatpush.bf16.msra.mxu1 %v14025_v15  ;;  %v13993_v33 = vor.u32 %v15468_v20, %v13992_v19  ;;  %v13960_v38 = vld [vmem:[#allocation6 + $0x20c0] sm:$0xf]  ;;  %v9837_v8 = vor.u32 %v14424_v58, %v9834_v59  ;;  %v10381_v15 = vor.u32 %v14560_v5, %v10378_v7  ;;  %v14488_v17 = vld [vmem:[#allocation6 + $0x284] sm:$0xf] }
 0x13c   :  { %7373 = vmatmul.bf16.vlgmr.msra.gmra.mxu0 %v15911_v18  ;;  %v15460_v39 = vld [vmem:[#allocation6 + $0x20dc] sm:$0xf0]  ;;  %v10090_v42 = vld [vmem:[#allocation6 + $0x2a0] sm:$0xf0]  ;;  %v606_v45 = vmax.f32 %v587_v16, 0.0 }
 0x13d   :  { %7417 = vmatpush.bf16.msrb.mxu0 %v10509_v11  ;;  %v13961_v49 = vor.u32 %v15460_v39, %v13960_v38  ;;  %7394 = vmatpush.bf16.msra.mxu2 %v9901_v37  ;;  %v13928_v54 = vld [vmem:[#allocation6 + $0x2080] sm:$0xf]  ;;  %v10125_v11 = vor.u32 %v14496_v61, %v10122_v63  ;;  %v14552_v19 = vld [vmem:[#allocation6 + $0x484] sm:$0xf] }
 0x13e   :  { %v15452_v55 = vld [vmem:[#allocation6 + $0x209c] sm:$0xf0]  ;;  %v10346_v23 = vld [vmem:[#allocation6 + $0x4a0] sm:$0xf0] }
 0x13f   :  { %7405 = vmatpush.bf16.msra.mxu3 %v10221_v24  ;;  %7381 = vmatpush.bf16.msra.mxu1 %v13993_v33  ;;  %v13929_v4 = vor.u32 %v15452_v55, %v13928_v54  ;;  %v13896_v9 = vld [vmem:[#allocation6 + $0x2040] sm:$0xf]  ;;  %v9770_v26 = vld [vmem:[#allocation6 + $0x20] sm:$0xf0]  ;;  %v10093_v33 = vor.u32 %v14488_v17, %v10090_v42  ;;  %v10349_v38 = vor.u32 %v14552_v19, %v10346_v23 }
 0x140   :  { %v15444_v10 = vld [vmem:[#allocation6 + $0x205c] sm:$0xf0]  ;;  %v14656_v32 = vld [vmem:[#allocation6 + $0x7c4] sm:$0xf] }
 0x141   :  { %7418 = vmatpush.bf16.msrb.mxu0 %v10477_v31  ;;  %7395 = vmatpush.bf16.msra.mxu2 %v9869_v53  ;;  %v13897_v20 = vor.u32 %v15444_v10, %v13896_v9  ;;  %v13864_v24 = vld [vmem:[#allocation6 + $0x2000] sm:$0xf]  ;;  %v14408_v31 = vld [vmem:[#allocation6 + $0x4] sm:$0xf] }
 0x142   :  { %v15436_v25 = vld [vmem:[#allocation6 + $0x201c] sm:$0xf0]  ;;  %v10762_v35 = vld [vmem:[#allocation6 + $0x7e0] sm:$0xf0]  ;;  %v9773_v46 = vor.u32 %v14408_v31, %v9770_v26 }
 0x143   :  { %7406 = vmatpush.bf16.msra.mxu3 %v10189_v27  ;;  %7382 = vmatpush.bf16.msra.mxu1 %v13961_v49  ;;  %v14720_v36 = vld [vmem:[#allocation6 + $0x9c4] sm:$0xf]  ;;  %v13865_v41 = vor.u32 %v15436_v25, %v13864_v24  ;;  %v10765_v48 = vor.u32 %v14656_v32, %v10762_v35 }
 0x144   :  { %v11018_v37 = vld [vmem:[#allocation6 + $0x9e0] sm:$0xf0] }
 0x145   :  { %7419 = vmatpush.bf16.msrb.mxu0 %v10445_v44  ;;  %7396 = vmatpush.bf16.msra.mxu2 %v9837_v8  ;;  %v14480_v39 = vld [vmem:[#allocation6 + $0x244] sm:$0xf]  ;;  %v11021_v50 = vor.u32 %v14720_v36, %v11018_v37 }
 0x146   :  { %v10058_v27 = vld [vmem:[#allocation6 + $0x260] sm:$0xf0] }
 0x147   :  { %7407 = vmatpush.bf16.msra.mxu3 %v10157_v56  ;;  %7383 = vmatpush.bf16.msra.mxu1 %v13929_v4  ;;  %v14544_v43 = vld [vmem:[#allocation6 + $0x444] sm:$0xf]  ;;  %v10061_v51 = vor.u32 %v14480_v39, %v10058_v27  ;;  %v15916_v56 = vpack.c.bf16 %v606_v45, %v606_v45 }
 0x148   :  { %v10314_v44 = vld [vmem:[#allocation6 + $0x460] sm:$0xf0] }
 0x149   :  { %7420 = vmatpush.bf16.msrb.mxu0 %v10413_v60  ;;  %7397 = vmatpush.bf16.msra.mxu2 %v9805_v30  ;;  %v14648_v49 = vld [vmem:[#allocation6 + $0x784] sm:$0xf]  ;;  %v10317_v58 = vor.u32 %v14544_v43, %v10314_v44 }
 0x14a   :  { %v10730_v53 = vld [vmem:[#allocation6 + $0x7a0] sm:$0xf0] }
 0x14b   :  { %7408 = vmatpush.bf16.msra.mxu3 %v10125_v11  ;;  %7384 = vmatpush.bf16.msra.mxu1 %v13897_v20  ;;  %v14712_v54 = vld [vmem:[#allocation6 + $0x984] sm:$0xf]  ;;  %v10733_v5 = vor.u32 %v14648_v49, %v10730_v53 }
 0x14c   :  { %v10986_v55 = vld [vmem:[#allocation6 + $0x9a0] sm:$0xf0] }
 0x14d   :  { %7421 = vmatpush.bf16.msrb.mxu0 %v10381_v15  ;;  %v14472_v59 = vld [vmem:[#allocation6 + $0x204] sm:$0xf]  ;;  %7398 = vmatpush.bf16.msra.mxu2 %v9773_v46  ;;  %v10989_v9 = vor.u32 %v14712_v54, %v10986_v55 }
 0x14e   :  { %v10026_v60 = vld [vmem:[#allocation6 + $0x220] sm:$0xf0] }
 0x14f   :  { %7409 = vmatpush.bf16.msra.mxu3 %v10093_v33  ;;  %v14536_v61 = vld [vmem:[#allocation6 + $0x404] sm:$0xf]  ;;  %7385 = vmatpush.bf16.msra.mxu1 %v13865_v41  ;;  %v10029_v10 = vor.u32 %v14472_v59, %v10026_v60 }
 0x150   :  { %v10282_v63 = vld [vmem:[#allocation6 + $0x420] sm:$0xf0]  ;;  %7399 = vmatmul.bf16.vlgmr.msra.gmra.mxu2 %v15850_v57 }
 0x151   :  { %7422 = vmatpush.bf16.msrb.mxu0 %v10349_v38  ;;  %v14784_v2 = vld [vmem:[#allocation6 + $0xbc4] sm:$0xf]  ;;  %7443 = vmatpush.bf16.msrb.mxu2 %v11021_v50  ;;  %v10285_v13 = vor.u32 %v14536_v61, %v10282_v63 }
 0x152   :  { %v11274_v4 = vld [vmem:[#allocation6 + $0xbe0] sm:$0xf0]  ;;  %7386 = vmatmul.bf16.vlgmr.msra.gmra.mxu1 %v15916_v56 }
 0x153   :  { %7430 = vmatpush.bf16.msrb.mxu1 %v10765_v48  ;;  %v14848_v7 = vld [vmem:[#allocation6 + $0xdc4] sm:$0xf]  ;;  %7410 = vmatpush.bf16.msra.mxu3 %v10061_v51  ;;  %v11277_v15 = vor.u32 %v14784_v2, %v11274_v4 }
 0x154   :  { %v11530_v8 = vld [vmem:[#allocation6 + $0xde0] sm:$0xf0] }
 0x155   :  { %v14640_v11 = vld [vmem:[#allocation6 + $0x744] sm:$0xf]  ;;  %7423 = vmatpush.bf16.msrb.mxu0 %v10317_v58  ;;  %v11533_v42 = vor.u32 %v14848_v7, %v11530_v8  ;;  %7444 = vmatpush.bf16.msrb.mxu2 %v10989_v9 }
 0x156   :  { %v10698_v12 = vld [vmem:[#allocation6 + $0x760] sm:$0xf0] }
 0x157   :  { %v14704_v16 = vld [vmem:[#allocation6 + $0x944] sm:$0xf]  ;;  %7431 = vmatpush.bf16.msrb.mxu1 %v10733_v5  ;;  %v10701_v23 = vor.u32 %v14640_v11, %v10698_v12  ;;  %7411 = vmatpush.bf16.msra.mxu3 %v10029_v10 }
 0x158   :  { %v10954_v17 = vld [vmem:[#allocation6 + $0x960] sm:$0xf0] }
 0x159   :  { %v14776_v19 = vld [vmem:[#allocation6 + $0xb84] sm:$0xf]  ;;  %v10957_v30 = vor.u32 %v14704_v16, %v10954_v17  ;;  %7424 = vmatpush.bf16.msrb.mxu0 %v10285_v13 }
 0x15a   :  { %v11242_v20 = vld [vmem:[#allocation6 + $0xba0] sm:$0xf0]  ;;  %7412 = vmatmul.bf16.vlgmr.msra.gmra.mxu3 %v15853_v62 }
 0x15b   :  { %v14840_v24 = vld [vmem:[#allocation6 + $0xd84] sm:$0xf]  ;;  %7456 = vmatpush.bf16.msrb.mxu3 %v11277_v15  ;;  %v11245_v32 = vor.u32 %v14776_v19, %v11242_v20  ;;  %7432 = vmatpush.bf16.msrb.mxu1 %v10701_v23 }
 0x15c   :  { %v11498_v25 = vld [vmem:[#allocation6 + $0xda0] sm:$0xf0]  ;;  %7425 = vmatmul.bf16.vlgmr.msrb.gmra.mxu0 %v15858_v21  ;;  %7445 = vmatpush.bf16.msrb.mxu2 %v10957_v30 }
 0x15d   :  { %v14632_v31 = vld [vmem:[#allocation6 + $0x704] sm:$0xf]  ;;  %7469 = vmatpush.bf16.msra.mxu0 %v11533_v42  ;;  %v11501_v36 = vor.u32 %v14840_v24, %v11498_v25 }
 0x15e   :  { %v10666_v26 = vld [vmem:[#allocation6 + $0x720] sm:$0xf0] }
 0x15f   :  { %v14696_v33 = vld [vmem:[#allocation6 + $0x904] sm:$0xf]  ;;  %v10669_v38 = vor.u32 %v14632_v31, %v10666_v26  ;;  %7457 = vmatpush.bf16.msrb.mxu3 %v11245_v32 }
 0x160   :  { %v10922_v35 = vld [vmem:[#allocation6 + $0x920] sm:$0xf0] }
 0x161   :  { %v14768_v37 = vld [vmem:[#allocation6 + $0xb44] sm:$0xf]  ;;  %v10925_v41 = vor.u32 %v14696_v33, %v10922_v35  ;;  %7470 = vmatpush.bf16.msra.mxu0 %v11501_v36  ;;  %7433 = vmatpush.bf16.msrb.mxu1 %v10669_v38 }
 0x162   :  { %v11210_v45 = vld [vmem:[#allocation6 + $0xb60] sm:$0xf0] }
 0x163   :  { %v14832_v39 = vld [vmem:[#allocation6 + $0xd44] sm:$0xf]  ;;  %v11213_v46 = vor.u32 %v14768_v37, %v11210_v45  ;;  %7446 = vmatpush.bf16.msrb.mxu2 %v10925_v41 }
 0x164   :  { %v11466_v27 = vld [vmem:[#allocation6 + $0xd60] sm:$0xf0] }
 0x165   :  { %v14624_v43 = vld [vmem:[#allocation6 + $0x6c4] sm:$0xf]  ;;  %v11469_v50 = vor.u32 %v14832_v39, %v11466_v27  ;;  %7458 = vmatpush.bf16.msrb.mxu3 %v11213_v46 }
 0x166   :  { %v10634_v44 = vld [vmem:[#allocation6 + $0x6e0] sm:$0xf0] }
 0x167   :  { %v14688_v48 = vld [vmem:[#allocation6 + $0x8c4] sm:$0xf]  ;;  %v10637_v54 = vor.u32 %v14624_v43, %v10634_v44  ;;  %7471 = vmatpush.bf16.msra.mxu0 %v11469_v50 }
 0x168   :  { %v10890_v49 = vld [vmem:[#allocation6 + $0x8e0] sm:$0xf0] }
 0x169   :  { %v14760_v51 = vld [vmem:[#allocation6 + $0xb04] sm:$0xf]  ;;  %v10893_v59 = vor.u32 %v14688_v48, %v10890_v49  ;;  %7434 = vmatpush.bf16.msrb.mxu1 %v10637_v54 }
 0x16a   :  { %v11178_v53 = vld [vmem:[#allocation6 + $0xb20] sm:$0xf0] }
 0x16b   :  { %v14824_v55 = vld [vmem:[#allocation6 + $0xd04] sm:$0xf]  ;;  %v11181_v63 = vor.u32 %v14760_v51, %v11178_v53  ;;  %7447 = vmatpush.bf16.msrb.mxu2 %v10893_v59 }
 0x16c   :  { %v11434_v58 = vld [vmem:[#allocation6 + $0xd20] sm:$0xf0] }
 0x16d   :  { %v14616_v60 = vld [vmem:[#allocation6 + $0x684] sm:$0xf]  ;;  %v11437_v5 = vor.u32 %v14824_v55, %v11434_v58  ;;  %7459 = vmatpush.bf16.msrb.mxu3 %v11181_v63 }
 0x16e   :  { %v10602_v61 = vld [vmem:[#allocation6 + $0x6a0] sm:$0xf0] }
 0x16f   :  { %v14680_v2 = vld [vmem:[#allocation6 + $0x884] sm:$0xf]  ;;  %v10605_v9 = vor.u32 %v14616_v60, %v10602_v61  ;;  %7472 = vmatpush.bf16.msra.mxu0 %v11437_v5 }
 0x170   :  { %v10858_v4 = vld [vmem:[#allocation6 + $0x8a0] sm:$0xf0] }
 0x171   :  { %v14752_v7 = vld [vmem:[#allocation6 + $0xac4] sm:$0xf]  ;;  %v10861_v12 = vor.u32 %v14680_v2, %v10858_v4  ;;  %7435 = vmatpush.bf16.msrb.mxu1 %v10605_v9 }
 0x172   :  { %v11146_v8 = vld [vmem:[#allocation6 + $0xae0] sm:$0xf0] }
 0x173   :  { %v14816_v10 = vld [vmem:[#allocation6 + $0xcc4] sm:$0xf]  ;;  %v11149_v16 = vor.u32 %v14752_v7, %v11146_v8  ;;  %7448 = vmatpush.bf16.msrb.mxu2 %v10861_v12 }
 0x174   :  { %v11402_v11 = vld [vmem:[#allocation6 + $0xce0] sm:$0xf0] }
 0x175   :  { %v14608_v13 = vld [vmem:[#allocation6 + $0x644] sm:$0xf]  ;;  %v11405_v19 = vor.u32 %v14816_v10, %v11402_v11  ;;  %7460 = vmatpush.bf16.msrb.mxu3 %v11149_v16 }
 0x176   :  { %v10570_v15 = vld [vmem:[#allocation6 + $0x660] sm:$0xf0] }
 0x177   :  { %v14672_v17 = vld [vmem:[#allocation6 + $0x844] sm:$0xf]  ;;  %v10573_v24 = vor.u32 %v14608_v13, %v10570_v15  ;;  %7473 = vmatpush.bf16.msra.mxu0 %v11405_v19 }
 0x178   :  { %v10826_v42 = vld [vmem:[#allocation6 + $0x860] sm:$0xf0] }
 0x179   :  { %v14744_v20 = vld [vmem:[#allocation6 + $0xa84] sm:$0xf]  ;;  %v10829_v26 = vor.u32 %v14672_v17, %v10826_v42  ;;  %7436 = vmatpush.bf16.msrb.mxu1 %v10573_v24 }
 0x17a   :  { %v11114_v23 = vld [vmem:[#allocation6 + $0xaa0] sm:$0xf0] }
 0x17b   :  { %v14808_v25 = vld [vmem:[#allocation6 + $0xc84] sm:$0xf]  ;;  %v11117_v36 = vor.u32 %v14744_v20, %v11114_v23  ;;  %7449 = vmatpush.bf16.msrb.mxu2 %v10829_v26 }
 0x17c   :  { %v11370_v30 = vld [vmem:[#allocation6 + $0xca0] sm:$0xf0] }
 0x17d   :  { %v14600_v31 = vld [vmem:[#allocation6 + $0x604] sm:$0xf]  ;;  %v11373_v39 = vor.u32 %v14808_v25, %v11370_v30  ;;  %7461 = vmatpush.bf16.msrb.mxu3 %v11117_v36 }
 0x17e   :  { %v10538_v32 = vld [vmem:[#allocation6 + $0x620] sm:$0xf0] }
 0x17f   :  { %v14664_v33 = vld [vmem:[#allocation6 + $0x804] sm:$0xf]  ;;  %v10541_v44 = vor.u32 %v14600_v31, %v10538_v32  ;;  %7474 = vmatpush.bf16.msra.mxu0 %v11373_v39  ;;  %v7179_v39 = vpop.f32.mrf.mxu1 }
 0x180   :  { %v10794_v35 = vld [vmem:[#allocation6 + $0x820] sm:$0xf0] }
 0x181   :  { %v14912_v37 = vld [vmem:[#allocation6 + $0xfc4] sm:$0xf]  ;;  %v10797_v49 = vor.u32 %v14664_v33, %v10794_v35  ;;  %7437 = vmatpush.bf16.msrb.mxu1 %v10541_v44 }
 0x182   :  { %v11786_v45 = vld [vmem:[#allocation6 + $0xfe0] sm:$0xf0] }
 0x183   :  { %v14976_v38 = vld [vmem:[#allocation6 + $0x11c4] sm:$0xf]  ;;  %v11789_v50 = vor.u32 %v14912_v37, %v11786_v45  ;;  %7450 = vmatpush.bf16.msrb.mxu2 %v10797_v49 }
 0x184   :  { %v12042_v27 = vld [vmem:[#allocation6 + $0x11e0] sm:$0xf0]  ;;  %7438 = vmatmul.bf16.vlgmr.msrb.gmra.mxu1 %v15860_v28 }
 0x185   :  { %v14736_v41 = vld [vmem:[#allocation6 + $0xa44] sm:$0xf]  ;;  %v12045_v53 = vor.u32 %v14976_v38, %v12042_v27  ;;  %7482 = vmatpush.bf16.msra.mxu1 %v11789_v50 }
 0x186   :  { %v11082_v43 = vld [vmem:[#allocation6 + $0xa60] sm:$0xf0]  ;;  %7451 = vmatmul.bf16.vlgmr.msrb.gmra.mxu2 %v15866_v0 }
 0x187   :  { %v14800_v46 = vld [vmem:[#allocation6 + $0xc44] sm:$0xf]  ;;  %v11085_v54 = vor.u32 %v14736_v41, %v11082_v43  ;;  %7495 = vmatpush.bf16.msra.mxu2 %v12045_v53 }
 0x188   :  { %v11338_v48 = vld [vmem:[#allocation6 + $0xc60] sm:$0xf0] }
 0x189   :  { %v14904_v51 = vld [vmem:[#allocation6 + $0xf84] sm:$0xf]  ;;  %v11341_v60 = vor.u32 %v14800_v46, %v11338_v48  ;;  %7462 = vmatpush.bf16.msrb.mxu3 %v11085_v54 }
 0x18a   :  { %v11754_v55 = vld [vmem:[#allocation6 + $0xfa0] sm:$0xf0] }
 0x18b   :  { %v14968_v58 = vld [vmem:[#allocation6 + $0x1184] sm:$0xf]  ;;  %v11757_v8 = vor.u32 %v14904_v51, %v11754_v55  ;;  %7475 = vmatpush.bf16.msra.mxu0 %v11341_v60 }
 0x18c   :  { %v12010_v59 = vld [vmem:[#allocation6 + $0x11a0] sm:$0xf0] }
 0x18d   :  { %v14728_v61 = vld [vmem:[#allocation6 + $0xa04] sm:$0xf]  ;;  %v12013_v11 = vor.u32 %v14968_v58, %v12010_v59  ;;  %7483 = vmatpush.bf16.msra.mxu1 %v11757_v8 }
 0x18e   :  { %v11050_v63 = vld [vmem:[#allocation6 + $0xa20] sm:$0xf0] }
 0x18f   :  { %v14792_v2 = vld [vmem:[#allocation6 + $0xc04] sm:$0xf]  ;;  %v11053_v12 = vor.u32 %v14728_v61, %v11050_v63  ;;  %7496 = vmatpush.bf16.msra.mxu2 %v12013_v11 }
 0x190   :  { %v11306_v4 = vld [vmem:[#allocation6 + $0xc20] sm:$0xf0] }
 0x191   :  { %v15040_v5 = vld [vmem:[#allocation6 + $0x13c4] sm:$0xf]  ;;  %v11309_v16 = vor.u32 %v14792_v2, %v11306_v4  ;;  %7463 = vmatpush.bf16.msrb.mxu3 %v11053_v12 }
 0x192   :  { %v12298_v7 = vld [vmem:[#allocation6 + $0x13e0] sm:$0xf0] }
 0x193   :  { %v15104_v9 = vld [vmem:[#allocation6 + $0x15c4] sm:$0xf]  ;;  %v12301_v17 = vor.u32 %v15040_v5, %v12298_v7  ;;  %7476 = vmatpush.bf16.msra.mxu0 %v11309_v16  ;;  %v7181_v16 = vpop.f32.mrf.mxu1 }
 0x194   :  { %v12554_v10 = vld [vmem:[#allocation6 + $0x15e0] sm:$0xf0]  ;;  %7464 = vmatmul.bf16.vlgmr.msrb.gmra.mxu3 %v15869_v6 }
 0x195   :  { %v14896_v13 = vld [vmem:[#allocation6 + $0xf44] sm:$0xf]  ;;  %v12557_v20 = vor.u32 %v15104_v9, %v12554_v10  ;;  %7508 = vmatpush.bf16.msra.mxu3 %v12301_v17  ;;  %v7192_v9 = vpop.f32.mrf.mxu2 }
 0x196   :  { %v11722_v15 = vld [vmem:[#allocation6 + $0xf60] sm:$0xf0]  ;;  %7477 = vmatmul.bf16.vlgmr.msra.gmra.mxu0 %v15875_v34 }
 0x197   :  { %v14960_v42 = vld [vmem:[#allocation6 + $0x1144] sm:$0xf]  ;;  %v11725_v25 = vor.u32 %v14896_v13, %v11722_v15  ;;  %7521 = vmatpush.bf16.msrb.mxu0 %v12557_v20  ;;  %v7218_v15 = vpop.f32.mrf.mxu0 }
 0x198   :  { %v11978_v19 = vld [vmem:[#allocation6 + $0x1160] sm:$0xf0] }
 0x199   :  { %v15032_v23 = vld [vmem:[#allocation6 + $0x1384] sm:$0xf]  ;;  %v11981_v32 = vor.u32 %v14960_v42, %v11978_v19  ;;  %7484 = vmatpush.bf16.msra.mxu1 %v11725_v25 }
 0x19a   :  { %v12266_v24 = vld [vmem:[#allocation6 + $0x13a0] sm:$0xf0] }
 0x19b   :  { %v15924_v30 = vld [vmem:[#allocation7] sm:$0xff]  ;;  %v12269_v36 = vor.u32 %v15032_v23, %v12266_v24  ;;  %7497 = vmatpush.bf16.msra.mxu2 %v11981_v32 }
 0x19c   :  { %v15096_v31 = vld [vmem:[#allocation6 + $0x1584] sm:$0xf]  ;;  %v1714_v38 = vperm.slane %v15924_v30, 0 }
 0x19d   :  { %v12522_v26 = vld [vmem:[#allocation6 + $0x15a0] sm:$0xf0]  ;;  %7509 = vmatpush.bf16.msra.mxu3 %v12269_v36 }
 0x19e   :  { %v14888_v33 = vld [vmem:[#allocation6 + $0xf04] sm:$0xf]  ;;  %v12525_v27 = vor.u32 %v15096_v31, %v12522_v26  ;;  %v7180_v58 = vadd.f32 %v7179_v39, %v1714_v38  ;;  %v7205_v38 = vpop.f32.mrf.mxu3 }
 0x19f   :  { %v11690_v35 = vld [vmem:[#allocation6 + $0xf20] sm:$0xf0] }
 0x1a0   :  { %v14952_v37 = vld [vmem:[#allocation6 + $0x1104] sm:$0xf]  ;;  %v11693_v44 = vor.u32 %v14888_v33, %v11690_v35  ;;  %7522 = vmatpush.bf16.msrb.mxu0 %v12525_v27  ;;  %v7193_v13 = vadd.f32 %v7192_v9, %v7180_v58 }
 0x1a1   :  { %v11946_v45 = vld [vmem:[#allocation6 + $0x1120] sm:$0xf0] }
 0x1a2   :  { %v15024_v41 = vld [vmem:[#allocation6 + $0x1344] sm:$0xf]  ;;  %v11949_v49 = vor.u32 %v14952_v37, %v11946_v45  ;;  %7485 = vmatpush.bf16.msra.mxu1 %v11693_v44  ;;  %v7206_v44 = vadd.f32 %v7205_v38, %v7193_v13 }
 0x1a3   :  { %v12234_v43 = vld [vmem:[#allocation6 + $0x1360] sm:$0xf0] }
 0x1a4   :  { %v15088_v46 = vld [vmem:[#allocation6 + $0x1544] sm:$0xf]  ;;  %v12237_v53 = vor.u32 %v15024_v41, %v12234_v43  ;;  %7498 = vmatpush.bf16.msra.mxu2 %v11949_v49 }
 0x1a5   :  { %v12490_v48 = vld [vmem:[#allocation6 + $0x1560] sm:$0xf0] }
 0x1a6   :  { %v14880_v50 = vld [vmem:[#allocation6 + $0xec4] sm:$0xf]  ;;  %v12493_v59 = vor.u32 %v15088_v46, %v12490_v48  ;;  %7510 = vmatpush.bf16.msra.mxu3 %v12237_v53 }
 0x1a7   :  { %v11658_v51 = vld [vmem:[#allocation6 + $0xee0] sm:$0xf0] }
 0x1a8   :  { %v14944_v54 = vld [vmem:[#allocation6 + $0x10c4] sm:$0xf]  ;;  %v11661_v63 = vor.u32 %v14880_v50, %v11658_v51  ;;  %7523 = vmatpush.bf16.msrb.mxu0 %v12493_v59  ;;  %v7194_v51 = vpop.f32.mrf.mxu2  ;;  %v7220_v59 = vpop.f32.mrf.mxu0 }
 0x1a9   :  { %v11914_v55 = vld [vmem:[#allocation6 + $0x10e0] sm:$0xf0] }
 0x1aa   :  { %v15016_v60 = vld [vmem:[#allocation6 + $0x1304] sm:$0xf]  ;;  %v11917_v5 = vor.u32 %v14944_v54, %v11914_v55  ;;  %7486 = vmatpush.bf16.msra.mxu1 %v11661_v63 }
 0x1ab   :  { %v12202_v61 = vld [vmem:[#allocation6 + $0x1320] sm:$0xf0] }
 0x1ac   :  { %v15080_v2 = vld [vmem:[#allocation6 + $0x1504] sm:$0xf]  ;;  %v12205_v10 = vor.u32 %v15016_v60, %v12202_v61  ;;  %7499 = vmatpush.bf16.msra.mxu2 %v11917_v5  ;;  %v7219_v60 = vadd.f32 %v7218_v15, %v7206_v44  ;;  %v7231_v61 = vpop.f32.mrf.mxu1 }
 0x1ad   :  { %v12458_v4 = vld [vmem:[#allocation6 + $0x1520] sm:$0xf0] }
 0x1ae   :  { %v14872_v7 = vld [vmem:[#allocation6 + $0xe84] sm:$0xf]  ;;  %v12461_v17 = vor.u32 %v15080_v2, %v12458_v4  ;;  %7511 = vmatpush.bf16.msra.mxu3 %v12205_v10  ;;  %v7232_v10 = vadd.f32 %v7231_v61, %v7219_v60 }
 0x1af   :  { %v11626_v8 = vld [vmem:[#allocation6 + $0xea0] sm:$0xf0] }
 0x1b0   :  { %v14936_v11 = vld [vmem:[#allocation6 + $0x1084] sm:$0xf]  ;;  %v11629_v20 = vor.u32 %v14872_v7, %v11626_v8  ;;  %7524 = vmatpush.bf16.msrb.mxu0 %v12461_v17  ;;  %v7270_v51 = vpop.f32.mrf.mxu0 }
 0x1b1   :  { %v11882_v12 = vld [vmem:[#allocation6 + $0x10a0] sm:$0xf0] }
 0x1b2   :  { %v15008_v42 = vld [vmem:[#allocation6 + $0x12c4] sm:$0xf]  ;;  %v11885_v25 = vor.u32 %v14936_v11, %v11882_v12  ;;  %7487 = vmatpush.bf16.msra.mxu1 %v11629_v20 }
 0x1b3   :  { %v12170_v19 = vld [vmem:[#allocation6 + $0x12e0] sm:$0xf0] }
 0x1b4   :  { %v15072_v23 = vld [vmem:[#allocation6 + $0x14c4] sm:$0xf]  ;;  %v12173_v32 = vor.u32 %v15008_v42, %v12170_v19  ;;  %7500 = vmatpush.bf16.msra.mxu2 %v11885_v25  ;;  %v7233_v44 = vpop.f32.mrf.mxu1 }
 0x1b5   :  { %v12426_v24 = vld [vmem:[#allocation6 + $0x14e0] sm:$0xf0] }
 0x1b6   :  { %v14864_v31 = vld [vmem:[#allocation6 + $0xe44] sm:$0xf]  ;;  %v12429_v36 = vor.u32 %v15072_v23, %v12426_v24  ;;  %7512 = vmatpush.bf16.msra.mxu3 %v12173_v32 }
 0x1b7   :  { %v11594_v26 = vld [vmem:[#allocation6 + $0xe60] sm:$0xf0] }
 0x1b8   :  { %v14928_v33 = vld [vmem:[#allocation6 + $0x1044] sm:$0xf]  ;;  %v11597_v39 = vor.u32 %v14864_v31, %v11594_v26  ;;  %7525 = vmatpush.bf16.msrb.mxu0 %v12429_v36  ;;  %v7207_v31 = vpop.f32.mrf.mxu3 }
 0x1b9   :  { %v11850_v35 = vld [vmem:[#allocation6 + $0x1060] sm:$0xf0] }
 0x1ba   :  { %v15000_v37 = vld [vmem:[#allocation6 + $0x1284] sm:$0xf]  ;;  %v11853_v46 = vor.u32 %v14928_v33, %v11850_v35  ;;  %7488 = vmatpush.bf16.msra.mxu1 %v11597_v39 }
 0x1bb   :  { %v12138_v45 = vld [vmem:[#allocation6 + $0x12a0] sm:$0xf0] }
 0x1bc   :  { %v15064_v27 = vld [vmem:[#allocation6 + $0x1484] sm:$0xf]  ;;  %v12141_v53 = vor.u32 %v15000_v37, %v12138_v45  ;;  %7501 = vmatpush.bf16.msra.mxu2 %v11853_v46  ;;  %v7244_v45 = vpop.f32.mrf.mxu2 }
 0x1bd   :  { %v12394_v41 = vld [vmem:[#allocation6 + $0x14a0] sm:$0xf0] }
 0x1be   :  { %v14856_v43 = vld [vmem:[#allocation6 + $0xe04] sm:$0xf]  ;;  %v12397_v63 = vor.u32 %v15064_v27, %v12394_v41  ;;  %7513 = vmatpush.bf16.msra.mxu3 %v12141_v53 }
 0x1bf   :  { %v11562_v48 = vld [vmem:[#allocation6 + $0xe20] sm:$0xf0] }
 0x1c0   :  { %v14920_v49 = vld [vmem:[#allocation6 + $0x1004] sm:$0xf]  ;;  %v11565_v7 = vor.u32 %v14856_v43, %v11562_v48  ;;  %7526 = vmatpush.bf16.msrb.mxu0 %v12397_v63  ;;  %v7245_v43 = vadd.f32 %v7244_v45, %v7232_v10 }
 0x1c1   :  { %v11818_v50 = vld [vmem:[#allocation6 + $0x1020] sm:$0xf0] }
 0x1c2   :  { %v15168_v54 = vld [vmem:[#allocation6 + $0x17c4] sm:$0xf]  ;;  %v11821_v11 = vor.u32 %v14920_v49, %v11818_v50  ;;  %7489 = vmatpush.bf16.msra.mxu1 %v11565_v7 }
 0x1c3   :  { %v12810_v55 = vld [vmem:[#allocation6 + $0x17e0] sm:$0xf0] }
 0x1c4   :  { %v15232_v58 = vld [vmem:[#allocation6 + $0x19c4] sm:$0xf]  ;;  %v12813_v12 = vor.u32 %v15168_v54, %v12810_v55  ;;  %7502 = vmatpush.bf16.msra.mxu2 %v11821_v11 }
 0x1c5   :  { %v13066_v2 = vld [vmem:[#allocation6 + $0x19e0] sm:$0xf0]  ;;  %7490 = vmatmul.bf16.vlgmr.msra.gmra.mxu1 %v15879_v40 }
 0x1c6   :  { %v14992_v4 = vld [vmem:[#allocation6 + $0x1244] sm:$0xf]  ;;  %v13069_v16 = vor.u32 %v15232_v58, %v13066_v2  ;;  %7534 = vmatpush.bf16.msrb.mxu1 %v12813_v12 }
 0x1c7   :  { %v12106_v5 = vld [vmem:[#allocation6 + $0x1260] sm:$0xf0]  ;;  %7503 = vmatmul.bf16.vlgmr.msra.gmra.mxu2 %v15884_v22 }
 0x1c8   :  { %v15056_v8 = vld [vmem:[#allocation6 + $0x1444] sm:$0xf]  ;;  %v12109_v17 = vor.u32 %v14992_v4, %v12106_v5  ;;  %7547 = vmatpush.bf16.msrb.mxu2 %v13069_v16 }
 0x1c9   :  { %v12362_v9 = vld [vmem:[#allocation6 + $0x1460] sm:$0xf0] }
 0x1ca   :  { %v15160_v13 = vld [vmem:[#allocation6 + $0x1784] sm:$0xf]  ;;  %v12365_v20 = vor.u32 %v15056_v8, %v12362_v9  ;;  %7514 = vmatpush.bf16.msra.mxu3 %v12109_v17  ;;  %v7257_v8 = vpop.f32.mrf.mxu3 }
 0x1cb   :  { %v12778_v42 = vld [vmem:[#allocation6 + $0x17a0] sm:$0xf0]  ;;  %v7258_v12 = vadd.f32 %v7257_v8, %v7245_v43 }
 0x1cc   :  { %v15224_v19 = vld [vmem:[#allocation6 + $0x1984] sm:$0xf]  ;;  %v12781_v35 = vor.u32 %v15160_v13, %v12778_v42  ;;  %7527 = vmatpush.bf16.msrb.mxu0 %v12365_v20  ;;  %v7246_v42 = vpop.f32.mrf.mxu2 }
 0x1cd   :  { %v13034_v15 = vld [vmem:[#allocation6 + $0x19a0] sm:$0xf0] }
 0x1ce   :  { %v14984_v23 = vld [vmem:[#allocation6 + $0x1204] sm:$0xf]  ;;  %v13037_v38 = vor.u32 %v15224_v19, %v13034_v15  ;;  %7535 = vmatpush.bf16.msrb.mxu1 %v12781_v35 }
 0x1cf   :  { %v12074_v24 = vld [vmem:[#allocation6 + $0x1220] sm:$0xf0] }
 0x1d0   :  { %v15048_v25 = vld [vmem:[#allocation6 + $0x1404] sm:$0xf]  ;;  %v12077_v39 = vor.u32 %v14984_v23, %v12074_v24  ;;  %7548 = vmatpush.bf16.msrb.mxu2 %v13037_v38  ;;  %v7271_v23 = vadd.f32 %v7270_v51, %v7258_v12 }
 0x1d1   :  { %v12330_v26 = vld [vmem:[#allocation6 + $0x1420] sm:$0xf0] }
 0x1d2   :  { %v15296_v32 = vld [vmem:[#allocation6 + $0x1bc4] sm:$0xf]  ;;  %v12333_v46 = vor.u32 %v15048_v25, %v12330_v26  ;;  %7515 = vmatpush.bf16.msra.mxu3 %v12077_v39  ;;  %v7272_v26 = vpop.f32.mrf.mxu0 }
 0x1d3   :  { %v13322_v33 = vld [vmem:[#allocation6 + $0x1be0] sm:$0xf0] }
 0x1d4   :  { %v15360_v36 = vld [vmem:[#allocation6 + $0x1dc4] sm:$0xf]  ;;  %v13325_v48 = vor.u32 %v15296_v32, %v13322_v33  ;;  %7528 = vmatpush.bf16.msrb.mxu0 %v12333_v46  ;;  %v7283_v32 = vpop.f32.mrf.mxu1 }
 0x1d5   :  { %v13578_v37 = vld [vmem:[#allocation6 + $0x1de0] sm:$0xf0]  ;;  %7516 = vmatmul.bf16.vlgmr.msra.gmra.mxu3 %v15887_v29 }
 0x1d6   :  { %v15152_v27 = vld [vmem:[#allocation6 + $0x1744] sm:$0xf]  ;;  %v13581_v53 = vor.u32 %v15360_v36, %v13578_v37  ;;  %7560 = vmatpush.bf16.msrb.mxu3 %v13325_v48  ;;  %v7284_v37 = vadd.f32 %v7283_v32, %v7271_v23 }
 0x1d7   :  { %v12746_v41 = vld [vmem:[#allocation6 + $0x1760] sm:$0xf0]  ;;  %7529 = vmatmul.bf16.vlgmr.msrb.gmra.mxu0 %v15891_v1 }
 0x1d8   :  { %v15216_v49 = vld [vmem:[#allocation6 + $0x1944] sm:$0xf]  ;;  %v12749_v58 = vor.u32 %v15152_v27, %v12746_v41  ;;  %7573 = vmatpush.bf16.msra.mxu0 %v13581_v53 }
 0x1d9   :  { %v13002_v50 = vld [vmem:[#allocation6 + $0x1960] sm:$0xf0] }
 0x1da   :  { %v15288_v54 = vld [vmem:[#allocation6 + $0x1b84] sm:$0xf]  ;;  %v13005_v61 = vor.u32 %v15216_v49, %v13002_v50  ;;  %7536 = vmatpush.bf16.msrb.mxu1 %v12749_v58  ;;  %v7259_v49 = vpop.f32.mrf.mxu3 }
 0x1db   :  { %v13290_v55 = vld [vmem:[#allocation6 + $0x1ba0] sm:$0xf0] }
 0x1dc   :  { %v15352_v59 = vld [vmem:[#allocation6 + $0x1d84] sm:$0xf]  ;;  %v13293_v4 = vor.u32 %v15288_v54, %v13290_v55  ;;  %7549 = vmatpush.bf16.msrb.mxu2 %v13005_v61  ;;  %v7285_v12 = vpop.f32.mrf.mxu1 }
 0x1dd   :  { %v13546_v60 = vld [vmem:[#allocation6 + $0x1da0] sm:$0xf0] }
 0x1de   :  { %v15144_v63 = vld [vmem:[#allocation6 + $0x1704] sm:$0xf]  ;;  %v13549_v9 = vor.u32 %v15352_v59, %v13546_v60  ;;  %7561 = vmatpush.bf16.msrb.mxu3 %v13293_v4 }
 0x1df   :  { %v12714_v2 = vld [vmem:[#allocation6 + $0x1720] sm:$0xf0] }
 0x1e0   :  { %v15208_v5 = vld [vmem:[#allocation6 + $0x1904] sm:$0xf]  ;;  %v12717_v13 = vor.u32 %v15144_v63, %v12714_v2  ;;  %7574 = vmatpush.bf16.msra.mxu0 %v13549_v9  ;;  %v7296_v63 = vpop.f32.mrf.mxu2 }
 0x1e1   :  { %v12970_v7 = vld [vmem:[#allocation6 + $0x1920] sm:$0xf0]  ;;  %v7297_v8 = vadd.f32 %v7296_v63, %v7284_v37 }
 0x1e2   :  { %v15280_v10 = vld [vmem:[#allocation6 + $0x1b44] sm:$0xf]  ;;  %v12973_v19 = vor.u32 %v15208_v5, %v12970_v7  ;;  %7537 = vmatpush.bf16.msrb.mxu1 %v12717_v13  ;;  %v7322_v7 = vpop.f32.mrf.mxu0  ;;  %v7309_v37 = vpop.f32.mrf.mxu3 }
 0x1e3   :  { %v13258_v11 = vld [vmem:[#allocation6 + $0x1b60] sm:$0xf0] }
 0x1e4   :  { %v15344_v16 = vld [vmem:[#allocation6 + $0x1d44] sm:$0xf]  ;;  %v13261_v24 = vor.u32 %v15280_v10, %v13258_v11  ;;  %7550 = vmatpush.bf16.msrb.mxu2 %v12973_v19 }
 0x1e5   :  { %v13514_v17 = vld [vmem:[#allocation6 + $0x1d60] sm:$0xf0] }
 0x1e6   :  { %v15136_v15 = vld [vmem:[#allocation6 + $0x16c4] sm:$0xf]  ;;  %v13517_v33 = vor.u32 %v15344_v16, %v13514_v17  ;;  %7562 = vmatpush.bf16.msrb.mxu3 %v13261_v24 }
 0x1e7   :  { %v12682_v20 = vld [vmem:[#allocation6 + $0x16e0] sm:$0xf0] }
 0x1e8   :  { %v15200_v25 = vld [vmem:[#allocation6 + $0x18c4] sm:$0xf]  ;;  %v12685_v45 = vor.u32 %v15136_v15, %v12682_v20  ;;  %7575 = vmatpush.bf16.msra.mxu0 %v13517_v33 }
 0x1e9   :  { %v12938_v31 = vld [vmem:[#allocation6 + $0x18e0] sm:$0xf0] }
 0x1ea   :  { %v15272_v35 = vld [vmem:[#allocation6 + $0x1b04] sm:$0xf]  ;;  %v12941_v27 = vor.u32 %v15200_v25, %v12938_v31  ;;  %7538 = vmatpush.bf16.msrb.mxu1 %v12685_v45 }
 0x1eb   :  { %v13226_v36 = vld [vmem:[#allocation6 + $0x1b20] sm:$0xf0] }
 0x1ec   :  { %v15336_v38 = vld [vmem:[#allocation6 + $0x1d04] sm:$0xf]  ;;  %v13229_v44 = vor.u32 %v15272_v35, %v13226_v36  ;;  %7551 = vmatpush.bf16.msrb.mxu2 %v12941_v27  ;;  %v7310_v27 = vadd.f32 %v7309_v37, %v7297_v8  ;;  %v10256_v8 = vld [vmem:[#allocation6 + $0x3c8] sm:$0xf] }
 0x1ed   :  { %v13482_v39 = vld [vmem:[#allocation6 + $0x1d20] sm:$0xf0] }
 0x1ee   :  { %v15128_v41 = vld [vmem:[#allocation6 + $0x1684] sm:$0xf]  ;;  %v13485_v50 = vor.u32 %v15336_v38, %v13482_v39  ;;  %7563 = vmatpush.bf16.msrb.mxu3 %v13229_v44 }
 0x1ef   :  { %v12650_v43 = vld [vmem:[#allocation6 + $0x16a0] sm:$0xf0] }
 0x1f0   :  { %v15192_v46 = vld [vmem:[#allocation6 + $0x1884] sm:$0xf]  ;;  %v12653_v54 = vor.u32 %v15128_v41, %v12650_v43  ;;  %7576 = vmatpush.bf16.msra.mxu0 %v13485_v50 }
 0x1f1   :  { %v12906_v48 = vld [vmem:[#allocation6 + $0x18a0] sm:$0xf0] }
 0x1f2   :  { %v15264_v51 = vld [vmem:[#allocation6 + $0x1ac4] sm:$0xf]  ;;  %v12909_v59 = vor.u32 %v15192_v46, %v12906_v48  ;;  %7539 = vmatpush.bf16.msrb.mxu1 %v12653_v54  ;;  %v7324_v54 = vpop.f32.mrf.mxu0 }
 0x1f3   :  { %v13194_v53 = vld [vmem:[#allocation6 + $0x1ae0] sm:$0xf0] }
 0x1f4   :  { %v15328_v55 = vld [vmem:[#allocation6 + $0x1cc4] sm:$0xf]  ;;  %v13197_v2 = vor.u32 %v15264_v51, %v13194_v53  ;;  %7552 = vmatpush.bf16.msrb.mxu2 %v12909_v59  ;;  %v7298_v53 = vpop.f32.mrf.mxu2 }
 0x1f5   :  { %v13450_v58 = vld [vmem:[#allocation6 + $0x1ce0] sm:$0xf0]  ;;  %v7335_v53 = vpop.f32.mrf.mxu1 }
 0x1f6   :  { %v15120_v60 = vld [vmem:[#allocation6 + $0x1644] sm:$0xf]  ;;  %v13453_v9 = vor.u32 %v15328_v55, %v13450_v58  ;;  %7564 = vmatpush.bf16.msrb.mxu3 %v13197_v2  ;;  %v15933_v55 = vadd.f32 %v7322_v7, %v7310_v27  ;;  %v10000_v2 = vld [vmem:[#allocation6 + $0x1c8] sm:$0xf] }
 0x1f7   :  { %v12618_v61 = vld [vmem:[#allocation6 + $0x1660] sm:$0xf0] }
 0x1f8   :  { %v15184_v4 = vld [vmem:[#allocation6 + $0x1844] sm:$0xf]  ;;  %v12621_v13 = vor.u32 %v15120_v60, %v12618_v61  ;;  %7577 = vmatpush.bf16.msra.mxu0 %v13453_v9  ;;  %v14533_v9 = vld [vmem:[#allocation6 + $0x3e4] sm:$0xf0] }
 0x1f9   :  { %v12874_v5 = vld [vmem:[#allocation6 + $0x1860] sm:$0xf0] }
 0x1fa   :  { %v15256_v10 = vld [vmem:[#allocation6 + $0x1a84] sm:$0xf]  ;;  %v12877_v19 = vor.u32 %v15184_v4, %v12874_v5  ;;  %7540 = vmatpush.bf16.msrb.mxu1 %v12621_v13  ;;  %v14469_v4 = vld [vmem:[#allocation6 + $0x1e4] sm:$0xf0] }
 0x1fb   :  { %v13162_v11 = vld [vmem:[#allocation6 + $0x1aa0] sm:$0xf0] }
 0x1fc   :  { %v15320_v16 = vld [vmem:[#allocation6 + $0x1c84] sm:$0xf]  ;;  %v13165_v24 = vor.u32 %v15256_v10, %v13162_v11  ;;  %7553 = vmatpush.bf16.msrb.mxu2 %v12877_v19  ;;  %v10257_v19 = vor.u32 %v14533_v9, %v10256_v8 }
 0x1fd   :  { %v13418_v17 = vld [vmem:[#allocation6 + $0x1ca0] sm:$0xf0] }
 0x1fe   :  { %v15112_v42 = vld [vmem:[#allocation6 + $0x1604] sm:$0xf]  ;;  %v13421_v32 = vor.u32 %v15320_v16, %v13418_v17  ;;  %7565 = vmatpush.bf16.msrb.mxu3 %v13165_v24  ;;  %v10001_v16 = vor.u32 %v14469_v4, %v10000_v2  ;;  %v14509_v2 = vld [vmem:[#allocation6 + $0x324] sm:$0xf0] }
 0x1ff   :  { %v12586_v15 = vld [vmem:[#allocation6 + $0x1620] sm:$0xf0] }
 0x200   :  { %v15176_v20 = vld [vmem:[#allocation6 + $0x1804] sm:$0xf]  ;;  %v12589_v45 = vor.u32 %v15112_v42, %v12586_v15  ;;  %7578 = vmatpush.bf16.msra.mxu0 %v13421_v32  ;;  %v9968_v15 = vld [vmem:[#allocation6 + $0x188] sm:$0xf] }
 0x201   :  { %v12842_v23 = vld [vmem:[#allocation6 + $0x1820] sm:$0xf0] }
 0x202   :  { %v15424_v25 = vld [vmem:[#allocation6 + $0x1fc4] sm:$0xf]  ;;  %v12845_v41 = vor.u32 %v15176_v20, %v12842_v23  ;;  %7541 = vmatpush.bf16.msrb.mxu1 %v12589_v45  ;;  %v14461_v20 = vld [vmem:[#allocation6 + $0x1a4] sm:$0xf0]  ;;  %v7311_v23 = vpop.f32.mrf.mxu3 }
 0x203   :  { %v13834_v31 = vld [vmem:[#allocation6 + $0x1fe0] sm:$0xf0] }
 0x204   :  { %v15488_v26 = vld [vmem:[#allocation6 + $0x21c4] sm:$0xf]  ;;  %v13837_v43 = vor.u32 %v15424_v25, %v13834_v31  ;;  %7554 = vmatpush.bf16.msrb.mxu2 %v12845_v41  ;;  %v10224_v25 = vld [vmem:[#allocation6 + $0x388] sm:$0xf] }
 0x205   :  { %v14090_v33 = vld [vmem:[#allocation6 + $0x21e0] sm:$0xf0]  ;;  %7542 = vmatmul.bf16.vlgmr.msrb.gmra.mxu1 %v15893_v3  ;;  %v14525_v31 = vld [vmem:[#allocation6 + $0x3a4] sm:$0xf0] }
 0x206   :  { %v15248_v35 = vld [vmem:[#allocation6 + $0x1a44] sm:$0xf]  ;;  %v14093_v46 = vor.u32 %v15488_v26, %v14090_v33  ;;  %7586 = vmatpush.bf16.msra.mxu1 %v13837_v43  ;;  %v10225_v45 = vor.u32 %v14525_v31, %v10224_v25  ;;  %v10192_v41 = vld [vmem:[#allocation6 + $0x348] sm:$0xf]  ;;  %v7374_v31 = vpop.f32.mrf.mxu0 }
 0x207   :  { %v13130_v36 = vld [vmem:[#allocation6 + $0x1a60] sm:$0xf0]  ;;  %7555 = vmatmul.bf16.vlgmr.msrb.gmra.mxu2 %v15903_v47  ;;  %v14517_v43 = vld [vmem:[#allocation6 + $0x364] sm:$0xf0] }
 0x208   :  { %v15312_v38 = vld [vmem:[#allocation6 + $0x1c44] sm:$0xf]  ;;  %v13133_v48 = vor.u32 %v15248_v35, %v13130_v36  ;;  %7599 = vmatpush.bf16.msra.mxu2 %v14093_v46  ;;  %v9969_v35 = vor.u32 %v14461_v20, %v9968_v15  ;;  %v10193_v54 = vor.u32 %v14517_v43, %v10192_v41  ;;  %v7348_v20 = vpop.f32.mrf.mxu2 }
 0x209   :  { %v13386_v39 = vld [vmem:[#allocation6 + $0x1c60] sm:$0xf0] }
 0x20a   :  { %v15416_v44 = vld [vmem:[#allocation6 + $0x1f84] sm:$0xf]  ;;  %v13389_v58 = vor.u32 %v15312_v38, %v13386_v39  ;;  %7566 = vmatpush.bf16.msrb.mxu3 %v13133_v48  ;;  %v9936_v38 = vld [vmem:[#allocation6 + $0x148] sm:$0xf] }
 0x20b   :  { %v13802_v49 = vld [vmem:[#allocation6 + $0x1fa0] sm:$0xf0]  ;;  %v14453_v39 = vld [vmem:[#allocation6 + $0x164] sm:$0xf0] }
 0x20c   :  { %v15480_v50 = vld [vmem:[#allocation6 + $0x2184] sm:$0xf]  ;;  %v13805_v5 = vor.u32 %v15416_v44, %v13802_v49  ;;  %7579 = vmatpush.bf16.msra.mxu0 %v13389_v58  ;;  %v9937_v49 = vor.u32 %v14453_v39, %v9936_v38  ;;  %v9904_v58 = vld [vmem:[#allocation6 + $0x108] sm:$0xf] }
 0x20d   :  { %v14058_v51 = vld [vmem:[#allocation6 + $0x21a0] sm:$0xf0]  ;;  %v14493_v38 = vld [vmem:[#allocation6 + $0x2a4] sm:$0xf0] }
 0x20e   :  { %v15240_v59 = vld [vmem:[#allocation6 + $0x1a04] sm:$0xf]  ;;  %v14061_v10 = vor.u32 %v15480_v50, %v14058_v51  ;;  %7587 = vmatpush.bf16.msra.mxu1 %v13805_v5 }
 0x20f   :  { %v13098_v60 = vld [vmem:[#allocation6 + $0x1a20] sm:$0xf0] }
 0x210   :  { %v15304_v61 = vld [vmem:[#allocation6 + $0x1c04] sm:$0xf]  ;;  %v13101_v11 = vor.u32 %v15240_v59, %v13098_v60  ;;  %7600 = vmatpush.bf16.msra.mxu2 %v14061_v10  ;;  %v14445_v59 = vld [vmem:[#allocation6 + $0x124] sm:$0xf0]  ;;  %v7336_v60 = vadd.f32 %v7335_v53, %v15933_v55 }
 0x211   :  { %v13354_v63 = vld [vmem:[#allocation6 + $0x1c20] sm:$0xf0]  ;;  %v9905_v9 = vor.u32 %v14445_v59, %v9904_v58  ;;  %v14501_v55 = vld [vmem:[#allocation6 + $0x2e4] sm:$0xf0] }
 0x212   :  { %v15408_v7 = vld [vmem:[#allocation6 + $0x1f44] sm:$0xf]  ;;  %v13357_v13 = vor.u32 %v15304_v61, %v13354_v63  ;;  %7567 = vmatpush.bf16.msrb.mxu3 %v13101_v11  ;;  %v10160_v63 = vld [vmem:[#allocation6 + $0x308] sm:$0xf] }
 0x213   :  { %v13770_v12 = vld [vmem:[#allocation6 + $0x1f60] sm:$0xf0]  ;;  %v9808_v58 = vld [vmem:[#allocation6 + $0x48] sm:$0xf] }
 0x214   :  { %v15472_v17 = vld [vmem:[#allocation6 + $0x2144] sm:$0xf]  ;;  %v13773_v24 = vor.u32 %v15408_v7, %v13770_v12  ;;  %7580 = vmatpush.bf16.msra.mxu0 %v13357_v13  ;;  %v10161_v7 = vor.u32 %v14509_v2, %v10160_v63  ;;  %v9872_v12 = vld [vmem:[#allocation6 + $0xc8] sm:$0xf] }
 0x215   :  { %v14026_v42 = vld [vmem:[#allocation6 + $0x2160] sm:$0xf0]  ;;  %7568 = vmatmul.bf16.vlgmr.msrb.gmra.mxu3 %v15905_v52  ;;  %v14437_v13 = vld [vmem:[#allocation6 + $0xe4] sm:$0xf0] }
 0x216   :  { %v14029_v26 = vor.u32 %v15472_v17, %v14026_v42  ;;  %v15400_v32 = vld [vmem:[#allocation6 + $0x1f04] sm:$0xf]  ;;  %7612 = vmatpush.bf16.msra.mxu3 %v10001_v16  ;;  %7588 = vmatpush.bf16.msra.mxu1 %v13773_v24  ;;  %v10128_v17 = vld [vmem:[#allocation6 + $0x2c8] sm:$0xf]  ;;  %v9873_v23 = vor.u32 %v14437_v13, %v9872_v12 }
 0x217   :  { %v13738_v33 = vld [vmem:[#allocation6 + $0x1f20] sm:$0xf0]  ;;  %7581 = vmatmul.bf16.vlgmr.msra.gmra.mxu0 %v15909_v14  ;;  %v14421_v59 = vld [vmem:[#allocation6 + $0x64] sm:$0xf0] }
 0x218   :  { %v15464_v36 = vld [vmem:[#allocation6 + $0x2104] sm:$0xf]  ;;  %7625 = vmatpush.bf16.msrb.mxu0 %v10257_v19  ;;  %v13741_v27 = vor.u32 %v15400_v32, %v13738_v33  ;;  %7601 = vmatpush.bf16.msra.mxu2 %v14029_v26  ;;  %v7349_v26 = vadd.f32 %v7348_v20, %v7336_v60  ;;  %v10129_v32 = vor.u32 %v14501_v55, %v10128_v17  ;;  %v9840_v33 = vld [vmem:[#allocation6 + $0x88] sm:$0xf]  ;;  %v7376_v17 = vpop.f32.mrf.mxu0 }
 0x219   :  { %v13994_v37 = vld [vmem:[#allocation6 + $0x2120] sm:$0xf0]  ;;  %v10064_v63 = vld [vmem:[#allocation6 + $0x248] sm:$0xf] }
 0x21a   :  { %v13997_v44 = vor.u32 %v15464_v36, %v13994_v37  ;;  %v15392_v46 = vld [vmem:[#allocation6 + $0x1ec4] sm:$0xf]  ;;  %7613 = vmatpush.bf16.msra.mxu3 %v9969_v35  ;;  %7589 = vmatpush.bf16.msra.mxu1 %v13741_v27  ;;  %v14429_v35 = vld [vmem:[#allocation6 + $0xa4] sm:$0xf0]  ;;  %v7337_v36 = vpop.f32.mrf.mxu1 }
 0x21b   :  { %v13706_v48 = vld [vmem:[#allocation6 + $0x1ee0] sm:$0xf0]  ;;  %v14485_v2 = vld [vmem:[#allocation6 + $0x264] sm:$0xf0] }
 0x21c   :  { %v15456_v50 = vld [vmem:[#allocation6 + $0x20c4] sm:$0xf]  ;;  %7626 = vmatpush.bf16.msrb.mxu0 %v10225_v45  ;;  %v13709_v61 = vor.u32 %v15392_v46, %v13706_v48  ;;  %7602 = vmatpush.bf16.msra.mxu2 %v13997_v44  ;;  %v10096_v45 = vld [vmem:[#allocation6 + $0x288] sm:$0xf]  ;;  %v9841_v46 = vor.u32 %v14429_v35, %v9840_v33  ;;  %v10065_v55 = vor.u32 %v14485_v2, %v10064_v63 }
 0x21d   :  { %v13962_v51 = vld [vmem:[#allocation6 + $0x20e0] sm:$0xf0]  ;;  %v10512_v48 = vld [vmem:[#allocation6 + $0x5c8] sm:$0xf]  ;;  %v10097_v53 = vor.u32 %v14493_v38, %v10096_v45 }
 0x21e   :  { %v13965_v4 = vor.u32 %v15456_v50, %v13962_v51  ;;  %v15384_v5 = vld [vmem:[#allocation6 + $0x1e84] sm:$0xf]  ;;  %7614 = vmatpush.bf16.msra.mxu3 %v9937_v49  ;;  %7590 = vmatpush.bf16.msra.mxu1 %v13709_v61  ;;  %v14597_v49 = vld [vmem:[#allocation6 + $0x5e4] sm:$0xf0]  ;;  %v7361_v51 = vpop.f32.mrf.mxu3 }
 0x21f   :  { %v13674_v8 = vld [vmem:[#allocation6 + $0x1ea0] sm:$0xf0]  ;;  %v10768_v50 = vld [vmem:[#allocation6 + $0x7c8] sm:$0xf]  ;;  %v7362_v60 = vadd.f32 %v7361_v51, %v7349_v26 }
 0x220   :  { %v15448_v10 = vld [vmem:[#allocation6 + $0x2084] sm:$0xf]  ;;  %7627 = vmatpush.bf16.msrb.mxu0 %v10193_v54  ;;  %v13677_v16 = vor.u32 %v15384_v5, %v13674_v8  ;;  %7603 = vmatpush.bf16.msra.mxu2 %v13965_v4  ;;  %v14661_v54 = vld [vmem:[#allocation6 + $0x7e4] sm:$0xf0]  ;;  %v10513_v5 = vor.u32 %v14597_v49, %v10512_v48 }
 0x221   :  { %v13930_v11 = vld [vmem:[#allocation6 + $0x20a0] sm:$0xf0]  ;;  %v10480_v8 = vld [vmem:[#allocation6 + $0x588] sm:$0xf] }
 0x222   :  { %v13933_v42 = vor.u32 %v15448_v10, %v13930_v11  ;;  %v15376_v19 = vld [vmem:[#allocation6 + $0x1e44] sm:$0xf]  ;;  %7615 = vmatpush.bf16.msra.mxu3 %v9905_v9  ;;  %7591 = vmatpush.bf16.msra.mxu1 %v13677_v16  ;;  %v15940_v9 = vadd.f32 %v7374_v31, %v7362_v60  ;;  %v10769_v10 = vor.u32 %v14661_v54, %v10768_v50  ;;  %v10736_v12 = vld [vmem:[#allocation6 + $0x788] sm:$0xf]  ;;  %v7350_v16 = vpop.f32.mrf.mxu2 }
 0x223   :  { %v13642_v15 = vld [vmem:[#allocation6 + $0x1e60] sm:$0xf0]  ;;  %v9809_v11 = vor.u32 %v14421_v59, %v9808_v58  ;;  %v14653_v13 = vld [vmem:[#allocation6 + $0x7a4] sm:$0xf0]  ;;  %v7387_v16 = vpop.f32.mrf.mxu1 }
 0x224   :  { %v15440_v24 = vld [vmem:[#allocation6 + $0x2044] sm:$0xf]  ;;  %7628 = vmatpush.bf16.msrb.mxu0 %v10161_v7  ;;  %v13645_v37 = vor.u32 %v15376_v19, %v13642_v15  ;;  %7604 = vmatpush.bf16.msra.mxu2 %v13933_v42  ;;  %v14589_v7 = vld [vmem:[#allocation6 + $0x5a4] sm:$0xf0] }
 0x225   :  { %v13898_v25 = vld [vmem:[#allocation6 + $0x2060] sm:$0xf0]  ;;  %v9776_v42 = vld [vmem:[#allocation6 + $0x8] sm:$0xf] }
 0x226   :  { %v15368_v39 = vld [vmem:[#allocation6 + $0x1e04] sm:$0xf]  ;;  %v13901_v27 = vor.u32 %v15440_v24, %v13898_v25  ;;  %7616 = vmatpush.bf16.msra.mxu3 %v9873_v23  ;;  %7592 = vmatpush.bf16.msra.mxu1 %v13645_v37  ;;  %v14413_v19 = vld [vmem:[#allocation6 + $0x24] sm:$0xf0]  ;;  %v10481_v25 = vor.u32 %v14589_v7, %v10480_v8 }
 0x227   :  { %v13610_v41 = vld [vmem:[#allocation6 + $0x1e20] sm:$0xf0]  ;;  %v10032_v15 = vld [vmem:[#allocation6 + $0x208] sm:$0xf]  ;;  %v9777_v33 = vor.u32 %v14413_v19, %v9776_v42  ;;  %v15947_v19 = vadd.f32 %v7387_v16, %v15940_v9 }
 0x228   :  { %v15432_v43 = vld [vmem:[#allocation6 + $0x2004] sm:$0xf]  ;;  %7629 = vmatpush.bf16.msrb.mxu0 %v10129_v32  ;;  %v13613_v61 = vor.u32 %v15368_v39, %v13610_v41  ;;  %7605 = vmatpush.bf16.msra.mxu2 %v13901_v27  ;;  %v14477_v20 = vld [vmem:[#allocation6 + $0x224] sm:$0xf0]  ;;  %v10737_v32 = vor.u32 %v14653_v13, %v10736_v12  ;;  %v7363_v27 = vpop.f32.mrf.mxu3 }
 0x229   :  { %v13866_v44 = vld [vmem:[#allocation6 + $0x2020] sm:$0xf0]  ;;  %v11024_v23 = vld [vmem:[#allocation6 + $0x9c8] sm:$0xf]  ;;  %v10033_v37 = vor.u32 %v14477_v20, %v10032_v15 }
 0x22a   :  { %v13869_v4 = vor.u32 %v15432_v43, %v13866_v44  ;;  %7617 = vmatpush.bf16.msra.mxu3 %v9841_v46  ;;  %7593 = vmatpush.bf16.msra.mxu1 %v13613_v61  ;;  %v14725_v24 = vld [vmem:[#allocation6 + $0x9e4] sm:$0xf0] }
 0x22b   :  { %v11280_v31 = vld [vmem:[#allocation6 + $0xbc8] sm:$0xf]  ;;  %v11025_v45 = vor.u32 %v14725_v24, %v11024_v23 }
 0x22c   :  { %7630 = vmatpush.bf16.msrb.mxu0 %v10097_v53  ;;  %7606 = vmatpush.bf16.msra.mxu2 %v13869_v4  ;;  %v14789_v26 = vld [vmem:[#allocation6 + $0xbe4] sm:$0xf0] }
 0x22d   :  { %v10448_v35 = vld [vmem:[#allocation6 + $0x548] sm:$0xf]  ;;  %7594 = vmatmul.bf16.vlgmr.msra.gmra.mxu1 %v15911_v18  ;;  %v11281_v41 = vor.u32 %v14789_v26, %v11280_v31 }
 0x22e   :  { %7638 = vmatpush.bf16.msrb.mxu1 %v10513_v5  ;;  %7618 = vmatpush.bf16.msra.mxu3 %v9809_v11  ;;  %v14581_v36 = vld [vmem:[#allocation6 + $0x564] sm:$0xf0] }
 0x22f   :  { %v10704_v38 = vld [vmem:[#allocation6 + $0x748] sm:$0xf]  ;;  %7607 = vmatmul.bf16.vlgmr.msra.gmra.mxu2 %v15916_v56  ;;  %v10449_v46 = vor.u32 %v14581_v36, %v10448_v35 }
 0x230   :  { %7651 = vmatpush.bf16.msrb.mxu2 %v10769_v10  ;;  %7631 = vmatpush.bf16.msrb.mxu0 %v10065_v55  ;;  %v14645_v39 = vld [vmem:[#allocation6 + $0x764] sm:$0xf0] }
 0x231   :  { %v10992_v43 = vld [vmem:[#allocation6 + $0x988] sm:$0xf]  ;;  %v10705_v50 = vor.u32 %v14645_v39, %v10704_v38 }
 0x232   :  { %v14717_v44 = vld [vmem:[#allocation6 + $0x9a4] sm:$0xf0]  ;;  %7639 = vmatpush.bf16.msrb.mxu1 %v10481_v25  ;;  %7619 = vmatpush.bf16.msra.mxu3 %v9777_v33 }
 0x233   :  { %v11248_v48 = vld [vmem:[#allocation6 + $0xb88] sm:$0xf]  ;;  %v10993_v54 = vor.u32 %v14717_v44, %v10992_v43  ;;  %v1715_v43 = vperm.slane %v15924_v30, 1  ;;  %v7400_v44 = vpop.f32.mrf.mxu2 }
 0x234   :  { %v14781_v49 = vld [vmem:[#allocation6 + $0xba4] sm:$0xf0]  ;;  %7652 = vmatpush.bf16.msrb.mxu2 %v10737_v32  ;;  %7632 = vmatpush.bf16.msrb.mxu0 %v10033_v37 }
 0x235   :  { %v10416_v51 = vld [vmem:[#allocation6 + $0x508] sm:$0xf]  ;;  %v11249_v60 = vor.u32 %v14781_v49, %v11248_v48  ;;  %7620 = vmatmul.bf16.vlgmr.msra.gmra.mxu3 %v15850_v57 }
 0x236   :  { %v14573_v53 = vld [vmem:[#allocation6 + $0x524] sm:$0xf0]  ;;  %7664 = vmatpush.bf16.msrb.mxu3 %v11025_v45  ;;  %7640 = vmatpush.bf16.msrb.mxu1 %v10449_v46  ;;  %v7426_v46 = vpop.f32.mrf.mxu0 }
 0x237   :  { %v10672_v58 = vld [vmem:[#allocation6 + $0x708] sm:$0xf]  ;;  %v10417_v2 = vor.u32 %v14573_v53, %v10416_v51  ;;  %7633 = vmatmul.bf16.vlgmr.msrb.gmra.mxu0 %v15853_v62 }
 0x238   :  { %v14637_v59 = vld [vmem:[#allocation6 + $0x724] sm:$0xf0]  ;;  %7677 = vmatpush.bf16.msra.mxu0 %v11281_v41  ;;  %7653 = vmatpush.bf16.msrb.mxu2 %v10705_v50 }
 0x239   :  { %v10960_v61 = vld [vmem:[#allocation6 + $0x948] sm:$0xf]  ;;  %v10673_v8 = vor.u32 %v14637_v59, %v10672_v58  ;;  %v7389_v58 = vpop.f32.mrf.mxu1 }
 0x23a   :  { %v14709_v63 = vld [vmem:[#allocation6 + $0x964] sm:$0xf0]  ;;  %7665 = vmatpush.bf16.msrb.mxu3 %v10993_v54  ;;  %7641 = vmatpush.bf16.msrb.mxu1 %v10417_v2 }
 0x23b   :  { %v11216_v4 = vld [vmem:[#allocation6 + $0xb48] sm:$0xf]  ;;  %v10961_v7 = vor.u32 %v14709_v63, %v10960_v61 }
 0x23c   :  { %v14773_v5 = vld [vmem:[#allocation6 + $0xb64] sm:$0xf0]  ;;  %7678 = vmatpush.bf16.msra.mxu0 %v11249_v60  ;;  %7654 = vmatpush.bf16.msrb.mxu2 %v10673_v8  ;;  %v7401_v8 = vadd.f32 %v7400_v44, %v1715_v43 }
 0x23d   :  { %v10384_v10 = vld [vmem:[#allocation6 + $0x4c8] sm:$0xf]  ;;  %v11217_v17 = vor.u32 %v14773_v5, %v11216_v4 }
 0x23e   :  { %v14565_v11 = vld [vmem:[#allocation6 + $0x4e4] sm:$0xf0]  ;;  %7666 = vmatpush.bf16.msrb.mxu3 %v10961_v7 }
 0x23f   :  { %v10640_v12 = vld [vmem:[#allocation6 + $0x6c8] sm:$0xf]  ;;  %v10385_v15 = vor.u32 %v14565_v11, %v10384_v10 }
 0x240   :  { %v14629_v13 = vld [vmem:[#allocation6 + $0x6e4] sm:$0xf0]  ;;  %7679 = vmatpush.bf16.msra.mxu0 %v11217_v17 }
 0x241   :  { %v10928_v55 = vld [vmem:[#allocation6 + $0x908] sm:$0xf]  ;;  %v10641_v24 = vor.u32 %v14629_v13, %v10640_v12  ;;  %7642 = vmatpush.bf16.msrb.mxu1 %v10385_v15  ;;  %v7413_v13 = vpop.f32.mrf.mxu3 }
 0x242   :  { %v14701_v42 = vld [vmem:[#allocation6 + $0x924] sm:$0xf0]  ;;  %v7414_v15 = vadd.f32 %v7413_v13, %v7401_v8 }
 0x243   :  { %v11184_v20 = vld [vmem:[#allocation6 + $0xb08] sm:$0xf]  ;;  %v10929_v26 = vor.u32 %v14701_v42, %v10928_v55  ;;  %7655 = vmatpush.bf16.msrb.mxu2 %v10641_v24 }
 0x244   :  { %v14765_v23 = vld [vmem:[#allocation6 + $0xb24] sm:$0xf0] }
 0x245   :  { %v10352_v25 = vld [vmem:[#allocation6 + $0x488] sm:$0xf]  ;;  %v11185_v35 = vor.u32 %v14765_v23, %v11184_v20  ;;  %7667 = vmatpush.bf16.msrb.mxu3 %v10929_v26 }
 0x246   :  { %v14557_v31 = vld [vmem:[#allocation6 + $0x4a4] sm:$0xf0] }
 0x247   :  { %v10608_v32 = vld [vmem:[#allocation6 + $0x688] sm:$0xf]  ;;  %v10353_v45 = vor.u32 %v14557_v31, %v10352_v25  ;;  %7680 = vmatpush.bf16.msra.mxu0 %v11185_v35 }
 0x248   :  { %v14621_v33 = vld [vmem:[#allocation6 + $0x6a4] sm:$0xf0] }
 0x249   :  { %v10896_v36 = vld [vmem:[#allocation6 + $0x8c8] sm:$0xf]  ;;  %v10609_v39 = vor.u32 %v14621_v33, %v10608_v32  ;;  %7643 = vmatpush.bf16.msrb.mxu1 %v10353_v45  ;;  %v7402_v32 = vpop.f32.mrf.mxu2  ;;  %v7428_v33 = vpop.f32.mrf.mxu0 }
 0x24a   :  { %v14693_v37 = vld [vmem:[#allocation6 + $0x8e4] sm:$0xf0] }
 0x24b   :  { %v11152_v9 = vld [vmem:[#allocation6 + $0xac8] sm:$0xf]  ;;  %v10897_v48 = vor.u32 %v14693_v37, %v10896_v36  ;;  %7656 = vmatpush.bf16.msrb.mxu2 %v10609_v39 }
 0x24c   :  { %v14757_v38 = vld [vmem:[#allocation6 + $0xae4] sm:$0xf0] }
 0x24d   :  { %v10320_v27 = vld [vmem:[#allocation6 + $0x448] sm:$0xf]  ;;  %v11153_v51 = vor.u32 %v14757_v38, %v11152_v9  ;;  %7668 = vmatpush.bf16.msrb.mxu3 %v10897_v48  ;;  %v15950_v38 = vadd.f32 %v7426_v46, %v7414_v15 }
 0x24e   :  { %v14549_v41 = vld [vmem:[#allocation6 + $0x464] sm:$0xf0] }
 0x24f   :  { %v10576_v49 = vld [vmem:[#allocation6 + $0x648] sm:$0xf]  ;;  %v10321_v59 = vor.u32 %v14549_v41, %v10320_v27  ;;  %7681 = vmatpush.bf16.msra.mxu0 %v11153_v51 }
 0x250   :  { %v14613_v50 = vld [vmem:[#allocation6 + $0x664] sm:$0xf0] }
 0x251   :  { %v10864_v53 = vld [vmem:[#allocation6 + $0x888] sm:$0xf]  ;;  %v10577_v2 = vor.u32 %v14613_v50, %v10576_v49  ;;  %7644 = vmatpush.bf16.msrb.mxu1 %v10321_v59 }
 0x252   :  { %v14685_v54 = vld [vmem:[#allocation6 + $0x8a4] sm:$0xf0] }
 0x253   :  { %v11120_v60 = vld [vmem:[#allocation6 + $0xa88] sm:$0xf]  ;;  %v10865_v10 = vor.u32 %v14685_v54, %v10864_v53  ;;  %7657 = vmatpush.bf16.msrb.mxu2 %v10577_v2 }
 0x254   :  { %v14749_v61 = vld [vmem:[#allocation6 + $0xaa4] sm:$0xf0] }
 0x255   :  { %v10288_v63 = vld [vmem:[#allocation6 + $0x408] sm:$0xf]  ;;  %v11121_v16 = vor.u32 %v14749_v61, %v11120_v60  ;;  %7669 = vmatpush.bf16.msrb.mxu3 %v10865_v10  ;;  %v7415_v60 = vpop.f32.mrf.mxu3 }
 0x256   :  { %v14541_v4 = vld [vmem:[#allocation6 + $0x424] sm:$0xf0] }
 0x257   :  { %v10544_v30 = vld [vmem:[#allocation6 + $0x608] sm:$0xf]  ;;  %v10289_v20 = vor.u32 %v14541_v4, %v10288_v63  ;;  %7682 = vmatpush.bf16.msra.mxu0 %v11121_v16 }
 0x258   :  { %v14605_v5 = vld [vmem:[#allocation6 + $0x624] sm:$0xf0] }
 0x259   :  { %v11536_v11 = vld [vmem:[#allocation6 + $0xdc8] sm:$0xf]  ;;  %v10545_v25 = vor.u32 %v14605_v5, %v10544_v30  ;;  %7645 = vmatpush.bf16.msrb.mxu1 %v10289_v20 }
 0x25a   :  { %v14853_v7 = vld [vmem:[#allocation6 + $0xde4] sm:$0xf0] }
 0x25b   :  { %v11792_v12 = vld [vmem:[#allocation6 + $0xfc8] sm:$0xf]  ;;  %v11537_v31 = vor.u32 %v14853_v7, %v11536_v11  ;;  %7658 = vmatpush.bf16.msrb.mxu2 %v10545_v25 }
 0x25c   :  { %v14917_v17 = vld [vmem:[#allocation6 + $0xfe4] sm:$0xf0]  ;;  %7646 = vmatmul.bf16.vlgmr.msrb.gmra.mxu1 %v15858_v21 }
 0x25d   :  { %v10832_v55 = vld [vmem:[#allocation6 + $0x848] sm:$0xf]  ;;  %v11793_v35 = vor.u32 %v14917_v17, %v11792_v12  ;;  %7690 = vmatpush.bf16.msra.mxu1 %v11537_v31 }
 0x25e   :  { %v14677_v42 = vld [vmem:[#allocation6 + $0x864] sm:$0xf0]  ;;  %7659 = vmatmul.bf16.vlgmr.msrb.gmra.mxu2 %v15860_v28 }
 0x25f   :  { %v11088_v23 = vld [vmem:[#allocation6 + $0xa48] sm:$0xf]  ;;  %v10833_v36 = vor.u32 %v14677_v42, %v10832_v55  ;;  %7703 = vmatpush.bf16.msra.mxu2 %v11793_v35 }
 0x260   :  { %v14741_v24 = vld [vmem:[#allocation6 + $0xa64] sm:$0xf0] }
 0x261   :  { %v11504_v26 = vld [vmem:[#allocation6 + $0xd88] sm:$0xf]  ;;  %v11089_v39 = vor.u32 %v14741_v24, %v11088_v23  ;;  %7670 = vmatpush.bf16.msrb.mxu3 %v10833_v36 }
 0x262   :  { %v14845_v37 = vld [vmem:[#allocation6 + $0xda4] sm:$0xf0] }
 0x263   :  { %v11760_v45 = vld [vmem:[#allocation6 + $0xf88] sm:$0xf]  ;;  %v11505_v50 = vor.u32 %v14845_v37, %v11504_v26  ;;  %7683 = vmatpush.bf16.msra.mxu0 %v11089_v39 }
 0x264   :  { %v14909_v9 = vld [vmem:[#allocation6 + $0xfa4] sm:$0xf0] }
 0x265   :  { %v10800_v27 = vld [vmem:[#allocation6 + $0x808] sm:$0xf]  ;;  %v11761_v54 = vor.u32 %v14909_v9, %v11760_v45  ;;  %7691 = vmatpush.bf16.msra.mxu1 %v11505_v50  ;;  %v7439_v45 = vpop.f32.mrf.mxu1 }
 0x266   :  { %v14669_v41 = vld [vmem:[#allocation6 + $0x824] sm:$0xf0] }
 0x267   :  { %v11056_v43 = vld [vmem:[#allocation6 + $0xa08] sm:$0xf]  ;;  %v10801_v58 = vor.u32 %v14669_v41, %v10800_v27  ;;  %7704 = vmatpush.bf16.msra.mxu2 %v11761_v54  ;;  %v7440_v41 = vadd.f32 %v7439_v45, %v15950_v38 }
 0x268   :  { %v14733_v44 = vld [vmem:[#allocation6 + $0xa24] sm:$0xf0] }
 0x269   :  { %v12048_v48 = vld [vmem:[#allocation6 + $0x11c8] sm:$0xf]  ;;  %v11057_v61 = vor.u32 %v14733_v44, %v11056_v43  ;;  %7671 = vmatpush.bf16.msrb.mxu3 %v10801_v58 }
 0x26a   :  { %v14981_v49 = vld [vmem:[#allocation6 + $0x11e4] sm:$0xf0] }
 0x26b   :  { %v12304_v51 = vld [vmem:[#allocation6 + $0x13c8] sm:$0xf]  ;;  %v12049_v63 = vor.u32 %v14981_v49, %v12048_v48  ;;  %7684 = vmatpush.bf16.msra.mxu0 %v11057_v61 }
 0x26c   :  { %v15045_v53 = vld [vmem:[#allocation6 + $0x13e4] sm:$0xf0]  ;;  %7672 = vmatmul.bf16.vlgmr.msrb.gmra.mxu3 %v15866_v0 }
 0x26d   :  { %v11472_v46 = vld [vmem:[#allocation6 + $0xd48] sm:$0xf]  ;;  %v12305_v30 = vor.u32 %v15045_v53, %v12304_v51  ;;  %7716 = vmatpush.bf16.msra.mxu3 %v12049_v63 }
 0x26e   :  { %v14837_v59 = vld [vmem:[#allocation6 + $0xd64] sm:$0xf0]  ;;  %7685 = vmatmul.bf16.vlgmr.msra.gmra.mxu0 %v15869_v6 }
 0x26f   :  { %v11728_v2 = vld [vmem:[#allocation6 + $0xf48] sm:$0xf]  ;;  %v11473_v10 = vor.u32 %v14837_v59, %v11472_v46  ;;  %7729 = vmatpush.bf16.msrb.mxu0 %v12305_v30 }
 0x270   :  { %v14901_v4 = vld [vmem:[#allocation6 + $0xf64] sm:$0xf0] }
 0x271   :  { %v12016_v5 = vld [vmem:[#allocation6 + $0x1188] sm:$0xf]  ;;  %v11729_v12 = vor.u32 %v14901_v4, %v11728_v2  ;;  %7692 = vmatpush.bf16.msra.mxu1 %v11473_v10 }
 0x272   :  { %v14973_v8 = vld [vmem:[#allocation6 + $0x11a4] sm:$0xf0] }
 0x273   :  { %v12272_v11 = vld [vmem:[#allocation6 + $0x1388] sm:$0xf]  ;;  %v12017_v17 = vor.u32 %v14973_v8, %v12016_v5  ;;  %7705 = vmatpush.bf16.msra.mxu2 %v11729_v12  ;;  %v7452_v5 = vpop.f32.mrf.mxu2  ;;  %v7478_v8 = vpop.f32.mrf.mxu0 }
 0x274   :  { %v15037_v7 = vld [vmem:[#allocation6 + $0x13a4] sm:$0xf0]  ;;  %v7453_v12 = vadd.f32 %v7452_v5, %v7440_v41 }
 0x275   :  { %v11440_v13 = vld [vmem:[#allocation6 + $0xd08] sm:$0xf]  ;;  %v12273_v15 = vor.u32 %v15037_v7, %v12272_v11  ;;  %7717 = vmatpush.bf16.msra.mxu3 %v12017_v17 }
 0x276   :  { %v14829_v16 = vld [vmem:[#allocation6 + $0xd24] sm:$0xf0] }
 0x277   :  { %v11696_v55 = vld [vmem:[#allocation6 + $0xf08] sm:$0xf]  ;;  %v11441_v24 = vor.u32 %v14829_v16, %v11440_v13  ;;  %7730 = vmatpush.bf16.msrb.mxu0 %v12273_v15  ;;  %v7441_v13 = vpop.f32.mrf.mxu1 }
 0x278   :  { %v14893_v42 = vld [vmem:[#allocation6 + $0xf24] sm:$0xf0] }
 0x279   :  { %v11984_v20 = vld [vmem:[#allocation6 + $0x1148] sm:$0xf]  ;;  %v11697_v26 = vor.u32 %v14893_v42, %v11696_v55  ;;  %7693 = vmatpush.bf16.msra.mxu1 %v11441_v24 }
 0x27a   :  { %v14965_v23 = vld [vmem:[#allocation6 + $0x1164] sm:$0xf0] }
 0x27b   :  { %v12240_v25 = vld [vmem:[#allocation6 + $0x1348] sm:$0xf]  ;;  %v11985_v35 = vor.u32 %v14965_v23, %v11984_v20  ;;  %7706 = vmatpush.bf16.msra.mxu2 %v11697_v26 }
 0x27c   :  { %v15029_v31 = vld [vmem:[#allocation6 + $0x1364] sm:$0xf0] }
 0x27d   :  { %v11408_v32 = vld [vmem:[#allocation6 + $0xcc8] sm:$0xf]  ;;  %v12241_v9 = vor.u32 %v15029_v31, %v12240_v25  ;;  %7718 = vmatpush.bf16.msra.mxu3 %v11985_v35 }
 0x27e   :  { %v14821_v33 = vld [vmem:[#allocation6 + $0xce4] sm:$0xf0] }
 0x27f   :  { %v11664_v36 = vld [vmem:[#allocation6 + $0xec8] sm:$0xf]  ;;  %v11409_v43 = vor.u32 %v14821_v33, %v11408_v32  ;;  %7731 = vmatpush.bf16.msrb.mxu0 %v12241_v9 }
 0x280   :  { %v14885_v37 = vld [vmem:[#allocation6 + $0xee4] sm:$0xf0] }
 0x281   :  { %v11952_v39 = vld [vmem:[#allocation6 + $0x1108] sm:$0xf]  ;;  %v11665_v49 = vor.u32 %v14885_v37, %v11664_v36  ;;  %7694 = vmatpush.bf16.msra.mxu1 %v11409_v43  ;;  %v7465_v37 = vpop.f32.mrf.mxu3 }
 0x282   :  { %v14957_v27 = vld [vmem:[#allocation6 + $0x1124] sm:$0xf0]  ;;  %v7466_v41 = vadd.f32 %v7465_v37, %v7453_v12 }
 0x283   :  { %v12208_v44 = vld [vmem:[#allocation6 + $0x1308] sm:$0xf]  ;;  %v11953_v53 = vor.u32 %v14957_v27, %v11952_v39  ;;  %7707 = vmatpush.bf16.msra.mxu2 %v11665_v49 }
 0x284   :  { %v15021_v48 = vld [vmem:[#allocation6 + $0x1324] sm:$0xf0] }
 0x285   :  { %v11376_v50 = vld [vmem:[#allocation6 + $0xc88] sm:$0xf]  ;;  %v12209_v46 = vor.u32 %v15021_v48, %v12208_v44  ;;  %7719 = vmatpush.bf16.msra.mxu3 %v11953_v53  ;;  %v7454_v53 = vpop.f32.mrf.mxu2 }
 0x286   :  { %v14813_v51 = vld [vmem:[#allocation6 + $0xca4] sm:$0xf0] }
 0x287   :  { %v11632_v54 = vld [vmem:[#allocation6 + $0xe88] sm:$0xf]  ;;  %v11377_v61 = vor.u32 %v14813_v51, %v11376_v50  ;;  %7732 = vmatpush.bf16.msrb.mxu0 %v12209_v46 }
 0x288   :  { %v14877_v58 = vld [vmem:[#allocation6 + $0xea4] sm:$0xf0] }
 0x289   :  { %v11920_v59 = vld [vmem:[#allocation6 + $0x10c8] sm:$0xf]  ;;  %v11633_v2 = vor.u32 %v14877_v58, %v11632_v54  ;;  %7695 = vmatpush.bf16.msra.mxu1 %v11377_v61  ;;  %v7480_v54 = vpop.f32.mrf.mxu0 }
 0x28a   :  { %v14949_v60 = vld [vmem:[#allocation6 + $0x10e4] sm:$0xf0] }
 0x28b   :  { %v12176_v63 = vld [vmem:[#allocation6 + $0x12c8] sm:$0xf]  ;;  %v11921_v10 = vor.u32 %v14949_v60, %v11920_v59  ;;  %7708 = vmatpush.bf16.msra.mxu2 %v11633_v2 }
 0x28c   :  { %v15013_v38 = vld [vmem:[#allocation6 + $0x12e4] sm:$0xf0] }
 0x28d   :  { %v11344_v4 = vld [vmem:[#allocation6 + $0xc48] sm:$0xf]  ;;  %v12177_v16 = vor.u32 %v15013_v38, %v12176_v63  ;;  %7720 = vmatpush.bf16.msra.mxu3 %v11921_v10  ;;  %v15957_v63 = vadd.f32 %v7478_v8, %v7466_v41 }
 0x28e   :  { %v14805_v30 = vld [vmem:[#allocation6 + $0xc64] sm:$0xf0] }
 0x28f   :  { %v11600_v11 = vld [vmem:[#allocation6 + $0xe48] sm:$0xf]  ;;  %v11345_v42 = vor.u32 %v14805_v30, %v11344_v4  ;;  %7733 = vmatpush.bf16.msrb.mxu0 %v12177_v16 }
 0x290   :  { %v14869_v7 = vld [vmem:[#allocation6 + $0xe64] sm:$0xf0] }
 0x291   :  { %v11888_v17 = vld [vmem:[#allocation6 + $0x1088] sm:$0xf]  ;;  %v11601_v24 = vor.u32 %v14869_v7, %v11600_v11  ;;  %7696 = vmatpush.bf16.msra.mxu1 %v11345_v42  ;;  %v7467_v42 = vpop.f32.mrf.mxu3 }
 0x292   :  { %v14941_v55 = vld [vmem:[#allocation6 + $0x10a4] sm:$0xf0] }
 0x293   :  { %v12144_v15 = vld [vmem:[#allocation6 + $0x1288] sm:$0xf]  ;;  %v11889_v32 = vor.u32 %v14941_v55, %v11888_v17  ;;  %7709 = vmatpush.bf16.msra.mxu2 %v11601_v24 }
 0x294   :  { %v15005_v20 = vld [vmem:[#allocation6 + $0x12a4] sm:$0xf0] }
 0x295   :  { %v11312_v23 = vld [vmem:[#allocation6 + $0xc08] sm:$0xf]  ;;  %v12145_v45 = vor.u32 %v15005_v20, %v12144_v15  ;;  %7721 = vmatpush.bf16.msra.mxu3 %v11889_v32 }
 0x296   :  { %v14797_v25 = vld [vmem:[#allocation6 + $0xc24] sm:$0xf0] }
 0x297   :  { %v11568_v31 = vld [vmem:[#allocation6 + $0xe08] sm:$0xf]  ;;  %v11313_v43 = vor.u32 %v14797_v25, %v11312_v23  ;;  %7734 = vmatpush.bf16.msrb.mxu0 %v12145_v45 }
 0x298   :  { %v14861_v26 = vld [vmem:[#allocation6 + $0xe24] sm:$0xf0] }
 0x299   :  { %v12560_v33 = vld [vmem:[#allocation6 + $0x15c8] sm:$0xf]  ;;  %v11569_v49 = vor.u32 %v14861_v26, %v11568_v31  ;;  %7697 = vmatpush.bf16.msra.mxu1 %v11313_v43 }
 0x29a   :  { %v15109_v35 = vld [vmem:[#allocation6 + $0x15e4] sm:$0xf0] }
 0x29b   :  { %v12816_v36 = vld [vmem:[#allocation6 + $0x17c8] sm:$0xf]  ;;  %v12561_v50 = vor.u32 %v15109_v35, %v12560_v33  ;;  %7710 = vmatpush.bf16.msra.mxu2 %v11569_v49 }
 0x29c   :  { %v15173_v9 = vld [vmem:[#allocation6 + $0x17e4] sm:$0xf0]  ;;  %7698 = vmatmul.bf16.vlgmr.msra.gmra.mxu1 %v15875_v34 }
 0x29d   :  { %v11856_v39 = vld [vmem:[#allocation6 + $0x1048] sm:$0xf]  ;;  %v12817_v58 = vor.u32 %v15173_v9, %v12816_v36  ;;  %7742 = vmatpush.bf16.msrb.mxu1 %v12561_v50 }
 0x29e   :  { %v14933_v27 = vld [vmem:[#allocation6 + $0x1064] sm:$0xf0]  ;;  %7711 = vmatmul.bf16.vlgmr.msra.gmra.mxu2 %v15879_v40 }
 0x29f   :  { %v12112_v44 = vld [vmem:[#allocation6 + $0x1248] sm:$0xf]  ;;  %v11857_v46 = vor.u32 %v14933_v27, %v11856_v39  ;;  %7755 = vmatpush.bf16.msrb.mxu2 %v12817_v58 }
 0x2a0   :  { %v14997_v48 = vld [vmem:[#allocation6 + $0x1264] sm:$0xf0] }
 0x2a1   :  { %v12528_v51 = vld [vmem:[#allocation6 + $0x1588] sm:$0xf]  ;;  %v12113_v38 = vor.u32 %v14997_v48, %v12112_v44  ;;  %7722 = vmatpush.bf16.msra.mxu3 %v11857_v46 }
 0x2a2   :  { %v15101_v59 = vld [vmem:[#allocation6 + $0x15a4] sm:$0xf0] }
 0x2a3   :  { %v12784_v60 = vld [vmem:[#allocation6 + $0x1788] sm:$0xf]  ;;  %v12529_v7 = vor.u32 %v15101_v59, %v12528_v51  ;;  %7735 = vmatpush.bf16.msrb.mxu0 %v12113_v38 }
 0x2a4   :  { %v15165_v61 = vld [vmem:[#allocation6 + $0x17a4] sm:$0xf0] }
 0x2a5   :  { %v11824_v2 = vld [vmem:[#allocation6 + $0x1008] sm:$0xf]  ;;  %v12785_v16 = vor.u32 %v15165_v61, %v12784_v60  ;;  %7743 = vmatpush.bf16.msrb.mxu1 %v12529_v7  ;;  %v7491_v60 = vpop.f32.mrf.mxu1 }
 0x2a6   :  { %v14925_v4 = vld [vmem:[#allocation6 + $0x1024] sm:$0xf0] }
 0x2a7   :  { %v12080_v30 = vld [vmem:[#allocation6 + $0x1208] sm:$0xf]  ;;  %v11825_v17 = vor.u32 %v14925_v4, %v11824_v2  ;;  %7756 = vmatpush.bf16.msrb.mxu2 %v12785_v16  ;;  %v7492_v4 = vadd.f32 %v7491_v60, %v15957_v63 }
 0x2a8   :  { %v14989_v5 = vld [vmem:[#allocation6 + $0x1224] sm:$0xf0] }
 0x2a9   :  { %v13072_v10 = vld [vmem:[#allocation6 + $0x19c8] sm:$0xf]  ;;  %v12081_v15 = vor.u32 %v14989_v5, %v12080_v30  ;;  %7723 = vmatpush.bf16.msra.mxu3 %v11825_v17 }
 0x2aa   :  { %v15237_v11 = vld [vmem:[#allocation6 + $0x19e4] sm:$0xf0] }
 0x2ab   :  { %v13328_v12 = vld [vmem:[#allocation6 + $0x1bc8] sm:$0xf]  ;;  %v13073_v20 = vor.u32 %v15237_v11, %v13072_v10  ;;  %7736 = vmatpush.bf16.msrb.mxu0 %v12081_v15 }
 0x2ac   :  { %v15301_v13 = vld [vmem:[#allocation6 + $0x1be4] sm:$0xf0]  ;;  %7724 = vmatmul.bf16.vlgmr.msra.gmra.mxu3 %v15884_v22 }
 0x2ad   :  { %v12496_v8 = vld [vmem:[#allocation6 + $0x1548] sm:$0xf]  ;;  %v13329_v25 = vor.u32 %v15301_v13, %v13328_v12  ;;  %7768 = vmatpush.bf16.msrb.mxu3 %v13073_v20 }
 0x2ae   :  { %v15093_v55 = vld [vmem:[#allocation6 + $0x1564] sm:$0xf0]  ;;  %7737 = vmatmul.bf16.vlgmr.msrb.gmra.mxu0 %v15887_v29 }
 0x2af   :  { %v12752_v23 = vld [vmem:[#allocation6 + $0x1748] sm:$0xf]  ;;  %v12497_v32 = vor.u32 %v15093_v55, %v12496_v8  ;;  %7781 = vmatpush.bf16.msra.mxu0 %v13329_v25 }
 0x2b0   :  { %v15157_v24 = vld [vmem:[#allocation6 + $0x1764] sm:$0xf0] }
 0x2b1   :  { %v13040_v31 = vld [vmem:[#allocation6 + $0x1988] sm:$0xf]  ;;  %v12753_v36 = vor.u32 %v15157_v24, %v12752_v23  ;;  %7744 = vmatpush.bf16.msrb.mxu1 %v12497_v32 }
 0x2b2   :  { %v15229_v26 = vld [vmem:[#allocation6 + $0x19a4] sm:$0xf0] }
 0x2b3   :  { %v13296_v33 = vld [vmem:[#allocation6 + $0x1b88] sm:$0xf]  ;;  %v13041_v9 = vor.u32 %v15229_v26, %v13040_v31  ;;  %7757 = vmatpush.bf16.msrb.mxu2 %v12753_v36  ;;  %v7504_v31 = vpop.f32.mrf.mxu2  ;;  %v7530_v26 = vpop.f32.mrf.mxu0 }
 0x2b4   :  { %v15293_v35 = vld [vmem:[#allocation6 + $0x1ba4] sm:$0xf0]  ;;  %v7505_v36 = vadd.f32 %v7504_v31, %v7492_v4 }
 0x2b5   :  { %v12464_v37 = vld [vmem:[#allocation6 + $0x1508] sm:$0xf]  ;;  %v13297_v41 = vor.u32 %v15293_v35, %v13296_v33  ;;  %7769 = vmatpush.bf16.msrb.mxu3 %v13041_v9 }
 0x2b6   :  { %v15085_v45 = vld [vmem:[#allocation6 + $0x1524] sm:$0xf0] }
 0x2b7   :  { %v12720_v39 = vld [vmem:[#allocation6 + $0x1708] sm:$0xf]  ;;  %v12465_v48 = vor.u32 %v15085_v45, %v12464_v37  ;;  %7782 = vmatpush.bf16.msra.mxu0 %v13297_v41  ;;  %v7493_v37 = vpop.f32.mrf.mxu1 }
 0x2b8   :  { %v15149_v27 = vld [vmem:[#allocation6 + $0x1724] sm:$0xf0]  ;;  %v10002_v37 = vld [vmem:[#allocation6 + $0x1e8] sm:$0xf0] }
 0x2b9   :  { %v13008_v43 = vld [vmem:[#allocation6 + $0x1948] sm:$0xf]  ;;  %v12721_v51 = vor.u32 %v15149_v27, %v12720_v39  ;;  %7745 = vmatpush.bf16.msrb.mxu1 %v12465_v48 }
 0x2ba   :  { %v15221_v44 = vld [vmem:[#allocation6 + $0x1964] sm:$0xf0] }
 0x2bb   :  { %v13264_v49 = vld [vmem:[#allocation6 + $0x1b48] sm:$0xf]  ;;  %v13009_v58 = vor.u32 %v15221_v44, %v13008_v43  ;;  %7758 = vmatpush.bf16.msrb.mxu2 %v12721_v51 }
 0x2bc   :  { %v15285_v50 = vld [vmem:[#allocation6 + $0x1b64] sm:$0xf0] }
 0x2bd   :  { %v12432_v53 = vld [vmem:[#allocation6 + $0x14c8] sm:$0xf]  ;;  %v13265_v61 = vor.u32 %v15285_v50, %v13264_v49  ;;  %7770 = vmatpush.bf16.msrb.mxu3 %v13009_v58 }
 0x2be   :  { %v15077_v54 = vld [vmem:[#allocation6 + $0x14e4] sm:$0xf0] }
 0x2bf   :  { %v12688_v46 = vld [vmem:[#allocation6 + $0x16c8] sm:$0xf]  ;;  %v12433_v30 = vor.u32 %v15077_v54, %v12432_v53  ;;  %7783 = vmatpush.bf16.msra.mxu0 %v13265_v61 }
 0x2c0   :  { %v15141_v59 = vld [vmem:[#allocation6 + $0x16e4] sm:$0xf0] }
 0x2c1   :  { %v12976_v38 = vld [vmem:[#allocation6 + $0x1908] sm:$0xf]  ;;  %v12689_v11 = vor.u32 %v15141_v59, %v12688_v46  ;;  %7746 = vmatpush.bf16.msrb.mxu1 %v12433_v30  ;;  %v7517_v59 = vpop.f32.mrf.mxu3 }
 0x2c2   :  { %v15213_v2 = vld [vmem:[#allocation6 + $0x1924] sm:$0xf0]  ;;  %v7518_v4 = vadd.f32 %v7517_v59, %v7505_v36  ;;  %v14465_v36 = vld [vmem:[#allocation6 + $0x1cc] sm:$0xf] }
 0x2c3   :  { %v13232_v5 = vld [vmem:[#allocation6 + $0x1b08] sm:$0xf]  ;;  %v12977_v13 = vor.u32 %v15213_v2, %v12976_v38  ;;  %7759 = vmatpush.bf16.msrb.mxu2 %v12689_v11 }
 0x2c4   :  { %v15277_v10 = vld [vmem:[#allocation6 + $0x1b24] sm:$0xf0] }
 0x2c5   :  { %v12400_v7 = vld [vmem:[#allocation6 + $0x1488] sm:$0xf]  ;;  %v13233_v8 = vor.u32 %v15277_v10, %v13232_v5  ;;  %7771 = vmatpush.bf16.msrb.mxu3 %v12977_v13  ;;  %v7506_v13 = vpop.f32.mrf.mxu2 }
 0x2c6   :  { %v15069_v12 = vld [vmem:[#allocation6 + $0x14a4] sm:$0xf0] }
 0x2c7   :  { %v12656_v16 = vld [vmem:[#allocation6 + $0x1688] sm:$0xf]  ;;  %v12401_v15 = vor.u32 %v15069_v12, %v12400_v7  ;;  %7784 = vmatpush.bf16.msra.mxu0 %v13233_v8 }
 0x2c8   :  { %v15133_v17 = vld [vmem:[#allocation6 + $0x16a4] sm:$0xf0] }
 0x2c9   :  { %v12944_v55 = vld [vmem:[#allocation6 + $0x18c8] sm:$0xf]  ;;  %v12657_v23 = vor.u32 %v15133_v17, %v12656_v16  ;;  %7747 = vmatpush.bf16.msrb.mxu1 %v12401_v15  ;;  %v7532_v16 = vpop.f32.mrf.mxu0 }
 0x2ca   :  { %v15205_v42 = vld [vmem:[#allocation6 + $0x18e4] sm:$0xf0] }
 0x2cb   :  { %v13200_v20 = vld [vmem:[#allocation6 + $0x1ac8] sm:$0xf]  ;;  %v12945_v32 = vor.u32 %v15205_v42, %v12944_v55  ;;  %7760 = vmatpush.bf16.msrb.mxu2 %v12657_v23 }
 0x2cc   :  { %v15269_v63 = vld [vmem:[#allocation6 + $0x1ae4] sm:$0xf0] }
 0x2cd   :  { %v12368_v24 = vld [vmem:[#allocation6 + $0x1448] sm:$0xf]  ;;  %v13201_v45 = vor.u32 %v15269_v63, %v13200_v20  ;;  %7772 = vmatpush.bf16.msrb.mxu3 %v12945_v32  ;;  %v15964_v20 = vadd.f32 %v7530_v26, %v7518_v4 }
 0x2ce   :  { %v15061_v25 = vld [vmem:[#allocation6 + $0x1464] sm:$0xf0] }
 0x2cf   :  { %v12624_v33 = vld [vmem:[#allocation6 + $0x1648] sm:$0xf]  ;;  %v12369_v27 = vor.u32 %v15061_v25, %v12368_v24  ;;  %7785 = vmatpush.bf16.msra.mxu0 %v13201_v45 }
 0x2d0   :  { %v15125_v35 = vld [vmem:[#allocation6 + $0x1664] sm:$0xf0] }
 0x2d1   :  { %v12912_v9 = vld [vmem:[#allocation6 + $0x1888] sm:$0xf]  ;;  %v12625_v48 = vor.u32 %v15125_v35, %v12624_v33  ;;  %7748 = vmatpush.bf16.msrb.mxu1 %v12369_v27  ;;  %v7519_v27 = vpop.f32.mrf.mxu3 }
 0x2d2   :  { %v15197_v39 = vld [vmem:[#allocation6 + $0x18a4] sm:$0xf0] }
 0x2d3   :  { %v13168_v41 = vld [vmem:[#allocation6 + $0x1a88] sm:$0xf]  ;;  %v12913_v53 = vor.u32 %v15197_v39, %v12912_v9  ;;  %7761 = vmatpush.bf16.msrb.mxu2 %v12625_v48 }
 0x2d4   :  { %v15261_v43 = vld [vmem:[#allocation6 + $0x1aa4] sm:$0xf0] }
 0x2d5   :  { %v12336_v44 = vld [vmem:[#allocation6 + $0x1408] sm:$0xf]  ;;  %v13169_v60 = vor.u32 %v15261_v43, %v13168_v41  ;;  %7773 = vmatpush.bf16.msrb.mxu3 %v12913_v53 }
 0x2d6   :  { %v15053_v49 = vld [vmem:[#allocation6 + $0x1424] sm:$0xf0] }
 0x2d7   :  { %v12592_v50 = vld [vmem:[#allocation6 + $0x1608] sm:$0xf]  ;;  %v12337_v30 = vor.u32 %v15053_v49, %v12336_v44  ;;  %7786 = vmatpush.bf16.msra.mxu0 %v13169_v60  ;;  %v10005_v49 = vor.u32 %v14465_v36, %v10002_v37 }
 0x2d8   :  { %v15117_v51 = vld [vmem:[#allocation6 + $0x1624] sm:$0xf0] }
 0x2d9   :  { %v13584_v54 = vld [vmem:[#allocation6 + $0x1dc8] sm:$0xf]  ;;  %v12593_v11 = vor.u32 %v15117_v51, %v12592_v50  ;;  %7749 = vmatpush.bf16.msrb.mxu1 %v12337_v30 }
 0x2da   :  { %v15365_v58 = vld [vmem:[#allocation6 + $0x1de4] sm:$0xf0] }
 0x2db   :  { %v13840_v46 = vld [vmem:[#allocation6 + $0x1fc8] sm:$0xf]  ;;  %v13585_v7 = vor.u32 %v15365_v58, %v13584_v54  ;;  %7762 = vmatpush.bf16.msrb.mxu2 %v12593_v11  ;;  %v14457_v54 = vld [vmem:[#allocation6 + $0x18c] sm:$0xf] }
 0x2dc   :  { %v15429_v61 = vld [vmem:[#allocation6 + $0x1fe4] sm:$0xf0]  ;;  %7750 = vmatmul.bf16.vlgmr.msrb.gmra.mxu1 %v15891_v1  ;;  %v9970_v58 = vld [vmem:[#allocation6 + $0x1a8] sm:$0xf0] }
 0x2dd   :  { %v12880_v38 = vld [vmem:[#allocation6 + $0x1848] sm:$0xf]  ;;  %v13841_v17 = vor.u32 %v15429_v61, %v13840_v46  ;;  %7794 = vmatpush.bf16.msra.mxu1 %v13585_v7  ;;  %v9973_v4 = vor.u32 %v14457_v54, %v9970_v58  ;;  %v14449_v11 = vld [vmem:[#allocation6 + $0x14c] sm:$0xf] }
 0x2de   :  { %v15189_v2 = vld [vmem:[#allocation6 + $0x1864] sm:$0xf0]  ;;  %7763 = vmatmul.bf16.vlgmr.msrb.gmra.mxu2 %v15893_v3  ;;  %v9938_v7 = vld [vmem:[#allocation6 + $0x168] sm:$0xf0] }
 0x2df   :  { %v13136_v5 = vld [vmem:[#allocation6 + $0x1a48] sm:$0xf]  ;;  %v12881_v8 = vor.u32 %v15189_v2, %v12880_v38  ;;  %7807 = vmatpush.bf16.msra.mxu2 %v13841_v17 }
 0x2e0   :  { %v15253_v10 = vld [vmem:[#allocation6 + $0x1a64] sm:$0xf0] }
 0x2e1   :  { %v13552_v12 = vld [vmem:[#allocation6 + $0x1d88] sm:$0xf]  ;;  %v13137_v63 = vor.u32 %v15253_v10, %v13136_v5  ;;  %7774 = vmatpush.bf16.msrb.mxu3 %v12881_v8 }
 0x2e2   :  { %v15357_v55 = vld [vmem:[#allocation6 + $0x1da4] sm:$0xf0] }
 0x2e3   :  { %v13808_v42 = vld [vmem:[#allocation6 + $0x1f88] sm:$0xf]  ;;  %v13553_v35 = vor.u32 %v15357_v55, %v13552_v12  ;;  %7787 = vmatpush.bf16.msra.mxu0 %v13137_v63 }
 0x2e4   :  { %v15421_v15 = vld [vmem:[#allocation6 + $0x1fa4] sm:$0xf0] }
 0x2e5   :  { %v12848_v23 = vld [vmem:[#allocation6 + $0x1808] sm:$0xf]  ;;  %v13809_v45 = vor.u32 %v15421_v15, %v13808_v42  ;;  %7795 = vmatpush.bf16.msra.mxu1 %v13553_v35  ;;  %v7543_v42 = vpop.f32.mrf.mxu1  ;;  %v9941_v15 = vor.u32 %v14449_v11, %v9938_v7 }
 0x2e6   :  { %v15181_v24 = vld [vmem:[#allocation6 + $0x1824] sm:$0xf0] }
 0x2e7   :  { %v13104_v25 = vld [vmem:[#allocation6 + $0x1a08] sm:$0xf]  ;;  %v12849_v9 = vor.u32 %v15181_v24, %v12848_v23  ;;  %7808 = vmatpush.bf16.msra.mxu2 %v13809_v45  ;;  %v7544_v24 = vadd.f32 %v7543_v42, %v15964_v20  ;;  %v9874_v20 = vld [vmem:[#allocation6 + $0xe8] sm:$0xf0] }
 0x2e8   :  { %v15245_v31 = vld [vmem:[#allocation6 + $0x1a24] sm:$0xf0] }
 0x2e9   :  { %v14096_v32 = vld [vmem:[#allocation6 + $0x21c8] sm:$0xf]  ;;  %v13105_v41 = vor.u32 %v15245_v31, %v13104_v25  ;;  %7775 = vmatpush.bf16.msrb.mxu3 %v12849_v9  ;;  %v14441_v31 = vld [vmem:[#allocation6 + $0x10c] sm:$0xf] }
 0x2ea   :  { %v15493_v33 = vld [vmem:[#allocation6 + $0x21e4] sm:$0xf0] }
 0x2eb   :  { %v13520_v26 = vld [vmem:[#allocation6 + $0x1d48] sm:$0xf]  ;;  %v14097_v43 = vor.u32 %v15493_v33, %v14096_v32  ;;  %7788 = vmatpush.bf16.msra.mxu0 %v13105_v41  ;;  %v9906_v32 = vld [vmem:[#allocation6 + $0x128] sm:$0xf0] }
 0x2ec   :  { %v15349_v39 = vld [vmem:[#allocation6 + $0x1d64] sm:$0xf0]  ;;  %7776 = vmatmul.bf16.vlgmr.msrb.gmra.mxu3 %v15903_v47 }
 0x2ed   :  { %v13776_v44 = vld [vmem:[#allocation6 + $0x1f48] sm:$0xf]  ;;  %v13521_v53 = vor.u32 %v15349_v39, %v13520_v26  ;;  %7820 = vmatpush.bf16.msra.mxu3 %v14097_v43  ;;  %v9909_v26 = vor.u32 %v14441_v31, %v9906_v32  ;;  %v14433_v43 = vld [vmem:[#allocation6 + $0xcc] sm:$0xf] }
 0x2ee   :  { %v15413_v48 = vld [vmem:[#allocation6 + $0x1f64] sm:$0xf0]  ;;  %7789 = vmatmul.bf16.vlgmr.msra.gmra.mxu0 %v15905_v52  ;;  %v14417_v31 = vld [vmem:[#allocation6 + $0x4c] sm:$0xf] }
 0x2ef   :  { %v14064_v50 = vld [vmem:[#allocation6 + $0x2188] sm:$0xf]  ;;  %v13777_v46 = vor.u32 %v15413_v48, %v13776_v44  ;;  %7833 = vmatpush.bf16.msrb.mxu0 %v10005_v49  ;;  %7796 = vmatpush.bf16.msra.mxu1 %v13521_v53  ;;  %v9810_v32 = vld [vmem:[#allocation6 + $0x68] sm:$0xf0] }
 0x2f0   :  { %v15485_v51 = vld [vmem:[#allocation6 + $0x21a4] sm:$0xf0] }
 0x2f1   :  { %v13488_v59 = vld [vmem:[#allocation6 + $0x1d08] sm:$0xf]  ;;  %v14065_v61 = vor.u32 %v15485_v51, %v14064_v50  ;;  %7809 = vmatpush.bf16.msra.mxu2 %v13777_v46  ;;  %v7556_v50 = vpop.f32.mrf.mxu2  ;;  %v7582_v51 = vpop.f32.mrf.mxu0 }
 0x2f2   :  { %v15341_v60 = vld [vmem:[#allocation6 + $0x1d24] sm:$0xf0]  ;;  %v7557_v46 = vadd.f32 %v7556_v50, %v7544_v24  ;;  %v9778_v50 = vld [vmem:[#allocation6 + $0x28] sm:$0xf0] }
 0x2f3   :  { %v13744_v38 = vld [vmem:[#allocation6 + $0x1f08] sm:$0xf]  ;;  %v13489_v10 = vor.u32 %v15341_v60, %v13488_v59  ;;  %7821 = vmatpush.bf16.msra.mxu3 %v14065_v61  ;;  %7834 = vmatpush.bf16.msrb.mxu0 %v9973_v4  ;;  %v7545_v59 = vpop.f32.mrf.mxu1  ;;  %v9877_v60 = vor.u32 %v14433_v43, %v9874_v20  ;;  %v14425_v4 = vld [vmem:[#allocation6 + $0x8c] sm:$0xf]  ;;  %v9813_v20 = vor.u32 %v14417_v31, %v9810_v32 }
 0x2f4   :  { %v15405_v2 = vld [vmem:[#allocation6 + $0x1f24] sm:$0xf0]  ;;  %v11026_v59 = vld [vmem:[#allocation6 + $0x9e8] sm:$0xf0] }
 0x2f5   :  { %v14032_v30 = vld [vmem:[#allocation6 + $0x2148] sm:$0xf]  ;;  %v13745_v12 = vor.u32 %v15405_v2, %v13744_v38  ;;  %7797 = vmatpush.bf16.msra.mxu1 %v13489_v10  ;;  %v10706_v31 = vld [vmem:[#allocation6 + $0x768] sm:$0xf0] }
 0x2f6   :  { %v15477_v5 = vld [vmem:[#allocation6 + $0x2164] sm:$0xf0] }
 0x2f7   :  { %v13456_v13 = vld [vmem:[#allocation6 + $0x1cc8] sm:$0xf]  ;;  %v14033_v17 = vor.u32 %v15477_v5, %v14032_v30  ;;  %7810 = vmatpush.bf16.msra.mxu2 %v13745_v12  ;;  %7835 = vmatpush.bf16.msrb.mxu0 %v9941_v15  ;;  %v9842_v30 = vld [vmem:[#allocation6 + $0xa8] sm:$0xf0] }
 0x2f8   :  { %v15333_v16 = vld [vmem:[#allocation6 + $0x1ce4] sm:$0xf0]  ;;  %v9845_v42 = vor.u32 %v14425_v4, %v9842_v30  ;;  %v10514_v15 = vld [vmem:[#allocation6 + $0x5e8] sm:$0xf0] }
 0x2f9   :  { %v13712_v8 = vld [vmem:[#allocation6 + $0x1ec8] sm:$0xf]  ;;  %v13457_v25 = vor.u32 %v15333_v16, %v13456_v13  ;;  %7822 = vmatpush.bf16.msra.mxu3 %v14033_v17  ;;  %v14529_v16 = vld [vmem:[#allocation6 + $0x3cc] sm:$0xf] }
 0x2fa   :  { %v15397_v55 = vld [vmem:[#allocation6 + $0x1ee4] sm:$0xf0]  ;;  %v10258_v17 = vld [vmem:[#allocation6 + $0x3e8] sm:$0xf0] }
 0x2fb   :  { %v14000_v63 = vld [vmem:[#allocation6 + $0x2108] sm:$0xf]  ;;  %v13713_v33 = vor.u32 %v15397_v55, %v13712_v8  ;;  %7798 = vmatpush.bf16.msra.mxu1 %v13457_v25  ;;  %7836 = vmatpush.bf16.msrb.mxu0 %v9909_v26  ;;  %v14593_v8 = vld [vmem:[#allocation6 + $0x5cc] sm:$0xf]  ;;  %v7569_v55 = vpop.f32.mrf.mxu3 }
 0x2fc   :  { %v15469_v23 = vld [vmem:[#allocation6 + $0x2124] sm:$0xf0]  ;;  %v7570_v24 = vadd.f32 %v7569_v55, %v7557_v46  ;;  %v14721_v46 = vld [vmem:[#allocation6 + $0x9cc] sm:$0xf] }
 0x2fd   :  { %v13424_v35 = vld [vmem:[#allocation6 + $0x1c88] sm:$0xf]  ;;  %v14001_v37 = vor.u32 %v15469_v23, %v14000_v63  ;;  %7811 = vmatpush.bf16.msra.mxu2 %v13713_v33  ;;  %v14505_v55 = vld [vmem:[#allocation6 + $0x30c] sm:$0xf] }
 0x2fe   :  { %v15325_v36 = vld [vmem:[#allocation6 + $0x1ca4] sm:$0xf0]  ;;  %v15971_v43 = vadd.f32 %v7582_v51, %v7570_v24  ;;  %v14513_v51 = vld [vmem:[#allocation6 + $0x34c] sm:$0xf] }
 0x2ff   :  { %v13680_v45 = vld [vmem:[#allocation6 + $0x1e88] sm:$0xf]  ;;  %v13425_v41 = vor.u32 %v15325_v36, %v13424_v35  ;;  %7823 = vmatpush.bf16.msra.mxu3 %v14001_v37  ;;  %7837 = vmatpush.bf16.msrb.mxu0 %v9877_v60  ;;  %v10261_v35 = vor.u32 %v14529_v16, %v10258_v17  ;;  %v14521_v36 = vld [vmem:[#allocation6 + $0x38c] sm:$0xf]  ;;  %v7558_v37 = vpop.f32.mrf.mxu2 }
 0x300   :  { %v15389_v9 = vld [vmem:[#allocation6 + $0x1ea4] sm:$0xf0]  ;;  %v14713_v16 = vld [vmem:[#allocation6 + $0x98c] sm:$0xf] }
 0x301   :  { %v13968_v39 = vld [vmem:[#allocation6 + $0x20c8] sm:$0xf]  ;;  %v13681_v44 = vor.u32 %v15389_v9, %v13680_v45  ;;  %7799 = vmatpush.bf16.msra.mxu1 %v13425_v41  ;;  %v7584_v45 = vpop.f32.mrf.mxu0  ;;  %v10517_v9 = vor.u32 %v14593_v8, %v10514_v15  ;;  %v10482_v41 = vld [vmem:[#allocation6 + $0x5a8] sm:$0xf0] }
 0x302   :  { %v15461_v27 = vld [vmem:[#allocation6 + $0x20e4] sm:$0xf0]  ;;  %v10994_v17 = vld [vmem:[#allocation6 + $0x9a8] sm:$0xf0] }
 0x303   :  { %v13392_v48 = vld [vmem:[#allocation6 + $0x1c48] sm:$0xf]  ;;  %v13969_v53 = vor.u32 %v15461_v27, %v13968_v39  ;;  %7812 = vmatpush.bf16.msra.mxu2 %v13681_v44  ;;  %v10226_v39 = vld [vmem:[#allocation6 + $0x3a8] sm:$0xf0]  ;;  %7838 = vmatpush.bf16.msrb.mxu0 %v9845_v42  ;;  %v10997_v24 = vor.u32 %v14713_v16, %v10994_v17 }
 0x304   :  { %v15317_v49 = vld [vmem:[#allocation6 + $0x1c64] sm:$0xf0]  ;;  %v14585_v27 = vld [vmem:[#allocation6 + $0x58c] sm:$0xf] }
 0x305   :  { %v13648_v54 = vld [vmem:[#allocation6 + $0x1e48] sm:$0xf]  ;;  %v13393_v2 = vor.u32 %v15317_v49, %v13392_v48  ;;  %7824 = vmatpush.bf16.msra.mxu3 %v13969_v53  ;;  %v14409_v49 = vld [vmem:[#allocation6 + $0xc] sm:$0xf]  ;;  %v10485_v60 = vor.u32 %v14585_v27, %v10482_v41  ;;  %v7595_v27 = vpop.f32.mrf.mxu1 }
 0x306   :  { %v15381_v58 = vld [vmem:[#allocation6 + $0x1e64] sm:$0xf0]  ;;  %v14657_v53 = vld [vmem:[#allocation6 + $0x7cc] sm:$0xf]  ;;  %v9781_v4 = vor.u32 %v14409_v49, %v9778_v50 }
 0x307   :  { %v13936_v61 = vld [vmem:[#allocation6 + $0x2088] sm:$0xf]  ;;  %v13649_v10 = vor.u32 %v15381_v58, %v13648_v54  ;;  %7800 = vmatpush.bf16.msra.mxu1 %v13393_v2  ;;  %v10770_v54 = vld [vmem:[#allocation6 + $0x7e8] sm:$0xf0]  ;;  %v10229_v58 = vor.u32 %v14521_v36, %v10226_v39  ;;  %7839 = vmatpush.bf16.msrb.mxu0 %v9813_v20  ;;  %v7571_v2 = vpop.f32.mrf.mxu3 }
 0x308   :  { %v15453_v38 = vld [vmem:[#allocation6 + $0x20a4] sm:$0xf0]  ;;  %v10773_v30 = vor.u32 %v14657_v53, %v10770_v54  ;;  %v10162_v42 = vld [vmem:[#allocation6 + $0x328] sm:$0xf0] }
 0x309   :  { %v13360_v5 = vld [vmem:[#allocation6 + $0x1c08] sm:$0xf]  ;;  %v13937_v13 = vor.u32 %v15453_v38, %v13936_v61  ;;  %7813 = vmatpush.bf16.msra.mxu2 %v13649_v10  ;;  %v10194_v38 = vld [vmem:[#allocation6 + $0x368] sm:$0xf0]  ;;  %v10165_v32 = vor.u32 %v14505_v55, %v10162_v42 }
 0x30a   :  { %v15309_v11 = vld [vmem:[#allocation6 + $0x1c24] sm:$0xf0]  ;;  %v10450_v10 = vld [vmem:[#allocation6 + $0x568] sm:$0xf0] }
 0x30b   :  { %v13616_v7 = vld [vmem:[#allocation6 + $0x1e08] sm:$0xf]  ;;  %v13361_v25 = vor.u32 %v15309_v11, %v13360_v5  ;;  %7825 = vmatpush.bf16.msra.mxu3 %v13937_v13  ;;  %v14577_v5 = vld [vmem:[#allocation6 + $0x54c] sm:$0xf]  ;;  %v11029_v11 = vor.u32 %v14721_v46, %v11026_v59  ;;  %v10197_v13 = vor.u32 %v14513_v51, %v10194_v38  ;;  %7840 = vmatpush.bf16.msrb.mxu0 %v9781_v4 }
 0x30c   :  { %v15373_v12 = vld [vmem:[#allocation6 + $0x1e24] sm:$0xf0]  ;;  %v10453_v8 = vor.u32 %v14577_v5, %v10450_v10  ;;  %v14497_v37 = vld [vmem:[#allocation6 + $0x2cc] sm:$0xf] }
 0x30d   :  { %v13904_v63 = vld [vmem:[#allocation6 + $0x2048] sm:$0xf]  ;;  %v13617_v33 = vor.u32 %v15373_v12, %v13616_v7  ;;  %7801 = vmatpush.bf16.msra.mxu1 %v13361_v25  ;;  %v14649_v7 = vld [vmem:[#allocation6 + $0x78c] sm:$0xf]  ;;  %v7597_v55 = vpop.f32.mrf.mxu1 }
 0x30e   :  { %v15445_v23 = vld [vmem:[#allocation6 + $0x2064] sm:$0xf0]  ;;  %v10738_v12 = vld [vmem:[#allocation6 + $0x7a8] sm:$0xf0]  ;;  %7841 = vmatmul.bf16.vlgmr.msrb.gmra.mxu0 %v15850_v57 }
 0x30f   :  { %v13905_v26 = vor.u32 %v15445_v23, %v13904_v63  ;;  %v13872_v44 = vld [vmem:[#allocation6 + $0x2008] sm:$0xf]  ;;  %7814 = vmatpush.bf16.msra.mxu2 %v13617_v33  ;;  %v10741_v15 = vor.u32 %v14649_v7, %v10738_v12  ;;  %v14569_v63 = vld [vmem:[#allocation6 + $0x50c] sm:$0xf]  ;;  %7885 = vmatpush.bf16.msra.mxu0 %v11029_v11  ;;  %v7608_v7 = vpop.f32.mrf.mxu2  ;;  %v7634_v12 = vpop.f32.mrf.mxu0 }
 0x310   :  { %v15437_v48 = vld [vmem:[#allocation6 + $0x2024] sm:$0xf0]  ;;  %7802 = vmatmul.bf16.vlgmr.msra.gmra.mxu1 %v15909_v14  ;;  %v10418_v23 = vld [vmem:[#allocation6 + $0x528] sm:$0xf0] }
 0x311   :  { %7846 = vmatpush.bf16.msrb.mxu1 %v10261_v35  ;;  %7826 = vmatpush.bf16.msra.mxu3 %v13905_v26  ;;  %v13873_v61 = vor.u32 %v15437_v48, %v13872_v44  ;;  %v14641_v25 = vld [vmem:[#allocation6 + $0x74c] sm:$0xf]  ;;  %v10421_v36 = vor.u32 %v14569_v63, %v10418_v23  ;;  %v7596_v48 = vadd.f32 %v7595_v27, %v15971_v43 }
 0x312   :  { %7815 = vmatmul.bf16.vlgmr.msra.gmra.mxu2 %v15911_v18  ;;  %v14705_v33 = vld [vmem:[#allocation6 + $0x94c] sm:$0xf] }
 0x313   :  { %7859 = vmatpush.bf16.msrb.mxu2 %v10517_v9  ;;  %v10962_v35 = vld [vmem:[#allocation6 + $0x968] sm:$0xf0]  ;;  %v10709_v9 = vor.u32 %v14641_v25, %v10706_v31  ;;  %7886 = vmatpush.bf16.msra.mxu0 %v10997_v24 }
 0x314   :  { %v10130_v45 = vld [vmem:[#allocation6 + $0x2e8] sm:$0xf0]  ;;  %v10965_v41 = vor.u32 %v14705_v33, %v10962_v35 }
 0x315   :  { %7847 = vmatpush.bf16.msrb.mxu1 %v10229_v58  ;;  %7827 = vmatpush.bf16.msra.mxu3 %v13873_v61  ;;  %v14561_v26 = vld [vmem:[#allocation6 + $0x4cc] sm:$0xf]  ;;  %v10133_v49 = vor.u32 %v14497_v37, %v10130_v45 }
 0x316   :  { %v10386_v39 = vld [vmem:[#allocation6 + $0x4e8] sm:$0xf0] }
 0x317   :  { %7860 = vmatpush.bf16.msrb.mxu2 %v10485_v60  ;;  %v14633_v20 = vld [vmem:[#allocation6 + $0x70c] sm:$0xf]  ;;  %v10389_v54 = vor.u32 %v14561_v26, %v10386_v39  ;;  %7887 = vmatpush.bf16.msra.mxu0 %v10965_v41  ;;  %v7621_v41 = vpop.f32.mrf.mxu3 }
 0x318   :  { %7828 = vmatmul.bf16.vlgmr.msra.gmra.mxu3 %v15916_v56  ;;  %v10674_v44 = vld [vmem:[#allocation6 + $0x728] sm:$0xf0] }
 0x319   :  { %7872 = vmatpush.bf16.msrb.mxu3 %v10773_v30  ;;  %7848 = vmatpush.bf16.msrb.mxu1 %v10197_v13  ;;  %v14697_v50 = vld [vmem:[#allocation6 + $0x90c] sm:$0xf]  ;;  %v10677_v59 = vor.u32 %v14633_v20, %v10674_v44 }
 0x31a   :  { %v10930_v53 = vld [vmem:[#allocation6 + $0x928] sm:$0xf0] }
 0x31b   :  { %7861 = vmatpush.bf16.msrb.mxu2 %v10453_v8  ;;  %v14489_v58 = vld [vmem:[#allocation6 + $0x28c] sm:$0xf]  ;;  %v10933_v51 = vor.u32 %v14697_v50, %v10930_v53  ;;  %v15978_v8 = vadd.f32 %v7608_v7, %v7596_v48 }
 0x31c   :  { %v10098_v46 = vld [vmem:[#allocation6 + $0x2a8] sm:$0xf0] }
 0x31d   :  { %7873 = vmatpush.bf16.msrb.mxu3 %v10741_v15  ;;  %7849 = vmatpush.bf16.msrb.mxu1 %v10165_v32  ;;  %v14553_v60 = vld [vmem:[#allocation6 + $0x48c] sm:$0xf]  ;;  %v10101_v4 = vor.u32 %v14489_v58, %v10098_v46  ;;  %v15578_v15 = vld [vmem:[#allocation7] sm:$0xff] }
 0x31e   :  { %v10354_v61 = vld [vmem:[#allocation6 + $0x4a8] sm:$0xf0]  ;;  %7888 = vmatpush.bf16.msra.mxu0 %v10933_v51  ;;  %v1716_v63 = vperm.slane %v15578_v15, 2  ;;  %v7636_v51 = vpop.f32.mrf.mxu0 }
 0x31f   :  { %7862 = vmatpush.bf16.msrb.mxu2 %v10421_v36  ;;  %v14625_v38 = vld [vmem:[#allocation6 + $0x6cc] sm:$0xf]  ;;  %v10357_v5 = vor.u32 %v14553_v60, %v10354_v61  ;;  %v7610_v61 = vpop.f32.mrf.mxu2 }
 0x320   :  { %v10642_v2 = vld [vmem:[#allocation6 + $0x6e8] sm:$0xf0]  ;;  %v7622_v50 = vadd.f32 %v7621_v41, %v1716_v63 }
 0x321   :  { %7874 = vmatpush.bf16.msrb.mxu3 %v10709_v9  ;;  %7850 = vmatpush.bf16.msrb.mxu1 %v10133_v49  ;;  %v14689_v30 = vld [vmem:[#allocation6 + $0x8cc] sm:$0xf]  ;;  %v10645_v13 = vor.u32 %v14625_v38, %v10642_v2 }
 0x322   :  { %v10898_v43 = vld [vmem:[#allocation6 + $0x8e8] sm:$0xf0] }
 0x323   :  { %7863 = vmatpush.bf16.msrb.mxu2 %v10389_v54  ;;  %v14481_v10 = vld [vmem:[#allocation6 + $0x24c] sm:$0xf]  ;;  %v10901_v42 = vor.u32 %v14689_v30, %v10898_v43 }
 0x324   :  { %v10066_v11 = vld [vmem:[#allocation6 + $0x268] sm:$0xf0] }
 0x325   :  { %7875 = vmatpush.bf16.msrb.mxu3 %v10677_v59  ;;  %v14545_v16 = vld [vmem:[#allocation6 + $0x44c] sm:$0xf]  ;;  %7851 = vmatpush.bf16.msrb.mxu1 %v10101_v4  ;;  %v10069_v25 = vor.u32 %v14481_v10, %v10066_v11 }
 0x326   :  { %v10322_v17 = vld [vmem:[#allocation6 + $0x468] sm:$0xf0]  ;;  %7889 = vmatpush.bf16.msra.mxu0 %v10901_v42 }
 0x327   :  { %v14617_v23 = vld [vmem:[#allocation6 + $0x68c] sm:$0xf]  ;;  %7864 = vmatpush.bf16.msrb.mxu2 %v10357_v5  ;;  %v10325_v35 = vor.u32 %v14545_v16, %v10322_v17  ;;  %v15980_v5 = vadd.f32 %v7634_v12, %v7622_v50 }
 0x328   :  { %v10610_v24 = vld [vmem:[#allocation6 + $0x6a8] sm:$0xf0] }
 0x329   :  { %v14681_v31 = vld [vmem:[#allocation6 + $0x88c] sm:$0xf]  ;;  %7876 = vmatpush.bf16.msrb.mxu3 %v10645_v13  ;;  %v10613_v9 = vor.u32 %v14617_v23, %v10610_v24  ;;  %7852 = vmatpush.bf16.msrb.mxu1 %v10069_v25 }
 0x32a   :  { %v10866_v32 = vld [vmem:[#allocation6 + $0x8a8] sm:$0xf0] }
 0x32b   :  { %v14473_v33 = vld [vmem:[#allocation6 + $0x20c] sm:$0xf]  ;;  %v10869_v20 = vor.u32 %v14681_v31, %v10866_v32  ;;  %7865 = vmatpush.bf16.msrb.mxu2 %v10325_v35  ;;  %v7623_v31 = vpop.f32.mrf.mxu3 }
 0x32c   :  { %v10034_v36 = vld [vmem:[#allocation6 + $0x228] sm:$0xf0] }
 0x32d   :  { %v14537_v37 = vld [vmem:[#allocation6 + $0x40c] sm:$0xf]  ;;  %v10037_v53 = vor.u32 %v14473_v33, %v10034_v36  ;;  %7877 = vmatpush.bf16.msrb.mxu3 %v10613_v9  ;;  %7890 = vmatpush.bf16.msra.mxu0 %v10869_v20 }
 0x32e   :  { %v10290_v45 = vld [vmem:[#allocation6 + $0x428] sm:$0xf0] }
 0x32f   :  { %v14785_v26 = vld [vmem:[#allocation6 + $0xbcc] sm:$0xf]  ;;  %v10293_v46 = vor.u32 %v14537_v37, %v10290_v45  ;;  %7853 = vmatpush.bf16.msrb.mxu1 %v10037_v53 }
 0x330   :  { %v11282_v39 = vld [vmem:[#allocation6 + $0xbe8] sm:$0xf0] }
 0x331   :  { %v14849_v27 = vld [vmem:[#allocation6 + $0xdcc] sm:$0xf]  ;;  %v11285_v59 = vor.u32 %v14785_v26, %v11282_v39  ;;  %7866 = vmatpush.bf16.msrb.mxu2 %v10293_v46 }
 0x332   :  { %v11538_v44 = vld [vmem:[#allocation6 + $0xde8] sm:$0xf0]  ;;  %7854 = vmatmul.bf16.vlgmr.msrb.gmra.mxu1 %v15853_v62 }
 0x333   :  { %v14609_v48 = vld [vmem:[#allocation6 + $0x64c] sm:$0xf]  ;;  %v11541_v38 = vor.u32 %v14849_v27, %v11538_v44  ;;  %7898 = vmatpush.bf16.msra.mxu1 %v11285_v59 }
 0x334   :  { %v10578_v49 = vld [vmem:[#allocation6 + $0x668] sm:$0xf0]  ;;  %7867 = vmatmul.bf16.vlgmr.msrb.gmra.mxu2 %v15858_v21 }
 0x335   :  { %v14673_v54 = vld [vmem:[#allocation6 + $0x84c] sm:$0xf]  ;;  %v10581_v2 = vor.u32 %v14609_v48, %v10578_v49  ;;  %7911 = vmatpush.bf16.msra.mxu2 %v11541_v38 }
 0x336   :  { %v10834_v58 = vld [vmem:[#allocation6 + $0x868] sm:$0xf0] }
 0x337   :  { %v14777_v60 = vld [vmem:[#allocation6 + $0xb8c] sm:$0xf]  ;;  %v10837_v10 = vor.u32 %v14673_v54, %v10834_v58  ;;  %7878 = vmatpush.bf16.msrb.mxu3 %v10581_v2 }
 0x338   :  { %v11250_v4 = vld [vmem:[#allocation6 + $0xba8] sm:$0xf0] }
 0x339   :  { %v14841_v30 = vld [vmem:[#allocation6 + $0xd8c] sm:$0xf]  ;;  %v11253_v42 = vor.u32 %v14777_v60, %v11250_v4  ;;  %7891 = vmatpush.bf16.msra.mxu0 %v10837_v10 }
 0x33a   :  { %v11506_v43 = vld [vmem:[#allocation6 + $0xda8] sm:$0xf0] }
 0x33b   :  { %v14601_v11 = vld [vmem:[#allocation6 + $0x60c] sm:$0xf]  ;;  %v11509_v23 = vor.u32 %v14841_v30, %v11506_v43  ;;  %7899 = vmatpush.bf16.msra.mxu1 %v11253_v42  ;;  %v7647_v43 = vpop.f32.mrf.mxu1 }
 0x33c   :  { %v10546_v7 = vld [vmem:[#allocation6 + $0x628] sm:$0xf0] }
 0x33d   :  { %v14665_v13 = vld [vmem:[#allocation6 + $0x80c] sm:$0xf]  ;;  %v10549_v24 = vor.u32 %v14601_v11, %v10546_v7  ;;  %7912 = vmatpush.bf16.msra.mxu2 %v11509_v23 }
 0x33e   :  { %v10802_v16 = vld [vmem:[#allocation6 + $0x828] sm:$0xf0] }
 0x33f   :  { %v14913_v17 = vld [vmem:[#allocation6 + $0xfcc] sm:$0xf]  ;;  %v10805_v32 = vor.u32 %v14665_v13, %v10802_v16  ;;  %7879 = vmatpush.bf16.msrb.mxu3 %v10549_v24  ;;  %v7648_v13 = vadd.f32 %v7647_v43, %v15980_v5  ;;  %v7673_v43 = vpop.f32.mrf.mxu3 }
 0x340   :  { %v11794_v55 = vld [vmem:[#allocation6 + $0xfe8] sm:$0xf0] }
 0x341   :  { %v14977_v15 = vld [vmem:[#allocation6 + $0x11cc] sm:$0xf]  ;;  %v11797_v33 = vor.u32 %v14913_v17, %v11794_v55  ;;  %7892 = vmatpush.bf16.msra.mxu0 %v10805_v32 }
 0x342   :  { %v12050_v63 = vld [vmem:[#allocation6 + $0x11e8] sm:$0xf0]  ;;  %7880 = vmatmul.bf16.vlgmr.msrb.gmra.mxu3 %v15860_v28 }
 0x343   :  { %v14769_v12 = vld [vmem:[#allocation6 + $0xb4c] sm:$0xf]  ;;  %v12053_v37 = vor.u32 %v14977_v15, %v12050_v63  ;;  %7924 = vmatpush.bf16.msra.mxu3 %v11797_v33 }
 0x344   :  { %v11218_v25 = vld [vmem:[#allocation6 + $0xb68] sm:$0xf0]  ;;  %7893 = vmatmul.bf16.vlgmr.msra.gmra.mxu0 %v15866_v0 }
 0x345   :  { %v14833_v35 = vld [vmem:[#allocation6 + $0xd4c] sm:$0xf]  ;;  %v11221_v26 = vor.u32 %v14769_v12, %v11218_v25  ;;  %7937 = vmatpush.bf16.msrb.mxu0 %v12053_v37 }
 0x346   :  { %v11474_v36 = vld [vmem:[#allocation6 + $0xd68] sm:$0xf0] }
 0x347   :  { %v14905_v45 = vld [vmem:[#allocation6 + $0xf8c] sm:$0xf]  ;;  %v11477_v41 = vor.u32 %v14833_v35, %v11474_v36  ;;  %7900 = vmatpush.bf16.msra.mxu1 %v11221_v26  ;;  %v7686_v26 = vpop.f32.mrf.mxu0 }
 0x348   :  { %v11762_v9 = vld [vmem:[#allocation6 + $0xfa8] sm:$0xf0] }
 0x349   :  { %v14969_v39 = vld [vmem:[#allocation6 + $0x118c] sm:$0xf]  ;;  %v11765_v48 = vor.u32 %v14905_v45, %v11762_v9  ;;  %7913 = vmatpush.bf16.msra.mxu2 %v11477_v41  ;;  %v7660_v9 = vpop.f32.mrf.mxu2 }
 0x34a   :  { %v12018_v27 = vld [vmem:[#allocation6 + $0x11a8] sm:$0xf0] }
 0x34b   :  { %v14761_v20 = vld [vmem:[#allocation6 + $0xb0c] sm:$0xf]  ;;  %v12021_v53 = vor.u32 %v14969_v39, %v12018_v27  ;;  %7925 = vmatpush.bf16.msra.mxu3 %v11765_v48 }
 0x34c   :  { %v11186_v44 = vld [vmem:[#allocation6 + $0xb28] sm:$0xf0] }
 0x34d   :  { %v14825_v49 = vld [vmem:[#allocation6 + $0xd0c] sm:$0xf]  ;;  %v11189_v46 = vor.u32 %v14761_v20, %v11186_v44  ;;  %7938 = vmatpush.bf16.msrb.mxu0 %v12021_v53  ;;  %v7661_v20 = vadd.f32 %v7660_v9, %v7648_v13  ;;  %v7649_v44 = vpop.f32.mrf.mxu1 }
 0x34e   :  { %v11442_v50 = vld [vmem:[#allocation6 + $0xd28] sm:$0xf0] }
 0x34f   :  { %v14897_v54 = vld [vmem:[#allocation6 + $0xf4c] sm:$0xf]  ;;  %v11445_v61 = vor.u32 %v14825_v49, %v11442_v50  ;;  %7901 = vmatpush.bf16.msra.mxu1 %v11189_v46 }
 0x350   :  { %v11730_v58 = vld [vmem:[#allocation6 + $0xf68] sm:$0xf0] }
 0x351   :  { %v14961_v59 = vld [vmem:[#allocation6 + $0x114c] sm:$0xf]  ;;  %v11733_v2 = vor.u32 %v14897_v54, %v11730_v58  ;;  %7914 = vmatpush.bf16.msra.mxu2 %v11445_v61 }
 0x352   :  { %v11986_v60 = vld [vmem:[#allocation6 + $0x1168] sm:$0xf0] }
 0x353   :  { %v14753_v51 = vld [vmem:[#allocation6 + $0xacc] sm:$0xf]  ;;  %v11989_v10 = vor.u32 %v14961_v59, %v11986_v60  ;;  %7926 = vmatpush.bf16.msra.mxu3 %v11733_v2 }
 0x354   :  { %v11154_v38 = vld [vmem:[#allocation6 + $0xae8] sm:$0xf0] }
 0x355   :  { %v14817_v4 = vld [vmem:[#allocation6 + $0xccc] sm:$0xf]  ;;  %v11157_v16 = vor.u32 %v14753_v51, %v11154_v38  ;;  %7939 = vmatpush.bf16.msrb.mxu0 %v11989_v10 }
 0x356   :  { %v11410_v30 = vld [vmem:[#allocation6 + $0xce8] sm:$0xf0] }
 0x357   :  { %v14889_v11 = vld [vmem:[#allocation6 + $0xf0c] sm:$0xf]  ;;  %v11413_v42 = vor.u32 %v14817_v4, %v11410_v30  ;;  %7902 = vmatpush.bf16.msra.mxu1 %v11157_v16  ;;  %v7674_v16 = vadd.f32 %v7673_v43, %v7661_v20 }
 0x358   :  { %v11698_v7 = vld [vmem:[#allocation6 + $0xf28] sm:$0xf0] }
 0x359   :  { %v14953_v17 = vld [vmem:[#allocation6 + $0x110c] sm:$0xf]  ;;  %v11701_v23 = vor.u32 %v14889_v11, %v11698_v7  ;;  %7915 = vmatpush.bf16.msra.mxu2 %v11413_v42 }
 0x35a   :  { %v11954_v55 = vld [vmem:[#allocation6 + $0x1128] sm:$0xf0] }
 0x35b   :  { %v14745_v15 = vld [vmem:[#allocation6 + $0xa8c] sm:$0xf]  ;;  %v11957_v25 = vor.u32 %v14953_v17, %v11954_v55  ;;  %7927 = vmatpush.bf16.msra.mxu3 %v11701_v23 }
 0x35c   :  { %v11122_v63 = vld [vmem:[#allocation6 + $0xaa8] sm:$0xf0] }
 0x35d   :  { %v14809_v24 = vld [vmem:[#allocation6 + $0xc8c] sm:$0xf]  ;;  %v11125_v33 = vor.u32 %v14745_v15, %v11122_v63  ;;  %7940 = vmatpush.bf16.msrb.mxu0 %v11957_v25 }
 0x35e   :  { %v11378_v12 = vld [vmem:[#allocation6 + $0xca8] sm:$0xf0] }
 0x35f   :  { %v14881_v31 = vld [vmem:[#allocation6 + $0xecc] sm:$0xf]  ;;  %v11381_v36 = vor.u32 %v14809_v24, %v11378_v12  ;;  %7903 = vmatpush.bf16.msra.mxu1 %v11125_v33  ;;  %v7662_v24 = vpop.f32.mrf.mxu2  ;;  %v7688_v12 = vpop.f32.mrf.mxu0 }
 0x360   :  { %v11666_v32 = vld [vmem:[#allocation6 + $0xee8] sm:$0xf0] }
 0x361   :  { %v14945_v35 = vld [vmem:[#allocation6 + $0x10cc] sm:$0xf]  ;;  %v11669_v39 = vor.u32 %v14881_v31, %v11666_v32  ;;  %7916 = vmatpush.bf16.msra.mxu2 %v11381_v36 }
 0x362   :  { %v11922_v5 = vld [vmem:[#allocation6 + $0x10e8] sm:$0xf0] }
 0x363   :  { %v14737_v37 = vld [vmem:[#allocation6 + $0xa4c] sm:$0xf]  ;;  %v11925_v48 = vor.u32 %v14945_v35, %v11922_v5  ;;  %7928 = vmatpush.bf16.msra.mxu3 %v11669_v39  ;;  %v15987_v5 = vadd.f32 %v7686_v26, %v7674_v16 }
 0x364   :  { %v11090_v45 = vld [vmem:[#allocation6 + $0xa68] sm:$0xf0] }
 0x365   :  { %v14801_v27 = vld [vmem:[#allocation6 + $0xc4c] sm:$0xf]  ;;  %v11093_v53 = vor.u32 %v14737_v37, %v11090_v45  ;;  %7941 = vmatpush.bf16.msrb.mxu0 %v11925_v48 }
 0x366   :  { %v11346_v41 = vld [vmem:[#allocation6 + $0xc68] sm:$0xf0] }
 0x367   :  { %v14873_v49 = vld [vmem:[#allocation6 + $0xe8c] sm:$0xf]  ;;  %v11349_v59 = vor.u32 %v14801_v27, %v11346_v41  ;;  %7904 = vmatpush.bf16.msra.mxu1 %v11093_v53 }
 0x368   :  { %v11634_v50 = vld [vmem:[#allocation6 + $0xea8] sm:$0xf0] }
 0x369   :  { %v14937_v54 = vld [vmem:[#allocation6 + $0x108c] sm:$0xf]  ;;  %v11637_v38 = vor.u32 %v14873_v49, %v11634_v50  ;;  %7917 = vmatpush.bf16.msra.mxu2 %v11349_v59 }
 0x36a   :  { %v11890_v58 = vld [vmem:[#allocation6 + $0x10a8] sm:$0xf0] }
 0x36b   :  { %v14729_v46 = vld [vmem:[#allocation6 + $0xa0c] sm:$0xf]  ;;  %v11893_v10 = vor.u32 %v14937_v54, %v11890_v58  ;;  %7929 = vmatpush.bf16.msra.mxu3 %v11637_v38  ;;  %v7675_v54 = vpop.f32.mrf.mxu3 }
 0x36c   :  { %v11058_v60 = vld [vmem:[#allocation6 + $0xa28] sm:$0xf0] }
 0x36d   :  { %v14793_v61 = vld [vmem:[#allocation6 + $0xc0c] sm:$0xf]  ;;  %v11061_v17 = vor.u32 %v14729_v46, %v11058_v60  ;;  %7942 = vmatpush.bf16.msrb.mxu0 %v11893_v10 }
 0x36e   :  { %v11314_v51 = vld [vmem:[#allocation6 + $0xc28] sm:$0xf0] }
 0x36f   :  { %v15041_v2 = vld [vmem:[#allocation6 + $0x13cc] sm:$0xf]  ;;  %v11317_v15 = vor.u32 %v14793_v61, %v11314_v51  ;;  %7905 = vmatpush.bf16.msra.mxu1 %v11061_v17 }
 0x370   :  { %v12306_v4 = vld [vmem:[#allocation6 + $0x13e8] sm:$0xf0] }
 0x371   :  { %v15105_v30 = vld [vmem:[#allocation6 + $0x15cc] sm:$0xf]  ;;  %v12309_v63 = vor.u32 %v15041_v2, %v12306_v4  ;;  %7918 = vmatpush.bf16.msra.mxu2 %v11317_v15 }
 0x372   :  { %v12562_v11 = vld [vmem:[#allocation6 + $0x15e8] sm:$0xf0]  ;;  %7906 = vmatmul.bf16.vlgmr.msra.gmra.mxu1 %v15869_v6 }
 0x373   :  { %v14865_v7 = vld [vmem:[#allocation6 + $0xe4c] sm:$0xf]  ;;  %v12565_v25 = vor.u32 %v15105_v30, %v12562_v11  ;;  %7950 = vmatpush.bf16.msrb.mxu1 %v12309_v63 }
 0x374   :  { %v11602_v13 = vld [vmem:[#allocation6 + $0xe68] sm:$0xf0]  ;;  %7919 = vmatmul.bf16.vlgmr.msra.gmra.mxu2 %v15875_v34 }
 0x375   :  { %v14929_v55 = vld [vmem:[#allocation6 + $0x104c] sm:$0xf]  ;;  %v11605_v31 = vor.u32 %v14865_v7, %v11602_v13  ;;  %7963 = vmatpush.bf16.msrb.mxu2 %v12565_v25 }
 0x376   :  { %v11858_v42 = vld [vmem:[#allocation6 + $0x1068] sm:$0xf0] }
 0x377   :  { %v15033_v23 = vld [vmem:[#allocation6 + $0x138c] sm:$0xf]  ;;  %v11861_v36 = vor.u32 %v14929_v55, %v11858_v42  ;;  %7930 = vmatpush.bf16.msra.mxu3 %v11605_v31 }
 0x378   :  { %v12274_v32 = vld [vmem:[#allocation6 + $0x13a8] sm:$0xf0] }
 0x379   :  { %v15097_v33 = vld [vmem:[#allocation6 + $0x158c] sm:$0xf]  ;;  %v12277_v20 = vor.u32 %v15033_v23, %v12274_v32  ;;  %7943 = vmatpush.bf16.msrb.mxu0 %v11861_v36 }
 0x37a   :  { %v12530_v35 = vld [vmem:[#allocation6 + $0x15a8] sm:$0xf0] }
 0x37b   :  { %v14857_v37 = vld [vmem:[#allocation6 + $0xe0c] sm:$0xf]  ;;  %v12533_v49 = vor.u32 %v15097_v33, %v12530_v35  ;;  %7951 = vmatpush.bf16.msrb.mxu1 %v12277_v20  ;;  %v7699_v35 = vpop.f32.mrf.mxu1 }
 0x37c   :  { %v11570_v45 = vld [vmem:[#allocation6 + $0xe28] sm:$0xf0] }
 0x37d   :  { %v14921_v9 = vld [vmem:[#allocation6 + $0x100c] sm:$0xf]  ;;  %v11573_v50 = vor.u32 %v14857_v37, %v11570_v45  ;;  %7964 = vmatpush.bf16.msrb.mxu2 %v12533_v49 }
 0x37e   :  { %v11826_v39 = vld [vmem:[#allocation6 + $0x1028] sm:$0xf0] }
 0x37f   :  { %v15169_v27 = vld [vmem:[#allocation6 + $0x17cc] sm:$0xf]  ;;  %v11829_v58 = vor.u32 %v14921_v9, %v11826_v39  ;;  %7931 = vmatpush.bf16.msra.mxu3 %v11573_v50  ;;  %v7700_v9 = vadd.f32 %v7699_v35, %v15987_v5  ;;  %v7725_v35 = vpop.f32.mrf.mxu3 }
 0x380   :  { %v12818_v41 = vld [vmem:[#allocation6 + $0x17e8] sm:$0xf0] }
 0x381   :  { %v15233_v44 = vld [vmem:[#allocation6 + $0x19cc] sm:$0xf]  ;;  %v12821_v46 = vor.u32 %v15169_v27, %v12818_v41  ;;  %7944 = vmatpush.bf16.msrb.mxu0 %v11829_v58 }
 0x382   :  { %v13074_v48 = vld [vmem:[#allocation6 + $0x19e8] sm:$0xf0]  ;;  %7932 = vmatmul.bf16.vlgmr.msra.gmra.mxu3 %v15879_v40 }
 0x383   :  { %v15025_v26 = vld [vmem:[#allocation6 + $0x134c] sm:$0xf]  ;;  %v13077_v61 = vor.u32 %v15233_v44, %v13074_v48  ;;  %7976 = vmatpush.bf16.msrb.mxu3 %v12821_v46 }
 0x384   :  { %v12242_v53 = vld [vmem:[#allocation6 + $0x1368] sm:$0xf0]  ;;  %7945 = vmatmul.bf16.vlgmr.msrb.gmra.mxu0 %v15884_v22 }
 0x385   :  { %v15089_v59 = vld [vmem:[#allocation6 + $0x154c] sm:$0xf]  ;;  %v12245_v2 = vor.u32 %v15025_v26, %v12242_v53  ;;  %7989 = vmatpush.bf16.msra.mxu0 %v13077_v61 }
 0x386   :  { %v12498_v60 = vld [vmem:[#allocation6 + $0x1568] sm:$0xf0] }
 0x387   :  { %v15161_v51 = vld [vmem:[#allocation6 + $0x178c] sm:$0xf]  ;;  %v12501_v43 = vor.u32 %v15089_v59, %v12498_v60  ;;  %7952 = vmatpush.bf16.msrb.mxu1 %v12245_v2  ;;  %v7738_v2 = vpop.f32.mrf.mxu0 }
 0x388   :  { %v12786_v38 = vld [vmem:[#allocation6 + $0x17a8] sm:$0xf0] }
 0x389   :  { %v15225_v4 = vld [vmem:[#allocation6 + $0x198c] sm:$0xf]  ;;  %v12789_v7 = vor.u32 %v15161_v51, %v12786_v38  ;;  %7965 = vmatpush.bf16.msrb.mxu2 %v12501_v43  ;;  %v7712_v38 = vpop.f32.mrf.mxu2 }
 0x38a   :  { %v13042_v30 = vld [vmem:[#allocation6 + $0x19a8] sm:$0xf0] }
 0x38b   :  { %v15017_v10 = vld [vmem:[#allocation6 + $0x130c] sm:$0xf]  ;;  %v13045_v17 = vor.u32 %v15225_v4, %v13042_v30  ;;  %7977 = vmatpush.bf16.msrb.mxu3 %v12789_v7 }
 0x38c   :  { %v12210_v11 = vld [vmem:[#allocation6 + $0x1328] sm:$0xf0] }
 0x38d   :  { %v15081_v13 = vld [vmem:[#allocation6 + $0x150c] sm:$0xf]  ;;  %v12213_v15 = vor.u32 %v15017_v10, %v12210_v11  ;;  %7990 = vmatpush.bf16.msra.mxu0 %v13045_v17  ;;  %v7713_v10 = vadd.f32 %v7712_v38, %v7700_v9  ;;  %v7701_v11 = vpop.f32.mrf.mxu1 }
 0x38e   :  { %v12466_v16 = vld [vmem:[#allocation6 + $0x1528] sm:$0xf0] }
 0x38f   :  { %v15153_v55 = vld [vmem:[#allocation6 + $0x174c] sm:$0xf]  ;;  %v12469_v24 = vor.u32 %v15081_v13, %v12466_v16  ;;  %7953 = vmatpush.bf16.msrb.mxu1 %v12213_v15 }
 0x390   :  { %v12754_v42 = vld [vmem:[#allocation6 + $0x1768] sm:$0xf0] }
 0x391   :  { %v15217_v63 = vld [vmem:[#allocation6 + $0x194c] sm:$0xf]  ;;  %v12757_v31 = vor.u32 %v15153_v55, %v12754_v42  ;;  %7966 = vmatpush.bf16.msrb.mxu2 %v12469_v24 }
 0x392   :  { %v13010_v23 = vld [vmem:[#allocation6 + $0x1968] sm:$0xf0] }
 0x393   :  { %v15009_v12 = vld [vmem:[#allocation6 + $0x12cc] sm:$0xf]  ;;  %v13013_v36 = vor.u32 %v15217_v63, %v13010_v23  ;;  %7978 = vmatpush.bf16.msrb.mxu3 %v12757_v31 }
 0x394   :  { %v12178_v25 = vld [vmem:[#allocation6 + $0x12e8] sm:$0xf0] }
 0x395   :  { %v15073_v32 = vld [vmem:[#allocation6 + $0x14cc] sm:$0xf]  ;;  %v12181_v39 = vor.u32 %v15009_v12, %v12178_v25  ;;  %7991 = vmatpush.bf16.msra.mxu0 %v13013_v36 }
 0x396   :  { %v12434_v33 = vld [vmem:[#allocation6 + $0x14e8] sm:$0xf0] }
 0x397   :  { %v15145_v37 = vld [vmem:[#allocation6 + $0x170c] sm:$0xf]  ;;  %v12437_v20 = vor.u32 %v15073_v32, %v12434_v33  ;;  %7954 = vmatpush.bf16.msrb.mxu1 %v12181_v39  ;;  %v7726_v39 = vadd.f32 %v7725_v35, %v7713_v10 }
 0x398   :  { %v12722_v45 = vld [vmem:[#allocation6 + $0x1728] sm:$0xf0] }
 0x399   :  { %v15209_v27 = vld [vmem:[#allocation6 + $0x190c] sm:$0xf]  ;;  %v12725_v49 = vor.u32 %v15145_v37, %v12722_v45  ;;  %7967 = vmatpush.bf16.msrb.mxu2 %v12437_v20 }
 0x39a   :  { %v12978_v41 = vld [vmem:[#allocation6 + $0x1928] sm:$0xf0] }
 0x39b   :  { %v15001_v44 = vld [vmem:[#allocation6 + $0x128c] sm:$0xf]  ;;  %v12981_v53 = vor.u32 %v15209_v27, %v12978_v41  ;;  %7979 = vmatpush.bf16.msrb.mxu3 %v12725_v49 }
 0x39c   :  { %v12146_v48 = vld [vmem:[#allocation6 + $0x12a8] sm:$0xf0] }
 0x39d   :  { %v15065_v50 = vld [vmem:[#allocation6 + $0x148c] sm:$0xf]  ;;  %v12149_v46 = vor.u32 %v15001_v44, %v12146_v48  ;;  %7992 = vmatpush.bf16.msra.mxu0 %v12981_v53 }
 0x39e   :  { %v12402_v26 = vld [vmem:[#allocation6 + $0x14a8] sm:$0xf0] }
 0x39f   :  { %v15137_v54 = vld [vmem:[#allocation6 + $0x16cc] sm:$0xf]  ;;  %v12405_v60 = vor.u32 %v15065_v50, %v12402_v26  ;;  %7955 = vmatpush.bf16.msrb.mxu1 %v12149_v46  ;;  %v7714_v50 = vpop.f32.mrf.mxu2  ;;  %v7740_v26 = vpop.f32.mrf.mxu0 }
 0x3a0   :  { %v12690_v58 = vld [vmem:[#allocation6 + $0x16e8] sm:$0xf0] }
 0x3a1   :  { %v15201_v59 = vld [vmem:[#allocation6 + $0x18cc] sm:$0xf]  ;;  %v12693_v4 = vor.u32 %v15137_v54, %v12690_v58  ;;  %7968 = vmatpush.bf16.msrb.mxu2 %v12405_v60 }
 0x3a2   :  { %v12946_v5 = vld [vmem:[#allocation6 + $0x18e8] sm:$0xf0] }
 0x3a3   :  { %v14993_v61 = vld [vmem:[#allocation6 + $0x124c] sm:$0xf]  ;;  %v12949_v7 = vor.u32 %v15201_v59, %v12946_v5  ;;  %7980 = vmatpush.bf16.msrb.mxu3 %v12693_v4  ;;  %v15994_v5 = vadd.f32 %v7738_v2, %v7726_v39 }
 0x3a4   :  { %v12114_v51 = vld [vmem:[#allocation6 + $0x1268] sm:$0xf0] }
 0x3a5   :  { %v15057_v30 = vld [vmem:[#allocation6 + $0x144c] sm:$0xf]  ;;  %v12117_v17 = vor.u32 %v14993_v61, %v12114_v51  ;;  %7993 = vmatpush.bf16.msra.mxu0 %v12949_v7 }
 0x3a6   :  { %v12370_v43 = vld [vmem:[#allocation6 + $0x1468] sm:$0xf0] }
 0x3a7   :  { %v15129_v13 = vld [vmem:[#allocation6 + $0x168c] sm:$0xf]  ;;  %v12373_v63 = vor.u32 %v15057_v30, %v12370_v43  ;;  %7956 = vmatpush.bf16.msrb.mxu1 %v12117_v17 }
 0x3a8   :  { %v12658_v16 = vld [vmem:[#allocation6 + $0x16a8] sm:$0xf0] }
 0x3a9   :  { %v15193_v55 = vld [vmem:[#allocation6 + $0x188c] sm:$0xf]  ;;  %v12661_v25 = vor.u32 %v15129_v13, %v12658_v16  ;;  %7969 = vmatpush.bf16.msrb.mxu2 %v12373_v63 }
 0x3aa   :  { %v12914_v42 = vld [vmem:[#allocation6 + $0x18a8] sm:$0xf0] }
 0x3ab   :  { %v14985_v15 = vld [vmem:[#allocation6 + $0x120c] sm:$0xf]  ;;  %v12917_v36 = vor.u32 %v15193_v55, %v12914_v42  ;;  %7981 = vmatpush.bf16.msrb.mxu3 %v12661_v25  ;;  %v7727_v55 = vpop.f32.mrf.mxu3 }
 0x3ac   :  { %v12082_v23 = vld [vmem:[#allocation6 + $0x1228] sm:$0xf0] }
 0x3ad   :  { %v15049_v24 = vld [vmem:[#allocation6 + $0x140c] sm:$0xf]  ;;  %v12085_v27 = vor.u32 %v14985_v15, %v12082_v23  ;;  %7994 = vmatpush.bf16.msra.mxu0 %v12917_v36 }
 0x3ae   :  { %v12338_v12 = vld [vmem:[#allocation6 + $0x1428] sm:$0xf0] }
 0x3af   :  { %v15297_v31 = vld [vmem:[#allocation6 + $0x1bcc] sm:$0xf]  ;;  %v12341_v44 = vor.u32 %v15049_v24, %v12338_v12  ;;  %7957 = vmatpush.bf16.msrb.mxu1 %v12085_v27 }
 0x3b0   :  { %v13330_v32 = vld [vmem:[#allocation6 + $0x1be8] sm:$0xf0] }
 0x3b1   :  { %v15361_v33 = vld [vmem:[#allocation6 + $0x1dcc] sm:$0xf]  ;;  %v13333_v48 = vor.u32 %v15297_v31, %v13330_v32  ;;  %7970 = vmatpush.bf16.msrb.mxu2 %v12341_v44 }
 0x3b2   :  { %v13586_v37 = vld [vmem:[#allocation6 + $0x1de8] sm:$0xf0]  ;;  %7958 = vmatmul.bf16.vlgmr.msrb.gmra.mxu1 %v15887_v29 }
 0x3b3   :  { %v15121_v45 = vld [vmem:[#allocation6 + $0x164c] sm:$0xf]  ;;  %v13589_v53 = vor.u32 %v15361_v33, %v13586_v37  ;;  %8002 = vmatpush.bf16.msra.mxu1 %v13333_v48 }
 0x3b4   :  { %v12626_v9 = vld [vmem:[#allocation6 + $0x1668] sm:$0xf0]  ;;  %7971 = vmatmul.bf16.vlgmr.msrb.gmra.mxu2 %v15891_v1 }
 0x3b5   :  { %v15185_v41 = vld [vmem:[#allocation6 + $0x184c] sm:$0xf]  ;;  %v12629_v54 = vor.u32 %v15121_v45, %v12626_v9  ;;  %8015 = vmatpush.bf16.msra.mxu2 %v13589_v53 }
 0x3b6   :  { %v12882_v20 = vld [vmem:[#allocation6 + $0x1868] sm:$0xf0] }
 0x3b7   :  { %v15289_v49 = vld [vmem:[#allocation6 + $0x1b8c] sm:$0xf]  ;;  %v12885_v60 = vor.u32 %v15185_v41, %v12882_v20  ;;  %7982 = vmatpush.bf16.msrb.mxu3 %v12629_v54 }
 0x3b8   :  { %v13298_v58 = vld [vmem:[#allocation6 + $0x1ba8] sm:$0xf0] }
 0x3b9   :  { %v15353_v46 = vld [vmem:[#allocation6 + $0x1d8c] sm:$0xf]  ;;  %v13301_v10 = vor.u32 %v15289_v49, %v13298_v58  ;;  %7995 = vmatpush.bf16.msra.mxu0 %v12885_v60 }
 0x3ba   :  { %v13554_v59 = vld [vmem:[#allocation6 + $0x1da8] sm:$0xf0] }
 0x3bb   :  { %v15113_v61 = vld [vmem:[#allocation6 + $0x160c] sm:$0xf]  ;;  %v13557_v13 = vor.u32 %v15353_v46, %v13554_v59  ;;  %8003 = vmatpush.bf16.msra.mxu1 %v13301_v10  ;;  %v7751_v59 = vpop.f32.mrf.mxu1 }
 0x3bc   :  { %v12594_v51 = vld [vmem:[#allocation6 + $0x1628] sm:$0xf0] }
 0x3bd   :  { %v15177_v38 = vld [vmem:[#allocation6 + $0x180c] sm:$0xf]  ;;  %v12597_v16 = vor.u32 %v15113_v61, %v12594_v51  ;;  %8016 = vmatpush.bf16.msra.mxu2 %v13557_v13 }
 0x3be   :  { %v12850_v4 = vld [vmem:[#allocation6 + $0x1828] sm:$0xf0] }
 0x3bf   :  { %v15425_v30 = vld [vmem:[#allocation6 + $0x1fcc] sm:$0xf]  ;;  %v12853_v42 = vor.u32 %v15177_v38, %v12850_v4  ;;  %7983 = vmatpush.bf16.msrb.mxu3 %v12597_v16  ;;  %v7752_v38 = vadd.f32 %v7751_v59, %v15994_v5  ;;  %v7777_v59 = vpop.f32.mrf.mxu3 }
 0x3c0   :  { %v13842_v43 = vld [vmem:[#allocation6 + $0x1fe8] sm:$0xf0] }
 0x3c1   :  { %v15489_v11 = vld [vmem:[#allocation6 + $0x21cc] sm:$0xf]  ;;  %v13845_v15 = vor.u32 %v15425_v30, %v13842_v43  ;;  %7996 = vmatpush.bf16.msra.mxu0 %v12853_v42 }
 0x3c2   :  { %v14098_v7 = vld [vmem:[#allocation6 + $0x21e8] sm:$0xf0]  ;;  %7984 = vmatmul.bf16.vlgmr.msrb.gmra.mxu3 %v15893_v3 }
 0x3c3   :  { %v15281_v2 = vld [vmem:[#allocation6 + $0x1b4c] sm:$0xf]  ;;  %v14101_v24 = vor.u32 %v15489_v11, %v14098_v7  ;;  %8028 = vmatpush.bf16.msra.mxu3 %v13845_v15 }
 0x3c4   :  { %v13266_v17 = vld [vmem:[#allocation6 + $0x1b68] sm:$0xf0]  ;;  %7997 = vmatmul.bf16.vlgmr.msra.gmra.mxu0 %v15903_v47 }
 0x3c5   :  { %v15345_v63 = vld [vmem:[#allocation6 + $0x1d4c] sm:$0xf]  ;;  %v13269_v31 = vor.u32 %v15281_v2, %v13266_v17  ;;  %8041 = vmatpush.bf16.msrb.mxu0 %v14101_v24 }
 0x3c6   :  { %v13522_v23 = vld [vmem:[#allocation6 + $0x1d68] sm:$0xf0] }
 0x3c7   :  { %v15417_v12 = vld [vmem:[#allocation6 + $0x1f8c] sm:$0xf]  ;;  %v13525_v35 = vor.u32 %v15345_v63, %v13522_v23  ;;  %8004 = vmatpush.bf16.msra.mxu1 %v13269_v31  ;;  %v7790_v31 = vpop.f32.mrf.mxu0 }
 0x3c8   :  { %v13810_v25 = vld [vmem:[#allocation6 + $0x1fa8] sm:$0xf0] }
 0x3c9   :  { %v15481_v32 = vld [vmem:[#allocation6 + $0x218c] sm:$0xf]  ;;  %v13813_v45 = vor.u32 %v15417_v12, %v13810_v25  ;;  %8017 = vmatpush.bf16.msra.mxu2 %v13525_v35  ;;  %v7764_v25 = vpop.f32.mrf.mxu2 }
 0x3ca   :  { %v14066_v33 = vld [vmem:[#allocation6 + $0x21a8] sm:$0xf0] }
 0x3cb   :  { %v15273_v36 = vld [vmem:[#allocation6 + $0x1b0c] sm:$0xf]  ;;  %v14069_v27 = vor.u32 %v15481_v32, %v14066_v33  ;;  %8029 = vmatpush.bf16.msra.mxu3 %v13813_v45 }
 0x3cc   :  { %v13234_v37 = vld [vmem:[#allocation6 + $0x1b28] sm:$0xf0] }
 0x3cd   :  { %v15337_v9 = vld [vmem:[#allocation6 + $0x1d0c] sm:$0xf]  ;;  %v13237_v44 = vor.u32 %v15273_v36, %v13234_v37  ;;  %8042 = vmatpush.bf16.msrb.mxu0 %v14069_v27  ;;  %v7765_v36 = vadd.f32 %v7764_v25, %v7752_v38  ;;  %v7753_v37 = vpop.f32.mrf.mxu1 }
 0x3ce   :  { %v13490_v39 = vld [vmem:[#allocation6 + $0x1d28] sm:$0xf0]  ;;  %v10776_v37 = vld [vmem:[#allocation6 + $0x7d0] sm:$0xf] }
 0x3cf   :  { %v15409_v41 = vld [vmem:[#allocation6 + $0x1f4c] sm:$0xf]  ;;  %v13493_v50 = vor.u32 %v15337_v9, %v13490_v39  ;;  %8005 = vmatpush.bf16.msra.mxu1 %v13237_v44 }
 0x3d0   :  { %v13778_v20 = vld [vmem:[#allocation6 + $0x1f68] sm:$0xf0] }
 0x3d1   :  { %v15473_v48 = vld [vmem:[#allocation6 + $0x214c] sm:$0xf]  ;;  %v13781_v54 = vor.u32 %v15409_v41, %v13778_v20  ;;  %8018 = vmatpush.bf16.msra.mxu2 %v13493_v50 }
 0x3d2   :  { %v14034_v49 = vld [vmem:[#allocation6 + $0x2168] sm:$0xf0] }
 0x3d3   :  { %v15265_v26 = vld [vmem:[#allocation6 + $0x1acc] sm:$0xf]  ;;  %v14037_v60 = vor.u32 %v15473_v48, %v14034_v49  ;;  %8030 = vmatpush.bf16.msra.mxu3 %v13781_v54  ;;  %v10008_v54 = vld [vmem:[#allocation6 + $0x1d0] sm:$0xf] }
 0x3d4   :  { %v13202_v53 = vld [vmem:[#allocation6 + $0x1ae8] sm:$0xf0] }
 0x3d5   :  { %v15329_v58 = vld [vmem:[#allocation6 + $0x1ccc] sm:$0xf]  ;;  %v13205_v4 = vor.u32 %v15265_v26, %v13202_v53  ;;  %8043 = vmatpush.bf16.msrb.mxu0 %v14037_v60 }
 0x3d6   :  { %v13458_v46 = vld [vmem:[#allocation6 + $0x1ce8] sm:$0xf0] }
 0x3d7   :  { %v15401_v61 = vld [vmem:[#allocation6 + $0x1f0c] sm:$0xf]  ;;  %v13461_v10 = vor.u32 %v15329_v58, %v13458_v46  ;;  %8006 = vmatpush.bf16.msra.mxu1 %v13205_v4  ;;  %v14470_v58 = vld [vmem:[#allocation6 + $0x1ec] sm:$0xf0]  ;;  %v7778_v4 = vadd.f32 %v7777_v59, %v7765_v36 }
 0x3d8   :  { %v13746_v51 = vld [vmem:[#allocation6 + $0x1f28] sm:$0xf0]  ;;  %v10264_v46 = vld [vmem:[#allocation6 + $0x3d0] sm:$0xf] }
 0x3d9   :  { %v15465_v30 = vld [vmem:[#allocation6 + $0x210c] sm:$0xf]  ;;  %v13749_v13 = vor.u32 %v15401_v61, %v13746_v51  ;;  %8019 = vmatpush.bf16.msra.mxu2 %v13461_v10  ;;  %v14534_v61 = vld [vmem:[#allocation6 + $0x3ec] sm:$0xf0] }
 0x3da   :  { %v14002_v43 = vld [vmem:[#allocation6 + $0x2128] sm:$0xf0] }
 0x3db   :  { %v15257_v11 = vld [vmem:[#allocation6 + $0x1a8c] sm:$0xf]  ;;  %v14005_v17 = vor.u32 %v15465_v30, %v14002_v43  ;;  %8031 = vmatpush.bf16.msra.mxu3 %v13749_v13  ;;  %v9976_v13 = vld [vmem:[#allocation6 + $0x190] sm:$0xf] }
 0x3dc   :  { %v13170_v7 = vld [vmem:[#allocation6 + $0x1aa8] sm:$0xf0] }
 0x3dd   :  { %v15321_v16 = vld [vmem:[#allocation6 + $0x1c8c] sm:$0xf]  ;;  %v13173_v15 = vor.u32 %v15257_v11, %v13170_v7  ;;  %8044 = vmatpush.bf16.msrb.mxu0 %v14005_v17  ;;  %v10009_v7 = vor.u32 %v14470_v58, %v10008_v54  ;;  %v10265_v17 = vor.u32 %v14534_v61, %v10264_v46  ;;  %v10744_v58 = vld [vmem:[#allocation6 + $0x790] sm:$0xf] }
 0x3de   :  { %v13426_v2 = vld [vmem:[#allocation6 + $0x1ca8] sm:$0xf0]  ;;  %v14654_v46 = vld [vmem:[#allocation6 + $0x7ac] sm:$0xf0] }
 0x3df   :  { %v15393_v55 = vld [vmem:[#allocation6 + $0x1ecc] sm:$0xf]  ;;  %v13429_v23 = vor.u32 %v15321_v16, %v13426_v2  ;;  %8007 = vmatpush.bf16.msra.mxu1 %v13173_v15  ;;  %v7766_v16 = vpop.f32.mrf.mxu2  ;;  %v7792_v2 = vpop.f32.mrf.mxu0  ;;  %v10232_v15 = vld [vmem:[#allocation6 + $0x390] sm:$0xf] }
 0x3e0   :  { %v13714_v42 = vld [vmem:[#allocation6 + $0x1ee8] sm:$0xf0]  ;;  %v14446_v61 = vld [vmem:[#allocation6 + $0x12c] sm:$0xf0] }
 0x3e1   :  { %v15457_v63 = vld [vmem:[#allocation6 + $0x20cc] sm:$0xf]  ;;  %v13717_v32 = vor.u32 %v15393_v55, %v13714_v42  ;;  %8020 = vmatpush.bf16.msra.mxu2 %v13429_v23  ;;  %v14462_v42 = vld [vmem:[#allocation6 + $0x1ac] sm:$0xf0] }
 0x3e2   :  { %v13970_v5 = vld [vmem:[#allocation6 + $0x20e8] sm:$0xf0]  ;;  %v9977_v36 = vor.u32 %v14462_v42, %v9976_v13  ;;  %v14646_v13 = vld [vmem:[#allocation6 + $0x76c] sm:$0xf0] }
 0x3e3   :  { %v15249_v24 = vld [vmem:[#allocation6 + $0x1a4c] sm:$0xf]  ;;  %v13973_v45 = vor.u32 %v15457_v63, %v13970_v5  ;;  %8032 = vmatpush.bf16.msra.mxu3 %v13717_v32  ;;  %v14526_v63 = vld [vmem:[#allocation6 + $0x3ac] sm:$0xf0]  ;;  %v16001_v5 = vadd.f32 %v7790_v31, %v7778_v4 }
 0x3e4   :  { %v13138_v12 = vld [vmem:[#allocation6 + $0x1a68] sm:$0xf0]  ;;  %v9944_v31 = vld [vmem:[#allocation6 + $0x150] sm:$0xf] }
 0x3e5   :  { %v15313_v33 = vld [vmem:[#allocation6 + $0x1c4c] sm:$0xf]  ;;  %v13141_v27 = vor.u32 %v15249_v24, %v13138_v12  ;;  %8045 = vmatpush.bf16.msrb.mxu0 %v13973_v45  ;;  %v14662_v45 = vld [vmem:[#allocation6 + $0x7ec] sm:$0xf0] }
 0x3e6   :  { %v13394_v35 = vld [vmem:[#allocation6 + $0x1c68] sm:$0xf0]  ;;  %v14510_v4 = vld [vmem:[#allocation6 + $0x32c] sm:$0xf0] }
 0x3e7   :  { %v15385_v9 = vld [vmem:[#allocation6 + $0x1e8c] sm:$0xf]  ;;  %v13397_v48 = vor.u32 %v15313_v33, %v13394_v35  ;;  %8008 = vmatpush.bf16.msra.mxu1 %v13141_v27  ;;  %v10520_v33 = vld [vmem:[#allocation6 + $0x5d0] sm:$0xf] }
 0x3e8   :  { %v13682_v39 = vld [vmem:[#allocation6 + $0x1ea8] sm:$0xf0]  ;;  %v14598_v35 = vld [vmem:[#allocation6 + $0x5ec] sm:$0xf0] }
 0x3e9   :  { %v15449_v41 = vld [vmem:[#allocation6 + $0x208c] sm:$0xf]  ;;  %v13685_v53 = vor.u32 %v15385_v9, %v13682_v39  ;;  %8021 = vmatpush.bf16.msra.mxu2 %v13397_v48  ;;  %v10233_v9 = vor.u32 %v14526_v63, %v10232_v15  ;;  %v14454_v27 = vld [vmem:[#allocation6 + $0x16c] sm:$0xf0]  ;;  %v7803_v63 = vpop.f32.mrf.mxu1 }
 0x3ea   :  { %v13938_v20 = vld [vmem:[#allocation6 + $0x20a8] sm:$0xf0]  ;;  %v10200_v48 = vld [vmem:[#allocation6 + $0x350] sm:$0xf]  ;;  %v9945_v54 = vor.u32 %v14454_v27, %v9944_v31 }
 0x3eb   :  { %v15241_v44 = vld [vmem:[#allocation6 + $0x1a0c] sm:$0xf]  ;;  %v13941_v60 = vor.u32 %v15449_v41, %v13938_v20  ;;  %8033 = vmatpush.bf16.msra.mxu3 %v13685_v53  ;;  %v7779_v41 = vpop.f32.mrf.mxu3  ;;  %v14590_v53 = vld [vmem:[#allocation6 + $0x5ac] sm:$0xf0] }
 0x3ec   :  { %v13106_v49 = vld [vmem:[#allocation6 + $0x1a28] sm:$0xf0]  ;;  %v9880_v2 = vld [vmem:[#allocation6 + $0xd0] sm:$0xf] }
 0x3ed   :  { %v15305_v50 = vld [vmem:[#allocation6 + $0x1c0c] sm:$0xf]  ;;  %v13109_v30 = vor.u32 %v15241_v44, %v13106_v49  ;;  %8046 = vmatpush.bf16.msrb.mxu0 %v13941_v60  ;;  %v10521_v44 = vor.u32 %v14598_v35, %v10520_v33  ;;  %v14518_v49 = vld [vmem:[#allocation6 + $0x36c] sm:$0xf0] }
 0x3ee   :  { %v13362_v26 = vld [vmem:[#allocation6 + $0x1c28] sm:$0xf0]  ;;  %v10201_v59 = vor.u32 %v14518_v49, %v10200_v48  ;;  %v9912_v60 = vld [vmem:[#allocation6 + $0x110] sm:$0xf] }
 0x3ef   :  { %v15377_v51 = vld [vmem:[#allocation6 + $0x1e4c] sm:$0xf]  ;;  %v13365_v11 = vor.u32 %v15305_v50, %v13362_v26  ;;  %8009 = vmatpush.bf16.msra.mxu1 %v13109_v30  ;;  %v10777_v50 = vor.u32 %v14662_v45, %v10776_v37  ;;  %v10488_v26 = vld [vmem:[#allocation6 + $0x590] sm:$0xf]  ;;  %v10745_v30 = vor.u32 %v14654_v46, %v10744_v58 }
 0x3f0   :  { %v13650_v38 = vld [vmem:[#allocation6 + $0x1e68] sm:$0xf0]  ;;  %v10136_v42 = vld [vmem:[#allocation6 + $0x2d0] sm:$0xf] }
 0x3f1   :  { %v15441_v43 = vld [vmem:[#allocation6 + $0x204c] sm:$0xf]  ;;  %v13653_v55 = vor.u32 %v15377_v51, %v13650_v38  ;;  %8022 = vmatpush.bf16.msra.mxu2 %v13365_v11  ;;  %v10489_v51 = vor.u32 %v14590_v53, %v10488_v26  ;;  %v10168_v38 = vld [vmem:[#allocation6 + $0x310] sm:$0xf]  ;;  %v9913_v11 = vor.u32 %v14446_v61, %v9912_v60  ;;  %v7816_v53 = vpop.f32.mrf.mxu2  ;;  %v7805_v61 = vpop.f32.mrf.mxu1 }
 0x3f2   :  { %v13906_v10 = vld [vmem:[#allocation6 + $0x2068] sm:$0xf0]  ;;  %8010 = vmatmul.bf16.vlgmr.msra.gmra.mxu1 %v15905_v52  ;;  %v10169_v16 = vor.u32 %v14510_v4, %v10168_v38  ;;  %v14502_v15 = vld [vmem:[#allocation6 + $0x2ec] sm:$0xf0] }
 0x3f3   :  { %v13909_v23 = vor.u32 %v15441_v43, %v13906_v10  ;;  %v15369_v24 = vld [vmem:[#allocation6 + $0x1e0c] sm:$0xf]  ;;  %8054 = vmatpush.bf16.msrb.mxu1 %v10009_v7  ;;  %8034 = vmatpush.bf16.msra.mxu3 %v13653_v55  ;;  %v10456_v43 = vld [vmem:[#allocation6 + $0x550] sm:$0xf] }
 0x3f4   :  { %v13618_v12 = vld [vmem:[#allocation6 + $0x1e28] sm:$0xf0]  ;;  %8023 = vmatmul.bf16.vlgmr.msra.gmra.mxu2 %v15909_v14  ;;  %v14582_v10 = vld [vmem:[#allocation6 + $0x56c] sm:$0xf0] }
 0x3f5   :  { %v15433_v25 = vld [vmem:[#allocation6 + $0x200c] sm:$0xf]  ;;  %8067 = vmatpush.bf16.msrb.mxu2 %v10265_v17  ;;  %v13621_v39 = vor.u32 %v15369_v24, %v13618_v12  ;;  %8047 = vmatpush.bf16.msrb.mxu0 %v13909_v23  ;;  %v10712_v7 = vld [vmem:[#allocation6 + $0x750] sm:$0xf]  ;;  %v10457_v55 = vor.u32 %v14582_v10, %v10456_v43 }
 0x3f6   :  { %v13874_v32 = vld [vmem:[#allocation6 + $0x2028] sm:$0xf0]  ;;  %v14438_v17 = vld [vmem:[#allocation6 + $0xec] sm:$0xf0]  ;;  %v10713_v23 = vor.u32 %v14646_v13, %v10712_v7 }
 0x3f7   :  { %v13877_v20 = vor.u32 %v15433_v25, %v13874_v32  ;;  %8055 = vmatpush.bf16.msrb.mxu1 %v9977_v36  ;;  %8035 = vmatpush.bf16.msra.mxu3 %v13621_v39  ;;  %v10424_v24 = vld [vmem:[#allocation6 + $0x510] sm:$0xf]  ;;  %v7804_v25 = vadd.f32 %v7803_v63, %v16001_v5  ;;  %v9881_v32 = vor.u32 %v14438_v17, %v9880_v2  ;;  %v7829_v63 = vpop.f32.mrf.mxu3 }
 0x3f8   :  { %v14574_v12 = vld [vmem:[#allocation6 + $0x52c] sm:$0xf0]  ;;  %v10137_v36 = vor.u32 %v14502_v15, %v10136_v42 }
 0x3f9   :  { %8068 = vmatpush.bf16.msrb.mxu2 %v10233_v9  ;;  %8048 = vmatpush.bf16.msrb.mxu0 %v13877_v20  ;;  %v10680_v33 = vld [vmem:[#allocation6 + $0x710] sm:$0xf]  ;;  %v10425_v9 = vor.u32 %v14574_v12, %v10424_v24  ;;  %v7817_v60 = vadd.f32 %v7816_v53, %v7804_v25 }
 0x3fa   :  { %8036 = vmatmul.bf16.vlgmr.msra.gmra.mxu3 %v15911_v18  ;;  %v14638_v35 = vld [vmem:[#allocation6 + $0x72c] sm:$0xf0] }
 0x3fb   :  { %8080 = vmatpush.bf16.msrb.mxu3 %v10521_v44  ;;  %8056 = vmatpush.bf16.msrb.mxu1 %v9945_v54  ;;  %v9848_v37 = vld [vmem:[#allocation6 + $0x90] sm:$0xf]  ;;  %v10681_v27 = vor.u32 %v14638_v35, %v10680_v33  ;;  %v16008_v54 = vpop.f32.mrf.mxu0 }
 0x3fc   :  { %8049 = vmatmul.bf16.vlgmr.msrb.gmra.mxu0 %v15916_v56  ;;  %v14430_v45 = vld [vmem:[#allocation6 + $0xac] sm:$0xf0] }
 0x3fd   :  { %8093 = vmatpush.bf16.msra.mxu0 %v10777_v50  ;;  %8069 = vmatpush.bf16.msrb.mxu2 %v10201_v59  ;;  %v10104_v39 = vld [vmem:[#allocation6 + $0x290] sm:$0xf]  ;;  %v9849_v44 = vor.u32 %v14430_v45, %v9848_v37 }
 0x3fe   :  { %v14494_v31 = vld [vmem:[#allocation6 + $0x2ac] sm:$0xf0] }
 0x3ff   :  { %8081 = vmatpush.bf16.msrb.mxu3 %v10489_v51  ;;  %8057 = vmatpush.bf16.msrb.mxu1 %v9913_v11  ;;  %v10392_v41 = vld [vmem:[#allocation6 + $0x4d0] sm:$0xf]  ;;  %v10105_v49 = vor.u32 %v14494_v31, %v10104_v39  ;;  %v7818_v39 = vpop.f32.mrf.mxu2 }
 0x400   :  { %v14566_v20 = vld [vmem:[#allocation6 + $0x4ec] sm:$0xf0] }
 0x401   :  { %8094 = vmatpush.bf16.msra.mxu0 %v10745_v30  ;;  %8070 = vmatpush.bf16.msrb.mxu2 %v10169_v16  ;;  %v10648_v48 = vld [vmem:[#allocation6 + $0x6d0] sm:$0xf]  ;;  %v10393_v58 = vor.u32 %v14566_v20, %v10392_v41 }
 0x402   :  { %v14630_v5 = vld [vmem:[#allocation6 + $0x6ec] sm:$0xf0] }
 0x403   :  { %8082 = vmatpush.bf16.msrb.mxu3 %v10457_v55  ;;  %8058 = vmatpush.bf16.msrb.mxu1 %v9881_v32  ;;  %v9816_v50 = vld [vmem:[#allocation6 + $0x50] sm:$0xf]  ;;  %v10649_v51 = vor.u32 %v14630_v5, %v10648_v48  ;;  %v16010_v32 = vadd.f32 %v7829_v63, %v7817_v60  ;;  %v7844_v31 = vpop.f32.mrf.mxu0 }
 0x404   :  { %v14422_v26 = vld [vmem:[#allocation6 + $0x6c] sm:$0xf0] }
 0x405   :  { %8095 = vmatpush.bf16.msra.mxu0 %v10713_v23  ;;  %8071 = vmatpush.bf16.msrb.mxu2 %v10137_v36  ;;  %v10072_v46 = vld [vmem:[#allocation6 + $0x250] sm:$0xf]  ;;  %v9817_v30 = vor.u32 %v14422_v26, %v9816_v50 }
 0x406   :  { %v14486_v59 = vld [vmem:[#allocation6 + $0x26c] sm:$0xf0] }
 0x407   :  { %8083 = vmatpush.bf16.msrb.mxu3 %v10425_v9  ;;  %v10360_v38 = vld [vmem:[#allocation6 + $0x490] sm:$0xf]  ;;  %8059 = vmatpush.bf16.msrb.mxu1 %v9849_v44  ;;  %v10073_v7 = vor.u32 %v14486_v59, %v10072_v46 }
 0x408   :  { %v14558_v4 = vld [vmem:[#allocation6 + $0x4ac] sm:$0xf0] }
 0x409   :  { %8096 = vmatpush.bf16.msra.mxu0 %v10681_v27  ;;  %v10616_v43 = vld [vmem:[#allocation6 + $0x690] sm:$0xf]  ;;  %8072 = vmatpush.bf16.msrb.mxu2 %v10105_v49  ;;  %v10361_v17 = vor.u32 %v14558_v4, %v10360_v38 }
 0x40a   :  { %v14622_v10 = vld [vmem:[#allocation6 + $0x6ac] sm:$0xf0] }
 0x40b   :  { %v9784_v11 = vld [vmem:[#allocation6 + $0x10] sm:$0xf]  ;;  %8084 = vmatpush.bf16.msrb.mxu3 %v10393_v58  ;;  %v10617_v23 = vor.u32 %v14622_v10, %v10616_v43  ;;  %8060 = vmatpush.bf16.msrb.mxu1 %v9817_v30  ;;  %v7831_v43 = vpop.f32.mrf.mxu3 }
 0x40c   :  { %v14414_v13 = vld [vmem:[#allocation6 + $0x2c] sm:$0xf0] }
 0x40d   :  { %v10040_v16 = vld [vmem:[#allocation6 + $0x210] sm:$0xf]  ;;  %8097 = vmatpush.bf16.msra.mxu0 %v10649_v51  ;;  %v9785_v33 = vor.u32 %v14414_v13, %v9784_v11  ;;  %8073 = vmatpush.bf16.msrb.mxu2 %v10073_v7 }
 0x40e   :  { %v14478_v2 = vld [vmem:[#allocation6 + $0x22c] sm:$0xf0] }
 0x40f   :  { %v11032_v55 = vld [vmem:[#allocation6 + $0x9d0] sm:$0xf]  ;;  %v10041_v37 = vor.u32 %v14478_v2, %v10040_v16  ;;  %8085 = vmatpush.bf16.msrb.mxu3 %v10361_v17  ;;  %8061 = vmatpush.bf16.msrb.mxu1 %v9785_v33 }
 0x410   :  { %v14726_v42 = vld [vmem:[#allocation6 + $0x9ec] sm:$0xf0] }
 0x411   :  { %v11288_v15 = vld [vmem:[#allocation6 + $0xbd0] sm:$0xf]  ;;  %v11033_v45 = vor.u32 %v14726_v42, %v11032_v55  ;;  %8098 = vmatpush.bf16.msra.mxu0 %v10617_v23  ;;  %8074 = vmatpush.bf16.msrb.mxu2 %v10041_v37 }
 0x412   :  { %v14790_v24 = vld [vmem:[#allocation6 + $0xbec] sm:$0xf0]  ;;  %8062 = vmatmul.bf16.vlgmr.msrb.gmra.mxu1 %v15850_v57 }
 0x413   :  { %v10328_v12 = vld [vmem:[#allocation6 + $0x450] sm:$0xf]  ;;  %v11289_v27 = vor.u32 %v14790_v24, %v11288_v15  ;;  %8106 = vmatpush.bf16.msra.mxu1 %v11033_v45 }
 0x414   :  { %v14550_v25 = vld [vmem:[#allocation6 + $0x46c] sm:$0xf0]  ;;  %8075 = vmatmul.bf16.vlgmr.msrb.gmra.mxu2 %v15853_v62 }
 0x415   :  { %v10584_v35 = vld [vmem:[#allocation6 + $0x650] sm:$0xf]  ;;  %v10329_v41 = vor.u32 %v14550_v25, %v10328_v12  ;;  %8119 = vmatpush.bf16.msra.mxu2 %v11289_v27  ;;  %v15579_v12 = vld [vmem:[#allocation7] sm:$0xff] }
 0x416   :  { %v14614_v36 = vld [vmem:[#allocation6 + $0x66c] sm:$0xf0]  ;;  %v1717_v25 = vperm.slane %v15579_v12, 3 }
 0x417   :  { %v11000_v9 = vld [vmem:[#allocation6 + $0x990] sm:$0xf]  ;;  %v10585_v5 = vor.u32 %v14614_v36, %v10584_v35  ;;  %8086 = vmatpush.bf16.msrb.mxu3 %v10329_v41 }
 0x418   :  { %v14718_v20 = vld [vmem:[#allocation6 + $0x9ac] sm:$0xf0] }
 0x419   :  { %v11256_v44 = vld [vmem:[#allocation6 + $0xb90] sm:$0xf]  ;;  %v11001_v59 = vor.u32 %v14718_v20, %v11000_v9  ;;  %8099 = vmatpush.bf16.msra.mxu0 %v10585_v5 }
 0x41a   :  { %v14782_v48 = vld [vmem:[#allocation6 + $0xbac] sm:$0xf0] }
 0x41b   :  { %v10296_v49 = vld [vmem:[#allocation6 + $0x410] sm:$0xf]  ;;  %v11257_v51 = vor.u32 %v14782_v48, %v11256_v44  ;;  %8107 = vmatpush.bf16.msra.mxu1 %v11001_v59  ;;  %v7843_v48 = vadd.f32 %v16008_v54, %v1717_v25 }
 0x41c   :  { %v14542_v50 = vld [vmem:[#allocation6 + $0x42c] sm:$0xf0] }
 0x41d   :  { %v10552_v26 = vld [vmem:[#allocation6 + $0x610] sm:$0xf]  ;;  %v10297_v38 = vor.u32 %v14542_v50, %v10296_v49  ;;  %8120 = vmatpush.bf16.msra.mxu2 %v11257_v51 }
 0x41e   :  { %v14606_v53 = vld [vmem:[#allocation6 + $0x62c] sm:$0xf0] }
 0x41f   :  { %v11544_v58 = vld [vmem:[#allocation6 + $0xdd0] sm:$0xf]  ;;  %v10553_v10 = vor.u32 %v14606_v53, %v10552_v26  ;;  %8087 = vmatpush.bf16.msrb.mxu3 %v10297_v38  ;;  %v7855_v26 = vpop.f32.mrf.mxu1 }
 0x420   :  { %v14854_v46 = vld [vmem:[#allocation6 + $0xdec] sm:$0xf0]  ;;  %v7856_v59 = vadd.f32 %v7855_v26, %v7843_v48 }
 0x421   :  { %v11800_v60 = vld [vmem:[#allocation6 + $0xfd0] sm:$0xf]  ;;  %v11545_v11 = vor.u32 %v14854_v46, %v11544_v58  ;;  %8100 = vmatpush.bf16.msra.mxu0 %v10553_v10 }
 0x422   :  { %v14918_v61 = vld [vmem:[#allocation6 + $0xfec] sm:$0xf0]  ;;  %8088 = vmatmul.bf16.vlgmr.msrb.gmra.mxu3 %v15858_v21 }
 0x423   :  { %v10968_v4 = vld [vmem:[#allocation6 + $0x950] sm:$0xf]  ;;  %v11801_v16 = vor.u32 %v14918_v61, %v11800_v60  ;;  %8132 = vmatpush.bf16.msra.mxu3 %v11545_v11 }
 0x424   :  { %v14710_v30 = vld [vmem:[#allocation6 + $0x96c] sm:$0xf0]  ;;  %8101 = vmatmul.bf16.vlgmr.msra.gmra.mxu0 %v15860_v28 }
 0x425   :  { %v11224_v7 = vld [vmem:[#allocation6 + $0xb50] sm:$0xf]  ;;  %v10969_v55 = vor.u32 %v14710_v30, %v10968_v4  ;;  %8145 = vmatpush.bf16.msrb.mxu0 %v11801_v16 }
 0x426   :  { %v14774_v13 = vld [vmem:[#allocation6 + $0xb6c] sm:$0xf0] }
 0x427   :  { %v11512_v2 = vld [vmem:[#allocation6 + $0xd90] sm:$0xf]  ;;  %v11225_v63 = vor.u32 %v14774_v13, %v11224_v7  ;;  %8108 = vmatpush.bf16.msra.mxu1 %v10969_v55 }
 0x428   :  { %v14846_v17 = vld [vmem:[#allocation6 + $0xdac] sm:$0xf0] }
 0x429   :  { %v11768_v42 = vld [vmem:[#allocation6 + $0xf90] sm:$0xf]  ;;  %v11513_v33 = vor.u32 %v14846_v17, %v11512_v2  ;;  %8121 = vmatpush.bf16.msra.mxu2 %v11225_v63  ;;  %v7868_v63 = vpop.f32.mrf.mxu2 }
 0x42a   :  { %v14910_v15 = vld [vmem:[#allocation6 + $0xfac] sm:$0xf0] }
 0x42b   :  { %v10936_v23 = vld [vmem:[#allocation6 + $0x910] sm:$0xf]  ;;  %v11769_v37 = vor.u32 %v14910_v15, %v11768_v42  ;;  %8133 = vmatpush.bf16.msra.mxu3 %v11513_v33  ;;  %v7869_v33 = vadd.f32 %v7868_v63, %v7856_v59 }
 0x42c   :  { %v14702_v24 = vld [vmem:[#allocation6 + $0x92c] sm:$0xf0] }
 0x42d   :  { %v11192_v35 = vld [vmem:[#allocation6 + $0xb10] sm:$0xf]  ;;  %v10937_v39 = vor.u32 %v14702_v24, %v10936_v23  ;;  %8146 = vmatpush.bf16.msrb.mxu0 %v11769_v37  ;;  %v7894_v23 = vpop.f32.mrf.mxu0 }
 0x42e   :  { %v14766_v36 = vld [vmem:[#allocation6 + $0xb2c] sm:$0xf0] }
 0x42f   :  { %v11480_v45 = vld [vmem:[#allocation6 + $0xd50] sm:$0xf]  ;;  %v11193_v41 = vor.u32 %v14766_v36, %v11192_v35  ;;  %8109 = vmatpush.bf16.msra.mxu1 %v10937_v39  ;;  %v7857_v35 = vpop.f32.mrf.mxu1 }
 0x430   :  { %v14838_v9 = vld [vmem:[#allocation6 + $0xd6c] sm:$0xf0] }
 0x431   :  { %v11736_v31 = vld [vmem:[#allocation6 + $0xf50] sm:$0xf]  ;;  %v11481_v5 = vor.u32 %v14838_v9, %v11480_v45  ;;  %8122 = vmatpush.bf16.msra.mxu2 %v11193_v41 }
 0x432   :  { %v14902_v27 = vld [vmem:[#allocation6 + $0xf6c] sm:$0xf0] }
 0x433   :  { %v10904_v20 = vld [vmem:[#allocation6 + $0x8d0] sm:$0xf]  ;;  %v11737_v53 = vor.u32 %v14902_v27, %v11736_v31  ;;  %8134 = vmatpush.bf16.msra.mxu3 %v11481_v5 }
 0x434   :  { %v14694_v44 = vld [vmem:[#allocation6 + $0x8ec] sm:$0xf0] }
 0x435   :  { %v11160_v49 = vld [vmem:[#allocation6 + $0xad0] sm:$0xf]  ;;  %v10905_v60 = vor.u32 %v14694_v44, %v10904_v20  ;;  %8147 = vmatpush.bf16.msrb.mxu0 %v11737_v53  ;;  %v7881_v53 = vpop.f32.mrf.mxu3 }
 0x436   :  { %v14758_v50 = vld [vmem:[#allocation6 + $0xaec] sm:$0xf0] }
 0x437   :  { %v11448_v58 = vld [vmem:[#allocation6 + $0xd10] sm:$0xf]  ;;  %v11161_v38 = vor.u32 %v14758_v50, %v11160_v49  ;;  %8110 = vmatpush.bf16.msra.mxu1 %v10905_v60 }
 0x438   :  { %v14830_v46 = vld [vmem:[#allocation6 + $0xd2c] sm:$0xf0] }
 0x439   :  { %v11704_v61 = vld [vmem:[#allocation6 + $0xf10] sm:$0xf]  ;;  %v11449_v54 = vor.u32 %v14830_v46, %v11448_v58  ;;  %8123 = vmatpush.bf16.msra.mxu2 %v11161_v38 }
 0x43a   :  { %v14894_v51 = vld [vmem:[#allocation6 + $0xf2c] sm:$0xf0] }
 0x43b   :  { %v10872_v4 = vld [vmem:[#allocation6 + $0x890] sm:$0xf]  ;;  %v11705_v11 = vor.u32 %v14894_v51, %v11704_v61  ;;  %8135 = vmatpush.bf16.msra.mxu3 %v11449_v54  ;;  %v7882_v61 = vadd.f32 %v7881_v53, %v7869_v33 }
 0x43c   :  { %v14686_v30 = vld [vmem:[#allocation6 + $0x8ac] sm:$0xf0] }
 0x43d   :  { %v11128_v43 = vld [vmem:[#allocation6 + $0xa90] sm:$0xf]  ;;  %v10873_v16 = vor.u32 %v14686_v30, %v10872_v4  ;;  %8148 = vmatpush.bf16.msrb.mxu0 %v11705_v11  ;;  %v7896_v11 = vpop.f32.mrf.mxu0 }
 0x43e   :  { %v14750_v10 = vld [vmem:[#allocation6 + $0xaac] sm:$0xf0] }
 0x43f   :  { %v11416_v7 = vld [vmem:[#allocation6 + $0xcd0] sm:$0xf]  ;;  %v11129_v55 = vor.u32 %v14750_v10, %v11128_v43  ;;  %8111 = vmatpush.bf16.msra.mxu1 %v10873_v16  ;;  %v7870_v10 = vpop.f32.mrf.mxu2 }
 0x440   :  { %v14822_v13 = vld [vmem:[#allocation6 + $0xcec] sm:$0xf0] }
 0x441   :  { %v11672_v2 = vld [vmem:[#allocation6 + $0xed0] sm:$0xf]  ;;  %v11417_v24 = vor.u32 %v14822_v13, %v11416_v7  ;;  %8124 = vmatpush.bf16.msra.mxu2 %v11129_v55  ;;  %v16017_v55 = vadd.f32 %v7894_v23, %v7882_v61 }
 0x442   :  { %v14886_v17 = vld [vmem:[#allocation6 + $0xeec] sm:$0xf0] }
 0x443   :  { %v10840_v42 = vld [vmem:[#allocation6 + $0x850] sm:$0xf]  ;;  %v11673_v36 = vor.u32 %v14886_v17, %v11672_v2  ;;  %8136 = vmatpush.bf16.msra.mxu3 %v11417_v24 }
 0x444   :  { %v14678_v15 = vld [vmem:[#allocation6 + $0x86c] sm:$0xf0] }
 0x445   :  { %v11096_v12 = vld [vmem:[#allocation6 + $0xa50] sm:$0xf]  ;;  %v10841_v9 = vor.u32 %v14678_v15, %v10840_v42  ;;  %8149 = vmatpush.bf16.msrb.mxu0 %v11673_v36 }
 0x446   :  { %v14742_v25 = vld [vmem:[#allocation6 + $0xa6c] sm:$0xf0] }
 0x447   :  { %v11384_v37 = vld [vmem:[#allocation6 + $0xc90] sm:$0xf]  ;;  %v11097_v41 = vor.u32 %v14742_v25, %v11096_v12  ;;  %8112 = vmatpush.bf16.msra.mxu1 %v10841_v9 }
 0x448   :  { %v14814_v45 = vld [vmem:[#allocation6 + $0xcac] sm:$0xf0] }
 0x449   :  { %v11640_v39 = vld [vmem:[#allocation6 + $0xe90] sm:$0xf]  ;;  %v11385_v5 = vor.u32 %v14814_v45, %v11384_v37  ;;  %8125 = vmatpush.bf16.msra.mxu2 %v11097_v41 }
 0x44a   :  { %v14878_v31 = vld [vmem:[#allocation6 + $0xeac] sm:$0xf0] }
 0x44b   :  { %v10808_v27 = vld [vmem:[#allocation6 + $0x810] sm:$0xf]  ;;  %v11641_v58 = vor.u32 %v14878_v31, %v11640_v39  ;;  %8137 = vmatpush.bf16.msra.mxu3 %v11385_v5  ;;  %v7883_v31 = vpop.f32.mrf.mxu3 }
 0x44c   :  { %v14670_v20 = vld [vmem:[#allocation6 + $0x82c] sm:$0xf0] }
 0x44d   :  { %v11064_v44 = vld [vmem:[#allocation6 + $0xa10] sm:$0xf]  ;;  %v10809_v51 = vor.u32 %v14670_v20, %v10808_v27  ;;  %8150 = vmatpush.bf16.msrb.mxu0 %v11641_v58 }
 0x44e   :  { %v14734_v48 = vld [vmem:[#allocation6 + $0xa2c] sm:$0xf0] }
 0x44f   :  { %v12056_v49 = vld [vmem:[#allocation6 + $0x11d0] sm:$0xf]  ;;  %v11065_v30 = vor.u32 %v14734_v48, %v11064_v44  ;;  %8113 = vmatpush.bf16.msra.mxu1 %v10809_v51 }
 0x450   :  { %v14982_v50 = vld [vmem:[#allocation6 + $0x11ec] sm:$0xf0] }
 0x451   :  { %v12312_v26 = vld [vmem:[#allocation6 + $0x13d0] sm:$0xf]  ;;  %v12057_v54 = vor.u32 %v14982_v50, %v12056_v49  ;;  %8126 = vmatpush.bf16.msra.mxu2 %v11065_v30 }
 0x452   :  { %v15046_v46 = vld [vmem:[#allocation6 + $0x13ec] sm:$0xf0]  ;;  %8114 = vmatmul.bf16.vlgmr.msra.gmra.mxu1 %v15866_v0 }
 0x453   :  { %v11352_v59 = vld [vmem:[#allocation6 + $0xc50] sm:$0xf]  ;;  %v12313_v7 = vor.u32 %v15046_v46, %v12312_v26  ;;  %8158 = vmatpush.bf16.msrb.mxu1 %v12057_v54 }
 0x454   :  { %v14806_v60 = vld [vmem:[#allocation6 + $0xc6c] sm:$0xf0]  ;;  %8127 = vmatmul.bf16.vlgmr.msra.gmra.mxu2 %v15869_v6 }
 0x455   :  { %v11608_v38 = vld [vmem:[#allocation6 + $0xe50] sm:$0xf]  ;;  %v11353_v13 = vor.u32 %v14806_v60, %v11352_v59  ;;  %8171 = vmatpush.bf16.msrb.mxu2 %v12313_v7 }
 0x456   :  { %v14870_v4 = vld [vmem:[#allocation6 + $0xe6c] sm:$0xf0] }
 0x457   :  { %v12024_v43 = vld [vmem:[#allocation6 + $0x1190] sm:$0xf]  ;;  %v11609_v42 = vor.u32 %v14870_v4, %v11608_v38  ;;  %8138 = vmatpush.bf16.msra.mxu3 %v11353_v13 }
 0x458   :  { %v14974_v16 = vld [vmem:[#allocation6 + $0x11ac] sm:$0xf0] }
 0x459   :  { %v12280_v2 = vld [vmem:[#allocation6 + $0x1390] sm:$0xf]  ;;  %v12025_v35 = vor.u32 %v14974_v16, %v12024_v43  ;;  %8151 = vmatpush.bf16.msrb.mxu0 %v11609_v42  ;;  %v7907_v42 = vpop.f32.mrf.mxu1 }
 0x45a   :  { %v15038_v17 = vld [vmem:[#allocation6 + $0x13ac] sm:$0xf0] }
 0x45b   :  { %v11320_v15 = vld [vmem:[#allocation6 + $0xc10] sm:$0xf]  ;;  %v12281_v45 = vor.u32 %v15038_v17, %v12280_v2  ;;  %8159 = vmatpush.bf16.msrb.mxu1 %v12025_v35 }
 0x45c   :  { %v14798_v63 = vld [vmem:[#allocation6 + $0xc2c] sm:$0xf0] }
 0x45d   :  { %v11576_v24 = vld [vmem:[#allocation6 + $0xe10] sm:$0xf]  ;;  %v11321_v9 = vor.u32 %v14798_v63, %v11320_v15  ;;  %8172 = vmatpush.bf16.msrb.mxu2 %v12281_v45 }
 0x45e   :  { %v14862_v12 = vld [vmem:[#allocation6 + $0xe2c] sm:$0xf0] }
 0x45f   :  { %v12568_v25 = vld [vmem:[#allocation6 + $0x15d0] sm:$0xf]  ;;  %v11577_v27 = vor.u32 %v14862_v12, %v11576_v24  ;;  %8139 = vmatpush.bf16.msra.mxu3 %v11321_v9  ;;  %v7908_v12 = vadd.f32 %v7907_v42, %v16017_v55 }
 0x460   :  { %v15110_v33 = vld [vmem:[#allocation6 + $0x15ec] sm:$0xf0] }
 0x461   :  { %v12824_v36 = vld [vmem:[#allocation6 + $0x17d0] sm:$0xf]  ;;  %v12569_v41 = vor.u32 %v15110_v33, %v12568_v25  ;;  %8152 = vmatpush.bf16.msrb.mxu0 %v11577_v27 }
 0x462   :  { %v15174_v37 = vld [vmem:[#allocation6 + $0x17ec] sm:$0xf0]  ;;  %8140 = vmatmul.bf16.vlgmr.msra.gmra.mxu3 %v15875_v34 }
 0x463   :  { %v11992_v23 = vld [vmem:[#allocation6 + $0x1150] sm:$0xf]  ;;  %v12825_v48 = vor.u32 %v15174_v37, %v12824_v36  ;;  %8184 = vmatpush.bf16.msrb.mxu3 %v12569_v41 }
 0x464   :  { %v14966_v39 = vld [vmem:[#allocation6 + $0x116c] sm:$0xf0]  ;;  %8153 = vmatmul.bf16.vlgmr.msrb.gmra.mxu0 %v15879_v40 }
 0x465   :  { %v12248_v20 = vld [vmem:[#allocation6 + $0x1350] sm:$0xf]  ;;  %v11993_v50 = vor.u32 %v14966_v39, %v11992_v23  ;;  %8197 = vmatpush.bf16.msra.mxu0 %v12825_v48 }
 0x466   :  { %v15030_v44 = vld [vmem:[#allocation6 + $0x136c] sm:$0xf0] }
 0x467   :  { %v12536_v5 = vld [vmem:[#allocation6 + $0x1590] sm:$0xf]  ;;  %v12249_v58 = vor.u32 %v15030_v44, %v12248_v20  ;;  %8160 = vmatpush.bf16.msrb.mxu1 %v11993_v50  ;;  %v7920_v50 = vpop.f32.mrf.mxu2 }
 0x468   :  { %v15102_v49 = vld [vmem:[#allocation6 + $0x15ac] sm:$0xf0] }
 0x469   :  { %v12792_v26 = vld [vmem:[#allocation6 + $0x1790] sm:$0xf]  ;;  %v12537_v60 = vor.u32 %v15102_v49, %v12536_v5  ;;  %8173 = vmatpush.bf16.msrb.mxu2 %v12249_v58 }
 0x46a   :  { %v15166_v53 = vld [vmem:[#allocation6 + $0x17ac] sm:$0xf0] }
 0x46b   :  { %v11960_v46 = vld [vmem:[#allocation6 + $0x1110] sm:$0xf]  ;;  %v12793_v38 = vor.u32 %v15166_v53, %v12792_v26  ;;  %8185 = vmatpush.bf16.msrb.mxu3 %v12537_v60  ;;  %v7946_v26 = vpop.f32.mrf.mxu0  ;;  %v7909_v60 = vpop.f32.mrf.mxu1 }
 0x46c   :  { %v14958_v59 = vld [vmem:[#allocation6 + $0x112c] sm:$0xf0] }
 0x46d   :  { %v12216_v61 = vld [vmem:[#allocation6 + $0x1310] sm:$0xf]  ;;  %v11961_v54 = vor.u32 %v14958_v59, %v11960_v46  ;;  %8198 = vmatpush.bf16.msra.mxu0 %v12793_v38  ;;  %v7921_v59 = vadd.f32 %v7920_v50, %v7908_v12 }
 0x46e   :  { %v15022_v51 = vld [vmem:[#allocation6 + $0x132c] sm:$0xf0] }
 0x46f   :  { %v12504_v4 = vld [vmem:[#allocation6 + $0x1550] sm:$0xf]  ;;  %v12217_v11 = vor.u32 %v15022_v51, %v12216_v61  ;;  %8161 = vmatpush.bf16.msrb.mxu1 %v11961_v54 }
 0x470   :  { %v15094_v30 = vld [vmem:[#allocation6 + $0x156c] sm:$0xf0] }
 0x471   :  { %v12760_v43 = vld [vmem:[#allocation6 + $0x1750] sm:$0xf]  ;;  %v12505_v16 = vor.u32 %v15094_v30, %v12504_v4  ;;  %8174 = vmatpush.bf16.msrb.mxu2 %v12217_v11 }
 0x472   :  { %v15158_v10 = vld [vmem:[#allocation6 + $0x176c] sm:$0xf0] }
 0x473   :  { %v11928_v7 = vld [vmem:[#allocation6 + $0x10d0] sm:$0xf]  ;;  %v12761_v15 = vor.u32 %v15158_v10, %v12760_v43  ;;  %8186 = vmatpush.bf16.msrb.mxu3 %v12505_v16 }
 0x474   :  { %v14950_v13 = vld [vmem:[#allocation6 + $0x10ec] sm:$0xf0] }
 0x475   :  { %v12184_v2 = vld [vmem:[#allocation6 + $0x12d0] sm:$0xf]  ;;  %v11929_v25 = vor.u32 %v14950_v13, %v11928_v7  ;;  %8199 = vmatpush.bf16.msra.mxu0 %v12761_v15  ;;  %v7933_v15 = vpop.f32.mrf.mxu3 }
 0x476   :  { %v15014_v17 = vld [vmem:[#allocation6 + $0x12ec] sm:$0xf0] }
 0x477   :  { %v12472_v63 = vld [vmem:[#allocation6 + $0x1510] sm:$0xf]  ;;  %v12185_v36 = vor.u32 %v15014_v17, %v12184_v2  ;;  %8162 = vmatpush.bf16.msrb.mxu1 %v11929_v25 }
 0x478   :  { %v15086_v24 = vld [vmem:[#allocation6 + $0x152c] sm:$0xf0] }
 0x479   :  { %v12728_v33 = vld [vmem:[#allocation6 + $0x1710] sm:$0xf]  ;;  %v12473_v9 = vor.u32 %v15086_v24, %v12472_v63  ;;  %8175 = vmatpush.bf16.msrb.mxu2 %v12185_v36 }
 0x47a   :  { %v15150_v35 = vld [vmem:[#allocation6 + $0x172c] sm:$0xf0] }
 0x47b   :  { %v11896_v37 = vld [vmem:[#allocation6 + $0x1090] sm:$0xf]  ;;  %v12729_v31 = vor.u32 %v15150_v35, %v12728_v33  ;;  %8187 = vmatpush.bf16.msrb.mxu3 %v12473_v9  ;;  %v7934_v33 = vadd.f32 %v7933_v15, %v7921_v59 }
 0x47c   :  { %v14942_v45 = vld [vmem:[#allocation6 + $0x10ac] sm:$0xf0] }
 0x47d   :  { %v12152_v23 = vld [vmem:[#allocation6 + $0x1290] sm:$0xf]  ;;  %v11897_v20 = vor.u32 %v14942_v45, %v11896_v37  ;;  %8200 = vmatpush.bf16.msra.mxu0 %v12729_v31  ;;  %v7948_v31 = vpop.f32.mrf.mxu0 }
 0x47e   :  { %v15006_v39 = vld [vmem:[#allocation6 + $0x12ac] sm:$0xf0] }
 0x47f   :  { %v12440_v27 = vld [vmem:[#allocation6 + $0x14d0] sm:$0xf]  ;;  %v12153_v48 = vor.u32 %v15006_v39, %v12152_v23  ;;  %8163 = vmatpush.bf16.msrb.mxu1 %v11897_v20  ;;  %v7922_v39 = vpop.f32.mrf.mxu2 }
 0x480   :  { %v15078_v41 = vld [vmem:[#allocation6 + $0x14ec] sm:$0xf0] }
 0x481   :  { %v12696_v44 = vld [vmem:[#allocation6 + $0x16d0] sm:$0xf]  ;;  %v12441_v53 = vor.u32 %v15078_v41, %v12440_v27  ;;  %8176 = vmatpush.bf16.msrb.mxu2 %v12153_v48  ;;  %v16024_v48 = vadd.f32 %v7946_v26, %v7934_v33 }
 0x482   :  { %v15142_v55 = vld [vmem:[#allocation6 + $0x16ec] sm:$0xf0] }
 0x483   :  { %v11864_v5 = vld [vmem:[#allocation6 + $0x1050] sm:$0xf]  ;;  %v12697_v61 = vor.u32 %v15142_v55, %v12696_v44  ;;  %8188 = vmatpush.bf16.msrb.mxu3 %v12441_v53 }
 0x484   :  { %v14934_v49 = vld [vmem:[#allocation6 + $0x106c] sm:$0xf0] }
 0x485   :  { %v12120_v58 = vld [vmem:[#allocation6 + $0x1250] sm:$0xf]  ;;  %v11865_v4 = vor.u32 %v14934_v49, %v11864_v5  ;;  %8201 = vmatpush.bf16.msra.mxu0 %v12697_v61 }
 0x486   :  { %v14998_v46 = vld [vmem:[#allocation6 + $0x126c] sm:$0xf0] }
 0x487   :  { %v12408_v51 = vld [vmem:[#allocation6 + $0x1490] sm:$0xf]  ;;  %v12121_v10 = vor.u32 %v14998_v46, %v12120_v58  ;;  %8164 = vmatpush.bf16.msrb.mxu1 %v11865_v4 }
 0x488   :  { %v15070_v38 = vld [vmem:[#allocation6 + $0x14ac] sm:$0xf0] }
 0x489   :  { %v12664_v30 = vld [vmem:[#allocation6 + $0x1690] sm:$0xf]  ;;  %v12409_v16 = vor.u32 %v15070_v38, %v12408_v51  ;;  %8177 = vmatpush.bf16.msrb.mxu2 %v12121_v10 }
 0x48a   :  { %v15134_v54 = vld [vmem:[#allocation6 + $0x16ac] sm:$0xf0] }
 0x48b   :  { %v11832_v43 = vld [vmem:[#allocation6 + $0x1010] sm:$0xf]  ;;  %v12665_v63 = vor.u32 %v15134_v54, %v12664_v30  ;;  %8189 = vmatpush.bf16.msrb.mxu3 %v12409_v16  ;;  %v7935_v54 = vpop.f32.mrf.mxu3 }
 0x48c   :  { %v14926_v11 = vld [vmem:[#allocation6 + $0x102c] sm:$0xf0] }
 0x48d   :  { %v12088_v7 = vld [vmem:[#allocation6 + $0x1210] sm:$0xf]  ;;  %v11833_v35 = vor.u32 %v14926_v11, %v11832_v43  ;;  %8202 = vmatpush.bf16.msra.mxu0 %v12665_v63 }
 0x48e   :  { %v14990_v13 = vld [vmem:[#allocation6 + $0x122c] sm:$0xf0] }
 0x48f   :  { %v13080_v2 = vld [vmem:[#allocation6 + $0x19d0] sm:$0xf]  ;;  %v12089_v45 = vor.u32 %v14990_v13, %v12088_v7  ;;  %8165 = vmatpush.bf16.msrb.mxu1 %v11833_v35 }
 0x490   :  { %v15238_v17 = vld [vmem:[#allocation6 + $0x19ec] sm:$0xf0] }
 0x491   :  { %v13336_v42 = vld [vmem:[#allocation6 + $0x1bd0] sm:$0xf]  ;;  %v13081_v9 = vor.u32 %v15238_v17, %v13080_v2  ;;  %8178 = vmatpush.bf16.msrb.mxu2 %v12089_v45 }
 0x492   :  { %v15302_v24 = vld [vmem:[#allocation6 + $0x1bec] sm:$0xf0]  ;;  %8166 = vmatmul.bf16.vlgmr.msrb.gmra.mxu1 %v15884_v22 }
 0x493   :  { %v12376_v12 = vld [vmem:[#allocation6 + $0x1450] sm:$0xf]  ;;  %v13337_v27 = vor.u32 %v15302_v24, %v13336_v42  ;;  %8210 = vmatpush.bf16.msra.mxu1 %v13081_v9 }
 0x494   :  { %v15062_v25 = vld [vmem:[#allocation6 + $0x146c] sm:$0xf0]  ;;  %8179 = vmatmul.bf16.vlgmr.msrb.gmra.mxu2 %v15887_v29 }
 0x495   :  { %v12632_v36 = vld [vmem:[#allocation6 + $0x1650] sm:$0xf]  ;;  %v12377_v41 = vor.u32 %v15062_v25, %v12376_v12  ;;  %8223 = vmatpush.bf16.msra.mxu2 %v13337_v27 }
 0x496   :  { %v15126_v37 = vld [vmem:[#allocation6 + $0x166c] sm:$0xf0] }
 0x497   :  { %v13048_v23 = vld [vmem:[#allocation6 + $0x1990] sm:$0xf]  ;;  %v12633_v5 = vor.u32 %v15126_v37, %v12632_v36  ;;  %8190 = vmatpush.bf16.msrb.mxu3 %v12377_v41 }
 0x498   :  { %v15230_v20 = vld [vmem:[#allocation6 + $0x19ac] sm:$0xf0] }
 0x499   :  { %v13304_v44 = vld [vmem:[#allocation6 + $0x1b90] sm:$0xf]  ;;  %v13049_v60 = vor.u32 %v15230_v20, %v13048_v23  ;;  %8203 = vmatpush.bf16.msra.mxu0 %v12633_v5  ;;  %v7959_v5 = vpop.f32.mrf.mxu1 }
 0x49a   :  { %v15294_v55 = vld [vmem:[#allocation6 + $0x1bac] sm:$0xf0] }
 0x49b   :  { %v12344_v49 = vld [vmem:[#allocation6 + $0x1410] sm:$0xf]  ;;  %v13305_v38 = vor.u32 %v15294_v55, %v13304_v44  ;;  %8211 = vmatpush.bf16.msra.mxu1 %v13049_v60 }
 0x49c   :  { %v15054_v50 = vld [vmem:[#allocation6 + $0x142c] sm:$0xf0] }
 0x49d   :  { %v12600_v53 = vld [vmem:[#allocation6 + $0x1610] sm:$0xf]  ;;  %v12345_v4 = vor.u32 %v15054_v50, %v12344_v49  ;;  %8224 = vmatpush.bf16.msra.mxu2 %v13305_v38 }
 0x49e   :  { %v15118_v58 = vld [vmem:[#allocation6 + $0x162c] sm:$0xf0] }
 0x49f   :  { %v13592_v46 = vld [vmem:[#allocation6 + $0x1dd0] sm:$0xf]  ;;  %v12601_v43 = vor.u32 %v15118_v58, %v12600_v53  ;;  %8191 = vmatpush.bf16.msrb.mxu3 %v12345_v4  ;;  %v7960_v58 = vadd.f32 %v7959_v5, %v16024_v48  ;;  %v14466_v5 = vld [vmem:[#allocation6 + $0x1d4] sm:$0xf] }
 0x4a0   :  { %v15366_v59 = vld [vmem:[#allocation6 + $0x1dec] sm:$0xf0] }
 0x4a1   :  { %v13848_v61 = vld [vmem:[#allocation6 + $0x1fd0] sm:$0xf]  ;;  %v13593_v10 = vor.u32 %v15366_v59, %v13592_v46  ;;  %8204 = vmatpush.bf16.msra.mxu0 %v12601_v43 }
 0x4a2   :  { %v15430_v51 = vld [vmem:[#allocation6 + $0x1fec] sm:$0xf0]  ;;  %8192 = vmatmul.bf16.vlgmr.msrb.gmra.mxu3 %v15891_v1 }
 0x4a3   :  { %v13016_v26 = vld [vmem:[#allocation6 + $0x1950] sm:$0xf]  ;;  %v13849_v13 = vor.u32 %v15430_v51, %v13848_v61  ;;  %8236 = vmatpush.bf16.msra.mxu3 %v13593_v10 }
 0x4a4   :  { %v15222_v30 = vld [vmem:[#allocation6 + $0x196c] sm:$0xf0]  ;;  %8205 = vmatmul.bf16.vlgmr.msra.gmra.mxu0 %v15893_v3 }
 0x4a5   :  { %v13272_v11 = vld [vmem:[#allocation6 + $0x1b50] sm:$0xf]  ;;  %v13017_v17 = vor.u32 %v15222_v30, %v13016_v26  ;;  %8249 = vmatpush.bf16.msrb.mxu0 %v13849_v13 }
 0x4a6   :  { %v15286_v7 = vld [vmem:[#allocation6 + $0x1b6c] sm:$0xf0] }
 0x4a7   :  { %v13560_v16 = vld [vmem:[#allocation6 + $0x1d90] sm:$0xf]  ;;  %v13273_v63 = vor.u32 %v15286_v7, %v13272_v11  ;;  %8212 = vmatpush.bf16.msra.mxu1 %v13017_v17  ;;  %v7972_v17 = vpop.f32.mrf.mxu2 }
 0x4a8   :  { %v15358_v2 = vld [vmem:[#allocation6 + $0x1dac] sm:$0xf0] }
 0x4a9   :  { %v13816_v42 = vld [vmem:[#allocation6 + $0x1f90] sm:$0xf]  ;;  %v13561_v25 = vor.u32 %v15358_v2, %v13560_v16  ;;  %8225 = vmatpush.bf16.msra.mxu2 %v13273_v63 }
 0x4aa   :  { %v15422_v15 = vld [vmem:[#allocation6 + $0x1fac] sm:$0xf0] }
 0x4ab   :  { %v12984_v24 = vld [vmem:[#allocation6 + $0x1910] sm:$0xf]  ;;  %v13817_v36 = vor.u32 %v15422_v15, %v13816_v42  ;;  %8237 = vmatpush.bf16.msra.mxu3 %v13561_v25  ;;  %v7998_v42 = vpop.f32.mrf.mxu0  ;;  %v7961_v25 = vpop.f32.mrf.mxu1 }
 0x4ac   :  { %v15214_v12 = vld [vmem:[#allocation6 + $0x192c] sm:$0xf0] }
 0x4ad   :  { %v13240_v33 = vld [vmem:[#allocation6 + $0x1b10] sm:$0xf]  ;;  %v12985_v9 = vor.u32 %v15214_v12, %v12984_v24  ;;  %8250 = vmatpush.bf16.msrb.mxu0 %v13817_v36  ;;  %v7973_v12 = vadd.f32 %v7972_v17, %v7960_v58 }
 0x4ae   :  { %v15278_v35 = vld [vmem:[#allocation6 + $0x1b2c] sm:$0xf0] }
 0x4af   :  { %v13528_v37 = vld [vmem:[#allocation6 + $0x1d50] sm:$0xf]  ;;  %v13241_v31 = vor.u32 %v15278_v35, %v13240_v33  ;;  %8213 = vmatpush.bf16.msra.mxu1 %v12985_v9 }
 0x4b0   :  { %v15350_v45 = vld [vmem:[#allocation6 + $0x1d6c] sm:$0xf0] }
 0x4b1   :  { %v13784_v23 = vld [vmem:[#allocation6 + $0x1f50] sm:$0xf]  ;;  %v13529_v20 = vor.u32 %v15350_v45, %v13528_v37  ;;  %8226 = vmatpush.bf16.msra.mxu2 %v13241_v31 }
 0x4b2   :  { %v15414_v39 = vld [vmem:[#allocation6 + $0x1f6c] sm:$0xf0] }
 0x4b3   :  { %v12952_v27 = vld [vmem:[#allocation6 + $0x18d0] sm:$0xf]  ;;  %v13785_v49 = vor.u32 %v15414_v39, %v13784_v23  ;;  %8238 = vmatpush.bf16.msra.mxu3 %v13529_v20 }
 0x4b4   :  { %v15206_v41 = vld [vmem:[#allocation6 + $0x18ec] sm:$0xf0] }
 0x4b5   :  { %v13208_v44 = vld [vmem:[#allocation6 + $0x1ad0] sm:$0xf]  ;;  %v12953_v46 = vor.u32 %v15206_v41, %v12952_v27  ;;  %8251 = vmatpush.bf16.msrb.mxu0 %v13785_v49  ;;  %v7985_v49 = vpop.f32.mrf.mxu3 }
 0x4b6   :  { %v15270_v55 = vld [vmem:[#allocation6 + $0x1aec] sm:$0xf0] }
 0x4b7   :  { %v13496_v50 = vld [vmem:[#allocation6 + $0x1d10] sm:$0xf]  ;;  %v13209_v61 = vor.u32 %v15270_v55, %v13208_v44  ;;  %8214 = vmatpush.bf16.msra.mxu1 %v12953_v46 }
 0x4b8   :  { %v15342_v53 = vld [vmem:[#allocation6 + $0x1d2c] sm:$0xf0] }
 0x4b9   :  { %v13752_v59 = vld [vmem:[#allocation6 + $0x1f10] sm:$0xf]  ;;  %v13497_v4 = vor.u32 %v15342_v53, %v13496_v50  ;;  %8227 = vmatpush.bf16.msra.mxu2 %v13209_v61  ;;  %v10010_v53 = vld [vmem:[#allocation6 + $0x1f0] sm:$0xf0] }
 0x4ba   :  { %v15406_v60 = vld [vmem:[#allocation6 + $0x1f2c] sm:$0xf0] }
 0x4bb   :  { %v12920_v51 = vld [vmem:[#allocation6 + $0x1890] sm:$0xf]  ;;  %v13753_v54 = vor.u32 %v15406_v60, %v13752_v59  ;;  %8239 = vmatpush.bf16.msra.mxu3 %v13497_v4  ;;  %v7986_v59 = vadd.f32 %v7985_v49, %v7973_v12  ;;  %v10266_v12 = vld [vmem:[#allocation6 + $0x3f0] sm:$0xf0] }
 0x4bc   :  { %v15198_v38 = vld [vmem:[#allocation6 + $0x18ac] sm:$0xf0]  ;;  %v10490_v49 = vld [vmem:[#allocation6 + $0x5b0] sm:$0xf0] }
 0x4bd   :  { %v13176_v26 = vld [vmem:[#allocation6 + $0x1a90] sm:$0xf]  ;;  %v12921_v11 = vor.u32 %v15198_v38, %v12920_v51  ;;  %8252 = vmatpush.bf16.msrb.mxu0 %v13753_v54  ;;  %v8000_v54 = vpop.f32.mrf.mxu0 }
 0x4be   :  { %v15262_v30 = vld [vmem:[#allocation6 + $0x1aac] sm:$0xf0] }
 0x4bf   :  { %v13464_v43 = vld [vmem:[#allocation6 + $0x1cd0] sm:$0xf]  ;;  %v13177_v13 = vor.u32 %v15262_v30, %v13176_v26  ;;  %8215 = vmatpush.bf16.msra.mxu1 %v12921_v11  ;;  %v7974_v30 = vpop.f32.mrf.mxu2 }
 0x4c0   :  { %v15334_v10 = vld [vmem:[#allocation6 + $0x1cec] sm:$0xf0]  ;;  %v10458_v30 = vld [vmem:[#allocation6 + $0x570] sm:$0xf0] }
 0x4c1   :  { %v13720_v7 = vld [vmem:[#allocation6 + $0x1ed0] sm:$0xf]  ;;  %v13465_v15 = vor.u32 %v15334_v10, %v13464_v43  ;;  %8228 = vmatpush.bf16.msra.mxu2 %v13177_v13  ;;  %v10013_v43 = vor.u32 %v14466_v5, %v10010_v53  ;;  %v16031_v13 = vadd.f32 %v7998_v42, %v7986_v59  ;;  %v14586_v5 = vld [vmem:[#allocation6 + $0x594] sm:$0xf] }
 0x4c2   :  { %v15398_v48 = vld [vmem:[#allocation6 + $0x1eec] sm:$0xf0]  ;;  %v14442_v59 = vld [vmem:[#allocation6 + $0x114] sm:$0xf] }
 0x4c3   :  { %v12888_v16 = vld [vmem:[#allocation6 + $0x1850] sm:$0xf]  ;;  %v13721_v33 = vor.u32 %v15398_v48, %v13720_v7  ;;  %8240 = vmatpush.bf16.msra.mxu3 %v13465_v15  ;;  %v14458_v7 = vld [vmem:[#allocation6 + $0x194] sm:$0xf] }
 0x4c4   :  { %v15190_v2 = vld [vmem:[#allocation6 + $0x186c] sm:$0xf0]  ;;  %v9978_v48 = vld [vmem:[#allocation6 + $0x1b0] sm:$0xf0] }
 0x4c5   :  { %v13144_v63 = vld [vmem:[#allocation6 + $0x1a50] sm:$0xf]  ;;  %v12889_v37 = vor.u32 %v15190_v2, %v12888_v16  ;;  %8253 = vmatpush.bf16.msrb.mxu0 %v13721_v33  ;;  %v14594_v33 = vld [vmem:[#allocation6 + $0x5d4] sm:$0xf] }
 0x4c6   :  { %v15254_v24 = vld [vmem:[#allocation6 + $0x1a6c] sm:$0xf0] }
 0x4c7   :  { %v13432_v35 = vld [vmem:[#allocation6 + $0x1c90] sm:$0xf]  ;;  %v13145_v39 = vor.u32 %v15254_v24, %v13144_v63  ;;  %8216 = vmatpush.bf16.msra.mxu1 %v12889_v37  ;;  %v14530_v24 = vld [vmem:[#allocation6 + $0x3d4] sm:$0xf] }
 0x4c8   :  { %v15326_v36 = vld [vmem:[#allocation6 + $0x1cac] sm:$0xf0] }
 0x4c9   :  { %v13688_v45 = vld [vmem:[#allocation6 + $0x1e90] sm:$0xf]  ;;  %v13433_v20 = vor.u32 %v15326_v36, %v13432_v35  ;;  %8229 = vmatpush.bf16.msra.mxu2 %v13145_v39  ;;  %v10522_v35 = vld [vmem:[#allocation6 + $0x5f0] sm:$0xf0]  ;;  %v9981_v36 = vor.u32 %v14458_v7, %v9978_v48  ;;  %v10269_v39 = vor.u32 %v14530_v24, %v10266_v12 }
 0x4ca   :  { %v15390_v9 = vld [vmem:[#allocation6 + $0x1eac] sm:$0xf0]  ;;  %v14434_v7 = vld [vmem:[#allocation6 + $0xd4] sm:$0xf] }
 0x4cb   :  { %v12856_v23 = vld [vmem:[#allocation6 + $0x1810] sm:$0xf]  ;;  %v13689_v50 = vor.u32 %v15390_v9, %v13688_v45  ;;  %8241 = vmatpush.bf16.msra.mxu3 %v13433_v20  ;;  %v7987_v9 = vpop.f32.mrf.mxu3  ;;  %v14522_v20 = vld [vmem:[#allocation6 + $0x394] sm:$0xf] }
 0x4cc   :  { %v15182_v31 = vld [vmem:[#allocation6 + $0x182c] sm:$0xf0]  ;;  %v9882_v48 = vld [vmem:[#allocation6 + $0xf0] sm:$0xf0] }
 0x4cd   :  { %v13112_v27 = vld [vmem:[#allocation6 + $0x1a10] sm:$0xf]  ;;  %v12857_v60 = vor.u32 %v15182_v31, %v12856_v23  ;;  %8254 = vmatpush.bf16.msrb.mxu0 %v13689_v50  ;;  %v14450_v31 = vld [vmem:[#allocation6 + $0x154] sm:$0xf] }
 0x4ce   :  { %v15246_v41 = vld [vmem:[#allocation6 + $0x1a2c] sm:$0xf0]  ;;  %v14570_v12 = vld [vmem:[#allocation6 + $0x514] sm:$0xf] }
 0x4cf   :  { %v14104_v44 = vld [vmem:[#allocation6 + $0x21d0] sm:$0xf]  ;;  %v13113_v38 = vor.u32 %v15246_v41, %v13112_v27  ;;  %8217 = vmatpush.bf16.msra.mxu1 %v12857_v60  ;;  %v9946_v27 = vld [vmem:[#allocation6 + $0x170] sm:$0xf0]  ;;  %v10525_v41 = vor.u32 %v14594_v33, %v10522_v35  ;;  %v9885_v33 = vor.u32 %v14434_v7, %v9882_v48 }
 0x4d0   :  { %v15494_v55 = vld [vmem:[#allocation6 + $0x21ec] sm:$0xf0]  ;;  %v9949_v50 = vor.u32 %v14450_v31, %v9946_v27  ;;  %v9914_v60 = vld [vmem:[#allocation6 + $0x130] sm:$0xf0] }
 0x4d1   :  { %v13400_v58 = vld [vmem:[#allocation6 + $0x1c50] sm:$0xf]  ;;  %v14105_v4 = vor.u32 %v15494_v55, %v14104_v44  ;;  %8230 = vmatpush.bf16.msra.mxu2 %v13113_v38  ;;  %v10234_v44 = vld [vmem:[#allocation6 + $0x3b0] sm:$0xf0]  ;;  %v9917_v54 = vor.u32 %v14442_v59, %v9914_v60 }
 0x4d2   :  { %v15318_v46 = vld [vmem:[#allocation6 + $0x1c6c] sm:$0xf0]  ;;  %8218 = vmatmul.bf16.vlgmr.msra.gmra.mxu1 %v15903_v47  ;;  %v10202_v38 = vld [vmem:[#allocation6 + $0x370] sm:$0xf0] }
 0x4d3   :  { %v13656_v61 = vld [vmem:[#allocation6 + $0x1e50] sm:$0xf]  ;;  %v13401_v10 = vor.u32 %v15318_v46, %v13400_v58  ;;  %8262 = vmatpush.bf16.msrb.mxu1 %v14105_v4  ;;  %v10237_v46 = vor.u32 %v14522_v20, %v10234_v44  ;;  %v14562_v27 = vld [vmem:[#allocation6 + $0x4d4] sm:$0xf] }
 0x4d4   :  { %v15382_v51 = vld [vmem:[#allocation6 + $0x1e6c] sm:$0xf0]  ;;  %8231 = vmatmul.bf16.vlgmr.msra.gmra.mxu2 %v15905_v52  ;;  %v14490_v60 = vld [vmem:[#allocation6 + $0x294] sm:$0xf] }
 0x4d5   :  { %v14072_v26 = vld [vmem:[#allocation6 + $0x2190] sm:$0xf]  ;;  %v13657_v16 = vor.u32 %v15382_v51, %v13656_v61  ;;  %8275 = vmatpush.bf16.msrb.mxu2 %v10013_v43  ;;  %8242 = vmatpush.bf16.msra.mxu3 %v13401_v10  ;;  %v10493_v61 = vor.u32 %v14586_v5, %v10490_v49  ;;  %v14514_v51 = vld [vmem:[#allocation6 + $0x354] sm:$0xf]  ;;  %v8050_v5 = vpop.f32.mrf.mxu0 }
 0x4d6   :  { %v15486_v11 = vld [vmem:[#allocation6 + $0x21ac] sm:$0xf0]  ;;  %v14658_v7 = vld [vmem:[#allocation6 + $0x7d4] sm:$0xf] }
 0x4d7   :  { %v13368_v2 = vld [vmem:[#allocation6 + $0x1c10] sm:$0xf]  ;;  %v14073_v25 = vor.u32 %v15486_v11, %v14072_v26  ;;  %8255 = vmatpush.bf16.msrb.mxu0 %v13657_v16  ;;  %v14578_v26 = vld [vmem:[#allocation6 + $0x554] sm:$0xf]  ;;  %v10205_v11 = vor.u32 %v14514_v51, %v10202_v38  ;;  %v8011_v16 = vpop.f32.mrf.mxu1 }
 0x4d8   :  { %v15310_v17 = vld [vmem:[#allocation6 + $0x1c2c] sm:$0xf0]  ;;  %v14554_v38 = vld [vmem:[#allocation6 + $0x494] sm:$0xf] }
 0x4d9   :  { %v13624_v15 = vld [vmem:[#allocation6 + $0x1e10] sm:$0xf]  ;;  %v13369_v37 = vor.u32 %v15310_v17, %v13368_v2  ;;  %8263 = vmatpush.bf16.msrb.mxu1 %v14073_v25  ;;  %8276 = vmatpush.bf16.msrb.mxu2 %v9981_v36  ;;  %v10461_v2 = vor.u32 %v14578_v26, %v10458_v30  ;;  %v14506_v17 = vld [vmem:[#allocation6 + $0x314] sm:$0xf] }
 0x4da   :  { %v15374_v63 = vld [vmem:[#allocation6 + $0x1e2c] sm:$0xf0]  ;;  %v10426_v25 = vld [vmem:[#allocation6 + $0x530] sm:$0xf0] }
 0x4db   :  { %v14040_v42 = vld [vmem:[#allocation6 + $0x2150] sm:$0xf]  ;;  %v13625_v23 = vor.u32 %v15374_v63, %v13624_v15  ;;  %8243 = vmatpush.bf16.msra.mxu3 %v13369_v37  ;;  %v10170_v15 = vld [vmem:[#allocation6 + $0x330] sm:$0xf0]  ;;  %v8012_v63 = vadd.f32 %v8011_v16, %v16031_v13  ;;  %v10429_v9 = vor.u32 %v14570_v12, %v10426_v25 }
 0x4dc   :  { %v15478_v45 = vld [vmem:[#allocation6 + $0x216c] sm:$0xf0]  ;;  %v10173_v37 = vor.u32 %v14506_v17, %v10170_v15  ;;  %v10394_v13 = vld [vmem:[#allocation6 + $0x4f0] sm:$0xf0] }
 0x4dd   :  { %v14041_v55 = vor.u32 %v15478_v45, %v14040_v42  ;;  %v14008_v53 = vld [vmem:[#allocation6 + $0x2110] sm:$0xf]  ;;  %8256 = vmatpush.bf16.msrb.mxu0 %v13625_v23  ;;  %8277 = vmatpush.bf16.msrb.mxu2 %v9949_v50  ;;  %v14426_v42 = vld [vmem:[#allocation6 + $0x94] sm:$0xf]  ;;  %v10397_v59 = vor.u32 %v14562_v27, %v10394_v13 }
 0x4de   :  { %v15470_v58 = vld [vmem:[#allocation6 + $0x212c] sm:$0xf0]  ;;  %8244 = vmatmul.bf16.vlgmr.msra.gmra.mxu3 %v15909_v14  ;;  %v9850_v45 = vld [vmem:[#allocation6 + $0xb0] sm:$0xf0] }
 0x4df   :  { %8288 = vmatpush.bf16.msrb.mxu3 %v10269_v39  ;;  %8264 = vmatpush.bf16.msrb.mxu1 %v14041_v55  ;;  %v14009_v4 = vor.u32 %v15470_v58, %v14008_v53  ;;  %v13976_v43 = vld [vmem:[#allocation6 + $0x20d0] sm:$0xf]  ;;  %v14498_v23 = vld [vmem:[#allocation6 + $0x2d4] sm:$0xf]  ;;  %v8024_v55 = vpop.f32.mrf.mxu2 }
 0x4e0   :  { %8257 = vmatmul.bf16.vlgmr.msrb.gmra.mxu0 %v15911_v18  ;;  %v15462_v10 = vld [vmem:[#allocation6 + $0x20ec] sm:$0xf0]  ;;  %v10138_v39 = vld [vmem:[#allocation6 + $0x2f0] sm:$0xf0]  ;;  %v8025_v58 = vadd.f32 %v8024_v55, %v8012_v63 }
 0x4e1   :  { %8301 = vmatpush.bf16.msra.mxu0 %v10525_v41  ;;  %v13977_v24 = vor.u32 %v15462_v10, %v13976_v43  ;;  %8278 = vmatpush.bf16.msrb.mxu2 %v9917_v54  ;;  %v13944_v35 = vld [vmem:[#allocation6 + $0x2090] sm:$0xf]  ;;  %v9853_v41 = vor.u32 %v14426_v42, %v9850_v45  ;;  %v10141_v49 = vor.u32 %v14498_v23, %v10138_v39  ;;  %v14418_v50 = vld [vmem:[#allocation6 + $0x54] sm:$0xf]  ;;  %v8052_v23 = vpop.f32.mrf.mxu0 }
 0x4e2   :  { %v15454_v36 = vld [vmem:[#allocation6 + $0x20ac] sm:$0xf0]  ;;  %v9818_v53 = vld [vmem:[#allocation6 + $0x70] sm:$0xf0] }
 0x4e3   :  { %8289 = vmatpush.bf16.msrb.mxu3 %v10237_v46  ;;  %8265 = vmatpush.bf16.msrb.mxu1 %v14009_v4  ;;  %v13945_v31 = vor.u32 %v15454_v36, %v13944_v35  ;;  %v13912_v20 = vld [vmem:[#allocation6 + $0x2050] sm:$0xf]  ;;  %v8013_v46 = vpop.f32.mrf.mxu1  ;;  %v10362_v4 = vld [vmem:[#allocation6 + $0x4b0] sm:$0xf0]  ;;  %v9821_v30 = vor.u32 %v14418_v50, %v9818_v53 }
 0x4e4   :  { %v15446_v44 = vld [vmem:[#allocation6 + $0x206c] sm:$0xf0]  ;;  %v14410_v43 = vld [vmem:[#allocation6 + $0x14] sm:$0xf]  ;;  %v10365_v17 = vor.u32 %v14554_v38, %v10362_v4 }
 0x4e5   :  { %8302 = vmatpush.bf16.msra.mxu0 %v10493_v61  ;;  %8279 = vmatpush.bf16.msrb.mxu2 %v9885_v33  ;;  %v10106_v61 = vld [vmem:[#allocation6 + $0x2b0] sm:$0xf0]  ;;  %v13913_v51 = vor.u32 %v15446_v44, %v13912_v20  ;;  %v13880_v26 = vld [vmem:[#allocation6 + $0x2010] sm:$0xf] }
 0x4e6   :  { %v15438_v54 = vld [vmem:[#allocation6 + $0x202c] sm:$0xf0]  ;;  %v9786_v10 = vld [vmem:[#allocation6 + $0x30] sm:$0xf0] }
 0x4e7   :  { %8290 = vmatpush.bf16.msrb.mxu3 %v10205_v11  ;;  %8266 = vmatpush.bf16.msrb.mxu1 %v13977_v24  ;;  %v10109_v11 = vor.u32 %v14490_v60, %v10106_v61  ;;  %v10778_v48 = vld [vmem:[#allocation6 + $0x7f0] sm:$0xf0]  ;;  %v13881_v25 = vor.u32 %v15438_v54, %v13880_v26  ;;  %v9789_v36 = vor.u32 %v14410_v43, %v9786_v10 }
 0x4e8   :  { %v14722_v16 = vld [vmem:[#allocation6 + $0x9d4] sm:$0xf] }
 0x4e9   :  { %8303 = vmatpush.bf16.msra.mxu0 %v10461_v2  ;;  %8280 = vmatpush.bf16.msrb.mxu2 %v9853_v41  ;;  %v8037_v2 = vpop.f32.mrf.mxu3  ;;  %v11034_v15 = vld [vmem:[#allocation6 + $0x9f0] sm:$0xf0] }
 0x4ea   :  { %v14482_v63 = vld [vmem:[#allocation6 + $0x254] sm:$0xf]  ;;  %v8038_v12 = vadd.f32 %v8037_v2, %v8025_v58  ;;  %v11037_v39 = vor.u32 %v14722_v16, %v11034_v15 }
 0x4eb   :  { %8291 = vmatpush.bf16.msrb.mxu3 %v10173_v37  ;;  %8267 = vmatpush.bf16.msrb.mxu1 %v13945_v31  ;;  %v10074_v24 = vld [vmem:[#allocation6 + $0x270] sm:$0xf0]  ;;  %v10781_v37 = vor.u32 %v14658_v7, %v10778_v48 }
 0x4ec   :  { %v14546_v33 = vld [vmem:[#allocation6 + $0x454] sm:$0xf]  ;;  %v16038_v45 = vadd.f32 %v8050_v5, %v8038_v12  ;;  %v10077_v31 = vor.u32 %v14482_v63, %v10074_v24 }
 0x4ed   :  { %8304 = vmatpush.bf16.msra.mxu0 %v10429_v9  ;;  %v10330_v35 = vld [vmem:[#allocation6 + $0x470] sm:$0xf0]  ;;  %8281 = vmatpush.bf16.msrb.mxu2 %v9821_v30  ;;  %v8026_v9 = vpop.f32.mrf.mxu2 }
 0x4ee   :  { %v14650_v42 = vld [vmem:[#allocation6 + $0x794] sm:$0xf]  ;;  %v10333_v20 = vor.u32 %v14546_v33, %v10330_v35 }
 0x4ef   :  { %8292 = vmatpush.bf16.msrb.mxu3 %v10141_v49  ;;  %8268 = vmatpush.bf16.msrb.mxu1 %v13913_v51  ;;  %v10746_v27 = vld [vmem:[#allocation6 + $0x7b0] sm:$0xf0] }
 0x4f0   :  { %v14714_v13 = vld [vmem:[#allocation6 + $0x994] sm:$0xf]  ;;  %v10749_v5 = vor.u32 %v14650_v42, %v10746_v27 }
 0x4f1   :  { %8305 = vmatpush.bf16.msra.mxu0 %v10397_v59  ;;  %v11002_v41 = vld [vmem:[#allocation6 + $0x9b0] sm:$0xf0]  ;;  %8282 = vmatpush.bf16.msrb.mxu2 %v9789_v36  ;;  %v8039_v4 = vpop.f32.mrf.mxu3 }
 0x4f2   :  { %v14474_v44 = vld [vmem:[#allocation6 + $0x214] sm:$0xf]  ;;  %v11005_v60 = vor.u32 %v14714_v13, %v11002_v41 }
 0x4f3   :  { %8293 = vmatpush.bf16.msrb.mxu3 %v10109_v11  ;;  %v10042_v55 = vld [vmem:[#allocation6 + $0x230] sm:$0xf0]  ;;  %8269 = vmatpush.bf16.msrb.mxu1 %v13881_v25 }
 0x4f4   :  { %v14538_v49 = vld [vmem:[#allocation6 + $0x414] sm:$0xf]  ;;  %v10045_v61 = vor.u32 %v14474_v44, %v10042_v55  ;;  %8283 = vmatmul.bf16.vlgmr.msrb.gmra.mxu2 %v15850_v57 }
 0x4f5   :  { %8306 = vmatpush.bf16.msra.mxu0 %v10365_v17  ;;  %v10298_v50 = vld [vmem:[#allocation6 + $0x430] sm:$0xf0]  ;;  %8327 = vmatpush.bf16.msra.mxu2 %v11037_v39 }
 0x4f6   :  { %v14786_v53 = vld [vmem:[#allocation6 + $0xbd4] sm:$0xf]  ;;  %8270 = vmatmul.bf16.vlgmr.msrb.gmra.mxu1 %v15916_v56  ;;  %v10301_v26 = vor.u32 %v14538_v49, %v10298_v50 }
 0x4f7   :  { %v11290_v58 = vld [vmem:[#allocation6 + $0xbf0] sm:$0xf0]  ;;  %8314 = vmatpush.bf16.msra.mxu1 %v10781_v37  ;;  %8294 = vmatpush.bf16.msrb.mxu3 %v10077_v31 }
 0x4f8   :  { %v14850_v46 = vld [vmem:[#allocation6 + $0xdd4] sm:$0xf]  ;;  %v11293_v30 = vor.u32 %v14786_v53, %v11290_v58 }
 0x4f9   :  { %v11546_v59 = vld [vmem:[#allocation6 + $0xdf0] sm:$0xf0]  ;;  %8307 = vmatpush.bf16.msra.mxu0 %v10333_v20  ;;  %8328 = vmatpush.bf16.msra.mxu2 %v11005_v60  ;;  %v8063_v20 = vpop.f32.mrf.mxu1 }
 0x4fa   :  { %v14642_v51 = vld [vmem:[#allocation6 + $0x754] sm:$0xf]  ;;  %v11549_v10 = vor.u32 %v14850_v46, %v11546_v59 }
 0x4fb   :  { %v10714_v38 = vld [vmem:[#allocation6 + $0x770] sm:$0xf0]  ;;  %8315 = vmatpush.bf16.msra.mxu1 %v10749_v5  ;;  %8295 = vmatpush.bf16.msrb.mxu3 %v10045_v61  ;;  %v15580_v5 = vld [vmem:[#allocation7] sm:$0xff] }
 0x4fc   :  { %v14706_v54 = vld [vmem:[#allocation6 + $0x954] sm:$0xf]  ;;  %v10717_v48 = vor.u32 %v14642_v51, %v10714_v38  ;;  %v1718_v46 = vperm.slane %v15580_v5, 4 }
 0x4fd   :  { %v10970_v43 = vld [vmem:[#allocation6 + $0x970] sm:$0xf0]  ;;  %8308 = vmatpush.bf16.msra.mxu0 %v10301_v26 }
 0x4fe   :  { %v14778_v11 = vld [vmem:[#allocation6 + $0xb94] sm:$0xf]  ;;  %v10973_v17 = vor.u32 %v14706_v54, %v10970_v43  ;;  %8296 = vmatmul.bf16.vlgmr.msrb.gmra.mxu3 %v15853_v62 }
 0x4ff   :  { %v11258_v7 = vld [vmem:[#allocation6 + $0xbb0] sm:$0xf0]  ;;  %8340 = vmatpush.bf16.msra.mxu3 %v11293_v30  ;;  %8316 = vmatpush.bf16.msra.mxu1 %v10717_v48 }
 0x500   :  { %v14842_v16 = vld [vmem:[#allocation6 + $0xd94] sm:$0xf]  ;;  %v11261_v24 = vor.u32 %v14778_v11, %v11258_v7  ;;  %8309 = vmatmul.bf16.vlgmr.msra.gmra.mxu0 %v15858_v21  ;;  %8329 = vmatpush.bf16.msra.mxu2 %v10973_v17  ;;  %v8064_v7 = vadd.f32 %v8063_v20, %v1718_v46  ;;  %v8076_v17 = vpop.f32.mrf.mxu2 }
 0x501   :  { %v11514_v2 = vld [vmem:[#allocation6 + $0xdb0] sm:$0xf0]  ;;  %8353 = vmatpush.bf16.msrb.mxu0 %v11549_v10 }
 0x502   :  { %v14634_v15 = vld [vmem:[#allocation6 + $0x714] sm:$0xf]  ;;  %v11517_v33 = vor.u32 %v14842_v16, %v11514_v2 }
 0x503   :  { %v10682_v63 = vld [vmem:[#allocation6 + $0x730] sm:$0xf0]  ;;  %8341 = vmatpush.bf16.msra.mxu3 %v11261_v24 }
 0x504   :  { %v14698_v12 = vld [vmem:[#allocation6 + $0x914] sm:$0xf]  ;;  %v10685_v37 = vor.u32 %v14634_v15, %v10682_v63  ;;  %v8102_v15 = vpop.f32.mrf.mxu0 }
 0x505   :  { %v10938_v25 = vld [vmem:[#allocation6 + $0x930] sm:$0xf0]  ;;  %8354 = vmatpush.bf16.msrb.mxu0 %v11517_v33  ;;  %v8065_v33 = vpop.f32.mrf.mxu1 }
 0x506   :  { %v14770_v35 = vld [vmem:[#allocation6 + $0xb54] sm:$0xf]  ;;  %v10941_v23 = vor.u32 %v14698_v12, %v10938_v25  ;;  %8317 = vmatpush.bf16.msra.mxu1 %v10685_v37  ;;  %v8077_v25 = vadd.f32 %v8076_v17, %v8064_v7 }
 0x507   :  { %v11226_v36 = vld [vmem:[#allocation6 + $0xb70] sm:$0xf0] }
 0x508   :  { %v14834_v42 = vld [vmem:[#allocation6 + $0xd54] sm:$0xf]  ;;  %v11229_v27 = vor.u32 %v14770_v35, %v11226_v36  ;;  %8330 = vmatpush.bf16.msra.mxu2 %v10941_v23 }
 0x509   :  { %v11482_v9 = vld [vmem:[#allocation6 + $0xd70] sm:$0xf0] }
 0x50a   :  { %v14626_v39 = vld [vmem:[#allocation6 + $0x6d4] sm:$0xf]  ;;  %v11485_v44 = vor.u32 %v14834_v42, %v11482_v9  ;;  %8342 = vmatpush.bf16.msra.mxu3 %v11229_v27 }
 0x50b   :  { %v10650_v31 = vld [vmem:[#allocation6 + $0x6f0] sm:$0xf0] }
 0x50c   :  { %v14690_v13 = vld [vmem:[#allocation6 + $0x8d4] sm:$0xf]  ;;  %v10653_v50 = vor.u32 %v14626_v39, %v10650_v31  ;;  %8355 = vmatpush.bf16.msrb.mxu0 %v11485_v44 }
 0x50d   :  { %v10906_v41 = vld [vmem:[#allocation6 + $0x8f0] sm:$0xf0] }
 0x50e   :  { %v14762_v55 = vld [vmem:[#allocation6 + $0xb14] sm:$0xf]  ;;  %v10909_v59 = vor.u32 %v14690_v13, %v10906_v41  ;;  %8318 = vmatpush.bf16.msra.mxu1 %v10653_v50  ;;  %v8089_v50 = vpop.f32.mrf.mxu3 }
 0x50f   :  { %v11194_v49 = vld [vmem:[#allocation6 + $0xb30] sm:$0xf0] }
 0x510   :  { %v14826_v53 = vld [vmem:[#allocation6 + $0xd14] sm:$0xf]  ;;  %v11197_v51 = vor.u32 %v14762_v55, %v11194_v49  ;;  %8331 = vmatpush.bf16.msra.mxu2 %v10909_v59  ;;  %v8090_v59 = vadd.f32 %v8089_v50, %v8077_v25 }
 0x511   :  { %v11450_v58 = vld [vmem:[#allocation6 + $0xd30] sm:$0xf0] }
 0x512   :  { %v14618_v60 = vld [vmem:[#allocation6 + $0x694] sm:$0xf]  ;;  %v11453_v26 = vor.u32 %v14826_v53, %v11450_v58  ;;  %8343 = vmatpush.bf16.msra.mxu3 %v11197_v51 }
 0x513   :  { %v10618_v61 = vld [vmem:[#allocation6 + $0x6b0] sm:$0xf0] }
 0x514   :  { %v14682_v38 = vld [vmem:[#allocation6 + $0x894] sm:$0xf]  ;;  %v10621_v43 = vor.u32 %v14618_v60, %v10618_v61  ;;  %8356 = vmatpush.bf16.msrb.mxu0 %v11453_v26 }
 0x515   :  { %v10874_v4 = vld [vmem:[#allocation6 + $0x8b0] sm:$0xf0] }
 0x516   :  { %v14754_v30 = vld [vmem:[#allocation6 + $0xad4] sm:$0xf]  ;;  %v10877_v48 = vor.u32 %v14682_v38, %v10874_v4  ;;  %8319 = vmatpush.bf16.msra.mxu1 %v10621_v43 }
 0x517   :  { %v11162_v54 = vld [vmem:[#allocation6 + $0xaf0] sm:$0xf0] }
 0x518   :  { %v14818_v10 = vld [vmem:[#allocation6 + $0xcd4] sm:$0xf]  ;;  %v11165_v63 = vor.u32 %v14754_v30, %v11162_v54  ;;  %8332 = vmatpush.bf16.msra.mxu2 %v10877_v48  ;;  %v8078_v30 = vpop.f32.mrf.mxu2  ;;  %v8104_v54 = vpop.f32.mrf.mxu0 }
 0x519   :  { %v11418_v11 = vld [vmem:[#allocation6 + $0xcf0] sm:$0xf0] }
 0x51a   :  { %v14610_v16 = vld [vmem:[#allocation6 + $0x654] sm:$0xf]  ;;  %v11421_v35 = vor.u32 %v14818_v10, %v11418_v11  ;;  %8344 = vmatpush.bf16.msra.mxu3 %v11165_v63 }
 0x51b   :  { %v10586_v2 = vld [vmem:[#allocation6 + $0x670] sm:$0xf0] }
 0x51c   :  { %v14674_v24 = vld [vmem:[#allocation6 + $0x854] sm:$0xf]  ;;  %v10589_v42 = vor.u32 %v14610_v16, %v10586_v2  ;;  %8357 = vmatpush.bf16.msrb.mxu0 %v11421_v35  ;;  %v16044_v16 = vadd.f32 %v8102_v15, %v8090_v59 }
 0x51d   :  { %v10842_v12 = vld [vmem:[#allocation6 + $0x870] sm:$0xf0] }
 0x51e   :  { %v14746_v36 = vld [vmem:[#allocation6 + $0xa94] sm:$0xf]  ;;  %v10845_v31 = vor.u32 %v14674_v24, %v10842_v12  ;;  %8320 = vmatpush.bf16.msra.mxu1 %v10589_v42 }
 0x51f   :  { %v11130_v37 = vld [vmem:[#allocation6 + $0xab0] sm:$0xf0] }
 0x520   :  { %v14810_v9 = vld [vmem:[#allocation6 + $0xc94] sm:$0xf]  ;;  %v11133_v20 = vor.u32 %v14746_v36, %v11130_v37  ;;  %8333 = vmatpush.bf16.msra.mxu2 %v10845_v31 }
 0x521   :  { %v11386_v23 = vld [vmem:[#allocation6 + $0xcb0] sm:$0xf0] }
 0x522   :  { %v14602_v39 = vld [vmem:[#allocation6 + $0x614] sm:$0xf]  ;;  %v11389_v53 = vor.u32 %v14810_v9, %v11386_v23  ;;  %8345 = vmatpush.bf16.msra.mxu3 %v11133_v20 }
 0x523   :  { %v10554_v27 = vld [vmem:[#allocation6 + $0x630] sm:$0xf0] }
 0x524   :  { %v14666_v13 = vld [vmem:[#allocation6 + $0x814] sm:$0xf]  ;;  %v10557_v60 = vor.u32 %v14602_v39, %v10554_v27  ;;  %8358 = vmatpush.bf16.msrb.mxu0 %v11389_v53  ;;  %v8091_v39 = vpop.f32.mrf.mxu3 }
 0x525   :  { %v10810_v41 = vld [vmem:[#allocation6 + $0x830] sm:$0xf0] }
 0x526   :  { %v14914_v44 = vld [vmem:[#allocation6 + $0xfd4] sm:$0xf]  ;;  %v10813_v38 = vor.u32 %v14666_v13, %v10810_v41  ;;  %8321 = vmatpush.bf16.msra.mxu1 %v10557_v60 }
 0x527   :  { %v11802_v55 = vld [vmem:[#allocation6 + $0xff0] sm:$0xf0] }
 0x528   :  { %v14978_v49 = vld [vmem:[#allocation6 + $0x11d4] sm:$0xf]  ;;  %v11805_v4 = vor.u32 %v14914_v44, %v11802_v55  ;;  %8334 = vmatpush.bf16.msra.mxu2 %v10813_v38 }
 0x529   :  { %v12058_v58 = vld [vmem:[#allocation6 + $0x11f0] sm:$0xf0]  ;;  %8322 = vmatmul.bf16.vlgmr.msra.gmra.mxu1 %v15860_v28 }
 0x52a   :  { %v14738_v5 = vld [vmem:[#allocation6 + $0xa54] sm:$0xf]  ;;  %v12061_v43 = vor.u32 %v14978_v49, %v12058_v58  ;;  %8366 = vmatpush.bf16.msrb.mxu1 %v11805_v4 }
 0x52b   :  { %v11098_v46 = vld [vmem:[#allocation6 + $0xa70] sm:$0xf0]  ;;  %8335 = vmatmul.bf16.vlgmr.msra.gmra.mxu2 %v15866_v0 }
 0x52c   :  { %v14802_v61 = vld [vmem:[#allocation6 + $0xc54] sm:$0xf]  ;;  %v11101_v10 = vor.u32 %v14738_v5, %v11098_v46  ;;  %8379 = vmatpush.bf16.msrb.mxu2 %v12061_v43 }
 0x52d   :  { %v11354_v51 = vld [vmem:[#allocation6 + $0xc70] sm:$0xf0] }
 0x52e   :  { %v14906_v26 = vld [vmem:[#allocation6 + $0xf94] sm:$0xf]  ;;  %v11357_v2 = vor.u32 %v14802_v61, %v11354_v51  ;;  %8346 = vmatpush.bf16.msra.mxu3 %v11101_v10 }
 0x52f   :  { %v11770_v11 = vld [vmem:[#allocation6 + $0xfb0] sm:$0xf0] }
 0x530   :  { %v14970_v7 = vld [vmem:[#allocation6 + $0x1194] sm:$0xf]  ;;  %v11773_v35 = vor.u32 %v14906_v26, %v11770_v11  ;;  %8359 = vmatpush.bf16.msrb.mxu0 %v11357_v2 }
 0x531   :  { %v12026_v48 = vld [vmem:[#allocation6 + $0x11b0] sm:$0xf0] }
 0x532   :  { %v14730_v17 = vld [vmem:[#allocation6 + $0xa14] sm:$0xf]  ;;  %v12029_v42 = vor.u32 %v14970_v7, %v12026_v48  ;;  %8367 = vmatpush.bf16.msrb.mxu1 %v11773_v35 }
 0x533   :  { %v11066_v63 = vld [vmem:[#allocation6 + $0xa30] sm:$0xf0] }
 0x534   :  { %v14794_v24 = vld [vmem:[#allocation6 + $0xc14] sm:$0xf]  ;;  %v11069_v9 = vor.u32 %v14730_v17, %v11066_v63  ;;  %8380 = vmatpush.bf16.msrb.mxu2 %v12029_v42  ;;  %v8115_v17 = vpop.f32.mrf.mxu1 }
 0x535   :  { %v11322_v12 = vld [vmem:[#allocation6 + $0xc30] sm:$0xf0] }
 0x536   :  { %v15042_v25 = vld [vmem:[#allocation6 + $0x13d4] sm:$0xf]  ;;  %v11325_v31 = vor.u32 %v14794_v24, %v11322_v12  ;;  %8347 = vmatpush.bf16.msra.mxu3 %v11069_v9 }
 0x537   :  { %v12314_v33 = vld [vmem:[#allocation6 + $0x13f0] sm:$0xf0] }
 0x538   :  { %v15106_v36 = vld [vmem:[#allocation6 + $0x15d4] sm:$0xf]  ;;  %v12317_v27 = vor.u32 %v15042_v25, %v12314_v33  ;;  %8360 = vmatpush.bf16.msrb.mxu0 %v11325_v31  ;;  %v8116_v25 = vadd.f32 %v8115_v17, %v16044_v16 }
 0x539   :  { %v12570_v37 = vld [vmem:[#allocation6 + $0x15f0] sm:$0xf0]  ;;  %8348 = vmatmul.bf16.vlgmr.msra.gmra.mxu3 %v15869_v6 }
 0x53a   :  { %v14898_v15 = vld [vmem:[#allocation6 + $0xf54] sm:$0xf]  ;;  %v12573_v20 = vor.u32 %v15106_v36, %v12570_v37  ;;  %8392 = vmatpush.bf16.msrb.mxu3 %v12317_v27 }
 0x53b   :  { %v11738_v23 = vld [vmem:[#allocation6 + $0xf70] sm:$0xf0]  ;;  %8361 = vmatmul.bf16.vlgmr.msrb.gmra.mxu0 %v15875_v34 }
 0x53c   :  { %v14962_v13 = vld [vmem:[#allocation6 + $0x1154] sm:$0xf]  ;;  %v11741_v49 = vor.u32 %v14898_v15, %v11738_v23  ;;  %8405 = vmatpush.bf16.msra.mxu0 %v12573_v20 }
 0x53d   :  { %v11994_v41 = vld [vmem:[#allocation6 + $0x1170] sm:$0xf0] }
 0x53e   :  { %v15034_v44 = vld [vmem:[#allocation6 + $0x1394] sm:$0xf]  ;;  %v11997_v58 = vor.u32 %v14962_v13, %v11994_v41  ;;  %8368 = vmatpush.bf16.msrb.mxu1 %v11741_v49 }
 0x53f   :  { %v12282_v55 = vld [vmem:[#allocation6 + $0x13b0] sm:$0xf0] }
 0x540   :  { %v15098_v50 = vld [vmem:[#allocation6 + $0x1594] sm:$0xf]  ;;  %v12285_v59 = vor.u32 %v15034_v44, %v12282_v55  ;;  %8381 = vmatpush.bf16.msrb.mxu2 %v11997_v58 }
 0x541   :  { %v12538_v53 = vld [vmem:[#allocation6 + $0x15b0] sm:$0xf0] }
 0x542   :  { %v14890_v5 = vld [vmem:[#allocation6 + $0xf14] sm:$0xf]  ;;  %v12541_v51 = vor.u32 %v15098_v50, %v12538_v53  ;;  %8393 = vmatpush.bf16.msrb.mxu3 %v12285_v59  ;;  %v8128_v50 = vpop.f32.mrf.mxu2  ;;  %v8154_v53 = vpop.f32.mrf.mxu0 }
 0x543   :  { %v11706_v46 = vld [vmem:[#allocation6 + $0xf30] sm:$0xf0]  ;;  %v8129_v59 = vadd.f32 %v8128_v50, %v8116_v25 }
 0x544   :  { %v14954_v60 = vld [vmem:[#allocation6 + $0x1114] sm:$0xf]  ;;  %v11709_v26 = vor.u32 %v14890_v5, %v11706_v46  ;;  %8406 = vmatpush.bf16.msra.mxu0 %v12541_v51 }
 0x545   :  { %v11962_v61 = vld [vmem:[#allocation6 + $0x1130] sm:$0xf0] }
 0x546   :  { %v15026_v38 = vld [vmem:[#allocation6 + $0x1354] sm:$0xf]  ;;  %v11965_v43 = vor.u32 %v14954_v60, %v11962_v61  ;;  %8369 = vmatpush.bf16.msrb.mxu1 %v11709_v26  ;;  %v8117_v60 = vpop.f32.mrf.mxu1 }
 0x547   :  { %v12250_v4 = vld [vmem:[#allocation6 + $0x1370] sm:$0xf0] }
 0x548   :  { %v15090_v30 = vld [vmem:[#allocation6 + $0x1554] sm:$0xf]  ;;  %v12253_v7 = vor.u32 %v15026_v38, %v12250_v4  ;;  %8382 = vmatpush.bf16.msrb.mxu2 %v11965_v43 }
 0x549   :  { %v12506_v54 = vld [vmem:[#allocation6 + $0x1570] sm:$0xf0] }
 0x54a   :  { %v14882_v10 = vld [vmem:[#allocation6 + $0xed4] sm:$0xf]  ;;  %v12509_v63 = vor.u32 %v15090_v30, %v12506_v54  ;;  %8394 = vmatpush.bf16.msrb.mxu3 %v12253_v7 }
 0x54b   :  { %v11674_v11 = vld [vmem:[#allocation6 + $0xef0] sm:$0xf0] }
 0x54c   :  { %v14946_v48 = vld [vmem:[#allocation6 + $0x10d4] sm:$0xf]  ;;  %v11677_v33 = vor.u32 %v14882_v10, %v11674_v11  ;;  %8407 = vmatpush.bf16.msra.mxu0 %v12509_v63 }
 0x54d   :  { %v11930_v2 = vld [vmem:[#allocation6 + $0x10f0] sm:$0xf0] }
 0x54e   :  { %v15018_v24 = vld [vmem:[#allocation6 + $0x1314] sm:$0xf]  ;;  %v11933_v37 = vor.u32 %v14946_v48, %v11930_v2  ;;  %8370 = vmatpush.bf16.msrb.mxu1 %v11677_v33 }
 0x54f   :  { %v12218_v12 = vld [vmem:[#allocation6 + $0x1330] sm:$0xf0] }
 0x550   :  { %v15082_v35 = vld [vmem:[#allocation6 + $0x1514] sm:$0xf]  ;;  %v12221_v15 = vor.u32 %v15018_v24, %v12218_v12  ;;  %8383 = vmatpush.bf16.msrb.mxu2 %v11933_v37  ;;  %v8141_v24 = vpop.f32.mrf.mxu3 }
 0x551   :  { %v12474_v36 = vld [vmem:[#allocation6 + $0x1530] sm:$0xf0] }
 0x552   :  { %v14874_v42 = vld [vmem:[#allocation6 + $0xe94] sm:$0xf]  ;;  %v12477_v31 = vor.u32 %v15082_v35, %v12474_v36  ;;  %8395 = vmatpush.bf16.msrb.mxu3 %v12221_v15  ;;  %v8142_v36 = vadd.f32 %v8141_v24, %v8129_v59 }
 0x553   :  { %v11642_v9 = vld [vmem:[#allocation6 + $0xeb0] sm:$0xf0] }
 0x554   :  { %v14938_v23 = vld [vmem:[#allocation6 + $0x1094] sm:$0xf]  ;;  %v11645_v41 = vor.u32 %v14874_v42, %v11642_v9  ;;  %8408 = vmatpush.bf16.msra.mxu0 %v12477_v31  ;;  %v8130_v31 = vpop.f32.mrf.mxu2 }
 0x555   :  { %v11898_v39 = vld [vmem:[#allocation6 + $0x10b0] sm:$0xf0] }
 0x556   :  { %v15010_v27 = vld [vmem:[#allocation6 + $0x12d4] sm:$0xf]  ;;  %v11901_v44 = vor.u32 %v14938_v23, %v11898_v39  ;;  %8371 = vmatpush.bf16.msrb.mxu1 %v11645_v41 }
 0x557   :  { %v12186_v13 = vld [vmem:[#allocation6 + $0x12f0] sm:$0xf0] }
 0x558   :  { %v15074_v20 = vld [vmem:[#allocation6 + $0x14d4] sm:$0xf]  ;;  %v12189_v58 = vor.u32 %v15010_v27, %v12186_v13  ;;  %8384 = vmatpush.bf16.msrb.mxu2 %v11901_v44  ;;  %v8156_v27 = vpop.f32.mrf.mxu0 }
 0x559   :  { %v12442_v16 = vld [vmem:[#allocation6 + $0x14f0] sm:$0xf0] }
 0x55a   :  { %v14866_v55 = vld [vmem:[#allocation6 + $0xe54] sm:$0xf]  ;;  %v12445_v61 = vor.u32 %v15074_v20, %v12442_v16  ;;  %8396 = vmatpush.bf16.msrb.mxu3 %v12189_v58 }
 0x55b   :  { %v11610_v49 = vld [vmem:[#allocation6 + $0xe70] sm:$0xf0] }
 0x55c   :  { %v14930_v5 = vld [vmem:[#allocation6 + $0x1054] sm:$0xf]  ;;  %v11613_v4 = vor.u32 %v14866_v55, %v11610_v49  ;;  %8409 = vmatpush.bf16.msra.mxu0 %v12445_v61  ;;  %v16051_v55 = vadd.f32 %v8154_v53, %v8142_v36 }
 0x55d   :  { %v11866_v46 = vld [vmem:[#allocation6 + $0x1070] sm:$0xf0] }
 0x55e   :  { %v15002_v51 = vld [vmem:[#allocation6 + $0x1294] sm:$0xf]  ;;  %v11869_v43 = vor.u32 %v14930_v5, %v11866_v46  ;;  %8372 = vmatpush.bf16.msrb.mxu1 %v11613_v4 }
 0x55f   :  { %v12154_v38 = vld [vmem:[#allocation6 + $0x12b0] sm:$0xf0] }
 0x560   :  { %v15066_v26 = vld [vmem:[#allocation6 + $0x1494] sm:$0xf]  ;;  %v12157_v48 = vor.u32 %v15002_v51, %v12154_v38  ;;  %8385 = vmatpush.bf16.msrb.mxu2 %v11869_v43 }
 0x561   :  { %v12410_v30 = vld [vmem:[#allocation6 + $0x14b0] sm:$0xf0] }
 0x562   :  { %v14858_v54 = vld [vmem:[#allocation6 + $0xe14] sm:$0xf]  ;;  %v12413_v12 = vor.u32 %v15066_v26, %v12410_v30  ;;  %8397 = vmatpush.bf16.msrb.mxu3 %v12157_v48 }
 0x563   :  { %v11578_v10 = vld [vmem:[#allocation6 + $0xe30] sm:$0xf0] }
 0x564   :  { %v14922_v11 = vld [vmem:[#allocation6 + $0x1014] sm:$0xf]  ;;  %v11581_v37 = vor.u32 %v14858_v54, %v11578_v10  ;;  %8410 = vmatpush.bf16.msra.mxu0 %v12413_v12  ;;  %v8143_v54 = vpop.f32.mrf.mxu3 }
 0x565   :  { %v11834_v7 = vld [vmem:[#allocation6 + $0x1030] sm:$0xf0] }
 0x566   :  { %v15170_v2 = vld [vmem:[#allocation6 + $0x17d4] sm:$0xf]  ;;  %v11837_v15 = vor.u32 %v14922_v11, %v11834_v7  ;;  %8373 = vmatpush.bf16.msrb.mxu1 %v11581_v37 }
 0x567   :  { %v12826_v17 = vld [vmem:[#allocation6 + $0x17f0] sm:$0xf0] }
 0x568   :  { %v15234_v63 = vld [vmem:[#allocation6 + $0x19d4] sm:$0xf]  ;;  %v12829_v23 = vor.u32 %v15170_v2, %v12826_v17  ;;  %8386 = vmatpush.bf16.msrb.mxu2 %v11837_v15 }
 0x569   :  { %v13082_v25 = vld [vmem:[#allocation6 + $0x19f0] sm:$0xf0]  ;;  %8374 = vmatmul.bf16.vlgmr.msrb.gmra.mxu1 %v15879_v40 }
 0x56a   :  { %v14994_v33 = vld [vmem:[#allocation6 + $0x1254] sm:$0xf]  ;;  %v13085_v13 = vor.u32 %v15234_v63, %v13082_v25  ;;  %8418 = vmatpush.bf16.msra.mxu1 %v12829_v23 }
 0x56b   :  { %v12122_v35 = vld [vmem:[#allocation6 + $0x1270] sm:$0xf0]  ;;  %8387 = vmatmul.bf16.vlgmr.msrb.gmra.mxu2 %v15884_v22 }
 0x56c   :  { %v15058_v42 = vld [vmem:[#allocation6 + $0x1454] sm:$0xf]  ;;  %v12125_v41 = vor.u32 %v14994_v33, %v12122_v35  ;;  %8431 = vmatpush.bf16.msra.mxu2 %v13085_v13 }
 0x56d   :  { %v12378_v9 = vld [vmem:[#allocation6 + $0x1470] sm:$0xf0] }
 0x56e   :  { %v15162_v39 = vld [vmem:[#allocation6 + $0x1794] sm:$0xf]  ;;  %v12381_v49 = vor.u32 %v15058_v42, %v12378_v9  ;;  %8398 = vmatpush.bf16.msrb.mxu3 %v12125_v41 }
 0x56f   :  { %v12794_v20 = vld [vmem:[#allocation6 + $0x17b0] sm:$0xf0] }
 0x570   :  { %v15226_v16 = vld [vmem:[#allocation6 + $0x1994] sm:$0xf]  ;;  %v12797_v61 = vor.u32 %v15162_v39, %v12794_v20  ;;  %8411 = vmatpush.bf16.msra.mxu0 %v12381_v49 }
 0x571   :  { %v13050_v44 = vld [vmem:[#allocation6 + $0x19b0] sm:$0xf0] }
 0x572   :  { %v14986_v50 = vld [vmem:[#allocation6 + $0x1214] sm:$0xf]  ;;  %v13053_v4 = vor.u32 %v15226_v16, %v13050_v44  ;;  %8419 = vmatpush.bf16.msra.mxu1 %v12797_v61 }
 0x573   :  { %v12090_v58 = vld [vmem:[#allocation6 + $0x1230] sm:$0xf0] }
 0x574   :  { %v15050_v5 = vld [vmem:[#allocation6 + $0x1414] sm:$0xf]  ;;  %v12093_v26 = vor.u32 %v14986_v50, %v12090_v58  ;;  %8432 = vmatpush.bf16.msra.mxu2 %v13053_v4  ;;  %v8167_v50 = vpop.f32.mrf.mxu1 }
 0x575   :  { %v12346_v46 = vld [vmem:[#allocation6 + $0x1430] sm:$0xf0] }
 0x576   :  { %v15298_v59 = vld [vmem:[#allocation6 + $0x1bd4] sm:$0xf]  ;;  %v12349_v43 = vor.u32 %v15050_v5, %v12346_v46  ;;  %8399 = vmatpush.bf16.msrb.mxu3 %v12093_v26 }
 0x577   :  { %v13338_v60 = vld [vmem:[#allocation6 + $0x1bf0] sm:$0xf0] }
 0x578   :  { %v15362_v51 = vld [vmem:[#allocation6 + $0x1dd4] sm:$0xf]  ;;  %v13341_v10 = vor.u32 %v15298_v59, %v13338_v60  ;;  %8412 = vmatpush.bf16.msra.mxu0 %v12349_v43  ;;  %v8168_v59 = vadd.f32 %v8167_v50, %v16051_v55 }
 0x579   :  { %v13594_v38 = vld [vmem:[#allocation6 + $0x1df0] sm:$0xf0]  ;;  %8400 = vmatmul.bf16.vlgmr.msrb.gmra.mxu3 %v15887_v29 }
 0x57a   :  { %v15154_v53 = vld [vmem:[#allocation6 + $0x1754] sm:$0xf]  ;;  %v13597_v48 = vor.u32 %v15362_v51, %v13594_v38  ;;  %8444 = vmatpush.bf16.msra.mxu3 %v13341_v10 }
 0x57b   :  { %v12762_v30 = vld [vmem:[#allocation6 + $0x1770] sm:$0xf0]  ;;  %8413 = vmatmul.bf16.vlgmr.msra.gmra.mxu0 %v15891_v1 }
 0x57c   :  { %v15218_v11 = vld [vmem:[#allocation6 + $0x1954] sm:$0xf]  ;;  %v12765_v63 = vor.u32 %v15154_v53, %v12762_v30  ;;  %8457 = vmatpush.bf16.msrb.mxu0 %v13597_v48 }
 0x57d   :  { %v13018_v7 = vld [vmem:[#allocation6 + $0x1970] sm:$0xf0] }
 0x57e   :  { %v15290_v2 = vld [vmem:[#allocation6 + $0x1b94] sm:$0xf]  ;;  %v13021_v25 = vor.u32 %v15218_v11, %v13018_v7  ;;  %8420 = vmatpush.bf16.msra.mxu1 %v12765_v63 }
 0x57f   :  { %v13306_v17 = vld [vmem:[#allocation6 + $0x1bb0] sm:$0xf0] }
 0x580   :  { %v15354_v24 = vld [vmem:[#allocation6 + $0x1d94] sm:$0xf]  ;;  %v13309_v36 = vor.u32 %v15290_v2, %v13306_v17  ;;  %8433 = vmatpush.bf16.msra.mxu2 %v13021_v25 }
 0x581   :  { %v13562_v12 = vld [vmem:[#allocation6 + $0x1db0] sm:$0xf0] }
 0x582   :  { %v15146_v33 = vld [vmem:[#allocation6 + $0x1714] sm:$0xf]  ;;  %v13565_v9 = vor.u32 %v15354_v24, %v13562_v12  ;;  %8445 = vmatpush.bf16.msra.mxu3 %v13309_v36  ;;  %v8180_v24 = vpop.f32.mrf.mxu2  ;;  %v8206_v12 = vpop.f32.mrf.mxu0 }
 0x583   :  { %v12730_v35 = vld [vmem:[#allocation6 + $0x1730] sm:$0xf0]  ;;  %v8181_v36 = vadd.f32 %v8180_v24, %v8168_v59 }
 0x584   :  { %v15210_v37 = vld [vmem:[#allocation6 + $0x1914] sm:$0xf]  ;;  %v12733_v39 = vor.u32 %v15146_v33, %v12730_v35  ;;  %8458 = vmatpush.bf16.msrb.mxu0 %v13565_v9 }
 0x585   :  { %v12986_v42 = vld [vmem:[#allocation6 + $0x1930] sm:$0xf0] }
 0x586   :  { %v15282_v15 = vld [vmem:[#allocation6 + $0x1b54] sm:$0xf]  ;;  %v12989_v13 = vor.u32 %v15210_v37, %v12986_v42  ;;  %8421 = vmatpush.bf16.msra.mxu1 %v12733_v39  ;;  %v8169_v37 = vpop.f32.mrf.mxu1 }
 0x587   :  { %v13274_v23 = vld [vmem:[#allocation6 + $0x1b70] sm:$0xf0]  ;;  %v14471_v37 = vld [vmem:[#allocation6 + $0x1f4] sm:$0xf0] }
 0x588   :  { %v15346_v31 = vld [vmem:[#allocation6 + $0x1d54] sm:$0xf]  ;;  %v13277_v16 = vor.u32 %v15282_v15, %v13274_v23  ;;  %8434 = vmatpush.bf16.msra.mxu2 %v12989_v13 }
 0x589   :  { %v13530_v27 = vld [vmem:[#allocation6 + $0x1d70] sm:$0xf0] }
 0x58a   :  { %v15138_v41 = vld [vmem:[#allocation6 + $0x16d4] sm:$0xf]  ;;  %v13533_v58 = vor.u32 %v15346_v31, %v13530_v27  ;;  %8446 = vmatpush.bf16.msra.mxu3 %v13277_v16 }
 0x58b   :  { %v12698_v20 = vld [vmem:[#allocation6 + $0x16f0] sm:$0xf0] }
 0x58c   :  { %v15202_v44 = vld [vmem:[#allocation6 + $0x18d4] sm:$0xf]  ;;  %v12701_v60 = vor.u32 %v15138_v41, %v12698_v20  ;;  %8459 = vmatpush.bf16.msrb.mxu0 %v13533_v58 }
 0x58d   :  { %v12954_v49 = vld [vmem:[#allocation6 + $0x18f0] sm:$0xf0] }
 0x58e   :  { %v15274_v5 = vld [vmem:[#allocation6 + $0x1b14] sm:$0xf]  ;;  %v12957_v38 = vor.u32 %v15202_v44, %v12954_v49  ;;  %8422 = vmatpush.bf16.msra.mxu1 %v12701_v60 }
 0x58f   :  { %v13242_v46 = vld [vmem:[#allocation6 + $0x1b30] sm:$0xf0] }
 0x590   :  { %v15338_v61 = vld [vmem:[#allocation6 + $0x1d14] sm:$0xf]  ;;  %v13245_v53 = vor.u32 %v15274_v5, %v13242_v46  ;;  %8435 = vmatpush.bf16.msra.mxu2 %v12957_v38  ;;  %v8193_v5 = vpop.f32.mrf.mxu3 }
 0x591   :  { %v13498_v51 = vld [vmem:[#allocation6 + $0x1d30] sm:$0xf0] }
 0x592   :  { %v15130_v4 = vld [vmem:[#allocation6 + $0x1694] sm:$0xf]  ;;  %v13501_v43 = vor.u32 %v15338_v61, %v13498_v51  ;;  %8447 = vmatpush.bf16.msra.mxu3 %v13245_v53  ;;  %v8194_v51 = vadd.f32 %v8193_v5, %v8181_v36  ;;  %v10016_v36 = vld [vmem:[#allocation6 + $0x1d8] sm:$0xf] }
 0x593   :  { %v12666_v26 = vld [vmem:[#allocation6 + $0x16b0] sm:$0xf0]  ;;  %v10240_v5 = vld [vmem:[#allocation6 + $0x398] sm:$0xf] }
 0x594   :  { %v15194_v30 = vld [vmem:[#allocation6 + $0x1894] sm:$0xf]  ;;  %v12669_v7 = vor.u32 %v15130_v4, %v12666_v26  ;;  %8460 = vmatpush.bf16.msrb.mxu0 %v13501_v43  ;;  %v8182_v43 = vpop.f32.mrf.mxu2 }
 0x595   :  { %v12922_v54 = vld [vmem:[#allocation6 + $0x18b0] sm:$0xf0]  ;;  %v10208_v43 = vld [vmem:[#allocation6 + $0x358] sm:$0xf] }
 0x596   :  { %v15266_v10 = vld [vmem:[#allocation6 + $0x1ad4] sm:$0xf]  ;;  %v12925_v2 = vor.u32 %v15194_v30, %v12922_v54  ;;  %8423 = vmatpush.bf16.msra.mxu1 %v12669_v7 }
 0x597   :  { %v13210_v11 = vld [vmem:[#allocation6 + $0x1af0] sm:$0xf0] }
 0x598   :  { %v15330_v48 = vld [vmem:[#allocation6 + $0x1cd4] sm:$0xf]  ;;  %v13213_v25 = vor.u32 %v15266_v10, %v13210_v11  ;;  %8436 = vmatpush.bf16.msra.mxu2 %v12925_v2  ;;  %v8208_v10 = vpop.f32.mrf.mxu0 }
 0x599   :  { %v13466_v55 = vld [vmem:[#allocation6 + $0x1cf0] sm:$0xf0]  ;;  %v14519_v10 = vld [vmem:[#allocation6 + $0x374] sm:$0xf0] }
 0x59a   :  { %v15122_v17 = vld [vmem:[#allocation6 + $0x1654] sm:$0xf]  ;;  %v13469_v42 = vor.u32 %v15330_v48, %v13466_v55  ;;  %8448 = vmatpush.bf16.msra.mxu3 %v13213_v25 }
 0x59b   :  { %v12634_v63 = vld [vmem:[#allocation6 + $0x1670] sm:$0xf0] }
 0x59c   :  { %v15186_v33 = vld [vmem:[#allocation6 + $0x1854] sm:$0xf]  ;;  %v12637_v23 = vor.u32 %v15122_v17, %v12634_v63  ;;  %8461 = vmatpush.bf16.msrb.mxu0 %v13469_v42  ;;  %v16058_v17 = vadd.f32 %v8206_v12, %v8194_v51 }
 0x59d   :  { %v12890_v35 = vld [vmem:[#allocation6 + $0x1870] sm:$0xf0] }
 0x59e   :  { %v15258_v9 = vld [vmem:[#allocation6 + $0x1a94] sm:$0xf]  ;;  %v12893_v13 = vor.u32 %v15186_v33, %v12890_v35  ;;  %8424 = vmatpush.bf16.msra.mxu1 %v12637_v23 }
 0x59f   :  { %v13178_v15 = vld [vmem:[#allocation6 + $0x1ab0] sm:$0xf0] }
 0x5a0   :  { %v15322_v39 = vld [vmem:[#allocation6 + $0x1c94] sm:$0xf]  ;;  %v13181_v44 = vor.u32 %v15258_v9, %v13178_v15  ;;  %8437 = vmatpush.bf16.msra.mxu2 %v12893_v13  ;;  %v10272_v9 = vld [vmem:[#allocation6 + $0x3d8] sm:$0xf] }
 0x5a1   :  { %v13434_v31 = vld [vmem:[#allocation6 + $0x1cb0] sm:$0xf0]  ;;  %v14535_v15 = vld [vmem:[#allocation6 + $0x3f4] sm:$0xf0] }
 0x5a2   :  { %v15114_v27 = vld [vmem:[#allocation6 + $0x1614] sm:$0xf]  ;;  %v13437_v46 = vor.u32 %v15322_v39, %v13434_v31  ;;  %8449 = vmatpush.bf16.msra.mxu3 %v13181_v44  ;;  %v10273_v44 = vor.u32 %v14535_v15, %v10272_v9  ;;  %v14511_v9 = vld [vmem:[#allocation6 + $0x334] sm:$0xf0] }
 0x5a3   :  { %v12602_v41 = vld [vmem:[#allocation6 + $0x1630] sm:$0xf0] }
 0x5a4   :  { %v15178_v20 = vld [vmem:[#allocation6 + $0x1814] sm:$0xf]  ;;  %v12605_v38 = vor.u32 %v15114_v27, %v12602_v41  ;;  %8462 = vmatpush.bf16.msrb.mxu0 %v13437_v46  ;;  %v8195_v27 = vpop.f32.mrf.mxu3  ;;  %v10017_v41 = vor.u32 %v14471_v37, %v10016_v36  ;;  %v14527_v46 = vld [vmem:[#allocation6 + $0x3b4] sm:$0xf0] }
 0x5a5   :  { %v12858_v16 = vld [vmem:[#allocation6 + $0x1830] sm:$0xf0] }
 0x5a6   :  { %v15426_v49 = vld [vmem:[#allocation6 + $0x1fd4] sm:$0xf]  ;;  %v12861_v53 = vor.u32 %v15178_v20, %v12858_v16  ;;  %8425 = vmatpush.bf16.msra.mxu1 %v12605_v38 }
 0x5a7   :  { %v13850_v50 = vld [vmem:[#allocation6 + $0x1ff0] sm:$0xf0] }
 0x5a8   :  { %v15490_v58 = vld [vmem:[#allocation6 + $0x21d4] sm:$0xf]  ;;  %v13853_v30 = vor.u32 %v15426_v49, %v13850_v50  ;;  %8438 = vmatpush.bf16.msra.mxu2 %v12861_v53  ;;  %v9984_v49 = vld [vmem:[#allocation6 + $0x198] sm:$0xf] }
 0x5a9   :  { %v14106_v59 = vld [vmem:[#allocation6 + $0x21f0] sm:$0xf0]  ;;  %8426 = vmatmul.bf16.vlgmr.msra.gmra.mxu1 %v15893_v3  ;;  %v14463_v50 = vld [vmem:[#allocation6 + $0x1b4] sm:$0xf0] }
 0x5aa   :  { %v15250_v60 = vld [vmem:[#allocation6 + $0x1a54] sm:$0xf]  ;;  %v14109_v11 = vor.u32 %v15490_v58, %v14106_v59  ;;  %8470 = vmatpush.bf16.msrb.mxu1 %v13853_v30  ;;  %v9985_v51 = vor.u32 %v14463_v50, %v9984_v49  ;;  %v9952_v53 = vld [vmem:[#allocation6 + $0x158] sm:$0xf] }
 0x5ab   :  { %v13146_v61 = vld [vmem:[#allocation6 + $0x1a70] sm:$0xf0]  ;;  %8439 = vmatmul.bf16.vlgmr.msra.gmra.mxu2 %v15903_v47  ;;  %v14455_v30 = vld [vmem:[#allocation6 + $0x174] sm:$0xf0] }
 0x5ac   :  { %v15314_v4 = vld [vmem:[#allocation6 + $0x1c54] sm:$0xf]  ;;  %v13149_v7 = vor.u32 %v15250_v60, %v13146_v61  ;;  %8483 = vmatpush.bf16.msrb.mxu2 %v14109_v11 }
 0x5ad   :  { %v13402_v26 = vld [vmem:[#allocation6 + $0x1c70] sm:$0xf0] }
 0x5ae   :  { %v15418_v54 = vld [vmem:[#allocation6 + $0x1f94] sm:$0xf]  ;;  %v13405_v63 = vor.u32 %v15314_v4, %v13402_v26  ;;  %8450 = vmatpush.bf16.msra.mxu3 %v13149_v7  ;;  %v10241_v26 = vor.u32 %v14527_v46, %v10240_v5  ;;  %v8232_v5 = vpop.f32.mrf.mxu2  ;;  %v8258_v46 = vpop.f32.mrf.mxu0 }
 0x5af   :  { %v13818_v48 = vld [vmem:[#allocation6 + $0x1fb0] sm:$0xf0] }
 0x5b0   :  { %v15482_v55 = vld [vmem:[#allocation6 + $0x2194] sm:$0xf]  ;;  %v13821_v42 = vor.u32 %v15418_v54, %v13818_v48  ;;  %8463 = vmatpush.bf16.msrb.mxu0 %v13405_v63 }
 0x5b1   :  { %v14074_v2 = vld [vmem:[#allocation6 + $0x21b0] sm:$0xf0] }
 0x5b2   :  { %v15242_v24 = vld [vmem:[#allocation6 + $0x1a14] sm:$0xf]  ;;  %v14077_v23 = vor.u32 %v15482_v55, %v14074_v2  ;;  %8471 = vmatpush.bf16.msrb.mxu1 %v13821_v42  ;;  %v9953_v55 = vor.u32 %v14455_v30, %v9952_v53  ;;  %v10176_v42 = vld [vmem:[#allocation6 + $0x318] sm:$0xf] }
 0x5b3   :  { %v13114_v25 = vld [vmem:[#allocation6 + $0x1a30] sm:$0xf0]  ;;  %v14431_v53 = vld [vmem:[#allocation6 + $0xb4] sm:$0xf0] }
 0x5b4   :  { %v15306_v33 = vld [vmem:[#allocation6 + $0x1c14] sm:$0xf]  ;;  %v13117_v39 = vor.u32 %v15242_v24, %v13114_v25  ;;  %8484 = vmatpush.bf16.msrb.mxu2 %v14077_v23  ;;  %v8219_v24 = vpop.f32.mrf.mxu1  ;;  %v10209_v25 = vor.u32 %v14519_v10, %v10208_v43  ;;  %v14495_v43 = vld [vmem:[#allocation6 + $0x2b4] sm:$0xf0] }
 0x5b5   :  { %v13370_v35 = vld [vmem:[#allocation6 + $0x1c30] sm:$0xf0]  ;;  %v8220_v36 = vadd.f32 %v8219_v24, %v16058_v17  ;;  %v14503_v17 = vld [vmem:[#allocation6 + $0x2f4] sm:$0xf0] }
 0x5b6   :  { %v15410_v12 = vld [vmem:[#allocation6 + $0x1f54] sm:$0xf]  ;;  %v13373_v13 = vor.u32 %v15306_v33, %v13370_v35  ;;  %8451 = vmatpush.bf16.msra.mxu3 %v13117_v39  ;;  %v9920_v33 = vld [vmem:[#allocation6 + $0x118] sm:$0xf] }
 0x5b7   :  { %v13786_v31 = vld [vmem:[#allocation6 + $0x1f70] sm:$0xf0]  ;;  %v14447_v35 = vld [vmem:[#allocation6 + $0x134] sm:$0xf0] }
 0x5b8   :  { %v15474_v20 = vld [vmem:[#allocation6 + $0x2154] sm:$0xf]  ;;  %v13789_v58 = vor.u32 %v15410_v12, %v13786_v31  ;;  %8464 = vmatpush.bf16.msrb.mxu0 %v13373_v13  ;;  %v9921_v12 = vor.u32 %v14447_v35, %v9920_v33  ;;  %v10177_v13 = vor.u32 %v14511_v9, %v10176_v42  ;;  %v14599_v24 = vld [vmem:[#allocation6 + $0x5f4] sm:$0xf0]  ;;  %v8245_v33 = vpop.f32.mrf.mxu3 }
 0x5b9   :  { %v14042_v16 = vld [vmem:[#allocation6 + $0x2170] sm:$0xf0]  ;;  %8452 = vmatmul.bf16.vlgmr.msra.gmra.mxu3 %v15905_v52  ;;  %v14423_v42 = vld [vmem:[#allocation6 + $0x74] sm:$0xf0] }
 0x5ba   :  { %v14045_v59 = vor.u32 %v15474_v20, %v14042_v16  ;;  %v15402_v60 = vld [vmem:[#allocation6 + $0x1f14] sm:$0xf]  ;;  %8496 = vmatpush.bf16.msrb.mxu3 %v10017_v41  ;;  %8472 = vmatpush.bf16.msrb.mxu1 %v13789_v58  ;;  %v9888_v41 = vld [vmem:[#allocation6 + $0xd8] sm:$0xf] }
 0x5bb   :  { %v13754_v61 = vld [vmem:[#allocation6 + $0x1f30] sm:$0xf0]  ;;  %8465 = vmatmul.bf16.vlgmr.msrb.gmra.mxu0 %v15909_v14  ;;  %v14439_v20 = vld [vmem:[#allocation6 + $0xf4] sm:$0xf0] }
 0x5bc   :  { %v15466_v38 = vld [vmem:[#allocation6 + $0x2114] sm:$0xf]  ;;  %8509 = vmatpush.bf16.msra.mxu0 %v10273_v44  ;;  %v13757_v54 = vor.u32 %v15402_v60, %v13754_v61  ;;  %8485 = vmatpush.bf16.msrb.mxu2 %v14045_v59  ;;  %v10144_v44 = vld [vmem:[#allocation6 + $0x2d8] sm:$0xf]  ;;  %v9889_v59 = vor.u32 %v14439_v20, %v9888_v41  ;;  %v8260_v41 = vpop.f32.mrf.mxu0 }
 0x5bd   :  { %v14010_v4 = vld [vmem:[#allocation6 + $0x2130] sm:$0xf0]  ;;  %v14775_v41 = vld [vmem:[#allocation6 + $0xb74] sm:$0xf0] }
 0x5be   :  { %v14013_v11 = vor.u32 %v15466_v38, %v14010_v4  ;;  %v15394_v7 = vld [vmem:[#allocation6 + $0x1ed4] sm:$0xf]  ;;  %8497 = vmatpush.bf16.msrb.mxu3 %v9985_v51  ;;  %8473 = vmatpush.bf16.msrb.mxu1 %v13757_v54  ;;  %v8233_v51 = vadd.f32 %v8232_v5, %v8220_v36  ;;  %v8221_v38 = vpop.f32.mrf.mxu1  ;;  %v10145_v4 = vor.u32 %v14503_v17, %v10144_v44  ;;  %v10112_v54 = vld [vmem:[#allocation6 + $0x298] sm:$0xf] }
 0x5bf   :  { %v13722_v48 = vld [vmem:[#allocation6 + $0x1ef0] sm:$0xf0]  ;;  %v10113_v35 = vor.u32 %v14495_v43, %v10112_v54  ;;  %v14663_v36 = vld [vmem:[#allocation6 + $0x7f4] sm:$0xf0] }
 0x5c0   :  { %v15458_v2 = vld [vmem:[#allocation6 + $0x20d4] sm:$0xf]  ;;  %8510 = vmatpush.bf16.msra.mxu0 %v10241_v26  ;;  %v13725_v37 = vor.u32 %v15394_v7, %v13722_v48  ;;  %8486 = vmatpush.bf16.msrb.mxu2 %v14013_v11  ;;  %v9856_v26 = vld [vmem:[#allocation6 + $0x98] sm:$0xf]  ;;  %v8246_v9 = vadd.f32 %v8245_v33, %v8233_v51 }
 0x5c1   :  { %v13978_v63 = vld [vmem:[#allocation6 + $0x20f0] sm:$0xf0]  ;;  %v14591_v44 = vld [vmem:[#allocation6 + $0x5b4] sm:$0xf0] }
 0x5c2   :  { %v13981_v15 = vor.u32 %v15458_v2, %v13978_v63  ;;  %v15386_v23 = vld [vmem:[#allocation6 + $0x1e94] sm:$0xf]  ;;  %8498 = vmatpush.bf16.msrb.mxu3 %v9953_v55  ;;  %8474 = vmatpush.bf16.msrb.mxu1 %v13725_v37  ;;  %v9857_v2 = vor.u32 %v14431_v53, %v9856_v26  ;;  %v10528_v63 = vld [vmem:[#allocation6 + $0x5d8] sm:$0xf] }
 0x5c3   :  { %v13690_v39 = vld [vmem:[#allocation6 + $0x1eb0] sm:$0xf0]  ;;  %v9824_v37 = vld [vmem:[#allocation6 + $0x58] sm:$0xf] }
 0x5c4   :  { %v15450_v31 = vld [vmem:[#allocation6 + $0x2094] sm:$0xf]  ;;  %8511 = vmatpush.bf16.msra.mxu0 %v10209_v25  ;;  %v13693_v16 = vor.u32 %v15386_v23, %v13690_v39  ;;  %8487 = vmatpush.bf16.msrb.mxu2 %v13981_v15  ;;  %v10784_v25 = vld [vmem:[#allocation6 + $0x7d8] sm:$0xf] }
 0x5c5   :  { %v13946_v27 = vld [vmem:[#allocation6 + $0x20b0] sm:$0xf0]  ;;  %v10080_v23 = vld [vmem:[#allocation6 + $0x258] sm:$0xf]  ;;  %v10785_v20 = vor.u32 %v14663_v36, %v10784_v25 }
 0x5c6   :  { %v13949_v49 = vor.u32 %v15450_v31, %v13946_v27  ;;  %v15378_v50 = vld [vmem:[#allocation6 + $0x1e54] sm:$0xf]  ;;  %8499 = vmatpush.bf16.msrb.mxu3 %v9921_v12  ;;  %8475 = vmatpush.bf16.msrb.mxu1 %v13693_v16  ;;  %v14487_v39 = vld [vmem:[#allocation6 + $0x274] sm:$0xf0]  ;;  %v10529_v31 = vor.u32 %v14599_v24, %v10528_v63  ;;  %v9825_v16 = vor.u32 %v14423_v42, %v9824_v37 }
 0x5c7   :  { %v13658_v58 = vld [vmem:[#allocation6 + $0x1e70] sm:$0xf0]  ;;  %v10496_v27 = vld [vmem:[#allocation6 + $0x598] sm:$0xf] }
 0x5c8   :  { %v15442_v60 = vld [vmem:[#allocation6 + $0x2054] sm:$0xf]  ;;  %8512 = vmatpush.bf16.msra.mxu0 %v10177_v13  ;;  %v13661_v30 = vor.u32 %v15378_v50, %v13658_v58  ;;  %8488 = vmatpush.bf16.msrb.mxu2 %v13949_v49  ;;  %v8234_v13 = vpop.f32.mrf.mxu2  ;;  %v10752_v17 = vld [vmem:[#allocation6 + $0x798] sm:$0xf]  ;;  %v16065_v50 = vadd.f32 %v8258_v46, %v8246_v9  ;;  %v10081_v58 = vor.u32 %v14487_v39, %v10080_v23 }
 0x5c9   :  { %v13914_v61 = vld [vmem:[#allocation6 + $0x2070] sm:$0xf0]  ;;  %v14655_v49 = vld [vmem:[#allocation6 + $0x7b4] sm:$0xf0] }
 0x5ca   :  { %v15370_v10 = vld [vmem:[#allocation6 + $0x1e14] sm:$0xf]  ;;  %v13917_v11 = vor.u32 %v15442_v60, %v13914_v61  ;;  %8500 = vmatpush.bf16.msrb.mxu3 %v9889_v59  ;;  %8476 = vmatpush.bf16.msrb.mxu1 %v13661_v30  ;;  %v9792_v5 = vld [vmem:[#allocation6 + $0x18] sm:$0xf]  ;;  %v10753_v30 = vor.u32 %v14655_v49, %v10752_v17 }
 0x5cb   :  { %v13626_v7 = vld [vmem:[#allocation6 + $0x1e30] sm:$0xf0]  ;;  %v14415_v59 = vld [vmem:[#allocation6 + $0x34] sm:$0xf0] }
 0x5cc   :  { %v15434_v48 = vld [vmem:[#allocation6 + $0x2014] sm:$0xf]  ;;  %8513 = vmatpush.bf16.msra.mxu0 %v10145_v4  ;;  %v13629_v15 = vor.u32 %v15370_v10, %v13626_v7  ;;  %8489 = vmatpush.bf16.msrb.mxu2 %v13917_v11  ;;  %v10048_v60 = vld [vmem:[#allocation6 + $0x218] sm:$0xf]  ;;  %v10497_v4 = vor.u32 %v14591_v44, %v10496_v27  ;;  %v9793_v54 = vor.u32 %v14415_v59, %v9792_v5  ;;  %v8247_v10 = vpop.f32.mrf.mxu3  ;;  %v8271_v5 = vpop.f32.mrf.mxu1 }
 0x5cd   :  { %v13882_v55 = vld [vmem:[#allocation6 + $0x2030] sm:$0xf0]  ;;  %v14479_v61 = vld [vmem:[#allocation6 + $0x234] sm:$0xf0] }
 0x5ce   :  { %v13885_v12 = vor.u32 %v15434_v48, %v13882_v55  ;;  %8501 = vmatpush.bf16.msrb.mxu3 %v9857_v2  ;;  %8477 = vmatpush.bf16.msrb.mxu1 %v13629_v15  ;;  %v11040_v51 = vld [vmem:[#allocation6 + $0x9d8] sm:$0xf]  ;;  %v10049_v11 = vor.u32 %v14479_v61, %v10048_v60 }
 0x5cf   :  { %v14727_v38 = vld [vmem:[#allocation6 + $0x9f4] sm:$0xf0] }
 0x5d0   :  { %8514 = vmatpush.bf16.msra.mxu0 %v10113_v35  ;;  %8490 = vmatpush.bf16.msrb.mxu2 %v13885_v12  ;;  %v11296_v26 = vld [vmem:[#allocation6 + $0xbd8] sm:$0xf]  ;;  %v11041_v7 = vor.u32 %v14727_v38, %v11040_v51  ;;  %v16072_v51 = vadd.f32 %v8271_v5, %v16065_v50 }
 0x5d1   :  { %v14791_v53 = vld [vmem:[#allocation6 + $0xbf4] sm:$0xf0]  ;;  %8478 = vmatmul.bf16.vlgmr.msrb.gmra.mxu1 %v15911_v18 }
 0x5d2   :  { %8522 = vmatpush.bf16.msra.mxu1 %v10529_v31  ;;  %8502 = vmatpush.bf16.msrb.mxu3 %v9825_v16  ;;  %v10464_v46 = vld [vmem:[#allocation6 + $0x558] sm:$0xf]  ;;  %v11297_v2 = vor.u32 %v14791_v53, %v11296_v26 }
 0x5d3   :  { %v14583_v43 = vld [vmem:[#allocation6 + $0x574] sm:$0xf0]  ;;  %8491 = vmatmul.bf16.vlgmr.msrb.gmra.mxu2 %v15916_v56 }
 0x5d4   :  { %8535 = vmatpush.bf16.msra.mxu2 %v10785_v20  ;;  %8515 = vmatpush.bf16.msra.mxu0 %v10081_v58  ;;  %v10720_v48 = vld [vmem:[#allocation6 + $0x758] sm:$0xf]  ;;  %v10465_v25 = vor.u32 %v14583_v43, %v10464_v46 }
 0x5d5   :  { %v14647_v55 = vld [vmem:[#allocation6 + $0x774] sm:$0xf0] }
 0x5d6   :  { %v11008_v63 = vld [vmem:[#allocation6 + $0x998] sm:$0xf]  ;;  %8523 = vmatpush.bf16.msra.mxu1 %v10497_v4  ;;  %8503 = vmatpush.bf16.msrb.mxu3 %v9793_v54  ;;  %v10721_v36 = vor.u32 %v14647_v55, %v10720_v48 }
 0x5d7   :  { %v14719_v24 = vld [vmem:[#allocation6 + $0x9b4] sm:$0xf0] }
 0x5d8   :  { %v11264_v33 = vld [vmem:[#allocation6 + $0xb98] sm:$0xf]  ;;  %8536 = vmatpush.bf16.msra.mxu2 %v10753_v30  ;;  %8516 = vmatpush.bf16.msra.mxu0 %v10049_v11  ;;  %v11009_v9 = vor.u32 %v14719_v24, %v11008_v63 }
 0x5d9   :  { %v14783_v35 = vld [vmem:[#allocation6 + $0xbb4] sm:$0xf0]  ;;  %8504 = vmatmul.bf16.vlgmr.msrb.gmra.mxu3 %v15850_v57 }
 0x5da   :  { %v10432_v37 = vld [vmem:[#allocation6 + $0x518] sm:$0xf]  ;;  %8548 = vmatpush.bf16.msra.mxu3 %v11041_v7  ;;  %v11265_v39 = vor.u32 %v14783_v35, %v11264_v33  ;;  %8524 = vmatpush.bf16.msra.mxu1 %v10465_v25  ;;  %v15581_v33 = vld [vmem:[#allocation7] sm:$0xff] }
 0x5db   :  { %v14575_v42 = vld [vmem:[#allocation6 + $0x534] sm:$0xf0]  ;;  %8517 = vmatmul.bf16.vlgmr.msra.gmra.mxu0 %v15853_v62  ;;  %v1719_v35 = vperm.slane %v15581_v33, 5 }
 0x5dc   :  { %v10688_v15 = vld [vmem:[#allocation6 + $0x718] sm:$0xf]  ;;  %8561 = vmatpush.bf16.msrb.mxu0 %v11297_v2  ;;  %v10433_v27 = vor.u32 %v14575_v42, %v10432_v37  ;;  %8537 = vmatpush.bf16.msra.mxu2 %v10721_v36  ;;  %v8284_v36 = vpop.f32.mrf.mxu2  ;;  %v8310_v37 = vpop.f32.mrf.mxu0 }
 0x5dd   :  { %v14639_v23 = vld [vmem:[#allocation6 + $0x734] sm:$0xf0] }
 0x5de   :  { %v10976_v12 = vld [vmem:[#allocation6 + $0x958] sm:$0xf]  ;;  %v10689_v20 = vor.u32 %v14639_v23, %v10688_v15  ;;  %8549 = vmatpush.bf16.msra.mxu3 %v11009_v9  ;;  %8525 = vmatpush.bf16.msra.mxu1 %v10433_v27  ;;  %v8273_v23 = vpop.f32.mrf.mxu1 }
 0x5df   :  { %v14711_v31 = vld [vmem:[#allocation6 + $0x974] sm:$0xf0] }
 0x5e0   :  { %v11232_v13 = vld [vmem:[#allocation6 + $0xb58] sm:$0xf]  ;;  %v10977_v17 = vor.u32 %v14711_v31, %v10976_v12  ;;  %8562 = vmatpush.bf16.msrb.mxu0 %v11265_v39  ;;  %8538 = vmatpush.bf16.msra.mxu2 %v10689_v20 }
 0x5e1   :  { %v10400_v16 = vld [vmem:[#allocation6 + $0x4d8] sm:$0xf]  ;;  %v11233_v59 = vor.u32 %v14775_v41, %v11232_v13 }
 0x5e2   :  { %v14567_v44 = vld [vmem:[#allocation6 + $0x4f4] sm:$0xf0]  ;;  %8550 = vmatpush.bf16.msra.mxu3 %v10977_v17 }
 0x5e3   :  { %v10656_v49 = vld [vmem:[#allocation6 + $0x6d8] sm:$0xf]  ;;  %v10401_v38 = vor.u32 %v14567_v44, %v10400_v16 }
 0x5e4   :  { %v14631_v58 = vld [vmem:[#allocation6 + $0x6f4] sm:$0xf0]  ;;  %8563 = vmatpush.bf16.msrb.mxu0 %v11233_v59 }
 0x5e5   :  { %v10944_v60 = vld [vmem:[#allocation6 + $0x918] sm:$0xf]  ;;  %v10657_v53 = vor.u32 %v14631_v58, %v10656_v49  ;;  %8526 = vmatpush.bf16.msra.mxu1 %v10401_v38  ;;  %v8285_v58 = vadd.f32 %v8284_v36, %v1719_v35  ;;  %v8297_v38 = vpop.f32.mrf.mxu3 }
 0x5e6   :  { %v14703_v61 = vld [vmem:[#allocation6 + $0x934] sm:$0xf0] }
 0x5e7   :  { %v11200_v4 = vld [vmem:[#allocation6 + $0xb18] sm:$0xf]  ;;  %v10945_v46 = vor.u32 %v14703_v61, %v10944_v60  ;;  %8539 = vmatpush.bf16.msra.mxu2 %v10657_v53 }
 0x5e8   :  { %v14767_v26 = vld [vmem:[#allocation6 + $0xb34] sm:$0xf0] }
 0x5e9   :  { %v10368_v30 = vld [vmem:[#allocation6 + $0x498] sm:$0xf]  ;;  %v11201_v11 = vor.u32 %v14767_v26, %v11200_v4  ;;  %8551 = vmatpush.bf16.msra.mxu3 %v10945_v46 }
 0x5ea   :  { %v14559_v54 = vld [vmem:[#allocation6 + $0x4b4] sm:$0xf0] }
 0x5eb   :  { %v10624_v43 = vld [vmem:[#allocation6 + $0x698] sm:$0xf]  ;;  %v10369_v55 = vor.u32 %v14559_v54, %v10368_v30  ;;  %8564 = vmatpush.bf16.msrb.mxu0 %v11201_v11  ;;  %v8298_v54 = vadd.f32 %v8297_v38, %v8285_v58 }
 0x5ec   :  { %v14623_v10 = vld [vmem:[#allocation6 + $0x6b4] sm:$0xf0] }
 0x5ed   :  { %v10912_v7 = vld [vmem:[#allocation6 + $0x8d8] sm:$0xf]  ;;  %v10625_v63 = vor.u32 %v14623_v10, %v10624_v43  ;;  %8527 = vmatpush.bf16.msra.mxu1 %v10369_v55  ;;  %v8286_v55 = vpop.f32.mrf.mxu2  ;;  %v16074_v35 = vadd.f32 %v8310_v37, %v8298_v54 }
 0x5ee   :  { %v14695_v48 = vld [vmem:[#allocation6 + $0x8f4] sm:$0xf0] }
 0x5ef   :  { %v11168_v50 = vld [vmem:[#allocation6 + $0xad8] sm:$0xf]  ;;  %v10913_v42 = vor.u32 %v14695_v48, %v10912_v7  ;;  %8540 = vmatpush.bf16.msra.mxu2 %v10625_v63 }
 0x5f0   :  { %v14759_v2 = vld [vmem:[#allocation6 + $0xaf4] sm:$0xf0] }
 0x5f1   :  { %v10336_v24 = vld [vmem:[#allocation6 + $0x458] sm:$0xf]  ;;  %v11169_v39 = vor.u32 %v14759_v2, %v11168_v50  ;;  %8552 = vmatpush.bf16.msra.mxu3 %v10913_v42  ;;  %v8312_v50 = vpop.f32.mrf.mxu0 }
 0x5f2   :  { %v14551_v25 = vld [vmem:[#allocation6 + $0x474] sm:$0xf0] }
 0x5f3   :  { %v10592_v9 = vld [vmem:[#allocation6 + $0x658] sm:$0xf]  ;;  %v10337_v27 = vor.u32 %v14551_v25, %v10336_v24  ;;  %8565 = vmatpush.bf16.msrb.mxu0 %v11169_v39 }
 0x5f4   :  { %v14615_v15 = vld [vmem:[#allocation6 + $0x674] sm:$0xf0] }
 0x5f5   :  { %v10880_v12 = vld [vmem:[#allocation6 + $0x898] sm:$0xf]  ;;  %v10593_v16 = vor.u32 %v14615_v15, %v10592_v9  ;;  %8528 = vmatpush.bf16.msra.mxu1 %v10337_v27 }
 0x5f6   :  { %v14687_v31 = vld [vmem:[#allocation6 + $0x8b4] sm:$0xf0] }
 0x5f7   :  { %v11136_v13 = vld [vmem:[#allocation6 + $0xa98] sm:$0xf]  ;;  %v10881_v5 = vor.u32 %v14687_v31, %v10880_v12  ;;  %8541 = vmatpush.bf16.msra.mxu2 %v10593_v16 }
 0x5f8   :  { %v14751_v41 = vld [vmem:[#allocation6 + $0xab4] sm:$0xf0] }
 0x5f9   :  { %v10304_v20 = vld [vmem:[#allocation6 + $0x418] sm:$0xf]  ;;  %v11137_v4 = vor.u32 %v14751_v41, %v11136_v13  ;;  %8553 = vmatpush.bf16.msra.mxu3 %v10881_v5 }
 0x5fa   :  { %v14543_v44 = vld [vmem:[#allocation6 + $0x434] sm:$0xf0] }
 0x5fb   :  { %v10560_v17 = vld [vmem:[#allocation6 + $0x618] sm:$0xf]  ;;  %v10305_v46 = vor.u32 %v14543_v44, %v10304_v20  ;;  %8566 = vmatpush.bf16.msrb.mxu0 %v11137_v4  ;;  %v8299_v44 = vpop.f32.mrf.mxu3 }
 0x5fc   :  { %v14607_v49 = vld [vmem:[#allocation6 + $0x634] sm:$0xf0] }
 0x5fd   :  { %v11552_v59 = vld [vmem:[#allocation6 + $0xdd8] sm:$0xf]  ;;  %v10561_v11 = vor.u32 %v14607_v49, %v10560_v17  ;;  %8529 = vmatpush.bf16.msra.mxu1 %v10305_v46 }
 0x5fe   :  { %v14855_v60 = vld [vmem:[#allocation6 + $0xdf4] sm:$0xf0] }
 0x5ff   :  { %v11808_v61 = vld [vmem:[#allocation6 + $0xfd8] sm:$0xf]  ;;  %v11553_v7 = vor.u32 %v14855_v60, %v11552_v59  ;;  %8542 = vmatpush.bf16.msra.mxu2 %v10561_v11 }
 0x600   :  { %v14919_v26 = vld [vmem:[#allocation6 + $0xff4] sm:$0xf0]  ;;  %8530 = vmatmul.bf16.vlgmr.msra.gmra.mxu1 %v15858_v21 }
 0x601   :  { %v10848_v53 = vld [vmem:[#allocation6 + $0x858] sm:$0xf]  ;;  %v11809_v2 = vor.u32 %v14919_v26, %v11808_v61  ;;  %8574 = vmatpush.bf16.msrb.mxu1 %v11553_v7 }
 0x602   :  { %v14679_v30 = vld [vmem:[#allocation6 + $0x874] sm:$0xf0]  ;;  %8543 = vmatmul.bf16.vlgmr.msra.gmra.mxu2 %v15860_v28 }
 0x603   :  { %v11104_v43 = vld [vmem:[#allocation6 + $0xa58] sm:$0xf]  ;;  %v10849_v63 = vor.u32 %v14679_v30, %v10848_v53  ;;  %8587 = vmatpush.bf16.msrb.mxu2 %v11809_v2 }
 0x604   :  { %v14743_v10 = vld [vmem:[#allocation6 + $0xa74] sm:$0xf0] }
 0x605   :  { %v11520_v48 = vld [vmem:[#allocation6 + $0xd98] sm:$0xf]  ;;  %v11105_v36 = vor.u32 %v14743_v10, %v11104_v43  ;;  %8554 = vmatpush.bf16.msra.mxu3 %v10849_v63 }
 0x606   :  { %v14847_v24 = vld [vmem:[#allocation6 + $0xdb4] sm:$0xf0] }
 0x607   :  { %v11776_v25 = vld [vmem:[#allocation6 + $0xf98] sm:$0xf]  ;;  %v11521_v31 = vor.u32 %v14847_v24, %v11520_v48  ;;  %8567 = vmatpush.bf16.msrb.mxu0 %v11105_v36 }
 0x608   :  { %v14911_v33 = vld [vmem:[#allocation6 + $0xfb4] sm:$0xf0] }
 0x609   :  { %v10816_v42 = vld [vmem:[#allocation6 + $0x818] sm:$0xf]  ;;  %v11777_v41 = vor.u32 %v14911_v33, %v11776_v25  ;;  %8575 = vmatpush.bf16.msrb.mxu1 %v11521_v31 }
 0x60a   :  { %v14671_v9 = vld [vmem:[#allocation6 + $0x834] sm:$0xf0] }
 0x60b   :  { %v11072_v15 = vld [vmem:[#allocation6 + $0xa18] sm:$0xf]  ;;  %v10817_v20 = vor.u32 %v14671_v9, %v10816_v42  ;;  %8588 = vmatpush.bf16.msrb.mxu2 %v11777_v41  ;;  %v8323_v9 = vpop.f32.mrf.mxu1 }
 0x60c   :  { %v14735_v23 = vld [vmem:[#allocation6 + $0xa34] sm:$0xf0] }
 0x60d   :  { %v12064_v39 = vld [vmem:[#allocation6 + $0x11d8] sm:$0xf]  ;;  %v11073_v17 = vor.u32 %v14735_v23, %v11072_v15  ;;  %8555 = vmatpush.bf16.msra.mxu3 %v10817_v20 }
 0x60e   :  { %v14983_v12 = vld [vmem:[#allocation6 + $0x11f4] sm:$0xf0] }
 0x60f   :  { %v12320_v27 = vld [vmem:[#allocation6 + $0x13d8] sm:$0xf]  ;;  %v12065_v49 = vor.u32 %v14983_v12, %v12064_v39  ;;  %8568 = vmatpush.bf16.msrb.mxu0 %v11073_v17  ;;  %v8324_v12 = vadd.f32 %v8323_v9, %v16074_v35 }
 0x610   :  { %v15047_v13 = vld [vmem:[#allocation6 + $0x13f4] sm:$0xf0]  ;;  %8556 = vmatmul.bf16.vlgmr.msra.gmra.mxu3 %v15866_v0 }
 0x611   :  { %v11488_v37 = vld [vmem:[#allocation6 + $0xd58] sm:$0xf]  ;;  %v12321_v59 = vor.u32 %v15047_v13, %v12320_v27  ;;  %8600 = vmatpush.bf16.msrb.mxu3 %v12065_v49 }
 0x612   :  { %v14839_v16 = vld [vmem:[#allocation6 + $0xd74] sm:$0xf0]  ;;  %8569 = vmatmul.bf16.vlgmr.msrb.gmra.mxu0 %v15869_v6 }
 0x613   :  { %v11744_v58 = vld [vmem:[#allocation6 + $0xf58] sm:$0xf]  ;;  %v11489_v38 = vor.u32 %v14839_v16, %v11488_v37  ;;  %8613 = vmatpush.bf16.msra.mxu0 %v12321_v59 }
 0x614   :  { %v14903_v5 = vld [vmem:[#allocation6 + $0xf74] sm:$0xf0] }
 0x615   :  { %v12032_v60 = vld [vmem:[#allocation6 + $0x1198] sm:$0xf]  ;;  %v11745_v53 = vor.u32 %v14903_v5, %v11744_v58  ;;  %8576 = vmatpush.bf16.msrb.mxu1 %v11489_v38 }
 0x616   :  { %v14975_v61 = vld [vmem:[#allocation6 + $0x11b4] sm:$0xf0] }
 0x617   :  { %v12288_v4 = vld [vmem:[#allocation6 + $0x1398] sm:$0xf]  ;;  %v12033_v46 = vor.u32 %v14975_v61, %v12032_v60  ;;  %8589 = vmatpush.bf16.msrb.mxu2 %v11745_v53  ;;  %v8362_v53 = vpop.f32.mrf.mxu0 }
 0x618   :  { %v15039_v26 = vld [vmem:[#allocation6 + $0x13b4] sm:$0xf0] }
 0x619   :  { %v11456_v30 = vld [vmem:[#allocation6 + $0xd18] sm:$0xf]  ;;  %v12289_v11 = vor.u32 %v15039_v26, %v12288_v4  ;;  %8601 = vmatpush.bf16.msrb.mxu3 %v12033_v46  ;;  %v8336_v26 = vpop.f32.mrf.mxu2 }
 0x61a   :  { %v14831_v54 = vld [vmem:[#allocation6 + $0xd34] sm:$0xf0] }
 0x61b   :  { %v11712_v43 = vld [vmem:[#allocation6 + $0xf18] sm:$0xf]  ;;  %v11457_v55 = vor.u32 %v14831_v54, %v11456_v30  ;;  %8614 = vmatpush.bf16.msra.mxu0 %v12289_v11 }
 0x61c   :  { %v14895_v10 = vld [vmem:[#allocation6 + $0xf34] sm:$0xf0] }
 0x61d   :  { %v12000_v7 = vld [vmem:[#allocation6 + $0x1158] sm:$0xf]  ;;  %v11713_v63 = vor.u32 %v14895_v10, %v11712_v43  ;;  %8577 = vmatpush.bf16.msrb.mxu1 %v11457_v55  ;;  %v8337_v43 = vadd.f32 %v8336_v26, %v8324_v12  ;;  %v8325_v10 = vpop.f32.mrf.mxu1 }
 0x61e   :  { %v14967_v48 = vld [vmem:[#allocation6 + $0x1174] sm:$0xf0] }
 0x61f   :  { %v12256_v50 = vld [vmem:[#allocation6 + $0x1358] sm:$0xf]  ;;  %v12001_v33 = vor.u32 %v14967_v48, %v12000_v7  ;;  %8590 = vmatpush.bf16.msrb.mxu2 %v11713_v63 }
 0x620   :  { %v15031_v2 = vld [vmem:[#allocation6 + $0x1374] sm:$0xf0] }
 0x621   :  { %v11424_v24 = vld [vmem:[#allocation6 + $0xcd8] sm:$0xf]  ;;  %v12257_v15 = vor.u32 %v15031_v2, %v12256_v50  ;;  %8602 = vmatpush.bf16.msrb.mxu3 %v12001_v33 }
 0x622   :  { %v14823_v25 = vld [vmem:[#allocation6 + $0xcf4] sm:$0xf0] }
 0x623   :  { %v11680_v36 = vld [vmem:[#allocation6 + $0xed8] sm:$0xf]  ;;  %v11425_v31 = vor.u32 %v14823_v25, %v11424_v24  ;;  %8615 = vmatpush.bf16.msra.mxu0 %v12257_v15 }
 0x624   :  { %v14887_v42 = vld [vmem:[#allocation6 + $0xef4] sm:$0xf0] }
 0x625   :  { %v11968_v23 = vld [vmem:[#allocation6 + $0x1118] sm:$0xf]  ;;  %v11681_v41 = vor.u32 %v14887_v42, %v11680_v36  ;;  %8578 = vmatpush.bf16.msrb.mxu1 %v11425_v31 }
 0x626   :  { %v14959_v39 = vld [vmem:[#allocation6 + $0x1134] sm:$0xf0] }
 0x627   :  { %v12224_v27 = vld [vmem:[#allocation6 + $0x1318] sm:$0xf]  ;;  %v11969_v16 = vor.u32 %v14959_v39, %v11968_v23  ;;  %8591 = vmatpush.bf16.msrb.mxu2 %v11681_v41  ;;  %v8349_v39 = vpop.f32.mrf.mxu3 }
 0x628   :  { %v15023_v13 = vld [vmem:[#allocation6 + $0x1334] sm:$0xf0]  ;;  %v8350_v41 = vadd.f32 %v8349_v39, %v8337_v43 }
 0x629   :  { %v11392_v20 = vld [vmem:[#allocation6 + $0xc98] sm:$0xf]  ;;  %v12225_v49 = vor.u32 %v15023_v13, %v12224_v27  ;;  %8603 = vmatpush.bf16.msrb.mxu3 %v11969_v16 }
 0x62a   :  { %v14815_v37 = vld [vmem:[#allocation6 + $0xcb4] sm:$0xf0] }
 0x62b   :  { %v11648_v44 = vld [vmem:[#allocation6 + $0xe98] sm:$0xf]  ;;  %v11393_v59 = vor.u32 %v14815_v37, %v11392_v20  ;;  %8616 = vmatpush.bf16.msra.mxu0 %v12225_v49 }
 0x62c   :  { %v14879_v17 = vld [vmem:[#allocation6 + $0xeb4] sm:$0xf0] }
 0x62d   :  { %v11936_v58 = vld [vmem:[#allocation6 + $0x10d8] sm:$0xf]  ;;  %v11649_v61 = vor.u32 %v14879_v17, %v11648_v44  ;;  %8579 = vmatpush.bf16.msrb.mxu1 %v11393_v59 }
 0x62e   :  { %v14951_v5 = vld [vmem:[#allocation6 + $0x10f4] sm:$0xf0] }
 0x62f   :  { %v12192_v60 = vld [vmem:[#allocation6 + $0x12d8] sm:$0xf]  ;;  %v11937_v30 = vor.u32 %v14951_v5, %v11936_v58  ;;  %8592 = vmatpush.bf16.msrb.mxu2 %v11649_v61  ;;  %v8338_v58 = vpop.f32.mrf.mxu2  ;;  %v8364_v5 = vpop.f32.mrf.mxu0 }
 0x630   :  { %v15015_v35 = vld [vmem:[#allocation6 + $0x12f4] sm:$0xf0] }
 0x631   :  { %v11360_v38 = vld [vmem:[#allocation6 + $0xc58] sm:$0xf]  ;;  %v12193_v11 = vor.u32 %v15015_v35, %v12192_v60  ;;  %8604 = vmatpush.bf16.msrb.mxu3 %v11937_v30 }
 0x632   :  { %v14807_v4 = vld [vmem:[#allocation6 + $0xc74] sm:$0xf0] }
 0x633   :  { %v11616_v54 = vld [vmem:[#allocation6 + $0xe58] sm:$0xf]  ;;  %v11361_v55 = vor.u32 %v14807_v4, %v11360_v38  ;;  %8617 = vmatpush.bf16.msra.mxu0 %v12193_v11  ;;  %v16081_v4 = vadd.f32 %v8362_v53, %v8350_v41 }
 0x634   :  { %v14871_v46 = vld [vmem:[#allocation6 + $0xe74] sm:$0xf0] }
 0x635   :  { %v11904_v7 = vld [vmem:[#allocation6 + $0x1098] sm:$0xf]  ;;  %v11617_v24 = vor.u32 %v14871_v46, %v11616_v54  ;;  %8580 = vmatpush.bf16.msrb.mxu1 %v11361_v55 }
 0x636   :  { %v14943_v48 = vld [vmem:[#allocation6 + $0x10b4] sm:$0xf0] }
 0x637   :  { %v12160_v50 = vld [vmem:[#allocation6 + $0x1298] sm:$0xf]  ;;  %v11905_v42 = vor.u32 %v14943_v48, %v11904_v7  ;;  %8593 = vmatpush.bf16.msrb.mxu2 %v11617_v24  ;;  %v8351_v24 = vpop.f32.mrf.mxu3 }
 0x638   :  { %v15007_v2 = vld [vmem:[#allocation6 + $0x12b4] sm:$0xf0] }
 0x639   :  { %v11328_v63 = vld [vmem:[#allocation6 + $0xc18] sm:$0xf]  ;;  %v12161_v12 = vor.u32 %v15007_v2, %v12160_v50  ;;  %8605 = vmatpush.bf16.msrb.mxu3 %v11905_v42 }
 0x63a   :  { %v14799_v25 = vld [vmem:[#allocation6 + $0xc34] sm:$0xf0] }
 0x63b   :  { %v11584_v33 = vld [vmem:[#allocation6 + $0xe18] sm:$0xf]  ;;  %v11329_v20 = vor.u32 %v14799_v25, %v11328_v63  ;;  %8618 = vmatpush.bf16.msra.mxu0 %v12161_v12 }
 0x63c   :  { %v14863_v36 = vld [vmem:[#allocation6 + $0xe34] sm:$0xf0] }
 0x63d   :  { %v12576_v9 = vld [vmem:[#allocation6 + $0x15d8] sm:$0xf]  ;;  %v11585_v44 = vor.u32 %v14863_v36, %v11584_v33  ;;  %8581 = vmatpush.bf16.msrb.mxu1 %v11329_v20 }
 0x63e   :  { %v15111_v15 = vld [vmem:[#allocation6 + $0x15f4] sm:$0xf0] }
 0x63f   :  { %v12832_v23 = vld [vmem:[#allocation6 + $0x17d8] sm:$0xf]  ;;  %v12577_v17 = vor.u32 %v15111_v15, %v12576_v9  ;;  %8594 = vmatpush.bf16.msrb.mxu2 %v11585_v44 }
 0x640   :  { %v15175_v31 = vld [vmem:[#allocation6 + $0x17f4] sm:$0xf0]  ;;  %8582 = vmatmul.bf16.vlgmr.msrb.gmra.mxu1 %v15875_v34 }
 0x641   :  { %v11872_v27 = vld [vmem:[#allocation6 + $0x1058] sm:$0xf]  ;;  %v12833_v59 = vor.u32 %v15175_v31, %v12832_v23  ;;  %8626 = vmatpush.bf16.msra.mxu1 %v12577_v17 }
 0x642   :  { %v14935_v13 = vld [vmem:[#allocation6 + $0x1074] sm:$0xf0]  ;;  %8595 = vmatmul.bf16.vlgmr.msrb.gmra.mxu2 %v15879_v40 }
 0x643   :  { %v12128_v37 = vld [vmem:[#allocation6 + $0x1258] sm:$0xf]  ;;  %v11873_v60 = vor.u32 %v14935_v13, %v11872_v27  ;;  %8639 = vmatpush.bf16.msra.mxu2 %v12833_v59 }
 0x644   :  { %v14999_v16 = vld [vmem:[#allocation6 + $0x1274] sm:$0xf0] }
 0x645   :  { %v12544_v49 = vld [vmem:[#allocation6 + $0x1598] sm:$0xf]  ;;  %v12129_v26 = vor.u32 %v14999_v16, %v12128_v37  ;;  %8606 = vmatpush.bf16.msrb.mxu3 %v11873_v60 }
 0x646   :  { %v15103_v35 = vld [vmem:[#allocation6 + $0x15b4] sm:$0xf0] }
 0x647   :  { %v12800_v61 = vld [vmem:[#allocation6 + $0x1798] sm:$0xf]  ;;  %v12545_v7 = vor.u32 %v15103_v35, %v12544_v49  ;;  %8619 = vmatpush.bf16.msra.mxu0 %v12129_v26 }
 0x648   :  { %v15167_v38 = vld [vmem:[#allocation6 + $0x17b4] sm:$0xf0] }
 0x649   :  { %v11840_v30 = vld [vmem:[#allocation6 + $0x1018] sm:$0xf]  ;;  %v12801_v50 = vor.u32 %v15167_v38, %v12800_v61  ;;  %8627 = vmatpush.bf16.msra.mxu1 %v12545_v7 }
 0x64a   :  { %v14927_v54 = vld [vmem:[#allocation6 + $0x1034] sm:$0xf0] }
 0x64b   :  { %v12096_v46 = vld [vmem:[#allocation6 + $0x1218] sm:$0xf]  ;;  %v11841_v2 = vor.u32 %v14927_v54, %v11840_v30  ;;  %8640 = vmatpush.bf16.msra.mxu2 %v12801_v50  ;;  %v8375_v54 = vpop.f32.mrf.mxu1 }
 0x64c   :  { %v14991_v43 = vld [vmem:[#allocation6 + $0x1234] sm:$0xf0] }
 0x64d   :  { %v13088_v10 = vld [vmem:[#allocation6 + $0x19d8] sm:$0xf]  ;;  %v12097_v25 = vor.u32 %v14991_v43, %v12096_v46  ;;  %8607 = vmatpush.bf16.msrb.mxu3 %v11841_v2 }
 0x64e   :  { %v15239_v11 = vld [vmem:[#allocation6 + $0x19f4] sm:$0xf0] }
 0x64f   :  { %v13344_v48 = vld [vmem:[#allocation6 + $0x1bd8] sm:$0xf]  ;;  %v13089_v33 = vor.u32 %v15239_v11, %v13088_v10  ;;  %8620 = vmatpush.bf16.msra.mxu0 %v12097_v25  ;;  %v8376_v11 = vadd.f32 %v8375_v54, %v16081_v4 }
 0x650   :  { %v15303_v55 = vld [vmem:[#allocation6 + $0x1bf4] sm:$0xf0]  ;;  %8608 = vmatmul.bf16.vlgmr.msrb.gmra.mxu3 %v15884_v22 }
 0x651   :  { %v12512_v53 = vld [vmem:[#allocation6 + $0x1558] sm:$0xf]  ;;  %v13345_v9 = vor.u32 %v15303_v55, %v13344_v48  ;;  %8652 = vmatpush.bf16.msra.mxu3 %v13089_v33 }
 0x652   :  { %v15095_v63 = vld [vmem:[#allocation6 + $0x1574] sm:$0xf0]  ;;  %8621 = vmatmul.bf16.vlgmr.msra.gmra.mxu0 %v15887_v29 }
 0x653   :  { %v12768_v36 = vld [vmem:[#allocation6 + $0x1758] sm:$0xf]  ;;  %v12513_v39 = vor.u32 %v15095_v63, %v12512_v53  ;;  %8665 = vmatpush.bf16.msrb.mxu0 %v13345_v9 }
 0x654   :  { %v15159_v42 = vld [vmem:[#allocation6 + $0x1774] sm:$0xf0] }
 0x655   :  { %v13056_v15 = vld [vmem:[#allocation6 + $0x1998] sm:$0xf]  ;;  %v12769_v27 = vor.u32 %v15159_v42, %v12768_v36  ;;  %8628 = vmatpush.bf16.msra.mxu1 %v12513_v39 }
 0x656   :  { %v15231_v23 = vld [vmem:[#allocation6 + $0x19b4] sm:$0xf0] }
 0x657   :  { %v13312_v12 = vld [vmem:[#allocation6 + $0x1b98] sm:$0xf]  ;;  %v13057_v20 = vor.u32 %v15231_v23, %v13056_v15  ;;  %8641 = vmatpush.bf16.msra.mxu2 %v12769_v27  ;;  %v8414_v27 = vpop.f32.mrf.mxu0 }
 0x658   :  { %v15295_v31 = vld [vmem:[#allocation6 + $0x1bb4] sm:$0xf0] }
 0x659   :  { %v12480_v13 = vld [vmem:[#allocation6 + $0x1518] sm:$0xf]  ;;  %v13313_v44 = vor.u32 %v15295_v31, %v13312_v12  ;;  %8653 = vmatpush.bf16.msra.mxu3 %v13057_v20  ;;  %v8388_v31 = vpop.f32.mrf.mxu2 }
 0x65a   :  { %v15087_v41 = vld [vmem:[#allocation6 + $0x1534] sm:$0xf0] }
 0x65b   :  { %v12736_v37 = vld [vmem:[#allocation6 + $0x1718] sm:$0xf]  ;;  %v12481_v58 = vor.u32 %v15087_v41, %v12480_v13  ;;  %8666 = vmatpush.bf16.msrb.mxu0 %v13313_v44 }
 0x65c   :  { %v15151_v16 = vld [vmem:[#allocation6 + $0x1734] sm:$0xf0] }
 0x65d   :  { %v13024_v17 = vld [vmem:[#allocation6 + $0x1958] sm:$0xf]  ;;  %v12737_v60 = vor.u32 %v15151_v16, %v12736_v37  ;;  %8629 = vmatpush.bf16.msra.mxu1 %v12481_v58  ;;  %v8389_v37 = vadd.f32 %v8388_v31, %v8376_v11  ;;  %v8377_v16 = vpop.f32.mrf.mxu1 }
 0x65e   :  { %v15223_v49 = vld [vmem:[#allocation6 + $0x1974] sm:$0xf0] }
 0x65f   :  { %v13280_v5 = vld [vmem:[#allocation6 + $0x1b58] sm:$0xf]  ;;  %v13025_v38 = vor.u32 %v15223_v49, %v13024_v17  ;;  %8642 = vmatpush.bf16.msra.mxu2 %v12737_v60 }
 0x660   :  { %v15287_v59 = vld [vmem:[#allocation6 + $0x1b74] sm:$0xf0] }
 0x661   :  { %v12448_v35 = vld [vmem:[#allocation6 + $0x14d8] sm:$0xf]  ;;  %v13281_v46 = vor.u32 %v15287_v59, %v13280_v5  ;;  %8654 = vmatpush.bf16.msra.mxu3 %v13025_v38 }
 0x662   :  { %v15079_v61 = vld [vmem:[#allocation6 + $0x14f4] sm:$0xf0] }
 0x663   :  { %v12704_v26 = vld [vmem:[#allocation6 + $0x16d8] sm:$0xf]  ;;  %v12449_v7 = vor.u32 %v15079_v61, %v12448_v35  ;;  %8667 = vmatpush.bf16.msrb.mxu0 %v13281_v46 }
 0x664   :  { %v15143_v30 = vld [vmem:[#allocation6 + $0x16f4] sm:$0xf0] }
 0x665   :  { %v12992_v43 = vld [vmem:[#allocation6 + $0x1918] sm:$0xf]  ;;  %v12705_v50 = vor.u32 %v15143_v30, %v12704_v26  ;;  %8630 = vmatpush.bf16.msra.mxu1 %v12449_v7 }
 0x666   :  { %v15215_v10 = vld [vmem:[#allocation6 + $0x1934] sm:$0xf0] }
 0x667   :  { %v13248_v48 = vld [vmem:[#allocation6 + $0x1b18] sm:$0xf]  ;;  %v12993_v63 = vor.u32 %v15215_v10, %v12992_v43  ;;  %8643 = vmatpush.bf16.msra.mxu2 %v12705_v50  ;;  %v8401_v10 = vpop.f32.mrf.mxu3 }
 0x668   :  { %v15279_v55 = vld [vmem:[#allocation6 + $0x1b34] sm:$0xf0]  ;;  %v8402_v50 = vadd.f32 %v8401_v10, %v8389_v37 }
 0x669   :  { %v12416_v2 = vld [vmem:[#allocation6 + $0x1498] sm:$0xf]  ;;  %v13249_v33 = vor.u32 %v15279_v55, %v13248_v48  ;;  %8655 = vmatpush.bf16.msra.mxu3 %v12993_v63 }
 0x66a   :  { %v15071_v53 = vld [vmem:[#allocation6 + $0x14b4] sm:$0xf0] }
 0x66b   :  { %v12672_v24 = vld [vmem:[#allocation6 + $0x1698] sm:$0xf]  ;;  %v12417_v9 = vor.u32 %v15071_v53, %v12416_v2  ;;  %8668 = vmatpush.bf16.msrb.mxu0 %v13249_v33 }
 0x66c   :  { %v15135_v25 = vld [vmem:[#allocation6 + $0x16b4] sm:$0xf0] }
 0x66d   :  { %v12960_v36 = vld [vmem:[#allocation6 + $0x18d8] sm:$0xf]  ;;  %v12673_v23 = vor.u32 %v15135_v25, %v12672_v24  ;;  %8631 = vmatpush.bf16.msra.mxu1 %v12417_v9 }
 0x66e   :  { %v15207_v42 = vld [vmem:[#allocation6 + $0x18f4] sm:$0xf0] }
 0x66f   :  { %v13216_v15 = vld [vmem:[#allocation6 + $0x1ad8] sm:$0xf]  ;;  %v12961_v13 = vor.u32 %v15207_v42, %v12960_v36  ;;  %8644 = vmatpush.bf16.msra.mxu2 %v12673_v23  ;;  %v8390_v36 = vpop.f32.mrf.mxu2  ;;  %v8416_v42 = vpop.f32.mrf.mxu0 }
 0x670   :  { %v15271_v4 = vld [vmem:[#allocation6 + $0x1af4] sm:$0xf0]  ;;  %v14451_v42 = vld [vmem:[#allocation6 + $0x15c] sm:$0xf] }
 0x671   :  { %v12384_v39 = vld [vmem:[#allocation6 + $0x1458] sm:$0xf]  ;;  %v13217_v44 = vor.u32 %v15271_v4, %v13216_v15  ;;  %8656 = vmatpush.bf16.msra.mxu3 %v12961_v13 }
 0x672   :  { %v15063_v12 = vld [vmem:[#allocation6 + $0x1474] sm:$0xf0] }
 0x673   :  { %v12640_v41 = vld [vmem:[#allocation6 + $0x1658] sm:$0xf]  ;;  %v12385_v58 = vor.u32 %v15063_v12, %v12384_v39  ;;  %8669 = vmatpush.bf16.msrb.mxu0 %v13217_v44  ;;  %v16088_v12 = vadd.f32 %v8414_v27, %v8402_v50 }
 0x674   :  { %v15127_v20 = vld [vmem:[#allocation6 + $0x1674] sm:$0xf0] }
 0x675   :  { %v12928_v17 = vld [vmem:[#allocation6 + $0x1898] sm:$0xf]  ;;  %v12641_v35 = vor.u32 %v15127_v20, %v12640_v41  ;;  %8632 = vmatpush.bf16.msra.mxu1 %v12385_v58  ;;  %v10018_v58 = vld [vmem:[#allocation6 + $0x1f8] sm:$0xf0] }
 0x676   :  { %v15199_v49 = vld [vmem:[#allocation6 + $0x18b4] sm:$0xf0] }
 0x677   :  { %v13184_v5 = vld [vmem:[#allocation6 + $0x1a98] sm:$0xf]  ;;  %v12929_v30 = vor.u32 %v15199_v49, %v12928_v17  ;;  %8645 = vmatpush.bf16.msra.mxu2 %v12641_v35  ;;  %v14467_v49 = vld [vmem:[#allocation6 + $0x1dc] sm:$0xf]  ;;  %v8403_v35 = vpop.f32.mrf.mxu3 }
 0x678   :  { %v15263_v59 = vld [vmem:[#allocation6 + $0x1ab4] sm:$0xf0] }
 0x679   :  { %v12352_v60 = vld [vmem:[#allocation6 + $0x1418] sm:$0xf]  ;;  %v13185_v11 = vor.u32 %v15263_v59, %v13184_v5  ;;  %8657 = vmatpush.bf16.msra.mxu3 %v12929_v30 }
 0x67a   :  { %v15055_v61 = vld [vmem:[#allocation6 + $0x1434] sm:$0xf0] }
 0x67b   :  { %v12608_v38 = vld [vmem:[#allocation6 + $0x1618] sm:$0xf]  ;;  %v12353_v2 = vor.u32 %v15055_v61, %v12352_v60  ;;  %8670 = vmatpush.bf16.msrb.mxu0 %v13185_v11  ;;  %v14459_v11 = vld [vmem:[#allocation6 + $0x19c] sm:$0xf] }
 0x67c   :  { %v15119_v26 = vld [vmem:[#allocation6 + $0x1634] sm:$0xf0] }
 0x67d   :  { %v13600_v54 = vld [vmem:[#allocation6 + $0x1dd8] sm:$0xf]  ;;  %v12609_v24 = vor.u32 %v15119_v26, %v12608_v38  ;;  %8633 = vmatpush.bf16.msra.mxu1 %v12353_v2 }
 0x67e   :  { %v15367_v46 = vld [vmem:[#allocation6 + $0x1df4] sm:$0xf0] }
 0x67f   :  { %v13856_v43 = vld [vmem:[#allocation6 + $0x1fd8] sm:$0xf]  ;;  %v13601_v25 = vor.u32 %v15367_v46, %v13600_v54  ;;  %8646 = vmatpush.bf16.msra.mxu2 %v12609_v24  ;;  %v10021_v54 = vor.u32 %v14467_v49, %v10018_v58  ;;  %v14443_v49 = vld [vmem:[#allocation6 + $0x11c] sm:$0xf] }
 0x680   :  { %v15431_v7 = vld [vmem:[#allocation6 + $0x1ff4] sm:$0xf0]  ;;  %8634 = vmatmul.bf16.vlgmr.msra.gmra.mxu1 %v15891_v1  ;;  %v9922_v58 = vld [vmem:[#allocation6 + $0x138] sm:$0xf0] }
 0x681   :  { %v12896_v48 = vld [vmem:[#allocation6 + $0x1858] sm:$0xf]  ;;  %v13857_v9 = vor.u32 %v15431_v7, %v13856_v43  ;;  %8678 = vmatpush.bf16.msrb.mxu1 %v13601_v25  ;;  %v9986_v7 = vld [vmem:[#allocation6 + $0x1b8] sm:$0xf0] }
 0x682   :  { %v15191_v55 = vld [vmem:[#allocation6 + $0x1874] sm:$0xf0]  ;;  %8647 = vmatmul.bf16.vlgmr.msra.gmra.mxu2 %v15893_v3  ;;  %v9989_v24 = vor.u32 %v14459_v11, %v9986_v7  ;;  %v8440_v7 = vpop.f32.mrf.mxu2 }
 0x683   :  { %v13152_v53 = vld [vmem:[#allocation6 + $0x1a58] sm:$0xf]  ;;  %v12897_v15 = vor.u32 %v15191_v55, %v12896_v48  ;;  %8691 = vmatpush.bf16.msrb.mxu2 %v13857_v9  ;;  %v9954_v9 = vld [vmem:[#allocation6 + $0x178] sm:$0xf0] }
 0x684   :  { %v15255_v63 = vld [vmem:[#allocation6 + $0x1a74] sm:$0xf0] }
 0x685   :  { %v13568_v33 = vld [vmem:[#allocation6 + $0x1d98] sm:$0xf]  ;;  %v13153_v31 = vor.u32 %v15255_v63, %v13152_v53  ;;  %8658 = vmatpush.bf16.msra.mxu3 %v12897_v15 }
 0x686   :  { %v15359_v4 = vld [vmem:[#allocation6 + $0x1db4] sm:$0xf0] }
 0x687   :  { %v13824_v23 = vld [vmem:[#allocation6 + $0x1f98] sm:$0xf]  ;;  %v13569_v17 = vor.u32 %v15359_v4, %v13568_v33  ;;  %8671 = vmatpush.bf16.msrb.mxu0 %v13153_v31 }
 0x688   :  { %v15423_v39 = vld [vmem:[#allocation6 + $0x1fb4] sm:$0xf0] }
 0x689   :  { %v12864_v13 = vld [vmem:[#allocation6 + $0x1818] sm:$0xf]  ;;  %v13825_v5 = vor.u32 %v15423_v39, %v13824_v23  ;;  %8679 = vmatpush.bf16.msrb.mxu1 %v13569_v17 }
 0x68a   :  { %v15183_v41 = vld [vmem:[#allocation6 + $0x1834] sm:$0xf0] }
 0x68b   :  { %v13120_v20 = vld [vmem:[#allocation6 + $0x1a18] sm:$0xf]  ;;  %v12865_v59 = vor.u32 %v15183_v41, %v12864_v13  ;;  %8692 = vmatpush.bf16.msrb.mxu2 %v13825_v5  ;;  %v8427_v41 = vpop.f32.mrf.mxu1 }
 0x68c   :  { %v15247_v37 = vld [vmem:[#allocation6 + $0x1a34] sm:$0xf0] }
 0x68d   :  { %v14112_v16 = vld [vmem:[#allocation6 + $0x21d8] sm:$0xf]  ;;  %v13121_v61 = vor.u32 %v15247_v37, %v13120_v20  ;;  %8659 = vmatpush.bf16.msra.mxu3 %v12865_v59  ;;  %v9957_v20 = vor.u32 %v14451_v42, %v9954_v9  ;;  %v14427_v42 = vld [vmem:[#allocation6 + $0x9c] sm:$0xf] }
 0x68e   :  { %v15495_v44 = vld [vmem:[#allocation6 + $0x21f4] sm:$0xf0]  ;;  %v9858_v9 = vld [vmem:[#allocation6 + $0xb8] sm:$0xf0] }
 0x68f   :  { %v13536_v27 = vld [vmem:[#allocation6 + $0x1d58] sm:$0xf]  ;;  %v14113_v38 = vor.u32 %v15495_v44, %v14112_v16  ;;  %8672 = vmatpush.bf16.msrb.mxu0 %v13121_v61  ;;  %v8428_v44 = vadd.f32 %v8427_v41, %v16088_v12  ;;  %v9890_v12 = vld [vmem:[#allocation6 + $0xf8] sm:$0xf0] }
 0x690   :  { %v15351_v60 = vld [vmem:[#allocation6 + $0x1d74] sm:$0xf0]  ;;  %8660 = vmatmul.bf16.vlgmr.msra.gmra.mxu3 %v15903_v47  ;;  %v14531_v41 = vld [vmem:[#allocation6 + $0x3dc] sm:$0xf] }
 0x691   :  { %v13792_v26 = vld [vmem:[#allocation6 + $0x1f58] sm:$0xf]  ;;  %v13537_v10 = vor.u32 %v15351_v60, %v13536_v27  ;;  %8704 = vmatpush.bf16.msrb.mxu3 %v14113_v38  ;;  %v9925_v38 = vor.u32 %v14443_v49, %v9922_v58 }
 0x692   :  { %v15415_v30 = vld [vmem:[#allocation6 + $0x1f74] sm:$0xf0]  ;;  %8673 = vmatmul.bf16.vlgmr.msrb.gmra.mxu0 %v15905_v52 }
 0x693   :  { %v14080_v46 = vld [vmem:[#allocation6 + $0x2198] sm:$0xf]  ;;  %v13793_v48 = vor.u32 %v15415_v30, %v13792_v26  ;;  %8717 = vmatpush.bf16.msra.mxu0 %v10021_v54  ;;  %8680 = vmatpush.bf16.msrb.mxu1 %v13537_v10 }
 0x694   :  { %v15487_v43 = vld [vmem:[#allocation6 + $0x21b4] sm:$0xf0] }
 0x695   :  { %v13504_v55 = vld [vmem:[#allocation6 + $0x1d18] sm:$0xf]  ;;  %v14081_v2 = vor.u32 %v15487_v43, %v14080_v46  ;;  %8693 = vmatpush.bf16.msrb.mxu2 %v13793_v48  ;;  %v14435_v46 = vld [vmem:[#allocation6 + $0xdc] sm:$0xf]  ;;  %v8466_v48 = vpop.f32.mrf.mxu0 }
 0x696   :  { %v15343_v50 = vld [vmem:[#allocation6 + $0x1d34] sm:$0xf0] }
 0x697   :  { %v13760_v53 = vld [vmem:[#allocation6 + $0x1f18] sm:$0xf]  ;;  %v13505_v36 = vor.u32 %v15343_v50, %v13504_v55  ;;  %8705 = vmatpush.bf16.msrb.mxu3 %v14081_v2  ;;  %8718 = vmatpush.bf16.msra.mxu0 %v9989_v24  ;;  %v9893_v24 = vor.u32 %v14435_v46, %v9890_v12  ;;  %v10242_v12 = vld [vmem:[#allocation6 + $0x3b8] sm:$0xf0] }
 0x698   :  { %v15407_v63 = vld [vmem:[#allocation6 + $0x1f34] sm:$0xf0] }
 0x699   :  { %v14048_v25 = vld [vmem:[#allocation6 + $0x2158] sm:$0xf]  ;;  %v13761_v15 = vor.u32 %v15407_v63, %v13760_v53  ;;  %8681 = vmatpush.bf16.msrb.mxu1 %v13505_v36  ;;  %v8441_v53 = vadd.f32 %v8440_v7, %v8428_v44  ;;  %v8429_v63 = vpop.f32.mrf.mxu1  ;;  %v9861_v44 = vor.u32 %v14427_v42, %v9858_v9 }
 0x69a   :  { %v15479_v33 = vld [vmem:[#allocation6 + $0x2174] sm:$0xf0]  ;;  %v14659_v63 = vld [vmem:[#allocation6 + $0x7dc] sm:$0xf] }
 0x69b   :  { %v13472_v4 = vld [vmem:[#allocation6 + $0x1cd8] sm:$0xf]  ;;  %v14049_v39 = vor.u32 %v15479_v33, %v14048_v25  ;;  %8694 = vmatpush.bf16.msrb.mxu2 %v13761_v15  ;;  %8719 = vmatpush.bf16.msra.mxu0 %v9957_v20  ;;  %v10274_v20 = vld [vmem:[#allocation6 + $0x3f8] sm:$0xf0] }
 0x69c   :  { %v15335_v23 = vld [vmem:[#allocation6 + $0x1cf4] sm:$0xf0] }
 0x69d   :  { %v13728_v31 = vld [vmem:[#allocation6 + $0x1ed8] sm:$0xf]  ;;  %v13473_v17 = vor.u32 %v15335_v23, %v13472_v4  ;;  %8706 = vmatpush.bf16.msrb.mxu3 %v14049_v39 }
 0x69e   :  { %v15399_v13 = vld [vmem:[#allocation6 + $0x1ef4] sm:$0xf0] }
 0x69f   :  { %v14016_v37 = vld [vmem:[#allocation6 + $0x2118] sm:$0xf]  ;;  %v13729_v5 = vor.u32 %v15399_v13, %v13728_v31  ;;  %8682 = vmatpush.bf16.msrb.mxu1 %v13473_v17  ;;  %8720 = vmatpush.bf16.msra.mxu0 %v9925_v38  ;;  %v10530_v17 = vld [vmem:[#allocation6 + $0x5f8] sm:$0xf0] }
 0x6a0   :  { %v15471_v16 = vld [vmem:[#allocation6 + $0x2134] sm:$0xf0]  ;;  %v14523_v38 = vld [vmem:[#allocation6 + $0x39c] sm:$0xf] }
 0x6a1   :  { %v13440_v59 = vld [vmem:[#allocation6 + $0x1c98] sm:$0xf]  ;;  %v14017_v60 = vor.u32 %v15471_v16, %v14016_v37  ;;  %8695 = vmatpush.bf16.msrb.mxu2 %v13729_v5  ;;  %v14595_v37 = vld [vmem:[#allocation6 + $0x5dc] sm:$0xf]  ;;  %v8453_v16 = vpop.f32.mrf.mxu3 }
 0x6a2   :  { %v15327_v27 = vld [vmem:[#allocation6 + $0x1cb4] sm:$0xf0]  ;;  %v8454_v5 = vadd.f32 %v8453_v16, %v8441_v53  ;;  %v9794_v53 = vld [vmem:[#allocation6 + $0x38] sm:$0xf0] }
 0x6a3   :  { %v13696_v35 = vld [vmem:[#allocation6 + $0x1e98] sm:$0xf]  ;;  %v13441_v54 = vor.u32 %v15327_v27, %v13440_v59  ;;  %8707 = vmatpush.bf16.msrb.mxu3 %v14017_v60  ;;  %8721 = vmatpush.bf16.msra.mxu0 %v9893_v24  ;;  %v14419_v27 = vld [vmem:[#allocation6 + $0x5c] sm:$0xf] }
 0x6a4   :  { %v15391_v61 = vld [vmem:[#allocation6 + $0x1eb4] sm:$0xf0]  ;;  %v9826_v60 = vld [vmem:[#allocation6 + $0x78] sm:$0xf0] }
 0x6a5   :  { %v13984_v26 = vld [vmem:[#allocation6 + $0x20d8] sm:$0xf]  ;;  %v13697_v43 = vor.u32 %v15391_v61, %v13696_v35  ;;  %8683 = vmatpush.bf16.msrb.mxu1 %v13441_v54  ;;  %v10277_v61 = vor.u32 %v14531_v41, %v10274_v20  ;;  %v10533_v54 = vor.u32 %v14595_v37, %v10530_v17  ;;  %v9829_v7 = vor.u32 %v14419_v27, %v9826_v60  ;;  %v10786_v24 = vld [vmem:[#allocation6 + $0x7f8] sm:$0xf0] }
 0x6a6   :  { %v15463_v30 = vld [vmem:[#allocation6 + $0x20f4] sm:$0xf0]  ;;  %v14651_v20 = vld [vmem:[#allocation6 + $0x79c] sm:$0xf] }
 0x6a7   :  { %v13408_v10 = vld [vmem:[#allocation6 + $0x1c58] sm:$0xf]  ;;  %v13985_v55 = vor.u32 %v15463_v30, %v13984_v26  ;;  %8696 = vmatpush.bf16.msrb.mxu2 %v13697_v43  ;;  %v8442_v26 = vpop.f32.mrf.mxu2  ;;  %v8468_v30 = vpop.f32.mrf.mxu0  ;;  %v14587_v43 = vld [vmem:[#allocation6 + $0x59c] sm:$0xf]  ;;  %8722 = vmatpush.bf16.msra.mxu0 %v9861_v44 }
 0x6a8   :  { %v15319_v11 = vld [vmem:[#allocation6 + $0x1c74] sm:$0xf0]  ;;  %v10754_v37 = vld [vmem:[#allocation6 + $0x7b8] sm:$0xf0] }
 0x6a9   :  { %v13664_v50 = vld [vmem:[#allocation6 + $0x1e58] sm:$0xf]  ;;  %v13409_v36 = vor.u32 %v15319_v11, %v13408_v10  ;;  %8708 = vmatpush.bf16.msrb.mxu3 %v13985_v55  ;;  %v10498_v10 = vld [vmem:[#allocation6 + $0x5b8] sm:$0xf0]  ;;  %v16095_v11 = vadd.f32 %v8466_v48, %v8454_v5 }
 0x6aa   :  { %v15383_v2 = vld [vmem:[#allocation6 + $0x1e74] sm:$0xf0]  ;;  %v10501_v42 = vor.u32 %v14587_v43, %v10498_v10  ;;  %v14515_v48 = vld [vmem:[#allocation6 + $0x35c] sm:$0xf] }
 0x6ab   :  { %v13952_v25 = vld [vmem:[#allocation6 + $0x2098] sm:$0xf]  ;;  %v13665_v4 = vor.u32 %v15383_v2, %v13664_v50  ;;  %8684 = vmatpush.bf16.msrb.mxu1 %v13409_v36  ;;  %v14411_v2 = vld [vmem:[#allocation6 + $0x1c] sm:$0xf]  ;;  %8723 = vmatpush.bf16.msra.mxu0 %v9829_v7 }
 0x6ac   :  { %v15455_v33 = vld [vmem:[#allocation6 + $0x20b4] sm:$0xf0]  ;;  %v11042_v36 = vld [vmem:[#allocation6 + $0x9f8] sm:$0xf0] }
 0x6ad   :  { %v13376_v15 = vld [vmem:[#allocation6 + $0x1c18] sm:$0xf]  ;;  %v13953_v13 = vor.u32 %v15455_v33, %v13952_v25  ;;  %8697 = vmatpush.bf16.msrb.mxu2 %v13665_v4  ;;  %v10245_v25 = vor.u32 %v14523_v38, %v10242_v12  ;;  %v14723_v33 = vld [vmem:[#allocation6 + $0x9dc] sm:$0xf]  ;;  %v8455_v4 = vpop.f32.mrf.mxu3 }
 0x6ae   :  { %v15311_v23 = vld [vmem:[#allocation6 + $0x1c34] sm:$0xf0]  ;;  %v11045_v41 = vor.u32 %v14723_v33, %v11042_v36  ;;  %v14715_v44 = vld [vmem:[#allocation6 + $0x99c] sm:$0xf] }
 0x6af   :  { %v13632_v39 = vld [vmem:[#allocation6 + $0x1e18] sm:$0xf]  ;;  %v13377_v59 = vor.u32 %v15311_v23, %v13376_v15  ;;  %8709 = vmatpush.bf16.msrb.mxu3 %v13953_v13  ;;  %v10210_v15 = vld [vmem:[#allocation6 + $0x378] sm:$0xf0]  ;;  %v9797_v23 = vor.u32 %v14411_v2, %v9794_v53 }
 0x6b0   :  { %v15375_v31 = vld [vmem:[#allocation6 + $0x1e34] sm:$0xf0]  ;;  %v10466_v13 = vld [vmem:[#allocation6 + $0x578] sm:$0xf0]  ;;  %v10213_v16 = vor.u32 %v14515_v48, %v10210_v15 }
 0x6b1   :  { %v13920_v49 = vld [vmem:[#allocation6 + $0x2058] sm:$0xf]  ;;  %v13633_v35 = vor.u32 %v15375_v31, %v13632_v39  ;;  %8685 = vmatpush.bf16.msrb.mxu1 %v13377_v59  ;;  %v10789_v39 = vor.u32 %v14659_v63, %v10786_v24  ;;  %v14579_v31 = vld [vmem:[#allocation6 + $0x55c] sm:$0xf]  ;;  %8724 = vmatpush.bf16.msra.mxu0 %v9797_v23  ;;  %v10757_v59 = vor.u32 %v14651_v20, %v10754_v37 }
 0x6b2   :  { %v15447_v58 = vld [vmem:[#allocation6 + $0x2074] sm:$0xf0]  ;;  %v11010_v17 = vld [vmem:[#allocation6 + $0x9b8] sm:$0xf0] }
 0x6b3   :  { %v13921_v46 = vor.u32 %v15447_v58, %v13920_v49  ;;  %v13888_v55 = vld [vmem:[#allocation6 + $0x2018] sm:$0xf]  ;;  %8698 = vmatpush.bf16.msrb.mxu2 %v13633_v35  ;;  %v10469_v49 = vor.u32 %v14579_v31, %v10466_v13  ;;  %v14507_v58 = vld [vmem:[#allocation6 + $0x31c] sm:$0xf]  ;;  %v11013_v35 = vor.u32 %v14715_v44, %v11010_v17  ;;  %v8492_v44 = vpop.f32.mrf.mxu2  ;;  %v8518_v17 = vpop.f32.mrf.mxu0 }
 0x6b4   :  { %v15439_v50 = vld [vmem:[#allocation6 + $0x2034] sm:$0xf0]  ;;  %8686 = vmatmul.bf16.vlgmr.msrb.gmra.mxu1 %v15909_v14  ;;  %v10178_v5 = vld [vmem:[#allocation6 + $0x338] sm:$0xf0]  ;;  %8725 = vmatmul.bf16.vlgmr.msra.gmra.mxu0 %v15850_v57 }
 0x6b5   :  { %8730 = vmatpush.bf16.msra.mxu1 %v10277_v61  ;;  %8710 = vmatpush.bf16.msrb.mxu3 %v13921_v46  ;;  %v13889_v9 = vor.u32 %v15439_v50, %v13888_v55  ;;  %v14571_v27 = vld [vmem:[#allocation6 + $0x51c] sm:$0xf]  ;;  %v10181_v26 = vor.u32 %v14507_v58, %v10178_v5  ;;  %v8479_v50 = vpop.f32.mrf.mxu1 }
 0x6b6   :  { %8699 = vmatmul.bf16.vlgmr.msrb.gmra.mxu2 %v15911_v18  ;;  %v10434_v60 = vld [vmem:[#allocation6 + $0x538] sm:$0xf0]  ;;  %8769 = vmatpush.bf16.msrb.mxu0 %v11045_v41  ;;  %v8480_v24 = vadd.f32 %v8479_v50, %v16095_v11 }
 0x6b7   :  { %8743 = vmatpush.bf16.msra.mxu2 %v10533_v54  ;;  %v14643_v61 = vld [vmem:[#allocation6 + $0x75c] sm:$0xf]  ;;  %v10437_v46 = vor.u32 %v14571_v27, %v10434_v60 }
 0x6b8   :  { %v10722_v38 = vld [vmem:[#allocation6 + $0x778] sm:$0xf0] }
 0x6b9   :  { %8731 = vmatpush.bf16.msra.mxu1 %v10245_v25  ;;  %8711 = vmatpush.bf16.msrb.mxu3 %v13889_v9  ;;  %v14707_v30 = vld [vmem:[#allocation6 + $0x95c] sm:$0xf]  ;;  %v10725_v10 = vor.u32 %v14643_v61, %v10722_v38 }
 0x6ba   :  { %v10978_v54 = vld [vmem:[#allocation6 + $0x978] sm:$0xf0]  ;;  %8770 = vmatpush.bf16.msrb.mxu0 %v11013_v35  ;;  %v15582_v35 = vld [vmem:[#allocation7] sm:$0xff] }
 0x6bb   :  { %8744 = vmatpush.bf16.msra.mxu2 %v10501_v42  ;;  %v14499_v12 = vld [vmem:[#allocation6 + $0x2dc] sm:$0xf]  ;;  %v10981_v2 = vor.u32 %v14707_v30, %v10978_v54  ;;  %v1720_v61 = vperm.slane %v15582_v35, 6 }
 0x6bc   :  { %8712 = vmatmul.bf16.vlgmr.msrb.gmra.mxu3 %v15916_v56  ;;  %v10146_v43 = vld [vmem:[#allocation6 + $0x2f8] sm:$0xf0] }
 0x6bd   :  { %8756 = vmatpush.bf16.msra.mxu3 %v10789_v39  ;;  %8732 = vmatpush.bf16.msra.mxu1 %v10213_v16  ;;  %v14563_v7 = vld [vmem:[#allocation6 + $0x4dc] sm:$0xf]  ;;  %v10149_v25 = vor.u32 %v14499_v12, %v10146_v43  ;;  %v8481_v27 = vpop.f32.mrf.mxu1 }
 0x6be   :  { %v10402_v55 = vld [vmem:[#allocation6 + $0x4f8] sm:$0xf0]  ;;  %8771 = vmatpush.bf16.msrb.mxu0 %v10981_v2 }
 0x6bf   :  { %8745 = vmatpush.bf16.msra.mxu2 %v10469_v49  ;;  %v14635_v53 = vld [vmem:[#allocation6 + $0x71c] sm:$0xf]  ;;  %v10405_v57 = vor.u32 %v14563_v7, %v10402_v55 }
 0x6c0   :  { %v10690_v63 = vld [vmem:[#allocation6 + $0x738] sm:$0xf0] }
 0x6c1   :  { %8757 = vmatpush.bf16.msra.mxu3 %v10757_v59  ;;  %8733 = vmatpush.bf16.msra.mxu1 %v10181_v26  ;;  %v14699_v33 = vld [vmem:[#allocation6 + $0x91c] sm:$0xf]  ;;  %v10693_v48 = vor.u32 %v14635_v53, %v10690_v63  ;;  %v16102_v59 = vadd.f32 %v8492_v44, %v8480_v24  ;;  %v8505_v24 = vpop.f32.mrf.mxu3 }
 0x6c2   :  { %v10946_v36 = vld [vmem:[#allocation6 + $0x938] sm:$0xf0] }
 0x6c3   :  { %8746 = vmatpush.bf16.msra.mxu2 %v10437_v46  ;;  %v14491_v42 = vld [vmem:[#allocation6 + $0x29c] sm:$0xf]  ;;  %v10949_v23 = vor.u32 %v14699_v33, %v10946_v36 }
 0x6c4   :  { %v10114_v9 = vld [vmem:[#allocation6 + $0x2b8] sm:$0xf0] }
 0x6c5   :  { %8758 = vmatpush.bf16.msra.mxu3 %v10725_v10  ;;  %v14555_v15 = vld [vmem:[#allocation6 + $0x49c] sm:$0xf]  ;;  %8734 = vmatpush.bf16.msra.mxu1 %v10149_v25  ;;  %v10117_v13 = vor.u32 %v14491_v42, %v10114_v9  ;;  %v8506_v42 = vadd.f32 %v8505_v24, %v1720_v61 }
 0x6c6   :  { %v10370_v4 = vld [vmem:[#allocation6 + $0x4b8] sm:$0xf0]  ;;  %8772 = vmatpush.bf16.msrb.mxu0 %v10949_v23 }
 0x6c7   :  { %v14627_v39 = vld [vmem:[#allocation6 + $0x6dc] sm:$0xf]  ;;  %8747 = vmatpush.bf16.msra.mxu2 %v10405_v57  ;;  %v10373_v20 = vor.u32 %v14555_v15, %v10370_v4  ;;  %v16104_v44 = vadd.f32 %v8518_v17, %v8506_v42 }
 0x6c8   :  { %v10658_v31 = vld [vmem:[#allocation6 + $0x6f8] sm:$0xf0] }
 0x6c9   :  { %v14691_v41 = vld [vmem:[#allocation6 + $0x8dc] sm:$0xf]  ;;  %8759 = vmatpush.bf16.msra.mxu3 %v10693_v48  ;;  %v10661_v49 = vor.u32 %v14627_v39, %v10658_v31  ;;  %8735 = vmatpush.bf16.msra.mxu1 %v10117_v13  ;;  %v8494_v31 = vpop.f32.mrf.mxu2  ;;  %v8520_v13 = vpop.f32.mrf.mxu0 }
 0x6ca   :  { %v10914_v11 = vld [vmem:[#allocation6 + $0x8f8] sm:$0xf0] }
 0x6cb   :  { %v14483_v37 = vld [vmem:[#allocation6 + $0x25c] sm:$0xf]  ;;  %v10917_v60 = vor.u32 %v14691_v41, %v10914_v11  ;;  %8748 = vmatpush.bf16.msra.mxu2 %v10373_v20 }
 0x6cc   :  { %v10082_v16 = vld [vmem:[#allocation6 + $0x278] sm:$0xf0] }
 0x6cd   :  { %v14547_v58 = vld [vmem:[#allocation6 + $0x45c] sm:$0xf]  ;;  %v10085_v30 = vor.u32 %v14483_v37, %v10082_v16  ;;  %8760 = vmatpush.bf16.msra.mxu3 %v10661_v49  ;;  %8773 = vmatpush.bf16.msrb.mxu0 %v10917_v60 }
 0x6ce   :  { %v10338_v5 = vld [vmem:[#allocation6 + $0x478] sm:$0xf0] }
 0x6cf   :  { %v14619_v38 = vld [vmem:[#allocation6 + $0x69c] sm:$0xf]  ;;  %v10341_v43 = vor.u32 %v14547_v58, %v10338_v5  ;;  %8736 = vmatpush.bf16.msra.mxu1 %v10085_v30 }
 0x6d0   :  { %v10626_v26 = vld [vmem:[#allocation6 + $0x6b8] sm:$0xf0] }
 0x6d1   :  { %v14683_v54 = vld [vmem:[#allocation6 + $0x89c] sm:$0xf]  ;;  %v10629_v50 = vor.u32 %v14619_v38, %v10626_v26  ;;  %8749 = vmatpush.bf16.msra.mxu2 %v10341_v43  ;;  %v8507_v43 = vpop.f32.mrf.mxu3 }
 0x6d2   :  { %v10882_v46 = vld [vmem:[#allocation6 + $0x8b8] sm:$0xf0] }
 0x6d3   :  { %v14475_v12 = vld [vmem:[#allocation6 + $0x21c] sm:$0xf]  ;;  %v10885_v25 = vor.u32 %v14683_v54, %v10882_v46  ;;  %8761 = vmatpush.bf16.msra.mxu3 %v10629_v50 }
 0x6d4   :  { %v10050_v10 = vld [vmem:[#allocation6 + $0x238] sm:$0xf0] }
 0x6d5   :  { %v14539_v7 = vld [vmem:[#allocation6 + $0x41c] sm:$0xf]  ;;  %v10053_v9 = vor.u32 %v14475_v12, %v10050_v10  ;;  %8774 = vmatpush.bf16.msrb.mxu0 %v10885_v25 }
 0x6d6   :  { %v10306_v55 = vld [vmem:[#allocation6 + $0x438] sm:$0xf0] }
 0x6d7   :  { %v14787_v2 = vld [vmem:[#allocation6 + $0xbdc] sm:$0xf]  ;;  %v10309_v4 = vor.u32 %v14539_v7, %v10306_v55  ;;  %8737 = vmatpush.bf16.msra.mxu1 %v10053_v9 }
 0x6d8   :  { %v11298_v53 = vld [vmem:[#allocation6 + $0xbf8] sm:$0xf0] }
 0x6d9   :  { %v14851_v63 = vld [vmem:[#allocation6 + $0xddc] sm:$0xf]  ;;  %v11301_v23 = vor.u32 %v14787_v2, %v11298_v53  ;;  %8750 = vmatpush.bf16.msra.mxu2 %v10309_v4 }
 0x6da   :  { %v11554_v33 = vld [vmem:[#allocation6 + $0xdf8] sm:$0xf0]  ;;  %8738 = vmatmul.bf16.vlgmr.msra.gmra.mxu1 %v15853_v62 }
 0x6db   :  { %v14611_v36 = vld [vmem:[#allocation6 + $0x65c] sm:$0xf]  ;;  %v11557_v41 = vor.u32 %v14851_v63, %v11554_v33  ;;  %8782 = vmatpush.bf16.msrb.mxu1 %v11301_v23 }
 0x6dc   :  { %v10594_v57 = vld [vmem:[#allocation6 + $0x678] sm:$0xf0]  ;;  %8751 = vmatmul.bf16.vlgmr.msra.gmra.mxu2 %v15858_v21 }
 0x6dd   :  { %v14675_v48 = vld [vmem:[#allocation6 + $0x85c] sm:$0xf]  ;;  %v10597_v11 = vor.u32 %v14611_v36, %v10594_v57  ;;  %8795 = vmatpush.bf16.msrb.mxu2 %v11557_v41 }
 0x6de   :  { %v10850_v15 = vld [vmem:[#allocation6 + $0x878] sm:$0xf0] }
 0x6df   :  { %v14779_v39 = vld [vmem:[#allocation6 + $0xb9c] sm:$0xf]  ;;  %v10853_v49 = vor.u32 %v14675_v48, %v10850_v15  ;;  %8762 = vmatpush.bf16.msra.mxu3 %v10597_v11 }
 0x6e0   :  { %v11266_v20 = vld [vmem:[#allocation6 + $0xbb8] sm:$0xf0] }
 0x6e1   :  { %v14843_v37 = vld [vmem:[#allocation6 + $0xd9c] sm:$0xf]  ;;  %v11269_v38 = vor.u32 %v14779_v39, %v11266_v20  ;;  %8775 = vmatpush.bf16.msrb.mxu0 %v10853_v49  ;;  %v8531_v49 = vpop.f32.mrf.mxu1 }
 0x6e2   :  { %v11522_v16 = vld [vmem:[#allocation6 + $0xdb8] sm:$0xf0] }
 0x6e3   :  { %v14603_v58 = vld [vmem:[#allocation6 + $0x61c] sm:$0xf]  ;;  %v11525_v54 = vor.u32 %v14843_v37, %v11522_v16  ;;  %8783 = vmatpush.bf16.msrb.mxu1 %v11269_v38 }
 0x6e4   :  { %v10562_v5 = vld [vmem:[#allocation6 + $0x638] sm:$0xf0] }
 0x6e5   :  { %v14667_v27 = vld [vmem:[#allocation6 + $0x81c] sm:$0xf]  ;;  %v10565_v46 = vor.u32 %v14603_v58, %v10562_v5  ;;  %8796 = vmatpush.bf16.msrb.mxu2 %v11525_v54 }
 0x6e6   :  { %v10818_v60 = vld [vmem:[#allocation6 + $0x838] sm:$0xf0] }
 0x6e7   :  { %v14915_v35 = vld [vmem:[#allocation6 + $0xfdc] sm:$0xf]  ;;  %v10821_v10 = vor.u32 %v14667_v27, %v10818_v60  ;;  %8763 = vmatpush.bf16.msra.mxu3 %v10565_v46 }
 0x6e8   :  { %v11810_v61 = vld [vmem:[#allocation6 + $0xff8] sm:$0xf0] }
 0x6e9   :  { %v14979_v26 = vld [vmem:[#allocation6 + $0x11dc] sm:$0xf]  ;;  %v11813_v7 = vor.u32 %v14915_v35, %v11810_v61  ;;  %8776 = vmatpush.bf16.msrb.mxu0 %v10821_v10 }
 0x6ea   :  { %v12066_v30 = vld [vmem:[#allocation6 + $0x11f8] sm:$0xf0]  ;;  %8764 = vmatmul.bf16.vlgmr.msra.gmra.mxu3 %v15860_v28  ;;  %v8532_v28 = vadd.f32 %v8531_v49, %v16104_v44 }
 0x6eb   :  { %v14771_v17 = vld [vmem:[#allocation6 + $0xb5c] sm:$0xf]  ;;  %v12069_v2 = vor.u32 %v14979_v26, %v12066_v30  ;;  %8808 = vmatpush.bf16.msrb.mxu3 %v11813_v7 }
 0x6ec   :  { %v11234_v12 = vld [vmem:[#allocation6 + $0xb78] sm:$0xf0]  ;;  %8777 = vmatmul.bf16.vlgmr.msrb.gmra.mxu0 %v15866_v0 }
 0x6ed   :  { %v14835_v55 = vld [vmem:[#allocation6 + $0xd5c] sm:$0xf]  ;;  %v11237_v24 = vor.u32 %v14771_v17, %v11234_v12  ;;  %8821 = vmatpush.bf16.msra.mxu0 %v12069_v2 }
 0x6ee   :  { %v11490_v50 = vld [vmem:[#allocation6 + $0xd78] sm:$0xf0] }
 0x6ef   :  { %v14907_v53 = vld [vmem:[#allocation6 + $0xf9c] sm:$0xf]  ;;  %v11493_v36 = vor.u32 %v14835_v55, %v11490_v50  ;;  %8784 = vmatpush.bf16.msrb.mxu1 %v11237_v24 }
 0x6f0   :  { %v11778_v63 = vld [vmem:[#allocation6 + $0xfb8] sm:$0xf0] }
 0x6f1   :  { %v14971_v25 = vld [vmem:[#allocation6 + $0x119c] sm:$0xf]  ;;  %v11781_v62 = vor.u32 %v14907_v53, %v11778_v63  ;;  %8797 = vmatpush.bf16.msrb.mxu2 %v11493_v36  ;;  %v8544_v53 = vpop.f32.mrf.mxu2  ;;  %v8570_v63 = vpop.f32.mrf.mxu0 }
 0x6f2   :  { %v12034_v33 = vld [vmem:[#allocation6 + $0x11b8] sm:$0xf0]  ;;  %v8545_v36 = vadd.f32 %v8544_v53, %v8532_v28 }
 0x6f3   :  { %v14763_v57 = vld [vmem:[#allocation6 + $0xb1c] sm:$0xf]  ;;  %v12037_v15 = vor.u32 %v14971_v25, %v12034_v33  ;;  %8809 = vmatpush.bf16.msrb.mxu3 %v11781_v62 }
 0x6f4   :  { %v11202_v42 = vld [vmem:[#allocation6 + $0xb38] sm:$0xf0] }
 0x6f5   :  { %v14827_v9 = vld [vmem:[#allocation6 + $0xd1c] sm:$0xf]  ;;  %v11205_v23 = vor.u32 %v14763_v57, %v11202_v42  ;;  %8822 = vmatpush.bf16.msra.mxu0 %v12037_v15  ;;  %v8533_v57 = vpop.f32.mrf.mxu1 }
 0x6f6   :  { %v11458_v48 = vld [vmem:[#allocation6 + $0xd38] sm:$0xf0] }
 0x6f7   :  { %v14899_v21 = vld [vmem:[#allocation6 + $0xf5c] sm:$0xf]  ;;  %v11461_v13 = vor.u32 %v14827_v9, %v11458_v48  ;;  %8785 = vmatpush.bf16.msrb.mxu1 %v11205_v23 }
 0x6f8   :  { %v11746_v4 = vld [vmem:[#allocation6 + $0xf78] sm:$0xf0] }
 0x6f9   :  { %v14963_v39 = vld [vmem:[#allocation6 + $0x115c] sm:$0xf]  ;;  %v11749_v20 = vor.u32 %v14899_v21, %v11746_v4  ;;  %8798 = vmatpush.bf16.msrb.mxu2 %v11461_v13 }
 0x6fa   :  { %v12002_v31 = vld [vmem:[#allocation6 + $0x1178] sm:$0xf0] }
 0x6fb   :  { %v14755_v41 = vld [vmem:[#allocation6 + $0xadc] sm:$0xf]  ;;  %v12005_v58 = vor.u32 %v14963_v39, %v12002_v31  ;;  %8810 = vmatpush.bf16.msrb.mxu3 %v11749_v20 }
 0x6fc   :  { %v11170_v11 = vld [vmem:[#allocation6 + $0xaf8] sm:$0xf0] }
 0x6fd   :  { %v14819_v37 = vld [vmem:[#allocation6 + $0xcdc] sm:$0xf]  ;;  %v11173_v60 = vor.u32 %v14755_v41, %v11170_v11  ;;  %8823 = vmatpush.bf16.msra.mxu0 %v12005_v58 }
 0x6fe   :  { %v11426_v16 = vld [vmem:[#allocation6 + $0xcf8] sm:$0xf0] }
 0x6ff   :  { %v14891_v5 = vld [vmem:[#allocation6 + $0xf1c] sm:$0xf]  ;;  %v11429_v0 = vor.u32 %v14819_v37, %v11426_v16  ;;  %8786 = vmatpush.bf16.msrb.mxu1 %v11173_v60  ;;  %v8557_v16 = vpop.f32.mrf.mxu3 }
 0x700   :  { %v11714_v27 = vld [vmem:[#allocation6 + $0xf38] sm:$0xf0]  ;;  %v8558_v28 = vadd.f32 %v8557_v16, %v8545_v36 }
 0x701   :  { %v14955_v35 = vld [vmem:[#allocation6 + $0x111c] sm:$0xf]  ;;  %v11717_v30 = vor.u32 %v14891_v5, %v11714_v27  ;;  %8799 = vmatpush.bf16.msrb.mxu2 %v11429_v0 }
 0x702   :  { %v11970_v61 = vld [vmem:[#allocation6 + $0x1138] sm:$0xf0] }
 0x703   :  { %v14747_v38 = vld [vmem:[#allocation6 + $0xa9c] sm:$0xf]  ;;  %v11973_v17 = vor.u32 %v14955_v35, %v11970_v61  ;;  %8811 = vmatpush.bf16.msrb.mxu3 %v11717_v30  ;;  %v8546_v30 = vpop.f32.mrf.mxu2 }
 0x704   :  { %v11138_v26 = vld [vmem:[#allocation6 + $0xab8] sm:$0xf0] }
 0x705   :  { %v14811_v54 = vld [vmem:[#allocation6 + $0xc9c] sm:$0xf]  ;;  %v11141_v10 = vor.u32 %v14747_v38, %v11138_v26  ;;  %8824 = vmatpush.bf16.msra.mxu0 %v11973_v17 }
 0x706   :  { %v11394_v46 = vld [vmem:[#allocation6 + $0xcb8] sm:$0xf0] }
 0x707   :  { %v14883_v12 = vld [vmem:[#allocation6 + $0xedc] sm:$0xf]  ;;  %v11397_v55 = vor.u32 %v14811_v54, %v11394_v46  ;;  %8787 = vmatpush.bf16.msrb.mxu1 %v11141_v10  ;;  %v8572_v54 = vpop.f32.mrf.mxu0 }
 0x708   :  { %v11682_v43 = vld [vmem:[#allocation6 + $0xef8] sm:$0xf0] }
 0x709   :  { %v14947_v7 = vld [vmem:[#allocation6 + $0x10dc] sm:$0xf]  ;;  %v11685_v24 = vor.u32 %v14883_v12, %v11682_v43  ;;  %8800 = vmatpush.bf16.msrb.mxu2 %v11397_v55 }
 0x70a   :  { %v11938_v44 = vld [vmem:[#allocation6 + $0x10f8] sm:$0xf0] }
 0x70b   :  { %v14739_v50 = vld [vmem:[#allocation6 + $0xa5c] sm:$0xf]  ;;  %v11941_v42 = vor.u32 %v14947_v7, %v11938_v44  ;;  %8812 = vmatpush.bf16.msrb.mxu3 %v11685_v24  ;;  %v16111_v7 = vadd.f32 %v8570_v63, %v8558_v28 }
 0x70c   :  { %v11106_v2 = vld [vmem:[#allocation6 + $0xa78] sm:$0xf0] }
 0x70d   :  { %v14803_v25 = vld [vmem:[#allocation6 + $0xc5c] sm:$0xf]  ;;  %v11109_v48 = vor.u32 %v14739_v50, %v11106_v2  ;;  %8825 = vmatpush.bf16.msra.mxu0 %v11941_v42 }
 0x70e   :  { %v11362_v33 = vld [vmem:[#allocation6 + $0xc78] sm:$0xf0] }
 0x70f   :  { %v14875_v62 = vld [vmem:[#allocation6 + $0xe9c] sm:$0xf]  ;;  %v11365_v23 = vor.u32 %v14803_v25, %v11362_v33  ;;  %8788 = vmatpush.bf16.msrb.mxu1 %v11109_v48  ;;  %v8559_v48 = vpop.f32.mrf.mxu3 }
 0x710   :  { %v11650_v9 = vld [vmem:[#allocation6 + $0xeb8] sm:$0xf0] }
 0x711   :  { %v14939_v15 = vld [vmem:[#allocation6 + $0x109c] sm:$0xf]  ;;  %v11653_v41 = vor.u32 %v14875_v62, %v11650_v9  ;;  %8801 = vmatpush.bf16.msrb.mxu2 %v11365_v23 }
 0x712   :  { %v11906_v21 = vld [vmem:[#allocation6 + $0x10b8] sm:$0xf0] }
 0x713   :  { %v14731_v4 = vld [vmem:[#allocation6 + $0xa1c] sm:$0xf]  ;;  %v11909_v49 = vor.u32 %v14939_v15, %v11906_v21  ;;  %8813 = vmatpush.bf16.msrb.mxu3 %v11653_v41 }
 0x714   :  { %v11074_v39 = vld [vmem:[#allocation6 + $0xa38] sm:$0xf0] }
 0x715   :  { %v14795_v31 = vld [vmem:[#allocation6 + $0xc1c] sm:$0xf]  ;;  %v11077_v60 = vor.u32 %v14731_v4, %v11074_v39  ;;  %8826 = vmatpush.bf16.msra.mxu0 %v11909_v49 }
 0x716   :  { %v11330_v13 = vld [vmem:[#allocation6 + $0xc38] sm:$0xf0] }
 0x717   :  { %v15043_v11 = vld [vmem:[#allocation6 + $0x13dc] sm:$0xf]  ;;  %v11333_v0 = vor.u32 %v14795_v31, %v11330_v13  ;;  %8789 = vmatpush.bf16.msrb.mxu1 %v11077_v60 }
 0x718   :  { %v12322_v20 = vld [vmem:[#allocation6 + $0x13f8] sm:$0xf0] }
 0x719   :  { %v15107_v37 = vld [vmem:[#allocation6 + $0x15dc] sm:$0xf]  ;;  %v12325_v38 = vor.u32 %v15043_v11, %v12322_v20  ;;  %8802 = vmatpush.bf16.msrb.mxu2 %v11333_v0 }
 0x71a   :  { %v12578_v58 = vld [vmem:[#allocation6 + $0x15f8] sm:$0xf0]  ;;  %8790 = vmatmul.bf16.vlgmr.msrb.gmra.mxu1 %v15869_v6 }
 0x71b   :  { %v14867_v5 = vld [vmem:[#allocation6 + $0xe5c] sm:$0xf]  ;;  %v12581_v46 = vor.u32 %v15107_v37, %v12578_v58  ;;  %8834 = vmatpush.bf16.msra.mxu1 %v12325_v38 }
 0x71c   :  { %v11618_v27 = vld [vmem:[#allocation6 + $0xe78] sm:$0xf0]  ;;  %8803 = vmatmul.bf16.vlgmr.msrb.gmra.mxu2 %v15875_v34 }
 0x71d   :  { %v14931_v35 = vld [vmem:[#allocation6 + $0x105c] sm:$0xf]  ;;  %v11621_v17 = vor.u32 %v14867_v5, %v11618_v27  ;;  %8847 = vmatpush.bf16.msra.mxu2 %v12581_v46 }
 0x71e   :  { %v11874_v61 = vld [vmem:[#allocation6 + $0x1078] sm:$0xf0] }
 0x71f   :  { %v15035_v26 = vld [vmem:[#allocation6 + $0x139c] sm:$0xf]  ;;  %v11877_v44 = vor.u32 %v14931_v35, %v11874_v61  ;;  %8814 = vmatpush.bf16.msrb.mxu3 %v11621_v17  ;;  %v8583_v17 = vpop.f32.mrf.mxu1 }
 0x720   :  { %v12290_v12 = vld [vmem:[#allocation6 + $0x13b8] sm:$0xf0] }
 0x721   :  { %v15099_v43 = vld [vmem:[#allocation6 + $0x159c] sm:$0xf]  ;;  %v12293_v33 = vor.u32 %v15035_v26, %v12290_v12  ;;  %8827 = vmatpush.bf16.msra.mxu0 %v11877_v44 }
 0x722   :  { %v12546_v10 = vld [vmem:[#allocation6 + $0x15b8] sm:$0xf0] }
 0x723   :  { %v14859_v55 = vld [vmem:[#allocation6 + $0xe1c] sm:$0xf]  ;;  %v12549_v42 = vor.u32 %v15099_v43, %v12546_v10  ;;  %8835 = vmatpush.bf16.msra.mxu1 %v12293_v33 }
 0x724   :  { %v11586_v50 = vld [vmem:[#allocation6 + $0xe38] sm:$0xf0] }
 0x725   :  { %v14923_v2 = vld [vmem:[#allocation6 + $0x101c] sm:$0xf]  ;;  %v11589_v62 = vor.u32 %v14859_v55, %v11586_v50  ;;  %8848 = vmatpush.bf16.msra.mxu2 %v12549_v42 }
 0x726   :  { %v11842_v53 = vld [vmem:[#allocation6 + $0x1038] sm:$0xf0] }
 0x727   :  { %v15171_v24 = vld [vmem:[#allocation6 + $0x17dc] sm:$0xf]  ;;  %v11845_v15 = vor.u32 %v14923_v2, %v11842_v53  ;;  %8815 = vmatpush.bf16.msrb.mxu3 %v11589_v62 }
 0x728   :  { %v12834_v25 = vld [vmem:[#allocation6 + $0x17f8] sm:$0xf0] }
 0x729   :  { %v15235_v36 = vld [vmem:[#allocation6 + $0x19dc] sm:$0xf]  ;;  %v12837_v21 = vor.u32 %v15171_v24, %v12834_v25  ;;  %8828 = vmatpush.bf16.msra.mxu0 %v11845_v15 }
 0x72a   :  { %v13090_v57 = vld [vmem:[#allocation6 + $0x19f8] sm:$0xf0]  ;;  %8816 = vmatmul.bf16.vlgmr.msrb.gmra.mxu3 %v15879_v40  ;;  %v8584_v40 = vadd.f32 %v8583_v17, %v16111_v7 }
 0x72b   :  { %v15027_v63 = vld [vmem:[#allocation6 + $0x135c] sm:$0xf]  ;;  %v13093_v39 = vor.u32 %v15235_v36, %v13090_v57  ;;  %8860 = vmatpush.bf16.msra.mxu3 %v12837_v21  ;;  %v8596_v21 = vpop.f32.mrf.mxu2 }
 0x72c   :  { %v12258_v9 = vld [vmem:[#allocation6 + $0x1378] sm:$0xf0]  ;;  %8829 = vmatmul.bf16.vlgmr.msra.gmra.mxu0 %v15884_v22 }
 0x72d   :  { %v15091_v4 = vld [vmem:[#allocation6 + $0x155c] sm:$0xf]  ;;  %v12261_v41 = vor.u32 %v15027_v63, %v12258_v9  ;;  %8873 = vmatpush.bf16.msrb.mxu0 %v13093_v39 }
 0x72e   :  { %v12514_v23 = vld [vmem:[#allocation6 + $0x1578] sm:$0xf0] }
 0x72f   :  { %v15163_v31 = vld [vmem:[#allocation6 + $0x179c] sm:$0xf]  ;;  %v12517_v37 = vor.u32 %v15091_v4, %v12514_v23  ;;  %8836 = vmatpush.bf16.msra.mxu1 %v12261_v41  ;;  %v8622_v4 = vpop.f32.mrf.mxu0  ;;  %v8585_v41 = vpop.f32.mrf.mxu1 }
 0x730   :  { %v12802_v13 = vld [vmem:[#allocation6 + $0x17b8] sm:$0xf0] }
 0x731   :  { %v15227_v11 = vld [vmem:[#allocation6 + $0x199c] sm:$0xf]  ;;  %v12805_v6 = vor.u32 %v15163_v31, %v12802_v13  ;;  %8849 = vmatpush.bf16.msra.mxu2 %v12517_v37  ;;  %v8597_v13 = vadd.f32 %v8596_v21, %v8584_v40 }
 0x732   :  { %v13058_v20 = vld [vmem:[#allocation6 + $0x19b8] sm:$0xf0] }
 0x733   :  { %v15019_v16 = vld [vmem:[#allocation6 + $0x131c] sm:$0xf]  ;;  %v13061_v27 = vor.u32 %v15227_v11, %v13058_v20  ;;  %8861 = vmatpush.bf16.msra.mxu3 %v12805_v6 }
 0x734   :  { %v12226_v49 = vld [vmem:[#allocation6 + $0x1338] sm:$0xf0] }
 0x735   :  { %v15083_v58 = vld [vmem:[#allocation6 + $0x151c] sm:$0xf]  ;;  %v12229_v60 = vor.u32 %v15019_v16, %v12226_v49  ;;  %8874 = vmatpush.bf16.msrb.mxu0 %v13061_v27 }
 0x736   :  { %v12482_v5 = vld [vmem:[#allocation6 + $0x1538] sm:$0xf0] }
 0x737   :  { %v15155_v34 = vld [vmem:[#allocation6 + $0x175c] sm:$0xf]  ;;  %v12485_v0 = vor.u32 %v15083_v58, %v12482_v5  ;;  %8837 = vmatpush.bf16.msra.mxu1 %v12229_v60 }
 0x738   :  { %v12770_v28 = vld [vmem:[#allocation6 + $0x1778] sm:$0xf0] }
 0x739   :  { %v15219_v35 = vld [vmem:[#allocation6 + $0x195c] sm:$0xf]  ;;  %v12773_v30 = vor.u32 %v15155_v34, %v12770_v28  ;;  %8850 = vmatpush.bf16.msra.mxu2 %v12485_v0 }
 0x73a   :  { %v13026_v61 = vld [vmem:[#allocation6 + $0x1978] sm:$0xf0] }
 0x73b   :  { %v15011_v38 = vld [vmem:[#allocation6 + $0x12dc] sm:$0xf]  ;;  %v13029_v12 = vor.u32 %v15219_v35, %v13026_v61  ;;  %8862 = vmatpush.bf16.msra.mxu3 %v12773_v30 }
 0x73c   :  { %v12194_v26 = vld [vmem:[#allocation6 + $0x12f8] sm:$0xf0] }
 0x73d   :  { %v15075_v54 = vld [vmem:[#allocation6 + $0x14dc] sm:$0xf]  ;;  %v12197_v44 = vor.u32 %v15011_v38, %v12194_v26  ;;  %8875 = vmatpush.bf16.msrb.mxu0 %v13029_v12  ;;  %v8609_v38 = vpop.f32.mrf.mxu3 }
 0x73e   :  { %v12450_v46 = vld [vmem:[#allocation6 + $0x14f8] sm:$0xf0]  ;;  %v8610_v17 = vadd.f32 %v8609_v38, %v8597_v13 }
 0x73f   :  { %v15147_v43 = vld [vmem:[#allocation6 + $0x171c] sm:$0xf]  ;;  %v12453_v22 = vor.u32 %v15075_v54, %v12450_v46  ;;  %8838 = vmatpush.bf16.msra.mxu1 %v12197_v44 }
 0x740   :  { %v12738_v10 = vld [vmem:[#allocation6 + $0x1738] sm:$0xf0] }
 0x741   :  { %v15211_v55 = vld [vmem:[#allocation6 + $0x191c] sm:$0xf]  ;;  %v12741_v24 = vor.u32 %v15147_v43, %v12738_v10  ;;  %8851 = vmatpush.bf16.msra.mxu2 %v12453_v22  ;;  %v8624_v22 = vpop.f32.mrf.mxu0 }
 0x742   :  { %v12994_v50 = vld [vmem:[#allocation6 + $0x1938] sm:$0xf0] }
 0x743   :  { %v15003_v2 = vld [vmem:[#allocation6 + $0x129c] sm:$0xf]  ;;  %v12997_v36 = vor.u32 %v15211_v55, %v12994_v50  ;;  %8863 = vmatpush.bf16.msra.mxu3 %v12741_v24  ;;  %v8598_v50 = vpop.f32.mrf.mxu2 }
 0x744   :  { %v12162_v53 = vld [vmem:[#allocation6 + $0x12b8] sm:$0xf0] }
 0x745   :  { %v15067_v25 = vld [vmem:[#allocation6 + $0x149c] sm:$0xf]  ;;  %v12165_v62 = vor.u32 %v15003_v2, %v12162_v53  ;;  %8876 = vmatpush.bf16.msrb.mxu0 %v12997_v36  ;;  %v16118_v36 = vadd.f32 %v8622_v4, %v8610_v17  ;;  %v8611_v41 = vpop.f32.mrf.mxu3 }
 0x746   :  { %v12418_v33 = vld [vmem:[#allocation6 + $0x14b8] sm:$0xf0] }
 0x747   :  { %v15139_v57 = vld [vmem:[#allocation6 + $0x16dc] sm:$0xf]  ;;  %v12421_v9 = vor.u32 %v15067_v25, %v12418_v33  ;;  %8839 = vmatpush.bf16.msra.mxu1 %v12165_v62 }
 0x748   :  { %v12706_v42 = vld [vmem:[#allocation6 + $0x16f8] sm:$0xf0] }
 0x749   :  { %v15203_v63 = vld [vmem:[#allocation6 + $0x18dc] sm:$0xf]  ;;  %v12709_v23 = vor.u32 %v15139_v57, %v12706_v42  ;;  %8852 = vmatpush.bf16.msra.mxu2 %v12421_v9 }
 0x74a   :  { %v12962_v7 = vld [vmem:[#allocation6 + $0x18f8] sm:$0xf0] }
 0x74b   :  { %v14995_v48 = vld [vmem:[#allocation6 + $0x125c] sm:$0xf]  ;;  %v12965_v11 = vor.u32 %v15203_v63, %v12962_v7  ;;  %8864 = vmatpush.bf16.msra.mxu3 %v12709_v23 }
 0x74c   :  { %v12130_v15 = vld [vmem:[#allocation6 + $0x1278] sm:$0xf0] }
 0x74d   :  { %v15059_v39 = vld [vmem:[#allocation6 + $0x145c] sm:$0xf]  ;;  %v12133_v16 = vor.u32 %v14995_v48, %v12130_v15  ;;  %8877 = vmatpush.bf16.msrb.mxu0 %v12965_v11 }
 0x74e   :  { %v12386_v31 = vld [vmem:[#allocation6 + $0x1478] sm:$0xf0] }
 0x74f   :  { %v15131_v20 = vld [vmem:[#allocation6 + $0x169c] sm:$0xf]  ;;  %v12389_v5 = vor.u32 %v15059_v39, %v12386_v31  ;;  %8840 = vmatpush.bf16.msra.mxu1 %v12133_v16 }
 0x750   :  { %v12674_v37 = vld [vmem:[#allocation6 + $0x16b8] sm:$0xf0] }
 0x751   :  { %v15195_v49 = vld [vmem:[#allocation6 + $0x189c] sm:$0xf]  ;;  %v12677_v60 = vor.u32 %v15131_v20, %v12674_v37  ;;  %8853 = vmatpush.bf16.msra.mxu2 %v12389_v5 }
 0x752   :  { %v12930_v6 = vld [vmem:[#allocation6 + $0x18b8] sm:$0xf0] }
 0x753   :  { %v14987_v58 = vld [vmem:[#allocation6 + $0x121c] sm:$0xf]  ;;  %v12933_v26 = vor.u32 %v15195_v49, %v12930_v6  ;;  %8865 = vmatpush.bf16.msra.mxu3 %v12677_v60 }
 0x754   :  { %v12098_v27 = vld [vmem:[#allocation6 + $0x1238] sm:$0xf0] }
 0x755   :  { %v15051_v34 = vld [vmem:[#allocation6 + $0x141c] sm:$0xf]  ;;  %v12101_v12 = vor.u32 %v14987_v58, %v12098_v27  ;;  %8878 = vmatpush.bf16.msrb.mxu0 %v12933_v26 }
 0x756   :  { %v12354_v28 = vld [vmem:[#allocation6 + $0x1438] sm:$0xf0] }
 0x757   :  { %v15299_v35 = vld [vmem:[#allocation6 + $0x1bdc] sm:$0xf]  ;;  %v12357_v40 = vor.u32 %v15051_v34, %v12354_v28  ;;  %8841 = vmatpush.bf16.msra.mxu1 %v12101_v12 }
 0x758   :  { %v13346_v61 = vld [vmem:[#allocation6 + $0x1bf8] sm:$0xf0] }
 0x759   :  { %v15363_v0 = vld [vmem:[#allocation6 + $0x1ddc] sm:$0xf]  ;;  %v13349_v44 = vor.u32 %v15299_v35, %v13346_v61  ;;  %8854 = vmatpush.bf16.msra.mxu2 %v12357_v40 }
 0x75a   :  { %v13602_v30 = vld [vmem:[#allocation6 + $0x1df8] sm:$0xf0]  ;;  %8842 = vmatmul.bf16.vlgmr.msra.gmra.mxu1 %v15887_v29 }
 0x75b   :  { %v15123_v54 = vld [vmem:[#allocation6 + $0x165c] sm:$0xf]  ;;  %v13605_v2 = vor.u32 %v15363_v0, %v13602_v30  ;;  %8886 = vmatpush.bf16.msrb.mxu1 %v13349_v44 }
 0x75c   :  { %v12642_v46 = vld [vmem:[#allocation6 + $0x1678] sm:$0xf0]  ;;  %8855 = vmatmul.bf16.vlgmr.msra.gmra.mxu2 %v15891_v1 }
 0x75d   :  { %v15187_v43 = vld [vmem:[#allocation6 + $0x185c] sm:$0xf]  ;;  %v12645_v53 = vor.u32 %v15123_v54, %v12642_v46  ;;  %8899 = vmatpush.bf16.msrb.mxu2 %v13605_v2 }
 0x75e   :  { %v12898_v10 = vld [vmem:[#allocation6 + $0x1878] sm:$0xf0] }
 0x75f   :  { %v15291_v55 = vld [vmem:[#allocation6 + $0x1b9c] sm:$0xf]  ;;  %v12901_v57 = vor.u32 %v15187_v43, %v12898_v10  ;;  %8866 = vmatpush.bf16.msra.mxu3 %v12645_v53 }
 0x760   :  { %v13314_v24 = vld [vmem:[#allocation6 + $0x1bb8] sm:$0xf0] }
 0x761   :  { %v15355_v25 = vld [vmem:[#allocation6 + $0x1d9c] sm:$0xf]  ;;  %v13317_v15 = vor.u32 %v15291_v55, %v13314_v24  ;;  %8879 = vmatpush.bf16.msrb.mxu0 %v12901_v57  ;;  %v8635_v55 = vpop.f32.mrf.mxu1 }
 0x762   :  { %v13570_v33 = vld [vmem:[#allocation6 + $0x1db8] sm:$0xf0] }
 0x763   :  { %v15115_v42 = vld [vmem:[#allocation6 + $0x161c] sm:$0xf]  ;;  %v13573_v39 = vor.u32 %v15355_v25, %v13570_v33  ;;  %8887 = vmatpush.bf16.msrb.mxu1 %v13317_v15 }
 0x764   :  { %v12610_v62 = vld [vmem:[#allocation6 + $0x1638] sm:$0xf0] }
 0x765   :  { %v15179_v63 = vld [vmem:[#allocation6 + $0x181c] sm:$0xf]  ;;  %v12613_v31 = vor.u32 %v15115_v42, %v12610_v62  ;;  %8900 = vmatpush.bf16.msrb.mxu2 %v13573_v39 }
 0x766   :  { %v12866_v7 = vld [vmem:[#allocation6 + $0x1838] sm:$0xf0] }
 0x767   :  { %v15427_v9 = vld [vmem:[#allocation6 + $0x1fdc] sm:$0xf]  ;;  %v12869_v11 = vor.u32 %v15179_v63, %v12866_v7  ;;  %8867 = vmatpush.bf16.msra.mxu3 %v12613_v31 }
 0x768   :  { %v13858_v48 = vld [vmem:[#allocation6 + $0x1ff8] sm:$0xf0] }
 0x769   :  { %v15491_v21 = vld [vmem:[#allocation6 + $0x21dc] sm:$0xf]  ;;  %v13861_v20 = vor.u32 %v15427_v9, %v13858_v48  ;;  %8880 = vmatpush.bf16.msrb.mxu0 %v12869_v11 }
 0x76a   :  { %v14114_v23 = vld [vmem:[#allocation6 + $0x21f8] sm:$0xf0]  ;;  %8868 = vmatmul.bf16.vlgmr.msra.gmra.mxu3 %v15893_v3  ;;  %v8636_v3 = vadd.f32 %v8635_v55, %v16118_v36  ;;  %v15511_v55 = vld [vmem:[#allocation9 + $0x78] sm:$0xff] }
 0x76b   :  { %v15283_v4 = vld [vmem:[#allocation6 + $0x1b5c] sm:$0xf]  ;;  %v14117_v49 = vor.u32 %v15491_v21, %v14114_v23  ;;  %8912 = vmatpush.bf16.msrb.mxu3 %v13861_v20 }
 0x76c   :  { %v13282_v13 = vld [vmem:[#allocation6 + $0x1b78] sm:$0xf0]  ;;  %8881 = vmatmul.bf16.vlgmr.msrb.gmra.mxu0 %v15903_v47 }
 0x76d   :  { %v15347_v37 = vld [vmem:[#allocation6 + $0x1d5c] sm:$0xf]  ;;  %v13285_v5 = vor.u32 %v15283_v4, %v13282_v13  ;;  %8925 = vmatpush.bf16.msra.mxu0 %v14117_v49  ;;  %v8648_v4 = vpop.f32.mrf.mxu2  ;;  %v8674_v13 = vpop.f32.mrf.mxu0 }
 0x76e   :  { %v13538_v16 = vld [vmem:[#allocation6 + $0x1d78] sm:$0xf0] }
 0x76f   :  { %v15419_v6 = vld [vmem:[#allocation6 + $0x1f9c] sm:$0xf]  ;;  %v13541_v28 = vor.u32 %v15347_v37, %v13538_v16  ;;  %8888 = vmatpush.bf16.msrb.mxu1 %v13285_v5  ;;  %v8637_v37 = vpop.f32.mrf.mxu1 }
 0x770   :  { %v13826_v58 = vld [vmem:[#allocation6 + $0x1fb8] sm:$0xf0]  ;;  %v15515_v37 = vld [vmem:[#allocation9 + $0x98] sm:$0xff] }
 0x771   :  { %v15483_v27 = vld [vmem:[#allocation6 + $0x219c] sm:$0xf]  ;;  %v13829_v29 = vor.u32 %v15419_v6, %v13826_v58  ;;  %8901 = vmatpush.bf16.msrb.mxu2 %v13541_v28 }
 0x772   :  { %v14082_v34 = vld [vmem:[#allocation6 + $0x21b8] sm:$0xf0] }
 0x773   :  { %v15275_v60 = vld [vmem:[#allocation6 + $0x1b1c] sm:$0xf]  ;;  %v14085_v38 = vor.u32 %v15483_v27, %v14082_v34  ;;  %8913 = vmatpush.bf16.msrb.mxu3 %v13829_v29 }
 0x774   :  { %v13250_v35 = vld [vmem:[#allocation6 + $0x1b38] sm:$0xf0] }
 0x775   :  { %v15339_v61 = vld [vmem:[#allocation6 + $0x1d1c] sm:$0xf]  ;;  %v13253_v30 = vor.u32 %v15275_v60, %v13250_v35  ;;  %8926 = vmatpush.bf16.msra.mxu0 %v14085_v38  ;;  %v8649_v35 = vadd.f32 %v8648_v4, %v8636_v3  ;;  %v8661_v38 = vpop.f32.mrf.mxu3  ;;  %v15507_v4 = vld [vmem:[#allocation9 + $0x58] sm:$0xff] }
 0x776   :  { %v13506_v0 = vld [vmem:[#allocation6 + $0x1d38] sm:$0xf0] }
 0x777   :  { %v15411_v1 = vld [vmem:[#allocation6 + $0x1f5c] sm:$0xf]  ;;  %v13509_v17 = vor.u32 %v15339_v61, %v13506_v0  ;;  %8889 = vmatpush.bf16.msrb.mxu1 %v13253_v30 }
 0x778   :  { %v13794_v26 = vld [vmem:[#allocation6 + $0x1f78] sm:$0xf0] }
 0x779   :  { %v15475_v54 = vld [vmem:[#allocation6 + $0x215c] sm:$0xf]  ;;  %v13797_v10 = vor.u32 %v15411_v1, %v13794_v26  ;;  %8902 = vmatpush.bf16.msrb.mxu2 %v13509_v17 }
 0x77a   :  { %v14050_v46 = vld [vmem:[#allocation6 + $0x2178] sm:$0xf0] }
 0x77b   :  { %v15267_v12 = vld [vmem:[#allocation6 + $0x1adc] sm:$0xf]  ;;  %v14053_v50 = vor.u32 %v15475_v54, %v14050_v46  ;;  %8914 = vmatpush.bf16.msrb.mxu3 %v13797_v10  ;;  %v8662_v54 = vadd.f32 %v8661_v38, %v8649_v35  ;;  %v15503_v10 = vld [vmem:[#allocation9 + $0x38] sm:$0xff]  ;;  %v15504_v35 = vld [vmem:[#allocation9 + $0x40] sm:$0xff] }
 0x77c   :  { %v13218_v43 = vld [vmem:[#allocation6 + $0x1af8] sm:$0xf0] }
 0x77d   :  { %v15331_v40 = vld [vmem:[#allocation6 + $0x1cdc] sm:$0xf]  ;;  %v13221_v53 = vor.u32 %v15267_v12, %v13218_v43  ;;  %8927 = vmatpush.bf16.msra.mxu0 %v14053_v50 }
 0x77e   :  { %v13474_v44 = vld [vmem:[#allocation6 + $0x1cf8] sm:$0xf0] }
 0x77f   :  { %v15403_v22 = vld [vmem:[#allocation6 + $0x1f1c] sm:$0xf]  ;;  %v13477_v47 = vor.u32 %v15331_v40, %v13474_v44  ;;  %8890 = vmatpush.bf16.msrb.mxu1 %v13221_v53  ;;  %v8650_v40 = vpop.f32.mrf.mxu2  ;;  %v8676_v44 = vpop.f32.mrf.mxu0 }
 0x780   :  { %v13762_v2 = vld [vmem:[#allocation6 + $0x1f38] sm:$0xf0]  ;;  %v15551_v40 = vld [vmem:[#allocation9 + $0x1b8] sm:$0xff]  ;;  %v8941_v44 = vmax.f32 %v16038_v45, 0.0 }
 0x781   :  { %v15467_v24 = vld [vmem:[#allocation6 + $0x211c] sm:$0xf]  ;;  %v13765_v42 = vor.u32 %v15403_v22, %v13762_v2  ;;  %8903 = vmatpush.bf16.msrb.mxu2 %v13477_v47  ;;  %v16125_v22 = vadd.f32 %v8674_v13, %v8662_v54  ;;  %v15516_v13 = vld [vmem:[#allocation9 + $0xa0] sm:$0xff] }
 0x782   :  { %v14018_v25 = vld [vmem:[#allocation6 + $0x2138] sm:$0xf0] }
 0x783   :  { %v15259_v33 = vld [vmem:[#allocation6 + $0x1a9c] sm:$0xf]  ;;  %v14021_v7 = vor.u32 %v15467_v24, %v14018_v25  ;;  %8915 = vmatpush.bf16.msrb.mxu3 %v13765_v42  ;;  %v8663_v42 = vpop.f32.mrf.mxu3 }
 0x784   :  { %v13186_v57 = vld [vmem:[#allocation6 + $0x1ab8] sm:$0xf0] }
 0x785   :  { %v15323_v62 = vld [vmem:[#allocation6 + $0x1c9c] sm:$0xf]  ;;  %v13189_v15 = vor.u32 %v15259_v33, %v13186_v57  ;;  %8928 = vmatpush.bf16.msra.mxu0 %v14021_v7  ;;  %v15527_v7 = vld [vmem:[#allocation9 + $0xf8] sm:$0xff] }
 0x786   :  { %v13442_v63 = vld [vmem:[#allocation6 + $0x1cb8] sm:$0xf0] }
 0x787   :  { %v15395_v9 = vld [vmem:[#allocation6 + $0x1edc] sm:$0xf]  ;;  %v13445_v23 = vor.u32 %v15323_v62, %v13442_v63  ;;  %8891 = vmatpush.bf16.msrb.mxu1 %v13189_v15  ;;  %v15519_v63 = vld [vmem:[#allocation9 + $0xb8] sm:$0xff] }
 0x788   :  { %v13730_v48 = vld [vmem:[#allocation6 + $0x1ef8] sm:$0xf0] }
 0x789   :  { %v15459_v21 = vld [vmem:[#allocation6 + $0x20dc] sm:$0xf]  ;;  %v13733_v41 = vor.u32 %v15395_v9, %v13730_v48  ;;  %8904 = vmatpush.bf16.msrb.mxu2 %v13445_v23  ;;  %v15501_v9 = vld [vmem:[#allocation9 + $0x28] sm:$0xff]  ;;  %v16131_v23 = vpop.f32.mrf.mxu1 }
 0x78a   :  { %v13986_v36 = vld [vmem:[#allocation6 + $0x20f8] sm:$0xf0]  ;;  %v15509_v48 = vld [vmem:[#allocation9 + $0x68] sm:$0xff] }
 0x78b   :  { %v15251_v39 = vld [vmem:[#allocation6 + $0x1a5c] sm:$0xf]  ;;  %v13989_v16 = vor.u32 %v15459_v21, %v13986_v36  ;;  %8916 = vmatpush.bf16.msrb.mxu3 %v13733_v41  ;;  %v15500_v36 = vld [vmem:[#allocation9 + $0x20] sm:$0xff] }
 0x78c   :  { %v13154_v31 = vld [vmem:[#allocation6 + $0x1a78] sm:$0xf0] }
 0x78d   :  { %v15315_v11 = vld [vmem:[#allocation6 + $0x1c5c] sm:$0xf]  ;;  %v13157_v58 = vor.u32 %v15251_v39, %v13154_v31  ;;  %8929 = vmatpush.bf16.msra.mxu0 %v13989_v16  ;;  %v15525_v39 = vld [vmem:[#allocation9 + $0xe8] sm:$0xff]  ;;  %v15499_v31 = vld [vmem:[#allocation9 + $0x18] sm:$0xff] }
 0x78e   :  { %v13410_v20 = vld [vmem:[#allocation6 + $0x1c78] sm:$0xf0] }
 0x78f   :  { %v15387_v49 = vld [vmem:[#allocation6 + $0x1e9c] sm:$0xf]  ;;  %v13413_v34 = vor.u32 %v15315_v11, %v13410_v20  ;;  %8892 = vmatpush.bf16.msrb.mxu1 %v13157_v58  ;;  %v16133_v11 = vpop.f32.mrf.mxu2  ;;  %v16135_v20 = vpop.f32.mrf.mxu0  ;;  %v15505_v58 = vld [vmem:[#allocation9 + $0x48] sm:$0xff] }
 0x790   :  { %v13698_v6 = vld [vmem:[#allocation6 + $0x1eb8] sm:$0xf0] }
 0x791   :  { %v15451_v5 = vld [vmem:[#allocation6 + $0x209c] sm:$0xf]  ;;  %v13701_v29 = vor.u32 %v15387_v49, %v13698_v6  ;;  %8905 = vmatpush.bf16.msrb.mxu2 %v13413_v34  ;;  %v8689_v16 = vpop.f32.mrf.mxu1  ;;  %v15523_v49 = vld [vmem:[#allocation9 + $0xd8] sm:$0xff]  ;;  %v15497_v6 = vld [vmem:[#allocation9 + $0x8] sm:$0xff] }
 0x792   :  { %v13954_v27 = vld [vmem:[#allocation6 + $0x20b8] sm:$0xf0]  ;;  %v15536_v16 = vld [vmem:[#allocation9 + $0x140] sm:$0xff] }
 0x793   :  { %v15243_v28 = vld [vmem:[#allocation6 + $0x1a1c] sm:$0xf]  ;;  %v13957_v1 = vor.u32 %v15451_v5, %v13954_v27  ;;  %8917 = vmatpush.bf16.msrb.mxu3 %v13701_v29  ;;  %v16137_v27 = vpop.f32.mrf.mxu3  ;;  %v15535_v29 = vld [vmem:[#allocation9 + $0x138] sm:$0xff] }
 0x794   :  { %v13122_v60 = vld [vmem:[#allocation6 + $0x1a38] sm:$0xf0] }
 0x795   :  { %v15307_v61 = vld [vmem:[#allocation6 + $0x1c1c] sm:$0xf]  ;;  %v13125_v46 = vor.u32 %v15243_v28, %v13122_v60  ;;  %8930 = vmatpush.bf16.msra.mxu0 %v13957_v1  ;;  %v15496_v28 = vld [vmem:[#allocation9] sm:$0xff]  ;;  %v8938_v60 = vmax.f32 %v15947_v19, 0.0  ;;  %v15543_v1 = vld [vmem:[#allocation9 + $0x178] sm:$0xff] }
 0x796   :  { %v13378_v0 = vld [vmem:[#allocation6 + $0x1c38] sm:$0xf0] }
 0x797   :  { %v15379_v26 = vld [vmem:[#allocation6 + $0x1e5c] sm:$0xf]  ;;  %v13381_v43 = vor.u32 %v15307_v61, %v13378_v0  ;;  %8893 = vmatpush.bf16.msrb.mxu1 %v13125_v46  ;;  %v8939_v61 = vmax.f32 %v15978_v8, 0.0  ;;  %v8702_v0 = vpop.f32.mrf.mxu2  ;;  %v8728_v38 = vpop.f32.mrf.mxu0  ;;  %v8946_v54 = vpack.c.bf16 %v8938_v60, %v8938_v60  ;;  %v15544_v60 = vld [vmem:[#allocation9 + $0x180] sm:$0xff] }
 0x798   :  { %v13666_v30 = vld [vmem:[#allocation6 + $0x1e78] sm:$0xf0] }
 0x799   :  { %v15443_v17 = vld [vmem:[#allocation6 + $0x205c] sm:$0xf]  ;;  %v13669_v50 = vor.u32 %v15379_v26, %v13666_v30  ;;  %8906 = vmatpush.bf16.msrb.mxu2 %v13381_v43  ;;  %v15513_v26 = vld [vmem:[#allocation9 + $0x88] sm:$0xff]  ;;  %v8940_v43 = vmax.f32 %v16010_v32, 0.0  ;;  %v8949_v32 = vpack.c.bf16 %v8941_v44, %v8941_v44 }
 0x79a   :  { %v13922_v12 = vld [vmem:[#allocation6 + $0x2078] sm:$0xf0]  ;;  %8894 = vmatmul.bf16.vlgmr.msrb.gmra.mxu1 %v15905_v52  ;;  %v15508_v52 = vld [vmem:[#allocation9 + $0x60] sm:$0xff]  ;;  %v15521_v30 = vld [vmem:[#allocation9 + $0xc8] sm:$0xff] }
 0x79b   :  { %v13925_v2 = vor.u32 %v15443_v17, %v13922_v12  ;;  %v15371_v3 = vld [vmem:[#allocation6 + $0x1e1c] sm:$0xf]  ;;  %9470 = vmatpush.bf16.msra.mxu1 %v15503_v10  ;;  %8918 = vmatpush.bf16.msrb.mxu3 %v13669_v50  ;;  %v8947_v17 = vpack.c.bf16 %v8939_v61, %v8939_v61  ;;  %v15512_v12 = vld [vmem:[#allocation9 + $0x80] sm:$0xff]  ;;  %v8715_v8 = vpop.f32.mrf.mxu3  ;;  %v15541_v50 = vld [vmem:[#allocation9 + $0x168] sm:$0xff] }
 0x79c   :  { %v13634_v53 = vld [vmem:[#allocation6 + $0x1e38] sm:$0xf0]  ;;  %8907 = vmatmul.bf16.vlgmr.msrb.gmra.mxu2 %v15909_v14  ;;  %v15517_v14 = vld [vmem:[#allocation9 + $0xa8] sm:$0xff]  ;;  %v15520_v10 = vld [vmem:[#allocation9 + $0xc0] sm:$0xff] }
 0x79d   :  { %v15435_v24 = vld [vmem:[#allocation6 + $0x201c] sm:$0xf]  ;;  %9483 = vmatpush.bf16.msra.mxu2 %v15511_v55  ;;  %v13637_v57 = vor.u32 %v15371_v3, %v13634_v53  ;;  %8931 = vmatpush.bf16.msra.mxu0 %v13925_v2  ;;  %v15533_v55 = vld [vmem:[#allocation9 + $0x128] sm:$0xff]  ;;  %v8948_v2 = vpack.c.bf16 %v8940_v43, %v8940_v43  ;;  %v15583_v3 = vld [vmem:[#allocation7] sm:$0xff] }
 0x79e   :  { %v13890_v25 = vld [vmem:[#allocation6 + $0x2038] sm:$0xf0]  ;;  %v1721_v53 = vperm.slane %v15583_v3, 7  ;;  %v15553_v44 = vld [vmem:[#allocation9 + $0x1c8] sm:$0xff] }
 0x79f   :  { %v15502_v47 = vld [vmem:[#allocation9 + $0x30] sm:$0xff]  ;;  %v13893_v62 = vor.u32 %v15435_v24, %v13890_v25  ;;  %8919 = vmatpush.bf16.msrb.mxu3 %v13637_v57  ;;  %v15532_v25 = vld [vmem:[#allocation9 + $0x120] sm:$0xff]  ;;  %v8739_v57 = vpop.f32.mrf.mxu1 }
 0x7a0   :  { %v15510_v33 = vld [vmem:[#allocation9 + $0x70] sm:$0xff]  ;;  %9471 = vmatpush.bf16.msra.mxu1 %v15502_v47  ;;  %v15540_v47 = vld [vmem:[#allocation9 + $0x160] sm:$0xff]  ;;  %v8727_v45 = vadd.f32 %v16135_v20, %v1721_v53  ;;  %v8942_v20 = vmax.f32 %v16072_v51, 0.0 }
 0x7a1   :  { %9484 = vmatpush.bf16.msra.mxu2 %v15510_v33  ;;  %8932 = vmatpush.bf16.msra.mxu0 %v13893_v62  ;;  %v15518_v15 = vld [vmem:[#allocation9 + $0xb0] sm:$0xff]  ;;  %v15549_v33 = vld [vmem:[#allocation9 + $0x1a8] sm:$0xff]  ;;  %v15531_v62 = vld [vmem:[#allocation9 + $0x118] sm:$0xff] }
 0x7a2   :  { %v15526_v21 = vld [vmem:[#allocation9 + $0xf0] sm:$0xff]  ;;  %8920 = vmatmul.bf16.vlgmr.msrb.gmra.mxu3 %v15911_v18  ;;  %v15524_v18 = vld [vmem:[#allocation9 + $0xe0] sm:$0xff]  ;;  %v8740_v42 = vadd.f32 %v8739_v57, %v8727_v45 }
 0x7a3   :  { %9496 = vmatpush.bf16.msra.mxu3 %v15519_v63  ;;  %v15498_v41 = vld [vmem:[#allocation9 + $0x10] sm:$0xff]  ;;  %v15539_v63 = vld [vmem:[#allocation9 + $0x158] sm:$0xff] }
 0x7a4   :  { %9472 = vmatpush.bf16.msra.mxu1 %v15501_v9  ;;  %8933 = vmatmul.bf16.vlgmr.msra.gmra.mxu0 %v15916_v56  ;;  %v15506_v56 = vld [vmem:[#allocation9 + $0x50] sm:$0xff] }
 0x7a5   :  { %9509 = vmatpush.bf16.msrb.mxu0 %v15527_v7  ;;  %9485 = vmatpush.bf16.msra.mxu2 %v15509_v48  ;;  %v15514_v5 = vld [vmem:[#allocation9 + $0x90] sm:$0xff]  ;;  %v15548_v7 = vld [vmem:[#allocation9 + $0x1a0] sm:$0xff] }
 0x7a6   :  { %v15522_v34 = vld [vmem:[#allocation9 + $0xd0] sm:$0xff] }
 0x7a7   :  { %9497 = vmatpush.bf16.msra.mxu3 %v15518_v15  ;;  %v15534_v46 = vld [vmem:[#allocation9 + $0x130] sm:$0xff]  ;;  %v8752_v15 = vpop.f32.mrf.mxu2 }
 0x7a8   :  { %9473 = vmatpush.bf16.msra.mxu1 %v15500_v36  ;;  %v15542_v19 = vld [vmem:[#allocation9 + $0x170] sm:$0xff]  ;;  %v15547_v36 = vld [vmem:[#allocation9 + $0x198] sm:$0xff] }
 0x7a9   :  { %9510 = vmatpush.bf16.msrb.mxu0 %v15526_v21  ;;  %9486 = vmatpush.bf16.msra.mxu2 %v15508_v52  ;;  %v15550_v24 = vld [vmem:[#allocation9 + $0x1b0] sm:$0xff]  ;;  %v8778_v21 = vpop.f32.mrf.mxu0  ;;  %v8753_v52 = vadd.f32 %v8752_v15, %v8740_v42 }
 0x7aa   :  { %v15530_v9 = vld [vmem:[#allocation9 + $0x110] sm:$0xff] }
 0x7ab   :  { %9498 = vmatpush.bf16.msra.mxu3 %v15517_v14  ;;  %v15538_v48 = vld [vmem:[#allocation9 + $0x150] sm:$0xff]  ;;  %v8741_v14 = vpop.f32.mrf.mxu1 }
 0x7ac   :  { %9474 = vmatpush.bf16.msra.mxu1 %v15499_v31  ;;  %v15537_v31 = vld [vmem:[#allocation9 + $0x148] sm:$0xff]  ;;  %v15554_v43 = vld [vmem:[#allocation9 + $0x1d0] sm:$0xff] }
 0x7ad   :  { %9511 = vmatpush.bf16.msrb.mxu0 %v15525_v39  ;;  %9487 = vmatpush.bf16.msra.mxu2 %v15507_v4  ;;  %v15529_v39 = vld [vmem:[#allocation9 + $0x108] sm:$0xff]  ;;  %v15546_v4 = vld [vmem:[#allocation9 + $0x190] sm:$0xff] }
 0x7af   :  { %9499 = vmatpush.bf16.msra.mxu3 %v15516_v13  ;;  %v8688_v13 = vadd.f32 %v16131_v23, %v16125_v22  ;;  %v8950_v22 = vpack.c.bf16 %v8942_v20, %v8942_v20 }
 0x7b0   :  { %9475 = vmatpush.bf16.msra.mxu1 %v15498_v41 }
 0x7b1   :  { %9512 = vmatpush.bf16.msrb.mxu0 %v15524_v18  ;;  %9488 = vmatpush.bf16.msra.mxu2 %v15506_v56  ;;  %v8765_v18 = vpop.f32.mrf.mxu3  ;;  %v15528_v56 = vld [vmem:[#allocation9 + $0x100] sm:$0xff] }
 0x7b2   :  { %v8766_v41 = vadd.f32 %v8765_v18, %v8753_v52 }
 0x7b3   :  { %9500 = vmatpush.bf16.msra.mxu3 %v15515_v37  ;;  %v8701_v37 = vadd.f32 %v16133_v11, %v8688_v13 }
 0x7b4   :  { %9476 = vmatpush.bf16.msra.mxu1 %v15497_v6  ;;  %v8754_v6 = vpop.f32.mrf.mxu2 }
 0x7b5   :  { %9513 = vmatpush.bf16.msrb.mxu0 %v15523_v49  ;;  %9489 = vmatpush.bf16.msra.mxu2 %v15505_v58  ;;  %v8943_v49 = vmax.f32 %v16102_v59, 0.0  ;;  %v8780_v58 = vpop.f32.mrf.mxu0  ;;  %v8791_v59 = vpop.f32.mrf.mxu1 }
 0x7b7   :  { %9501 = vmatpush.bf16.msra.mxu3 %v15514_v5  ;;  %v15545_v5 = vld [vmem:[#allocation9 + $0x188] sm:$0xff]  ;;  %v8951_v23 = vpack.c.bf16 %v8943_v49, %v8943_v49 }
 0x7b8   :  { %9477 = vmatpush.bf16.msra.mxu1 %v15496_v28  ;;  %v8714_v28 = vadd.f32 %v16137_v27, %v8701_v37 }
 0x7b9   :  { %9514 = vmatpush.bf16.msrb.mxu0 %v15522_v34  ;;  %9490 = vmatpush.bf16.msra.mxu2 %v15504_v35  ;;  %v8779_v34 = vadd.f32 %v8778_v21, %v8766_v41  ;;  %v8767_v35 = vpop.f32.mrf.mxu3  ;;  %v15573_v41 = vld [vmem:[#allocation10] ss:$0 sm:$0xff] }
 0x7ba   :  { %v8944_v51 = vmax.f32 %v8714_v28, 0.0 }
 0x7bb   :  { %9502 = vmatpush.bf16.msra.mxu3 %v15513_v26  ;;  %9478 = vmatmul.bf16.vlgmr.msra.gmra.mxu1 %v8946_v54  ;;  %v15557_v54 = vld [vmem:[#allocation9 + $0x1e8] sm:$0xff]  ;;  %v8792_v53 = vadd.f32 %v8791_v59, %v8779_v34 }
 0x7bc   :  { %9522 = vmatpush.bf16.msrb.mxu1 %v15535_v29  ;;  %9491 = vmatmul.bf16.vlgmr.msra.gmra.mxu2 %v8947_v17  ;;  %v8952_v11 = vpack.c.bf16 %v8944_v51, %v8944_v51  ;;  %v8804_v29 = vpop.f32.mrf.mxu2  ;;  %v15556_v17 = vld [vmem:[#allocation9 + $0x1e0] sm:$0xff] }
 0x7bd   :  { %9535 = vmatpush.bf16.msrb.mxu2 %v15543_v1  ;;  %9515 = vmatpush.bf16.msrb.mxu0 %v15521_v30  ;;  %v8830_v61 = vpop.f32.mrf.mxu0  ;;  %v8793_v0 = vpop.f32.mrf.mxu1  ;;  %v15559_v1 = vld [vmem:[#allocation9 + $0x1f8] sm:$0xff]  ;;  %v15558_v30 = vld [vmem:[#allocation9 + $0x1f0] sm:$0xff] }
 0x7bf   :  { %9503 = vmatpush.bf16.msra.mxu3 %v15512_v12  ;;  %v15555_v12 = vld [vmem:[#allocation9 + $0x1d8] sm:$0xff] }
 0x7c0   :  { %9523 = vmatpush.bf16.msrb.mxu1 %v15534_v46 }
 0x7c1   :  { %9536 = vmatpush.bf16.msrb.mxu2 %v15542_v19  ;;  %9516 = vmatpush.bf16.msrb.mxu0 %v15520_v10  ;;  %v8817_v38 = vpop.f32.mrf.mxu3 }
 0x7c2   :  { %9504 = vmatmul.bf16.vlgmr.msra.gmra.mxu3 %v8948_v2 }
 0x7c3   :  { %9548 = vmatpush.bf16.msrb.mxu3 %v15551_v40 }
 0x7c4   :  { %9524 = vmatpush.bf16.msrb.mxu1 %v15533_v55  ;;  %9517 = vmatmul.bf16.vlgmr.msrb.gmra.mxu0 %v8949_v32  ;;  %v8806_v27 = vpop.f32.mrf.mxu2 }
 0x7c5   :  { %9537 = vmatpush.bf16.msrb.mxu2 %v15541_v50  ;;  %9561 = vmatpush.bf16.msra.mxu0 %v15559_v1  ;;  %v8832_v26 = vpop.f32.mrf.mxu0  ;;  %v15552_v50 = vld [vmem:[#allocation9 + $0x1c0] sm:$0xff] }
 0x7c7   :  { %9549 = vmatpush.bf16.msrb.mxu3 %v15550_v24  ;;  %v8805_v24 = vadd.f32 %v8804_v29, %v8792_v53 }
 0x7c8   :  { %9525 = vmatpush.bf16.msrb.mxu1 %v15532_v25 }
 0x7c9   :  { %9538 = vmatpush.bf16.msrb.mxu2 %v15540_v47  ;;  %9562 = vmatpush.bf16.msra.mxu0 %v15558_v30  ;;  %v8819_v46 = vpop.f32.mrf.mxu3  ;;  %v8818_v25 = vadd.f32 %v8817_v38, %v8805_v24  ;;  %v9574_v38 = vlaneseq }
 0x7cb   :  { %9550 = vmatpush.bf16.msrb.mxu3 %v15549_v33  ;;  %v8831_v47 = vadd.f32 %v8830_v61, %v8818_v25  ;;  %v9575_v1 = vshrl.u32 %v9574_v38, 7  ;;  %v9577_v27 = vand.u32 127, %v9574_v38 }
 0x7cc   :  { %9526 = vmatpush.bf16.msrb.mxu1 %v15531_v62 }
 0x7cd   :  { %9539 = vmatpush.bf16.msrb.mxu2 %v15539_v63  ;;  %9563 = vmatpush.bf16.msra.mxu0 %v15557_v54  ;;  %vm9578_vm1 = vcmp.lt.s32.totalorder %v9575_v1, 4  ;;  %vm9579_vm2 = vcmp.lt.s32.totalorder %v9577_v27, 6 }
 0x7ce   :  { %vm9580_vm3 = vmand %vm9578_vm1, %vm9579_vm2 }
 0x7cf   :  { %9551 = vmatpush.bf16.msrb.mxu3 %v15548_v7 }
 0x7d0   :  { %9527 = vmatpush.bf16.msrb.mxu1 %v15530_v9 }
 0x7d1   :  { %9540 = vmatpush.bf16.msrb.mxu2 %v15538_v48  ;;  %9564 = vmatpush.bf16.msra.mxu0 %v15556_v17 }
 0x7d3   :  { %9552 = vmatpush.bf16.msrb.mxu3 %v15547_v36 }
 0x7d4   :  { %9528 = vmatpush.bf16.msrb.mxu1 %v15529_v39 }
 0x7d5   :  { %9541 = vmatpush.bf16.msrb.mxu2 %v15537_v31  ;;  %9565 = vmatpush.bf16.msra.mxu0 %v15555_v12 }
 0x7d7   :  { %9553 = vmatpush.bf16.msrb.mxu3 %v15546_v4  ;;  %v8843_v19 = vpop.f32.mrf.mxu1 }
 0x7d8   :  { %9529 = vmatpush.bf16.msrb.mxu1 %v15528_v56  ;;  %v8844_v45 = vadd.f32 %v8843_v19, %v8831_v47 }
 0x7d9   :  { %9542 = vmatpush.bf16.msrb.mxu2 %v15536_v16  ;;  %9566 = vmatpush.bf16.msra.mxu0 %v15554_v43 }
 0x7db   :  { %9554 = vmatpush.bf16.msrb.mxu3 %v15545_v5  ;;  %9530 = vmatmul.bf16.vlgmr.msrb.gmra.mxu1 %v8950_v22 }
 0x7dc   :  { %9543 = vmatmul.bf16.vlgmr.msrb.gmra.mxu2 %v8951_v23 }
 0x7dd   :  { %9567 = vmatpush.bf16.msra.mxu0 %v15553_v44 }
 0x7df   :  { %9555 = vmatpush.bf16.msrb.mxu3 %v15544_v60  ;;  %v8856_v8 = vpop.f32.mrf.mxu2  ;;  %v8845_v40 = vpop.f32.mrf.mxu1 }
 0x7e0   :  { %v8857_v57 = vadd.f32 %v8856_v8, %v8844_v45 }
 0x7e1   :  { %9568 = vmatpush.bf16.msra.mxu0 %v15552_v50 }
 0x7e2   :  { %9556 = vmatmul.bf16.vlgmr.msrb.gmra.mxu3 %v8952_v11 }
 0x7e7   :  { %v8858_v2 = vpop.f32.mrf.mxu2 }
 0x7e9   :  { %v8882_v10 = vpop.f32.mrf.mxu0 }
 0x7ed   :  { %v8869_v55 = vpop.f32.mrf.mxu3 }
 0x7ee   :  { %v8870_v42 = vadd.f32 %v8869_v55, %v8857_v57 }
 0x7f0   :  { %v8883_v62 = vadd.f32 %v8882_v10, %v8870_v42 }
 0x7f1   :  { %v8884_v3 = vpop.f32.mrf.mxu0 }
 0x7f5   :  { %v8871_v32 = vpop.f32.mrf.mxu3 }
 0x817   :  { %v8895_v33 = vpop.f32.mrf.mxu1 }
 0x818   :  { %v8896_v48 = vadd.f32 %v8895_v33, %v8883_v62 }
 0x81f   :  { %v8908_v63 = vpop.f32.mrf.mxu2  ;;  %v8897_v9 = vpop.f32.mrf.mxu1 }
 0x820   :  { %v8909_v15 = vadd.f32 %v8908_v63, %v8896_v48 }
 0x821   :  { %v8934_v7 = vpop.f32.mrf.mxu0 }
 0x825   :  { %v8921_v21 = vpop.f32.mrf.mxu3 }
 0x826   :  { %v8922_v36 = vadd.f32 %v8921_v21, %v8909_v15 }
 0x827   :  { %v8910_v14 = vpop.f32.mrf.mxu2 }
 0x828   :  { %v8935_v52 = vadd.f32 %v8934_v7, %v8922_v36 }
 0x829   :  { %v8936_v39 = vpop.f32.mrf.mxu0 }
 0x82a   :  { %v8945_v31 = vmax.f32 %v8935_v52, 0.0 }
 0x82c   :  { %v8953_v4 = vpack.c.bf16 %v8945_v31, %v8945_v31 }
 0x82d   :  { %v8923_v13 = vpop.f32.mrf.mxu3 }
 0x82e   :  { %9569 = vmatmul.bf16.vlgmr.msra.gmra.mxu0 %v8953_v4 }
 0x838   :  { %v9479_v18 = vpop.f32.mrf.mxu1 }
 0x839   :  { %v9480_v56 = vadd.f32 %v15573_v41, %v9479_v18 }
 0x83f   :  { %v9492_v20 = vpop.f32.mrf.mxu2 }
 0x840   :  { %v9493_v16 = vadd.f32 %v9492_v20, %v9480_v56  ;;  %v9481_v49 = vpop.f32.mrf.mxu1 }
 0x841   :  { %v9518_v37 = vpop.f32.mrf.mxu0 }
 0x845   :  { %v9505_v6 = vpop.f32.mrf.mxu3 }
 0x846   :  { %v9506_v58 = vadd.f32 %v9505_v6, %v9493_v16 }
 0x847   :  { %v9494_v5 = vpop.f32.mrf.mxu2 }
 0x848   :  { %v9519_v28 = vadd.f32 %v9518_v37, %v9506_v58 }
 0x849   :  { %v9520_v34 = vpop.f32.mrf.mxu0 }
 0x84d   :  { %v9507_v22 = vpop.f32.mrf.mxu3 }
 0x858   :  { %v9531_v23 = vpop.f32.mrf.mxu1 }
 0x859   :  { %v9532_v60 = vadd.f32 %v9531_v23, %v9519_v28 }
 0x85f   :  { %v9544_v51 = vpop.f32.mrf.mxu2 }
 0x860   :  { %v9545_v35 = vadd.f32 %v9544_v51, %v9532_v60  ;;  %v9533_v11 = vpop.f32.mrf.mxu1 }
 0x865   :  { %v9557_v59 = vpop.f32.mrf.mxu3 }
 0x866   :  { %v9558_v29 = vadd.f32 %v9557_v59, %v9545_v35 }
 0x867   :  { %v9546_v61 = vpop.f32.mrf.mxu2 }
 0x86d   :  { %v9559_v0 = vpop.f32.mrf.mxu3 }
 0x8ab   :  { %v9570_v26 = vpop.f32.mrf.mxu0 }
 0x8ac   :  { %v9571_v30 = vadd.f32 %v9570_v26, %v9558_v29 }
 0x8ae   :  { %v9581_v54 = vsel %vm9580_vm3, %v9571_v30, -1e+30 }
 0x8af   :  { %9582 = vmax.xlane.f32.xlu0 %v9581_v54 }
 0x8b3   :  { %v9572_v46 = vpop.f32.mrf.mxu0 }
 0x922   :  { %v9583_v17 = vpop.xlane.xlu0 %9582 }
 0x923   :  { %v9584_v19 = vsub.f32 %v9581_v54, %v9583_v17 }
 0x925   :  { %v9585_v12 = vmul.f32 1.442695, %v9584_v19 }
 0x927   :  { %15574 = vpow2.f32 %v9585_v12 }
 0x92d   :  { %v15575_v43 = vpop.eup %15574 }
 0x92e   :  { %9587 = vadd.xlane.f32.xlu0 %v15575_v43 }
 0x9a1   :  { %v9588_v8 = vpop.xlane.xlu0 %9587 }
 0x9a2   :  { %15576 = vrcp.f32 %v9588_v8  ;;  %v9600_v55 = vand.u32 2147483648, %v9588_v8  ;;  %v9598_v2 = vand.u32 2147483647, %v9588_v8  ;;  %vm9594_vm5 = vweird.f32 %v9588_v8 }
 0x9a4   :  { %v9601_v53 = vor.u32 1.1754944e-38, %v9600_v55  ;;  %vm9599_vm7 = vcmp.eq.f32.partialorder %v9598_v2, 8.507059e+37 }
 0x9a8   :  { %v15577_v10 = vpop.eup %15576 }
 0x9a9   :  { %v9590_v40 = vmul.f32 %v15577_v10, %v9588_v8  ;;  %vm9595_vm4 = vweird.f32 %v15577_v10 }
 0x9aa   :  { %vm9596_vm6 = vmor %vm9594_vm5, %vm9595_vm4 }
 0x9ab   :  { %v9591_v44 = vsub.f32 1.0, %v9590_v40 }
 0x9ad   :  { %v9592_v50 = vmul.f32 %v15577_v10, %v9591_v44 }
 0x9af   :  { %v9593_v3 = vadd.f32 %v15577_v10, %v9592_v50 }
 0x9b1   :  { %v9597_v24 = vsel %vm9596_vm6, %v15577_v10, %v9593_v3 }
 0x9b2   :  { %v9602_v32 = vsel %vm9599_vm7, %v9601_v53, %v9597_v24 }
 0x9b3   :  { %v9603_v25 = vmul.f32 %v15575_v43, %v9602_v32 }
 0x9b5   :  { %9604 = vst [vmem:[%s16160_s7] sm:$0xff] %v9603_v25 }
 0x9b6   :  { %9609 = vsyncpa [#allocation3], 1 }
 0x9b7   :  { %9610 = vsyncpa [#allocation5], 1 }
 0x9b8   :  { %9611 = vsyncpa [#allocation8], 1 }
 0x9b9   :  { %9612 = vsyncpa [#allocation11], 1 }

</bundles_post_ra>
